<compile_context>
chip_gen: v5e
topology: v5e:2x2
jax: 0.10.0
libtpu: 0.0.40
codegen_flags: <defaults>
</compile_context>

<pallas_src>
import numpy as np
import jax
import jax.numpy as jnp
from jax.experimental import pallas as pl
from jax.experimental.pallas import tpu as pltpu

_LANE = 128


# ------------------------------- small helpers ------------------------------

def _round_up(x, m):
    return ((x + m - 1) // m) * m


def _largest_divisor_leq(n, cap):
    for d in range(min(n, cap), 0, -1):
        if n % d == 0:
            return d
    return 1


def _vmem_limit_bytes():
    # ~3/4 of physical VMEM (128 MiB on v5e/v6e, 64 MiB on v7x), capped at 96 MiB.
    try:
        info = pltpu.get_tpu_info()
        cap = int(getattr(info, "vmem_capacity_bytes", 64 * 1024 * 1024))
        return int(min(cap * 3 // 4, 96 * 1024 * 1024))
    except Exception:
        return 48 * 1024 * 1024


def _to_nhwc_ch_padded(x_nchw):
    """NCHW -> NHWC, bf16, channels zero-padded up to a multiple of 128."""
    x = jnp.transpose(x_nchw, (0, 2, 3, 1)).astype(jnp.bfloat16)
    c = x.shape[-1]
    cp = _round_up(c, _LANE)
    if cp != c:
        x = jnp.pad(x, ((0, 0), (0, 0), (0, 0), (0, cp - c)))
    return x


# ----------------------------- ConvTranspose 2x2 -----------------------------

def _convt2x2_kernel(x_ref, w_ref, b_ref, o_ref):
    # x_ref: (1, THu*W1, Cip)  bf16   flattened row tile of the low-res input
    # w_ref: (Cip, 4*Cop)      bf16   columns ordered di*(2*Cop) + dj*Cop + c
    # b_ref: (1, 4*Cop)        f32
    # o_ref: (1, THu, 2, W1, 2*Cop)   (row i, di, col j, dj*Cop+c) -> a *free*
    #                                 row-major reshape away from (2H, 2W, Cop)
    THu = o_ref.shape[1]
    W1 = o_ref.shape[3]
    C2 = o_ref.shape[4]                       # 2*Cop
    y = jnp.dot(x_ref[0], w_ref[...],
                preferred_element_type=jnp.float32) + b_ref[...]
    y0 = y[:, :C2].reshape(THu, W1, C2)       # di = 0 output rows
    y1 = y[:, C2:].reshape(THu, W1, C2)       # di = 1 output rows
    o_ref[0, :, 0, :, :] = y0.astype(o_ref.dtype)
    o_ref[0, :, 1, :, :] = y1.astype(o_ref.dtype)


def conv_transpose2x2(x, wt, bias, row_tile=8):
    """ConvTranspose2d(k=2, s=2). x: (N,H1,W1,Cip) bf16 channel-padded.
    wt: (ci, co, 2, 2) PyTorch layout. Returns (N, 2H1, 2W1, Cop) bf16."""
    N, H1, W1, Cip = x.shape
    ci, co = wt.shape[0], wt.shape[1]
    Cop = _round_up(co, _LANE)
    assert W1 % 8 == 0, "W1 must be a multiple of 8"  # TODO(synk): general widths
    THu = _largest_divisor_leq(H1, row_tile)
    nt = H1 // THu

    # weights packed so that column = di*(2*Cop) + dj*Cop + c  (lane-dense, K=Cip)
    w = jnp.transpose(wt, (0, 2, 3, 1))                    # (cin, di, dj, cout)
    w = jnp.pad(w, ((0, Cip - ci), (0, 0), (0, 0), (0, Cop - co)))
    wm = w.reshape(Cip, 4 * Cop).astype(jnp.bfloat16)
    bm = jnp.tile(jnp.pad(bias, (0, Cop - co)), 4).reshape(1, 4 * Cop)
    bm = bm.astype(jnp.float32)

    xf = x.reshape(N, H1 * W1, Cip)                        # free row-major reshape

    y = pl.pallas_call(
        _convt2x2_kernel,
        out_shape=jax.ShapeDtypeStruct((N, H1, 2, W1, 2 * Cop), jnp.bfloat16),
        grid=(N, nt),
        in_specs=[
            pl.BlockSpec((1, THu * W1, Cip), lambda n, t: (n, t, 0)),
            pl.BlockSpec((Cip, 4 * Cop), lambda n, t: (0, 0)),
            pl.BlockSpec((1, 4 * Cop), lambda n, t: (0, 0)),
        ],
        out_specs=pl.BlockSpec((1, THu, 2, W1, 2 * Cop),
                               lambda n, t: (n, t, 0, 0, 0)),
        compiler_params=pltpu.CompilerParams(
            dimension_semantics=("parallel", "parallel"),
            vmem_limit_bytes=_vmem_limit_bytes()),
    )(xf, wm, bm)
    # free row-major reshape: (N, H1, 2, W1, 2*Cop) == (N, 2H1, 2W1, Cop)
    return y.reshape(N, 2 * H1, 2 * W1, Cop)


# ----------------------- 3x3 conv + folded BN + ReLU -------------------------

def _make_conv3x3_kernel(c_pads):
    """Kernel over a row tile.  Inputs per feature map f: (main, top-halo row,
    bottom-halo row).  Channel concat of the feature maps is fused via the
    window scratch + split-packed weight.  One K=9*sumC matmul per tile."""
    ninp = len(c_pads)
    offs = [sum(c_pads[:i]) for i in range(ninp)]
    sumC = sum(c_pads)

    def kernel(*refs):
        x_refs = refs[:3 * ninp]
        w_ref, scale_ref, shift_ref, o_ref, win_ref, col_ref = refs[3 * ninp:]
        TH = o_ref.shape[1]
        W = o_ref.shape[2]
        Cop = o_ref.shape[3]
        t = pl.program_id(1)
        nt = pl.num_programs(1)
        top_m = (t > 0).astype(win_ref.dtype)          # zero halo at image top
        bot_m = (t < nt - 1).astype(win_ref.dtype)     # zero halo at image bottom

        # Build the halo-padded window (TH+2, W+2, sumC) in VMEM.
        zcol = jnp.zeros((TH + 2, 1, sumC), win_ref.dtype)
        win_ref[:, 0:1, :] = zcol                      # left zero column
        win_ref[:, W + 1:W + 2, :] = zcol              # right zero column
        for f in range(ninp):
            lo, hi = offs[f], offs[f] + c_pads[f]
            win_ref[1:TH + 1, 1:W + 1, lo:hi] = x_refs[3 * f][0]
            win_ref[0:1, 1:W + 1, lo:hi] = x_refs[3 * f + 1][0] * top_m
            win_ref[TH + 1:TH + 2, 1:W + 1, lo:hi] = x_refs[3 * f + 2][0] * bot_m

        # im2col staging -> a single MXU matmul with K = 9*sumC.
        for dy in range(3):
            for dx in range(3):
                k = dy * 3 + dx
                patch = win_ref[dy:dy + TH, dx:dx + W, :]
                col_ref[:, k * sumC:(k + 1) * sumC] = patch.reshape(TH * W, sumC)

        acc = jnp.dot(col_ref[...], w_ref[...],
                      preferred_element_type=jnp.float32)
        y = jnp.maximum(acc * scale_ref[...] + shift_ref[...], 0.0)
        o_ref[...] = y.reshape(TH, W, Cop)[None].astype(o_ref.dtype)

    return kernel


def _pack_conv3x3_weights(w_oihw, split_sizes, c_pads, co_pad):
    """(co, sum(splits), 3, 3) -> (9*sum(c_pads), co_pad) bf16,
    row = (dy*3+dx)*sumC + padded-channel index (matching the im2col layout)."""
    co = w_oihw.shape[0]
    blocks, src = [], 0
    for cr, cp in zip(split_sizes, c_pads):
        wpart = w_oihw[:, src:src + cr]                       # (co, cr, 3, 3)
        src += cr
        wpart = jnp.transpose(wpart, (2, 3, 1, 0))            # (3, 3, cr, co)
        wpart = jnp.pad(wpart, ((0, 0), (0, 0), (0, cp - cr), (0, co_pad - co)))
        blocks.append(wpart)
    w = blocks[0] if len(blocks) == 1 else jnp.concatenate(blocks, axis=2)
    return w.reshape(9 * sum(c_pads), co_pad).astype(jnp.bfloat16)


def conv3x3_bn_relu(xs, split_sizes, w_oihw, scale, shift,
                    out_dtype=jnp.bfloat16, row_tile=8):
    """Conv2d(3x3, pad=1) + folded BN affine + ReLU over the channel-concat of
    the feature maps in `xs` (the concat itself is fused into the kernel)."""
    assert len(xs) == len(split_sizes)
    N, H, W = xs[0].shape[0], xs[0].shape[1], xs[0].shape[2]
    assert W % 8 == 0, "W must be a multiple of 8"    # TODO(synk): general widths
    for x in xs:
        assert x.shape[0] == N and x.shape[1] == H and x.shape[2] == W
        assert x.shape[3] % _LANE == 0
    c_pads = tuple(int(x.shape[3]) for x in xs)
    sumC = sum(c_pads)
    co = w_oihw.shape[0]
    assert w_oihw.shape[1] == sum(split_sizes)
    Cop = _round_up(co, _LANE)
    TH = _largest_divisor_leq(H, row_tile)
    nt = H // TH

    wp = _pack_conv3x3_weights(w_oihw, split_sizes, c_pads, Cop)
    sc = jnp.pad(scale, (0, Cop - co)).reshape(1, Cop).astype(jnp.float32)
    sh = jnp.pad(shift, (0, Cop - co)).reshape(1, Cop).astype(jnp.float32)

    in_specs, ops = [], []
    for x, cp in zip(xs, c_pads):
        # main row tile + 1-row top/bottom halos (clamped; zeroed in-kernel).
        in_specs.append(pl.BlockSpec((1, TH, W, cp),
                                     lambda n, t: (n, t, 0, 0)))
        in_specs.append(pl.BlockSpec(
            (1, 1, W, cp), lambda n, t: (n, jnp.maximum(t * TH - 1, 0), 0, 0)))
        in_specs.append(pl.BlockSpec(
            (1, 1, W, cp), lambda n, t: (n, jnp.minimum(t * TH + TH, H - 1), 0, 0)))
        ops += [x, x, x]
    in_specs += [
        pl.BlockSpec((9 * sumC, Cop), lambda n, t: (0, 0)),
        pl.BlockSpec((1, Cop), lambda n, t: (0, 0)),
        pl.BlockSpec((1, Cop), lambda n, t: (0, 0)),
    ]
    ops += [wp, sc, sh]

    return pl.pallas_call(
        _make_conv3x3_kernel(c_pads),
        out_shape=jax.ShapeDtypeStruct((N, H, W, Cop), out_dtype),
        grid=(N, nt),
        in_specs=in_specs,
        out_specs=pl.BlockSpec((1, TH, W, Cop), lambda n, t: (n, t, 0, 0)),
        scratch_shapes=[
            pltpu.VMEM((TH + 2, W + 2, sumC), jnp.bfloat16),   # halo-padded window
            pltpu.VMEM((TH * W, 9 * sumC), jnp.bfloat16),      # im2col staging
        ],
        compiler_params=pltpu.CompilerParams(
            dimension_semantics=("parallel", "parallel"),
            vmem_limit_bytes=_vmem_limit_bytes()),
    )(*ops)


# ------------------------------ deconv module --------------------------------

def init_deconv_params(key, ci, co, eps=1e-5):
    ks = jax.random.split(key, 14)
    w = lambda k, shape, s=0.1: s * jax.random.normal(k, shape, jnp.float32)

    def fold_bn(kslice, cin, cout):
        k0, k1, k2, k3, k4, k5 = kslice
        cw = w(k0, (cout, cin, 3, 3))
        cb = w(k1, (cout,))
        gamma = 1.0 + w(k2, (cout,))
        beta = w(k3, (cout,))
        rmean = w(k4, (cout,))
        rvar = 1.0 + 0.5 * jnp.abs(jax.random.normal(k5, (cout,), jnp.float32))
        scale = gamma / jnp.sqrt(rvar + eps)
        shift = (cb - rmean) * scale + beta
        return cw, scale, shift

    p = {}
    p["up_w"] = w(ks[0], (ci, co, 2, 2))   # ConvTranspose2d weight (in, out, kH, kW)
    p["up_b"] = w(ks[1], (co,))
    p["c1_w"], p["c1_scale"], p["c1_shift"] = fold_bn(ks[2:8], ci, co)
    p["c2_w"], p["c2_scale"], p["c2_shift"] = fold_bn(ks[8:14], co, co)
    return p


def deconv_forward(params, x1_nchw, x2_nchw):
    ci, co = params["up_w"].shape[0], params["up_w"].shape[1]
    x1 = _to_nhwc_ch_padded(x1_nchw)
    x2 = _to_nhwc_ch_padded(x2_nchw)

    x1 = conv_transpose2x2(x1, params["up_w"], params["up_b"])

    # Mirrors the PyTorch module exactly: diffX = x2.size(2) - x1.size(2) (H
    # diff) is applied to the W axis (pad-left), diffY (W diff) to the H axis.
    # TODO(synk): verify against the real module on non-square inputs.
    diffX = x2.shape[1] - x1.shape[1]
    diffY = x2.shape[2] - x1.shape[2]
    if diffX != 0 or diffY != 0:          # usually 0 -> no extra HBM pass
        x1 = jnp.pad(x1, ((0, 0), (diffY, 0), (diffX, 0), (0, 0)))

    # cat([x2, x1], channel) is fused into the first conv (weight split).
    x = conv3x3_bn_relu([x2, x1], [ci - co, co], params["c1_w"],
                        params["c1_scale"], params["c1_shift"],
                        out_dtype=jnp.bfloat16)
    x = conv3x3_bn_relu([x], [co], params["c2_w"],
                        params["c2_scale"], params["c2_shift"],
                        out_dtype=jnp.float32)
    out = x[..., :co]                      # drop lane-padding channels
    return jnp.transpose(out, (0, 3, 1, 2))  # back to NCHW


# ------------------------------ pure-JAX reference ---------------------------

def _conv3x3_ref(x_nchw, w_oihw, scale, shift):
    y = jax.lax.conv_general_dilated(
        x_nchw, w_oihw, (1, 1), ((1, 1), (1, 1)),
        dimension_numbers=("NCHW", "OIHW", "NCHW"))
    y = y * scale[None, :, None, None] + shift[None, :, None, None]
    return jnp.maximum(y, 0.0)


def reference_forward(params, x1_nchw, x2_nchw):
    wt = params["up_w"]
    N, Ci, H, W = x1_nchw.shape
    Co = wt.shape[1]
    t = jnp.einsum("ncij,codk->noidjk", x1_nchw, wt)
    x1 = t.reshape(N, Co, 2 * H, 2 * W) + params["up_b"][None, :, None, None]
    diffX = x2_nchw.shape[2] - x1.shape[2]
    diffY = x2_nchw.shape[3] - x1.shape[3]
    x1 = jnp.pad(x1, ((0, 0), (0, 0), (diffY, 0), (diffX, 0)))
    x = jnp.concatenate([x2_nchw, x1], axis=1)
    x = _conv3x3_ref(x, params["c1_w"], params["c1_scale"], params["c1_shift"])
    x = _conv3x3_ref(x, params["c2_w"], params["c2_scale"], params["c2_shift"])
    return x


# ----------------------------------- main ------------------------------------

if __name__ == "__main__":
    ci, co = 8, 4
    N, H1, W1 = 2, 8, 8

    key = jax.random.PRNGKey(0)
    kp, kx1, kx2 = jax.random.split(key, 3)
    params = init_deconv_params(kp, ci, co)

    # x1: decoder feature (N, ci, H1, W1); x2: skip feature (N, ci-co, 2H1, 2W1)
    x1 = jax.random.normal(kx1, (N, ci, H1, W1), jnp.float32)
    x2 = jax.random.normal(kx2, (N, ci - co, 2 * H1, 2 * W1), jnp.float32)

    out = jax.jit(deconv_forward)(params, x1, x2)
    out = jax.block_until_ready(out)

    ref = reference_forward(params, x1, x2)
    np.testing.assert_allclose(np.asarray(out), np.asarray(ref),
                               rtol=5e-2, atol=5e-2)
    assert out.shape == (N, co, 2 * H1, 2 * W1)
    print("KERNEL_OK")
</pallas_src>

<mosaic_0001>
module attributes {stable_mosaic.version = 11 : i64} {
  func.func @_convt2x2_kernel(%arg0: i32, %arg1: i32, %arg2: memref<1x64x128xbf16, #tpu.memory_space<vmem>>, %arg3: memref<128x512xbf16, #tpu.memory_space<vmem>>, %arg4: memref<1x512xf32, #tpu.memory_space<vmem>>, %arg5: memref<1x8x2x8x256xbf16, #tpu.memory_space<vmem>>) attributes {dimension_semantics = [#tpu.dimension_semantics<parallel>, #tpu.dimension_semantics<parallel>], iteration_bounds = array<i64: 2, 1>, scalar_prefetch = 0 : i64, scratch_operands = 0 : i64, tpu.core_type = #tpu.core_type<tc>, window_params = [{transform_indices = @transform_0, window_bounds = array<i64: 1, 64, 128>}, {pipeline_mode = #tpu.pipeline_mode<synchronous>, transform_indices = @transform_1, window_bounds = array<i64: 128, 512>}, {pipeline_mode = #tpu.pipeline_mode<synchronous>, transform_indices = @transform_2, window_bounds = array<i64: 1, 512>}, {transform_indices = @transform_3, window_bounds = array<i64: 1, 8, 2, 8, 256>}]} {
    %c0 = arith.constant 0 : index
    %c0_0 = arith.constant 0 : index
    %c0_1 = arith.constant 0 : index
    %0 = vector.load %arg2[%c0, %c0_0, %c0_1] : memref<1x64x128xbf16, #tpu.memory_space<vmem>>, vector<1x64x128xbf16>
    %1 = vector.shape_cast %0 : vector<1x64x128xbf16> to vector<64x128xbf16>
    %c0_2 = arith.constant 0 : index
    %c0_3 = arith.constant 0 : index
    %2 = vector.load %arg3[%c0_2, %c0_3] : memref<128x512xbf16, #tpu.memory_space<vmem>>, vector<128x512xbf16>
    %cst = arith.constant dense<0.000000e+00> : vector<64x512xf32>
    %3 = tpu.matmul %1, %2, %cst {dimension_numbers = #tpu.dot_dimension_numbers<[1], [0], [0], [1], [0, 0, 1, 1], [], []>} : vector<64x128xbf16>, vector<128x512xbf16>, vector<64x512xf32> -> vector<64x512xf32>
    %c0_4 = arith.constant 0 : index
    %c0_5 = arith.constant 0 : index
    %4 = vector.load %arg4[%c0_4, %c0_5] : memref<1x512xf32, #tpu.memory_space<vmem>>, vector<1x512xf32>
    %5 = vector.broadcast %4 : vector<1x512xf32> to vector<64x512xf32>
    %6 = arith.addf %3, %5 : vector<64x512xf32>
    %7 = vector.extract_strided_slice %6 {offsets = [0, 0], sizes = [64, 256], strides = [1, 1]} : vector<64x512xf32> to vector<64x256xf32>
    %8 = vector.shape_cast %7 : vector<64x256xf32> to vector<8x8x256xf32>
    %9 = vector.extract_strided_slice %6 {offsets = [0, 256], sizes = [64, 256], strides = [1, 1]} : vector<64x512xf32> to vector<64x256xf32>
    %10 = vector.shape_cast %9 : vector<64x256xf32> to vector<8x8x256xf32>
    %11 = arith.truncf %8 : vector<8x8x256xf32> to vector<8x8x256xbf16>
    %c0_6 = arith.constant 0 : index
    %c0_7 = arith.constant 0 : index
    %c0_8 = arith.constant 0 : index
    %c0_9 = arith.constant 0 : index
    %c0_10 = arith.constant 0 : index
    %12 = vector.load %arg5[%c0_6, %c0_7, %c0_8, %c0_9, %c0_10] : memref<1x8x2x8x256xbf16, #tpu.memory_space<vmem>>, vector<1x8x1x8x256xbf16>
    %13 = vector.shape_cast %12 : vector<1x8x1x8x256xbf16> to vector<8x8x256xbf16>
    %14 = vector.shape_cast %11 : vector<8x8x256xbf16> to vector<1x8x1x8x256xbf16>
    tpu.vector_store %arg5[%c0_6, %c0_7, %c0_8, %c0_9, %c0_10], %14 {strides = array<i32>} : memref<1x8x2x8x256xbf16, #tpu.memory_space<vmem>>, vector<1x8x1x8x256xbf16>,
    %15 = arith.truncf %10 : vector<8x8x256xf32> to vector<8x8x256xbf16>
    %c0_11 = arith.constant 0 : index
    %c0_12 = arith.constant 0 : index
    %c1 = arith.constant 1 : index
    %c0_13 = arith.constant 0 : index
    %c0_14 = arith.constant 0 : index
    %16 = vector.load %arg5[%c0_11, %c0_12, %c1, %c0_13, %c0_14] : memref<1x8x2x8x256xbf16, #tpu.memory_space<vmem>>, vector<1x8x1x8x256xbf16>
    %17 = vector.shape_cast %16 : vector<1x8x1x8x256xbf16> to vector<8x8x256xbf16>
    %18 = vector.shape_cast %15 : vector<8x8x256xbf16> to vector<1x8x1x8x256xbf16>
    tpu.vector_store %arg5[%c0_11, %c0_12, %c1, %c0_13, %c0_14], %18 {strides = array<i32>} : memref<1x8x2x8x256xbf16, #tpu.memory_space<vmem>>, vector<1x8x1x8x256xbf16>,
    return
  }
  func.func @transform_0(%arg0: i32, %arg1: i32) -> (i32, i32, i32) {
    %c0_i32 = arith.constant 0 : i32
    %c0_i32_0 = arith.constant 0 : i32
    return %arg0, %arg1, %c0_i32 : i32, i32, i32
  }
  func.func @transform_1(%arg0: i32, %arg1: i32) -> (i32, i32) {
    %c0_i32 = arith.constant 0 : i32
    %c0_i32_0 = arith.constant 0 : i32
    %c0_i32_1 = arith.constant 0 : i32
    return %c0_i32, %c0_i32_0 : i32, i32
  }
  func.func @transform_2(%arg0: i32, %arg1: i32) -> (i32, i32) {
    %c0_i32 = arith.constant 0 : i32
    %c0_i32_0 = arith.constant 0 : i32
    %c0_i32_1 = arith.constant 0 : i32
    return %c0_i32, %c0_i32_0 : i32, i32
  }
  func.func @transform_3(%arg0: i32, %arg1: i32) -> (i32, i32, i32, i32, i32) {
    %c0_i32 = arith.constant 0 : i32
    %c0_i32_0 = arith.constant 0 : i32
    %c0_i32_1 = arith.constant 0 : i32
    %c0_i32_2 = arith.constant 0 : i32
    return %arg0, %arg1, %c0_i32, %c0_i32_0, %c0_i32_1 : i32, i32, i32, i32, i32
  }
}

module attributes {stable_mosaic.version = 11 : i64} {
  func.func @kernel(%arg0: i32, %arg1: i32, %arg2: memref<1x8x16x128xbf16, #tpu.memory_space<vmem>>, %arg3: memref<1x1x16x128xbf16, #tpu.memory_space<vmem>>, %arg4: memref<1x1x16x128xbf16, #tpu.memory_space<vmem>>, %arg5: memref<1x8x16x128xbf16, #tpu.memory_space<vmem>>, %arg6: memref<1x1x16x128xbf16, #tpu.memory_space<vmem>>, %arg7: memref<1x1x16x128xbf16, #tpu.memory_space<vmem>>, %arg8: memref<2304x128xbf16, #tpu.memory_space<vmem>>, %arg9: memref<1x128xf32, #tpu.memory_space<vmem>>, %arg10: memref<1x128xf32, #tpu.memory_space<vmem>>, %arg11: memref<1x8x16x128xbf16, #tpu.memory_space<vmem>>, %arg12: memref<10x18x256xbf16, #tpu.memory_space<vmem>>, %arg13: memref<128x2304xbf16, #tpu.memory_space<vmem>>) attributes {dimension_semantics = [#tpu.dimension_semantics<parallel>, #tpu.dimension_semantics<parallel>], iteration_bounds = array<i64: 2, 2>, scalar_prefetch = 0 : i64, scratch_operands = 2 : i64, tpu.core_type = #tpu.core_type<tc>, window_params = [{transform_indices = @transform_0, window_bounds = array<i64: 1, 8, 16, 128>}, {transform_indices = @transform_1, window_bounds = array<i64: 1, 1, 16, 128>}, {transform_indices = @transform_2, window_bounds = array<i64: 1, 1, 16, 128>}, {transform_indices = @transform_3, window_bounds = array<i64: 1, 8, 16, 128>}, {transform_indices = @transform_4, window_bounds = array<i64: 1, 1, 16, 128>}, {transform_indices = @transform_5, window_bounds = array<i64: 1, 1, 16, 128>}, {pipeline_mode = #tpu.pipeline_mode<synchronous>, transform_indices = @transform_6, window_bounds = array<i64: 2304, 128>}, {pipeline_mode = #tpu.pipeline_mode<synchronous>, transform_indices = @transform_7, window_bounds = array<i64: 1, 128>}, {pipeline_mode = #tpu.pipeline_mode<synchronous>, transform_indices = @transform_8, window_bounds = array<i64: 1, 128>}, {transform_indices = @transform_9, window_bounds = array<i64: 1, 8, 16, 128>}]} {
    %c0_i32 = arith.constant 0 : i32
    %0 = arith.cmpi sgt, %arg1, %c0_i32 : i32
    %1 = arith.extui %0 : i1 to i32
    %2 = arith.sitofp %1 : i32 to f32
    %3 = arith.truncf %2 : f32 to bf16
    %c1_i32 = arith.constant 1 : i32
    %4 = arith.cmpi slt, %arg1, %c1_i32 : i32
    %5 = arith.extui %4 : i1 to i32
    %6 = arith.sitofp %5 : i32 to f32
    %7 = arith.truncf %6 : f32 to bf16
    %cst = arith.constant 0.000000e+00 : bf16
    %8 = vector.broadcast %cst : bf16 to vector<10x1x256xbf16>
    %c0 = arith.constant 0 : index
    %c0_0 = arith.constant 0 : index
    %c0_1 = arith.constant 0 : index
    %9 = vector.load %arg12[%c0, %c0_0, %c0_1] : memref<10x18x256xbf16, #tpu.memory_space<vmem>>, vector<10x1x256xbf16>
    tpu.vector_store %arg12[%c0, %c0_0, %c0_1], %8 {strides = array<i32>} : memref<10x18x256xbf16, #tpu.memory_space<vmem>>, vector<10x1x256xbf16>,
    %c0_2 = arith.constant 0 : index
    %c17 = arith.constant 17 : index
    %c0_3 = arith.constant 0 : index
    %10 = vector.load %arg12[%c0_2, %c17, %c0_3] : memref<10x18x256xbf16, #tpu.memory_space<vmem>>, vector<10x1x256xbf16>
    tpu.vector_store %arg12[%c0_2, %c17, %c0_3], %8 {strides = array<i32>} : memref<10x18x256xbf16, #tpu.memory_space<vmem>>, vector<10x1x256xbf16>,
    %c0_4 = arith.constant 0 : index
    %c0_5 = arith.constant 0 : index
    %c0_6 = arith.constant 0 : index
    %c0_7 = arith.constant 0 : index
    %11 = vector.load %arg2[%c0_4, %c0_5, %c0_6, %c0_7] : memref<1x8x16x128xbf16, #tpu.memory_space<vmem>>, vector<1x8x16x128xbf16>
    %12 = vector.shape_cast %11 : vector<1x8x16x128xbf16> to vector<8x16x128xbf16>
    %c1 = arith.constant 1 : index
    %c1_8 = arith.constant 1 : index
    %c0_9 = arith.constant 0 : index
    %13 = vector.load %arg12[%c1, %c1_8, %c0_9] : memref<10x18x256xbf16, #tpu.memory_space<vmem>>, vector<8x16x128xbf16>
    tpu.vector_store %arg12[%c1, %c1_8, %c0_9], %12 {strides = array<i32>} : memref<10x18x256xbf16, #tpu.memory_space<vmem>>, vector<8x16x128xbf16>,
    %c0_10 = arith.constant 0 : index
    %c0_11 = arith.constant 0 : index
    %c0_12 = arith.constant 0 : index
    %c0_13 = arith.constant 0 : index
    %14 = vector.load %arg3[%c0_10, %c0_11, %c0_12, %c0_13] : memref<1x1x16x128xbf16, #tpu.memory_space<vmem>>, vector<1x1x16x128xbf16>
    %15 = vector.shape_cast %14 : vector<1x1x16x128xbf16> to vector<1x16x128xbf16>
    %16 = vector.broadcast %3 : bf16 to vector<1x16x128xbf16>
    %17 = arith.mulf %15, %16 : vector<1x16x128xbf16>
    %c0_14 = arith.constant 0 : index
    %c1_15 = arith.constant 1 : index
    %c0_16 = arith.constant 0 : index
    %18 = vector.load %arg12[%c0_14, %c1_15, %c0_16] : memref<10x18x256xbf16, #tpu.memory_space<vmem>>, vector<1x16x128xbf16>
    tpu.vector_store %arg12[%c0_14, %c1_15, %c0_16], %17 {strides = array<i32>} : memref<10x18x256xbf16, #tpu.memory_space<vmem>>, vector<1x16x128xbf16>,
    %c0_17 = arith.constant 0 : index
    %c0_18 = arith.constant 0 : index
    %c0_19 = arith.constant 0 : index
    %c0_20 = arith.constant 0 : index
    %19 = vector.load %arg4[%c0_17, %c0_18, %c0_19, %c0_20] : memref<1x1x16x128xbf16, #tpu.memory_space<vmem>>, vector<1x1x16x128xbf16>
    %20 = vector.shape_cast %19 : vector<1x1x16x128xbf16> to vector<1x16x128xbf16>
    %21 = vector.broadcast %7 : bf16 to vector<1x16x128xbf16>
    %22 = arith.mulf %20, %21 : vector<1x16x128xbf16>
    %c9 = arith.constant 9 : index
    %c1_21 = arith.constant 1 : index
    %c0_22 = arith.constant 0 : index
    %23 = vector.load %arg12[%c9, %c1_21, %c0_22] : memref<10x18x256xbf16, #tpu.memory_space<vmem>>, vector<1x16x128xbf16>
    tpu.vector_store %arg12[%c9, %c1_21, %c0_22], %22 {strides = array<i32>} : memref<10x18x256xbf16, #tpu.memory_space<vmem>>, vector<1x16x128xbf16>,
    %c0_23 = arith.constant 0 : index
    %c0_24 = arith.constant 0 : index
    %c0_25 = arith.constant 0 : index
    %c0_26 = arith.constant 0 : index
    %24 = vector.load %arg5[%c0_23, %c0_24, %c0_25, %c0_26] : memref<1x8x16x128xbf16, #tpu.memory_space<vmem>>, vector<1x8x16x128xbf16>
    %25 = vector.shape_cast %24 : vector<1x8x16x128xbf16> to vector<8x16x128xbf16>
    %c1_27 = arith.constant 1 : index
    %c1_28 = arith.constant 1 : index
    %c128 = arith.constant 128 : index
    %26 = vector.load %arg12[%c1_27, %c1_28, %c128] : memref<10x18x256xbf16, #tpu.memory_space<vmem>>, vector<8x16x128xbf16>
    tpu.vector_store %arg12[%c1_27, %c1_28, %c128], %25 {strides = array<i32>} : memref<10x18x256xbf16, #tpu.memory_space<vmem>>, vector<8x16x128xbf16>,
    %c0_29 = arith.constant 0 : index
    %c0_30 = arith.constant 0 : index
    %c0_31 = arith.constant 0 : index
    %c0_32 = arith.constant 0 : index
    %27 = vector.load %arg6[%c0_29, %c0_30, %c0_31, %c0_32] : memref<1x1x16x128xbf16, #tpu.memory_space<vmem>>, vector<1x1x16x128xbf16>
    %28 = vector.shape_cast %27 : vector<1x1x16x128xbf16> to vector<1x16x128xbf16>
    %29 = vector.broadcast %3 : bf16 to vector<1x16x128xbf16>
    %30 = arith.mulf %28, %29 : vector<1x16x128xbf16>
    %c0_33 = arith.constant 0 : index
    %c1_34 = arith.constant 1 : index
    %c128_35 = arith.constant 128 : index
    %31 = vector.load %arg12[%c0_33, %c1_34, %c128_35] : memref<10x18x256xbf16, #tpu.memory_space<vmem>>, vector<1x16x128xbf16>
    tpu.vector_store %arg12[%c0_33, %c1_34, %c128_35], %30 {strides = array<i32>} : memref<10x18x256xbf16, #tpu.memory_space<vmem>>, vector<1x16x128xbf16>,
    %c0_36 = arith.constant 0 : index
    %c0_37 = arith.constant 0 : index
    %c0_38 = arith.constant 0 : index
    %c0_39 = arith.constant 0 : index
    %32 = vector.load %arg7[%c0_36, %c0_37, %c0_38, %c0_39] : memref<1x1x16x128xbf16, #tpu.memory_space<vmem>>, vector<1x1x16x128xbf16>
    %33 = vector.shape_cast %32 : vector<1x1x16x128xbf16> to vector<1x16x128xbf16>
    %34 = vector.broadcast %7 : bf16 to vector<1x16x128xbf16>
    %35 = arith.mulf %33, %34 : vector<1x16x128xbf16>
    %c9_40 = arith.constant 9 : index
    %c1_41 = arith.constant 1 : index
    %c128_42 = arith.constant 128 : index
    %36 = vector.load %arg12[%c9_40, %c1_41, %c128_42] : memref<10x18x256xbf16, #tpu.memory_space<vmem>>, vector<1x16x128xbf16>
    tpu.vector_store %arg12[%c9_40, %c1_41, %c128_42], %35 {strides = array<i32>} : memref<10x18x256xbf16, #tpu.memory_space<vmem>>, vector<1x16x128xbf16>,
    %c0_43 = arith.constant 0 : index
    %c0_44 = arith.constant 0 : index
    %c0_45 = arith.constant 0 : index
    %37 = vector.load %arg12[%c0_43, %c0_44, %c0_45] : memref<10x18x256xbf16, #tpu.memory_space<vmem>>, vector<8x16x256xbf16>
    %38 = vector.shape_cast %37 : vector<8x16x256xbf16> to vector<128x256xbf16>
    %c0_46 = arith.constant 0 : index
    %c0_47 = arith.constant 0 : index
    %39 = vector.load %arg13[%c0_46, %c0_47] : memref<128x2304xbf16, #tpu.memory_space<vmem>>, vector<128x256xbf16>
    tpu.vector_store %arg13[%c0_46, %c0_47], %38 {strides = array<i32>} : memref<128x2304xbf16, #tpu.memory_space<vmem>>, vector<128x256xbf16>,
    %c0_48 = arith.constant 0 : index
    %c1_49 = arith.constant 1 : index
    %c0_50 = arith.constant 0 : index
    %40 = vector.load %arg12[%c0_48, %c1_49, %c0_50] : memref<10x18x256xbf16, #tpu.memory_space<vmem>>, vector<8x16x256xbf16>
    %41 = vector.shape_cast %40 : vector<8x16x256xbf16> to vector<128x256xbf16>
    %c0_51 = arith.constant 0 : index
    %c256 = arith.constant 256 : index
    %42 = vector.load %arg13[%c0_51, %c256] : memref<128x2304xbf16, #tpu.memory_space<vmem>>, vector<128x256xbf16>
    tpu.vector_store %arg13[%c0_51, %c256], %41 {strides = array<i32>} : memref<128x2304xbf16, #tpu.memory_space<vmem>>, vector<128x256xbf16>,
    %c0_52 = arith.constant 0 : index
    %c2 = arith.constant 2 : index
    %c0_53 = arith.constant 0 : index
    %43 = vector.load %arg12[%c0_52, %c2, %c0_53] : memref<10x18x256xbf16, #tpu.memory_space<vmem>>, vector<8x16x256xbf16>
    %44 = vector.shape_cast %43 : vector<8x16x256xbf16> to vector<128x256xbf16>
    %c0_54 = arith.constant 0 : index
    %c512 = arith.constant 512 : index
    %45 = vector.load %arg13[%c0_54, %c512] : memref<128x2304xbf16, #tpu.memory_space<vmem>>, vector<128x256xbf16>
    tpu.vector_store %arg13[%c0_54, %c512], %44 {strides = array<i32>} : memref<128x2304xbf16, #tpu.memory_space<vmem>>, vector<128x256xbf16>,
    %c1_55 = arith.constant 1 : index
    %c0_56 = arith.constant 0 : index
    %c0_57 = arith.constant 0 : index
    %46 = vector.load %arg12[%c1_55, %c0_56, %c0_57] : memref<10x18x256xbf16, #tpu.memory_space<vmem>>, vector<8x16x256xbf16>
    %47 = vector.shape_cast %46 : vector<8x16x256xbf16> to vector<128x256xbf16>
    %c0_58 = arith.constant 0 : index
    %c768 = arith.constant 768 : index
    %48 = vector.load %arg13[%c0_58, %c768] : memref<128x2304xbf16, #tpu.memory_space<vmem>>, vector<128x256xbf16>
    tpu.vector_store %arg13[%c0_58, %c768], %47 {strides = array<i32>} : memref<128x2304xbf16, #tpu.memory_space<vmem>>, vector<128x256xbf16>,
    %c1_59 = arith.constant 1 : index
    %c1_60 = arith.constant 1 : index
    %c0_61 = arith.constant 0 : index
    %49 = vector.load %arg12[%c1_59, %c1_60, %c0_61] : memref<10x18x256xbf16, #tpu.memory_space<vmem>>, vector<8x16x256xbf16>
    %50 = vector.shape_cast %49 : vector<8x16x256xbf16> to vector<128x256xbf16>
    %c0_62 = arith.constant 0 : index
    %c1024 = arith.constant 1024 : index
    %51 = vector.load %arg13[%c0_62, %c1024] : memref<128x2304xbf16, #tpu.memory_space<vmem>>, vector<128x256xbf16>
    tpu.vector_store %arg13[%c0_62, %c1024], %50 {strides = array<i32>} : memref<128x2304xbf16, #tpu.memory_space<vmem>>, vector<128x256xbf16>,
    %c1_63 = arith.constant 1 : index
    %c2_64 = arith.constant 2 : index
    %c0_65 = arith.constant 0 : index
    %52 = vector.load %arg12[%c1_63, %c2_64, %c0_65] : memref<10x18x256xbf16, #tpu.memory_space<vmem>>, vector<8x16x256xbf16>
    %53 = vector.shape_cast %52 : vector<8x16x256xbf16> to vector<128x256xbf16>
    %c0_66 = arith.constant 0 : index
    %c1280 = arith.constant 1280 : index
    %54 = vector.load %arg13[%c0_66, %c1280] : memref<128x2304xbf16, #tpu.memory_space<vmem>>, vector<128x256xbf16>
    tpu.vector_store %arg13[%c0_66, %c1280], %53 {strides = array<i32>} : memref<128x2304xbf16, #tpu.memory_space<vmem>>, vector<128x256xbf16>,
    %c2_67 = arith.constant 2 : index
    %c0_68 = arith.constant 0 : index
    %c0_69 = arith.constant 0 : index
    %55 = vector.load %arg12[%c2_67, %c0_68, %c0_69] : memref<10x18x256xbf16, #tpu.memory_space<vmem>>, vector<8x16x256xbf16>
    %56 = vector.shape_cast %55 : vector<8x16x256xbf16> to vector<128x256xbf16>
    %c0_70 = arith.constant 0 : index
    %c1536 = arith.constant 1536 : index
    %57 = vector.load %arg13[%c0_70, %c1536] : memref<128x2304xbf16, #tpu.memory_space<vmem>>, vector<128x256xbf16>
    tpu.vector_store %arg13[%c0_70, %c1536], %56 {strides = array<i32>} : memref<128x2304xbf16, #tpu.memory_space<vmem>>, vector<128x256xbf16>,
    %c2_71 = arith.constant 2 : index
    %c1_72 = arith.constant 1 : index
    %c0_73 = arith.constant 0 : index
    %58 = vector.load %arg12[%c2_71, %c1_72, %c0_73] : memref<10x18x256xbf16, #tpu.memory_space<vmem>>, vector<8x16x256xbf16>
    %59 = vector.shape_cast %58 : vector<8x16x256xbf16> to vector<128x256xbf16>
    %c0_74 = arith.constant 0 : index
    %c1792 = arith.constant 1792 : index
    %60 = vector.load %arg13[%c0_74, %c1792] : memref<128x2304xbf16, #tpu.memory_space<vmem>>, vector<128x256xbf16>
    tpu.vector_store %arg13[%c0_74, %c1792], %59 {strides = array<i32>} : memref<128x2304xbf16, #tpu.memory_space<vmem>>, vector<128x256xbf16>,
    %c2_75 = arith.constant 2 : index
    %c2_76 = arith.constant 2 : index
    %c0_77 = arith.constant 0 : index
    %61 = vector.load %arg12[%c2_75, %c2_76, %c0_77] : memref<10x18x256xbf16, #tpu.memory_space<vmem>>, vector<8x16x256xbf16>
    %62 = vector.shape_cast %61 : vector<8x16x256xbf16> to vector<128x256xbf16>
    %c0_78 = arith.constant 0 : index
    %c2048 = arith.constant 2048 : index
    %63 = vector.load %arg13[%c0_78, %c2048] : memref<128x2304xbf16, #tpu.memory_space<vmem>>, vector<128x256xbf16>
    tpu.vector_store %arg13[%c0_78, %c2048], %62 {strides = array<i32>} : memref<128x2304xbf16, #tpu.memory_space<vmem>>, vector<128x256xbf16>,
    %c0_79 = arith.constant 0 : index
    %c0_80 = arith.constant 0 : index
    %64 = vector.load %arg13[%c0_79, %c0_80] : memref<128x2304xbf16, #tpu.memory_space<vmem>>, vector<128x2304xbf16>
    %c0_81 = arith.constant 0 : index
    %c0_82 = arith.constant 0 : index
    %65 = vector.load %arg8[%c0_81, %c0_82] : memref<2304x128xbf16, #tpu.memory_space<vmem>>, vector<2304x128xbf16>
    %cst_83 = arith.constant dense<0.000000e+00> : vector<128x128xf32>
    %66 = tpu.matmul %64, %65, %cst_83 {dimension_numbers = #tpu.dot_dimension_numbers<[1], [0], [0], [1], [0, 0, 1, 1], [], []>} : vector<128x2304xbf16>, vector<2304x128xbf16>, vector<128x128xf32> -> vector<128x128xf32>
    %c0_84 = arith.constant 0 : index
    %c0_85 = arith.constant 0 : index
    %67 = vector.load %arg9[%c0_84, %c0_85] : memref<1x128xf32, #tpu.memory_space<vmem>>, vector<1x128xf32>
    %68 = vector.broadcast %67 : vector<1x128xf32> to vector<128x128xf32>
    %69 = arith.mulf %66, %68 : vector<128x128xf32>
    %c0_86 = arith.constant 0 : index
    %c0_87 = arith.constant 0 : index
    %70 = vector.load %arg10[%c0_86, %c0_87] : memref<1x128xf32, #tpu.memory_space<vmem>>, vector<1x128xf32>
    %71 = vector.broadcast %70 : vector<1x128xf32> to vector<128x128xf32>
    %72 = arith.addf %69, %71 : vector<128x128xf32>
    %cst_88 = arith.constant 0.000000e+00 : f32
    %73 = vector.broadcast %cst_88 : f32 to vector<128x128xf32>
    %74 = arith.maximumf %72, %73 : vector<128x128xf32>
    %75 = vector.shape_cast %74 : vector<128x128xf32> to vector<8x16x128xf32>
    %76 = vector.shape_cast %75 : vector<8x16x128xf32> to vector<1x8x16x128xf32>
    %77 = arith.truncf %76 : vector<1x8x16x128xf32> to vector<1x8x16x128xbf16>
    %c0_89 = arith.constant 0 : index
    %c0_90 = arith.constant 0 : index
    %c0_91 = arith.constant 0 : index
    %c0_92 = arith.constant 0 : index
    %78 = vector.load %arg11[%c0_89, %c0_90, %c0_91, %c0_92] : memref<1x8x16x128xbf16, #tpu.memory_space<vmem>>, vector<1x8x16x128xbf16>
    tpu.vector_store %arg11[%c0_89, %c0_90, %c0_91, %c0_92], %77 {strides = array<i32>} : memref<1x8x16x128xbf16, #tpu.memory_space<vmem>>, vector<1x8x16x128xbf16>,
    return
  }
  func.func @transform_0(%arg0: i32, %arg1: i32) -> (i32, i32, i32, i32) {
    %c0_i32 = arith.constant 0 : i32
    %c0_i32_0 = arith.constant 0 : i32
    %c0_i32_1 = arith.constant 0 : i32
    return %arg0, %arg1, %c0_i32, %c0_i32_0 : i32, i32, i32, i32
  }
  func.func @transform_1(%arg0: i32, %arg1: i32) -> (i32, i32, i32, i32) {
    %c8_i32 = arith.constant 8 : i32
    %0 = arith.muli %arg1, %c8_i32 : i32
    %c1_i32 = arith.constant 1 : i32
    %1 = arith.subi %0, %c1_i32 : i32
    %c0_i32 = arith.constant 0 : i32
    %2 = arith.maxsi %1, %c0_i32 : i32
    %c0_i32_0 = arith.constant 0 : i32
    %c0_i32_1 = arith.constant 0 : i32
    %c0_i32_2 = arith.constant 0 : i32
    return %arg0, %2, %c0_i32_0, %c0_i32_1 : i32, i32, i32, i32
  }
  func.func @transform_2(%arg0: i32, %arg1: i32) -> (i32, i32, i32, i32) {
    %c8_i32 = arith.constant 8 : i32
    %0 = arith.muli %arg1, %c8_i32 : i32
    %c8_i32_0 = arith.constant 8 : i32
    %1 = arith.addi %0, %c8_i32_0 : i32
    %c15_i32 = arith.constant 15 : i32
    %2 = arith.minsi %1, %c15_i32 : i32
    %c0_i32 = arith.constant 0 : i32
    %c0_i32_1 = arith.constant 0 : i32
    %c0_i32_2 = arith.constant 0 : i32
    return %arg0, %2, %c0_i32, %c0_i32_1 : i32, i32, i32, i32
  }
  func.func @transform_3(%arg0: i32, %arg1: i32) -> (i32, i32, i32, i32) {
    %c0_i32 = arith.constant 0 : i32
    %c0_i32_0 = arith.constant 0 : i32
    %c0_i32_1 = arith.constant 0 : i32
    return %arg0, %arg1, %c0_i32, %c0_i32_0 : i32, i32, i32, i32
  }
  func.func @transform_4(%arg0: i32, %arg1: i32) -> (i32, i32, i32, i32) {
    %c8_i32 = arith.constant 8 : i32
    %0 = arith.muli %arg1, %c8_i32 : i32
    %c1_i32 = arith.constant 1 : i32
    %1 = arith.subi %0, %c1_i32 : i32
    %c0_i32 = arith.constant 0 : i32
    %2 = arith.maxsi %1, %c0_i32 : i32
    %c0_i32_0 = arith.constant 0 : i32
    %c0_i32_1 = arith.constant 0 : i32
    %c0_i32_2 = arith.constant 0 : i32
    return %arg0, %2, %c0_i32_0, %c0_i32_1 : i32, i32, i32, i32
  }
  func.func @transform_5(%arg0: i32, %arg1: i32) -> (i32, i32, i32, i32) {
    %c8_i32 = arith.constant 8 : i32
    %0 = arith.muli %arg1, %c8_i32 : i32
    %c8_i32_0 = arith.constant 8 : i32
    %1 = arith.addi %0, %c8_i32_0 : i32
    %c15_i32 = arith.constant 15 : i32
    %2 = arith.minsi %1, %c15_i32 : i32
    %c0_i32 = arith.constant 0 : i32
    %c0_i32_1 = arith.constant 0 : i32
    %c0_i32_2 = arith.constant 0 : i32
    return %arg0, %2, %c0_i32, %c0_i32_1 : i32, i32, i32, i32
  }
  func.func @transform_6(%arg0: i32, %arg1: i32) -> (i32, i32) {
    %c0_i32 = arith.constant 0 : i32
    %c0_i32_0 = arith.constant 0 : i32
    %c0_i32_1 = arith.constant 0 : i32
    return %c0_i32, %c0_i32_0 : i32, i32
  }
  func.func @transform_7(%arg0: i32, %arg1: i32) -> (i32, i32) {
    %c0_i32 = arith.constant 0 : i32
    %c0_i32_0 = arith.constant 0 : i32
    %c0_i32_1 = arith.constant 0 : i32
    return %c0_i32, %c0_i32_0 : i32, i32
  }
  func.func @transform_8(%arg0: i32, %arg1: i32) -> (i32, i32) {
    %c0_i32 = arith.constant 0 : i32
    %c0_i32_0 = arith.constant 0 : i32
    %c0_i32_1 = arith.constant 0 : i32
    return %c0_i32, %c0_i32_0 : i32, i32
  }
  func.func @transform_9(%arg0: i32, %arg1: i32) -> (i32, i32, i32, i32) {
    %c0_i32 = arith.constant 0 : i32
    %c0_i32_0 = arith.constant 0 : i32
    %c0_i32_1 = arith.constant 0 : i32
    return %arg0, %arg1, %c0_i32, %c0_i32_0 : i32, i32, i32, i32
  }
}

module attributes {stable_mosaic.version = 11 : i64} {
  func.func @kernel(%arg0: i32, %arg1: i32, %arg2: memref<1x8x16x128xbf16, #tpu.memory_space<vmem>>, %arg3: memref<1x1x16x128xbf16, #tpu.memory_space<vmem>>, %arg4: memref<1x1x16x128xbf16, #tpu.memory_space<vmem>>, %arg5: memref<1152x128xbf16, #tpu.memory_space<vmem>>, %arg6: memref<1x128xf32, #tpu.memory_space<vmem>>, %arg7: memref<1x128xf32, #tpu.memory_space<vmem>>, %arg8: memref<1x8x16x128xf32, #tpu.memory_space<vmem>>, %arg9: memref<10x18x128xbf16, #tpu.memory_space<vmem>>, %arg10: memref<128x1152xbf16, #tpu.memory_space<vmem>>) attributes {dimension_semantics = [#tpu.dimension_semantics<parallel>, #tpu.dimension_semantics<parallel>], iteration_bounds = array<i64: 2, 2>, scalar_prefetch = 0 : i64, scratch_operands = 2 : i64, tpu.core_type = #tpu.core_type<tc>, window_params = [{transform_indices = @transform_0, window_bounds = array<i64: 1, 8, 16, 128>}, {transform_indices = @transform_1, window_bounds = array<i64: 1, 1, 16, 128>}, {transform_indices = @transform_2, window_bounds = array<i64: 1, 1, 16, 128>}, {pipeline_mode = #tpu.pipeline_mode<synchronous>, transform_indices = @transform_3, window_bounds = array<i64: 1152, 128>}, {pipeline_mode = #tpu.pipeline_mode<synchronous>, transform_indices = @transform_4, window_bounds = array<i64: 1, 128>}, {pipeline_mode = #tpu.pipeline_mode<synchronous>, transform_indices = @transform_5, window_bounds = array<i64: 1, 128>}, {transform_indices = @transform_6, window_bounds = array<i64: 1, 8, 16, 128>}]} {
    %c0_i32 = arith.constant 0 : i32
    %0 = arith.cmpi sgt, %arg1, %c0_i32 : i32
    %1 = arith.extui %0 : i1 to i32
    %2 = arith.sitofp %1 : i32 to f32
    %3 = arith.truncf %2 : f32 to bf16
    %c1_i32 = arith.constant 1 : i32
    %4 = arith.cmpi slt, %arg1, %c1_i32 : i32
    %5 = arith.extui %4 : i1 to i32
    %6 = arith.sitofp %5 : i32 to f32
    %7 = arith.truncf %6 : f32 to bf16
    %cst = arith.constant 0.000000e+00 : bf16
    %8 = vector.broadcast %cst : bf16 to vector<10x1x128xbf16>
    %c0 = arith.constant 0 : index
    %c0_0 = arith.constant 0 : index
    %c0_1 = arith.constant 0 : index
    %9 = vector.load %arg9[%c0, %c0_0, %c0_1] : memref<10x18x128xbf16, #tpu.memory_space<vmem>>, vector<10x1x128xbf16>
    tpu.vector_store %arg9[%c0, %c0_0, %c0_1], %8 {strides = array<i32>} : memref<10x18x128xbf16, #tpu.memory_space<vmem>>, vector<10x1x128xbf16>,
    %c0_2 = arith.constant 0 : index
    %c17 = arith.constant 17 : index
    %c0_3 = arith.constant 0 : index
    %10 = vector.load %arg9[%c0_2, %c17, %c0_3] : memref<10x18x128xbf16, #tpu.memory_space<vmem>>, vector<10x1x128xbf16>
    tpu.vector_store %arg9[%c0_2, %c17, %c0_3], %8 {strides = array<i32>} : memref<10x18x128xbf16, #tpu.memory_space<vmem>>, vector<10x1x128xbf16>,
    %c0_4 = arith.constant 0 : index
    %c0_5 = arith.constant 0 : index
    %c0_6 = arith.constant 0 : index
    %c0_7 = arith.constant 0 : index
    %11 = vector.load %arg2[%c0_4, %c0_5, %c0_6, %c0_7] : memref<1x8x16x128xbf16, #tpu.memory_space<vmem>>, vector<1x8x16x128xbf16>
    %12 = vector.shape_cast %11 : vector<1x8x16x128xbf16> to vector<8x16x128xbf16>
    %c1 = arith.constant 1 : index
    %c1_8 = arith.constant 1 : index
    %c0_9 = arith.constant 0 : index
    %13 = vector.load %arg9[%c1, %c1_8, %c0_9] : memref<10x18x128xbf16, #tpu.memory_space<vmem>>, vector<8x16x128xbf16>
    tpu.vector_store %arg9[%c1, %c1_8, %c0_9], %12 {strides = array<i32>} : memref<10x18x128xbf16, #tpu.memory_space<vmem>>, vector<8x16x128xbf16>,
    %c0_10 = arith.constant 0 : index
    %c0_11 = arith.constant 0 : index
    %c0_12 = arith.constant 0 : index
    %c0_13 = arith.constant 0 : index
    %14 = vector.load %arg3[%c0_10, %c0_11, %c0_12, %c0_13] : memref<1x1x16x128xbf16, #tpu.memory_space<vmem>>, vector<1x1x16x128xbf16>
    %15 = vector.shape_cast %14 : vector<1x1x16x128xbf16> to vector<1x16x128xbf16>
    %16 = vector.broadcast %3 : bf16 to vector<1x16x128xbf16>
    %17 = arith.mulf %15, %16 : vector<1x16x128xbf16>
    %c0_14 = arith.constant 0 : index
    %c1_15 = arith.constant 1 : index
    %c0_16 = arith.constant 0 : index
    %18 = vector.load %arg9[%c0_14, %c1_15, %c0_16] : memref<10x18x128xbf16, #tpu.memory_space<vmem>>, vector<1x16x128xbf16>
    tpu.vector_store %arg9[%c0_14, %c1_15, %c0_16], %17 {strides = array<i32>} : memref<10x18x128xbf16, #tpu.memory_space<vmem>>, vector<1x16x128xbf16>,
    %c0_17 = arith.constant 0 : index
    %c0_18 = arith.constant 0 : index
    %c0_19 = arith.constant 0 : index
    %c0_20 = arith.constant 0 : index
    %19 = vector.load %arg4[%c0_17, %c0_18, %c0_19, %c0_20] : memref<1x1x16x128xbf16, #tpu.memory_space<vmem>>, vector<1x1x16x128xbf16>
    %20 = vector.shape_cast %19 : vector<1x1x16x128xbf16> to vector<1x16x128xbf16>
    %21 = vector.broadcast %7 : bf16 to vector<1x16x128xbf16>
    %22 = arith.mulf %20, %21 : vector<1x16x128xbf16>
    %c9 = arith.constant 9 : index
    %c1_21 = arith.constant 1 : index
    %c0_22 = arith.constant 0 : index
    %23 = vector.load %arg9[%c9, %c1_21, %c0_22] : memref<10x18x128xbf16, #tpu.memory_space<vmem>>, vector<1x16x128xbf16>
    tpu.vector_store %arg9[%c9, %c1_21, %c0_22], %22 {strides = array<i32>} : memref<10x18x128xbf16, #tpu.memory_space<vmem>>, vector<1x16x128xbf16>,
    %c0_23 = arith.constant 0 : index
    %c0_24 = arith.constant 0 : index
    %c0_25 = arith.constant 0 : index
    %24 = vector.load %arg9[%c0_23, %c0_24, %c0_25] : memref<10x18x128xbf16, #tpu.memory_space<vmem>>, vector<8x16x128xbf16>
    %25 = vector.shape_cast %24 : vector<8x16x128xbf16> to vector<128x128xbf16>
    %c0_26 = arith.constant 0 : index
    %c0_27 = arith.constant 0 : index
    %26 = vector.load %arg10[%c0_26, %c0_27] : memref<128x1152xbf16, #tpu.memory_space<vmem>>, vector<128x128xbf16>
    tpu.vector_store %arg10[%c0_26, %c0_27], %25 {strides = array<i32>} : memref<128x1152xbf16, #tpu.memory_space<vmem>>, vector<128x128xbf16>,
    %c0_28 = arith.constant 0 : index
    %c1_29 = arith.constant 1 : index
    %c0_30 = arith.constant 0 : index
    %27 = vector.load %arg9[%c0_28, %c1_29, %c0_30] : memref<10x18x128xbf16, #tpu.memory_space<vmem>>, vector<8x16x128xbf16>
    %28 = vector.shape_cast %27 : vector<8x16x128xbf16> to vector<128x128xbf16>
    %c0_31 = arith.constant 0 : index
    %c128 = arith.constant 128 : index
    %29 = vector.load %arg10[%c0_31, %c128] : memref<128x1152xbf16, #tpu.memory_space<vmem>>, vector<128x128xbf16>
    tpu.vector_store %arg10[%c0_31, %c128], %28 {strides = array<i32>} : memref<128x1152xbf16, #tpu.memory_space<vmem>>, vector<128x128xbf16>,
    %c0_32 = arith.constant 0 : index
    %c2 = arith.constant 2 : index
    %c0_33 = arith.constant 0 : index
    %30 = vector.load %arg9[%c0_32, %c2, %c0_33] : memref<10x18x128xbf16, #tpu.memory_space<vmem>>, vector<8x16x128xbf16>
    %31 = vector.shape_cast %30 : vector<8x16x128xbf16> to vector<128x128xbf16>
    %c0_34 = arith.constant 0 : index
    %c256 = arith.constant 256 : index
    %32 = vector.load %arg10[%c0_34, %c256] : memref<128x1152xbf16, #tpu.memory_space<vmem>>, vector<128x128xbf16>
    tpu.vector_store %arg10[%c0_34, %c256], %31 {strides = array<i32>} : memref<128x1152xbf16, #tpu.memory_space<vmem>>, vector<128x128xbf16>,
    %c1_35 = arith.constant 1 : index
    %c0_36 = arith.constant 0 : index
    %c0_37 = arith.constant 0 : index
    %33 = vector.load %arg9[%c1_35, %c0_36, %c0_37] : memref<10x18x128xbf16, #tpu.memory_space<vmem>>, vector<8x16x128xbf16>
    %34 = vector.shape_cast %33 : vector<8x16x128xbf16> to vector<128x128xbf16>
    %c0_38 = arith.constant 0 : index
    %c384 = arith.constant 384 : index
    %35 = vector.load %arg10[%c0_38, %c384] : memref<128x1152xbf16, #tpu.memory_space<vmem>>, vector<128x128xbf16>
    tpu.vector_store %arg10[%c0_38, %c384], %34 {strides = array<i32>} : memref<128x1152xbf16, #tpu.memory_space<vmem>>, vector<128x128xbf16>,
    %c1_39 = arith.constant 1 : index
    %c1_40 = arith.constant 1 : index
    %c0_41 = arith.constant 0 : index
    %36 = vector.load %arg9[%c1_39, %c1_40, %c0_41] : memref<10x18x128xbf16, #tpu.memory_space<vmem>>, vector<8x16x128xbf16>
    %37 = vector.shape_cast %36 : vector<8x16x128xbf16> to vector<128x128xbf16>
    %c0_42 = arith.constant 0 : index
    %c512 = arith.constant 512 : index
    %38 = vector.load %arg10[%c0_42, %c512] : memref<128x1152xbf16, #tpu.memory_space<vmem>>, vector<128x128xbf16>
    tpu.vector_store %arg10[%c0_42, %c512], %37 {strides = array<i32>} : memref<128x1152xbf16, #tpu.memory_space<vmem>>, vector<128x128xbf16>,
    %c1_43 = arith.constant 1 : index
    %c2_44 = arith.constant 2 : index
    %c0_45 = arith.constant 0 : index
    %39 = vector.load %arg9[%c1_43, %c2_44, %c0_45] : memref<10x18x128xbf16, #tpu.memory_space<vmem>>, vector<8x16x128xbf16>
    %40 = vector.shape_cast %39 : vector<8x16x128xbf16> to vector<128x128xbf16>
    %c0_46 = arith.constant 0 : index
    %c640 = arith.constant 640 : index
    %41 = vector.load %arg10[%c0_46, %c640] : memref<128x1152xbf16, #tpu.memory_space<vmem>>, vector<128x128xbf16>
    tpu.vector_store %arg10[%c0_46, %c640], %40 {strides = array<i32>} : memref<128x1152xbf16, #tpu.memory_space<vmem>>, vector<128x128xbf16>,
    %c2_47 = arith.constant 2 : index
    %c0_48 = arith.constant 0 : index
    %c0_49 = arith.constant 0 : index
    %42 = vector.load %arg9[%c2_47, %c0_48, %c0_49] : memref<10x18x128xbf16, #tpu.memory_space<vmem>>, vector<8x16x128xbf16>
    %43 = vector.shape_cast %42 : vector<8x16x128xbf16> to vector<128x128xbf16>
    %c0_50 = arith.constant 0 : index
    %c768 = arith.constant 768 : index
    %44 = vector.load %arg10[%c0_50, %c768] : memref<128x1152xbf16, #tpu.memory_space<vmem>>, vector<128x128xbf16>
    tpu.vector_store %arg10[%c0_50, %c768], %43 {strides = array<i32>} : memref<128x1152xbf16, #tpu.memory_space<vmem>>, vector<128x128xbf16>,
    %c2_51 = arith.constant 2 : index
    %c1_52 = arith.constant 1 : index
    %c0_53 = arith.constant 0 : index
    %45 = vector.load %arg9[%c2_51, %c1_52, %c0_53] : memref<10x18x128xbf16, #tpu.memory_space<vmem>>, vector<8x16x128xbf16>
    %46 = vector.shape_cast %45 : vector<8x16x128xbf16> to vector<128x128xbf16>
    %c0_54 = arith.constant 0 : index
    %c896 = arith.constant 896 : index
    %47 = vector.load %arg10[%c0_54, %c896] : memref<128x1152xbf16, #tpu.memory_space<vmem>>, vector<128x128xbf16>
    tpu.vector_store %arg10[%c0_54, %c896], %46 {strides = array<i32>} : memref<128x1152xbf16, #tpu.memory_space<vmem>>, vector<128x128xbf16>,
    %c2_55 = arith.constant 2 : index
    %c2_56 = arith.constant 2 : index
    %c0_57 = arith.constant 0 : index
    %48 = vector.load %arg9[%c2_55, %c2_56, %c0_57] : memref<10x18x128xbf16, #tpu.memory_space<vmem>>, vector<8x16x128xbf16>
    %49 = vector.shape_cast %48 : vector<8x16x128xbf16> to vector<128x128xbf16>
    %c0_58 = arith.constant 0 : index
    %c1024 = arith.constant 1024 : index
    %50 = vector.load %arg10[%c0_58, %c1024] : memref<128x1152xbf16, #tpu.memory_space<vmem>>, vector<128x128xbf16>
    tpu.vector_store %arg10[%c0_58, %c1024], %49 {strides = array<i32>} : memref<128x1152xbf16, #tpu.memory_space<vmem>>, vector<128x128xbf16>,
    %c0_59 = arith.constant 0 : index
    %c0_60 = arith.constant 0 : index
    %51 = vector.load %arg10[%c0_59, %c0_60] : memref<128x1152xbf16, #tpu.memory_space<vmem>>, vector<128x1152xbf16>
    %c0_61 = arith.constant 0 : index
    %c0_62 = arith.constant 0 : index
    %52 = vector.load %arg5[%c0_61, %c0_62] : memref<1152x128xbf16, #tpu.memory_space<vmem>>, vector<1152x128xbf16>
    %cst_63 = arith.constant dense<0.000000e+00> : vector<128x128xf32>
    %53 = tpu.matmul %51, %52, %cst_63 {dimension_numbers = #tpu.dot_dimension_numbers<[1], [0], [0], [1], [0, 0, 1, 1], [], []>} : vector<128x1152xbf16>, vector<1152x128xbf16>, vector<128x128xf32> -> vector<128x128xf32>
    %c0_64 = arith.constant 0 : index
    %c0_65 = arith.constant 0 : index
    %54 = vector.load %arg6[%c0_64, %c0_65] : memref<1x128xf32, #tpu.memory_space<vmem>>, vector<1x128xf32>
    %55 = vector.broadcast %54 : vector<1x128xf32> to vector<128x128xf32>
    %56 = arith.mulf %53, %55 : vector<128x128xf32>
    %c0_66 = arith.constant 0 : index
    %c0_67 = arith.constant 0 : index
    %57 = vector.load %arg7[%c0_66, %c0_67] : memref<1x128xf32, #tpu.memory_space<vmem>>, vector<1x128xf32>
    %58 = vector.broadcast %57 : vector<1x128xf32> to vector<128x128xf32>
    %59 = arith.addf %56, %58 : vector<128x128xf32>
    %cst_68 = arith.constant 0.000000e+00 : f32
    %60 = vector.broadcast %cst_68 : f32 to vector<128x128xf32>
    %61 = arith.maximumf %59, %60 : vector<128x128xf32>
    %62 = vector.shape_cast %61 : vector<128x128xf32> to vector<8x16x128xf32>
    %63 = vector.shape_cast %62 : vector<8x16x128xf32> to vector<1x8x16x128xf32>
    %c0_69 = arith.constant 0 : index
    %c0_70 = arith.constant 0 : index
    %c0_71 = arith.constant 0 : index
    %c0_72 = arith.constant 0 : index
    %64 = vector.load %arg8[%c0_69, %c0_70, %c0_71, %c0_72] : memref<1x8x16x128xf32, #tpu.memory_space<vmem>>, vector<1x8x16x128xf32>
    tpu.vector_store %arg8[%c0_69, %c0_70, %c0_71, %c0_72], %63 {strides = array<i32>} : memref<1x8x16x128xf32, #tpu.memory_space<vmem>>, vector<1x8x16x128xf32>,
    return
  }
  func.func @transform_0(%arg0: i32, %arg1: i32) -> (i32, i32, i32, i32) {
    %c0_i32 = arith.constant 0 : i32
    %c0_i32_0 = arith.constant 0 : i32
    %c0_i32_1 = arith.constant 0 : i32
    return %arg0, %arg1, %c0_i32, %c0_i32_0 : i32, i32, i32, i32
  }
  func.func @transform_1(%arg0: i32, %arg1: i32) -> (i32, i32, i32, i32) {
    %c8_i32 = arith.constant 8 : i32
    %0 = arith.muli %arg1, %c8_i32 : i32
    %c1_i32 = arith.constant 1 : i32
    %1 = arith.subi %0, %c1_i32 : i32
    %c0_i32 = arith.constant 0 : i32
    %2 = arith.maxsi %1, %c0_i32 : i32
    %c0_i32_0 = arith.constant 0 : i32
    %c0_i32_1 = arith.constant 0 : i32
    %c0_i32_2 = arith.constant 0 : i32
    return %arg0, %2, %c0_i32_0, %c0_i32_1 : i32, i32, i32, i32
  }
  func.func @transform_2(%arg0: i32, %arg1: i32) -> (i32, i32, i32, i32) {
    %c8_i32 = arith.constant 8 : i32
    %0 = arith.muli %arg1, %c8_i32 : i32
    %c8_i32_0 = arith.constant 8 : i32
    %1 = arith.addi %0, %c8_i32_0 : i32
    %c15_i32 = arith.constant 15 : i32
    %2 = arith.minsi %1, %c15_i32 : i32
    %c0_i32 = arith.constant 0 : i32
    %c0_i32_1 = arith.constant 0 : i32
    %c0_i32_2 = arith.constant 0 : i32
    return %arg0, %2, %c0_i32, %c0_i32_1 : i32, i32, i32, i32
  }
  func.func @transform_3(%arg0: i32, %arg1: i32) -> (i32, i32) {
    %c0_i32 = arith.constant 0 : i32
    %c0_i32_0 = arith.constant 0 : i32
    %c0_i32_1 = arith.constant 0 : i32
    return %c0_i32, %c0_i32_0 : i32, i32
  }
  func.func @transform_4(%arg0: i32, %arg1: i32) -> (i32, i32) {
    %c0_i32 = arith.constant 0 : i32
    %c0_i32_0 = arith.constant 0 : i32
    %c0_i32_1 = arith.constant 0 : i32
    return %c0_i32, %c0_i32_0 : i32, i32
  }
  func.func @transform_5(%arg0: i32, %arg1: i32) -> (i32, i32) {
    %c0_i32 = arith.constant 0 : i32
    %c0_i32_0 = arith.constant 0 : i32
    %c0_i32_1 = arith.constant 0 : i32
    return %c0_i32, %c0_i32_0 : i32, i32
  }
  func.func @transform_6(%arg0: i32, %arg1: i32) -> (i32, i32, i32, i32) {
    %c0_i32 = arith.constant 0 : i32
    %c0_i32_0 = arith.constant 0 : i32
    %c0_i32_1 = arith.constant 0 : i32
    return %arg0, %arg1, %c0_i32, %c0_i32_0 : i32, i32, i32, i32
  }
}

</mosaic_0001>

<bundles_post_ra>
// kernel: tile.8
= control target key start
LH: loop header
LB: loop body
LE: loop exit
PB: predicated region body
PF: predicated region fallthrough
CT: control target
= control target key end

     0   :  { %s22_s0 = inlined_call_operand.vmem [shape: f32[128], index: 0, kind: input, shape index: {}]   ;;  %s23_s1 = inlined_call_operand.vmem [shape: f32[4,128], index: 1, kind: output, shape index: {}]  }
   0x1   :  { %v4_v0 = vld [vmem:[%s22_s0] ss:$0 sm:$0xff] }
   0x2   :  { %5 = vst [vmem:[%s23_s1] sm:$0xf] %v4_v0 }

// kernel: deconv_forward.3
= control target key start
LH: loop header
LB: loop body
LE: loop exit
PB: predicated region body
PF: predicated region fallthrough
CT: control target
= control target key end

     0   :  { %s957_s12 = smov 0   ;;  %s959_s13 = smov 0   ;;  %s1251_s0 = inlined_call_operand.vmem [shape: bf16[2,64,128], index: 0, kind: input, shape index: {}]   ;;  %s1252_s1 = inlined_call_operand.vmem [shape: bf16[128,512], index: 1, kind: input, shape index: {}]   ;;  %s1253_s2 = inlined_call_operand.vmem [shape: f32[1,512], index: 2, kind: input, shape index: {}]   ;;  %s1254_s3 = inlined_call_operand.vmem [shape: bf16[2,8,2,8,256], index: 3, kind: output, shape index: {}]  }
   0x1   :  { %s961_s14 = smov 0  }
   0x2 LB: > { %s25_s15 = sadd.s32 1, %s931_s13  ;;  %p692_p0 = scmp.ge.s32.totalorder %s935_s14, 1  ;;  %s935_s14 = sphi %s961_s14, %s13_s14   ;;  %s931_s13 = sphi %s959_s13, %s1256_s13   ;;  %s927_s12 = sphi %s957_s12, %s1255_s12  }
   0x3   : > { %p27_p1 = scmp.ge.s32.totalorder %s25_s15, 2  ;;  %p158_p2 = scmp.lt.s32.totalorder %s935_s14, 3 }
   0x5   : > { %s1258_s15 = smov (%p27_p1, %s25_s15), 0  ;;  %p159_p3 = pnand %p692_p0, %p158_p2 }
   0x6   : > { %p192_p4 = scmp.lt.s32.totalorder (!%p159_p3), %s927_s12, 1 }
   0x7   : > { %162 = sbr.rel (%p159_p3) target bundleno = 241 (0xf1), region = 32 }
   0xc   : > { %v827_v0 = vld [vmem:[%s1252_s1 + $0xe0] sm:$0xf]  ;;  %v887_v1 = vld [vmem:[%s1252_s1 + $0xec] sm:$0xf0]  ;;  %v885_v2 = vld [vmem:[%s1252_s1 + $0xe4] sm:$0xf] }
   0xd   : > { %v828_v3 = vor.u32 %v887_v1, %v827_v0  ;;  %v829_v4 = vld [vmem:[%s1252_s1 + $0xf0] sm:$0xf0]  ;;  %v835_v5 = vld [vmem:[%s1252_s1 + $0xe8] sm:$0xf]  ;;  %v888_v6 = vld [vmem:[%s1252_s1 + $0xf4] sm:$0xf0] }
   0xe   : > { %v832_v7 = vor.u32 %v885_v2, %v829_v4  ;;  %v836_v8 = vor.u32 %v888_v6, %v835_v5  ;;  %v886_v9 = vld [vmem:[%s1252_s1 + $0xec] sm:$0xf]  ;;  %v837_v10 = vld [vmem:[%s1252_s1 + $0xf8] sm:$0xf0]  ;;  %v811_v11 = vld [vmem:[%s1252_s1 + $0xc0] sm:$0xf] }
   0xf   : > { %446 = vmatpush.bf16.msra.mxu0 %v828_v3  ;;  %v840_v12 = vor.u32 %v886_v9, %v837_v10  ;;  %v883_v13 = vld [vmem:[%s1252_s1 + $0xcc] sm:$0xf0]  ;;  %v881_v14 = vld [vmem:[%s1252_s1 + $0xc4] sm:$0xf]  ;;  %v813_v15 = vld [vmem:[%s1252_s1 + $0xd0] sm:$0xf0] }
  0x10   : > { %475 = vmatpush.bf16.msra.mxu1 %v832_v7  ;;  %504 = vmatpush.bf16.msra.mxu2 %v836_v8  ;;  %v812_v16 = vor.u32 %v883_v13, %v811_v11  ;;  %v816_v17 = vor.u32 %v881_v14, %v813_v15  ;;  %v819_v18 = vld [vmem:[%s1252_s1 + $0xc8] sm:$0xf]  ;;  %v884_v19 = vld [vmem:[%s1252_s1 + $0xd4] sm:$0xf0]  ;;  %v882_v20 = vld [vmem:[%s1252_s1 + $0xcc] sm:$0xf] }
  0x11   : > { %533 = vmatpush.bf16.msra.mxu3 %v840_v12  ;;  %v820_v21 = vor.u32 %v884_v19, %v819_v18  ;;  %v821_v22 = vld [vmem:[%s1252_s1 + $0xd8] sm:$0xf0]  ;;  %v795_v23 = vld [vmem:[%s1252_s1 + $0xa0] sm:$0xf]  ;;  %v879_v24 = vld [vmem:[%s1252_s1 + $0xac] sm:$0xf0] }
  0x12   : > { %v824_v25 = vor.u32 %v882_v20, %v821_v22  ;;  %v877_v26 = vld [vmem:[%s1252_s1 + $0xa4] sm:$0xf]  ;;  %v797_v27 = vld [vmem:[%s1252_s1 + $0xb0] sm:$0xf0]  ;;  %v803_v28 = vld [vmem:[%s1252_s1 + $0xa8] sm:$0xf]  ;;  %v796_v29 = vor.u32 %v879_v24, %v795_v23 }
  0x13   : > { %447 = vmatpush.bf16.msra.mxu0 %v812_v16  ;;  %v880_v30 = vld [vmem:[%s1252_s1 + $0xb4] sm:$0xf0]  ;;  %v878_v31 = vld [vmem:[%s1252_s1 + $0xac] sm:$0xf]  ;;  %v805_v32 = vld [vmem:[%s1252_s1 + $0xb8] sm:$0xf0]  ;;  %v800_v33 = vor.u32 %v877_v26, %v797_v27 }
  0x14   : > { %476 = vmatpush.bf16.msra.mxu1 %v816_v17  ;;  %505 = vmatpush.bf16.msra.mxu2 %v820_v21  ;;  %v804_v34 = vor.u32 %v880_v30, %v803_v28  ;;  %v779_v35 = vld [vmem:[%s1252_s1 + $0x80] sm:$0xf]  ;;  %v875_v36 = vld [vmem:[%s1252_s1 + $0x8c] sm:$0xf0]  ;;  %v873_v37 = vld [vmem:[%s1252_s1 + $0x84] sm:$0xf]  ;;  %v808_v38 = vor.u32 %v878_v31, %v805_v32 }
  0x15   : > { %534 = vmatpush.bf16.msra.mxu3 %v824_v25  ;;  %v781_v39 = vld [vmem:[%s1252_s1 + $0x90] sm:$0xf0]  ;;  %v787_v40 = vld [vmem:[%s1252_s1 + $0x88] sm:$0xf]  ;;  %v876_v41 = vld [vmem:[%s1252_s1 + $0x94] sm:$0xf0]  ;;  %v780_v44 = vor.u32 %v875_v36, %v779_v35 }
  0x16   : > { %v874_v42 = vld [vmem:[%s1252_s1 + $0x8c] sm:$0xf]  ;;  %v789_v43 = vld [vmem:[%s1252_s1 + $0x98] sm:$0xf0]  ;;  %v784_v45 = vor.u32 %v873_v37, %v781_v39  ;;  %v788_v46 = vor.u32 %v876_v41, %v787_v40  ;;  %v763_v47 = vld [vmem:[%s1252_s1 + $0x60] sm:$0xf] }
  0x17   : > { %448 = vmatpush.bf16.msra.mxu0 %v796_v29  ;;  %v871_v48 = vld [vmem:[%s1252_s1 + $0x6c] sm:$0xf0]  ;;  %v869_v49 = vld [vmem:[%s1252_s1 + $0x64] sm:$0xf]  ;;  %v792_v50 = vor.u32 %v874_v42, %v789_v43  ;;  %v765_v51 = vld [vmem:[%s1252_s1 + $0x70] sm:$0xf0] }
  0x18   : > { %477 = vmatpush.bf16.msra.mxu1 %v800_v33  ;;  %506 = vmatpush.bf16.msra.mxu2 %v804_v34  ;;  %v771_v52 = vld [vmem:[%s1252_s1 + $0x68] sm:$0xf]  ;;  %v872_v53 = vld [vmem:[%s1252_s1 + $0x74] sm:$0xf0]  ;;  %v870_v54 = vld [vmem:[%s1252_s1 + $0x6c] sm:$0xf]  ;;  %v764_v56 = vor.u32 %v871_v48, %v763_v47  ;;  %v768_v57 = vor.u32 %v869_v49, %v765_v51 }
  0x19   : > { %535 = vmatpush.bf16.msra.mxu3 %v808_v38  ;;  %v773_v55 = vld [vmem:[%s1252_s1 + $0x78] sm:$0xf0]  ;;  %v772_v58 = vor.u32 %v872_v53, %v771_v52  ;;  %v747_v59 = vld [vmem:[%s1252_s1 + $0x40] sm:$0xf]  ;;  %v867_v60 = vld [vmem:[%s1252_s1 + $0x4c] sm:$0xf0] }
  0x1a   : > { %v865_v61 = vld [vmem:[%s1252_s1 + $0x44] sm:$0xf]  ;;  %v776_v62 = vor.u32 %v870_v54, %v773_v55  ;;  %v749_v63 = vld [vmem:[%s1252_s1 + $0x50] sm:$0xf0]  ;;  %v755_v0 = vld [vmem:[%s1252_s1 + $0x48] sm:$0xf]  ;;  %v748_v4 = vor.u32 %v867_v60, %v747_v59 }
  0x1b   : > { %449 = vmatpush.bf16.msra.mxu0 %v780_v44  ;;  %v868_v1 = vld [vmem:[%s1252_s1 + $0x54] sm:$0xf0]  ;;  %v866_v2 = vld [vmem:[%s1252_s1 + $0x4c] sm:$0xf]  ;;  %v757_v3 = vld [vmem:[%s1252_s1 + $0x58] sm:$0xf0]  ;;  %v752_v6 = vor.u32 %v865_v61, %v749_v63 }
  0x1c   : > { %478 = vmatpush.bf16.msra.mxu1 %v784_v45  ;;  %507 = vmatpush.bf16.msra.mxu2 %v788_v46  ;;  %v731_v5 = vld [vmem:[%s1252_s1 + $0x20] sm:$0xf]  ;;  %v756_v7 = vor.u32 %v868_v1, %v755_v0  ;;  %v863_v8 = vld [vmem:[%s1252_s1 + $0x2c] sm:$0xf0]  ;;  %v861_v9 = vld [vmem:[%s1252_s1 + $0x24] sm:$0xf]  ;;  %v760_v11 = vor.u32 %v866_v2, %v757_v3 }
  0x1d   : > { %536 = vmatpush.bf16.msra.mxu3 %v792_v50  ;;  %v733_v10 = vld [vmem:[%s1252_s1 + $0x30] sm:$0xf0]  ;;  %v739_v12 = vld [vmem:[%s1252_s1 + $0x28] sm:$0xf]  ;;  %v864_v13 = vld [vmem:[%s1252_s1 + $0x34] sm:$0xf0]  ;;  %v732_v16 = vor.u32 %v863_v8, %v731_v5 }
  0x1e   : > { %v862_v14 = vld [vmem:[%s1252_s1 + $0x2c] sm:$0xf]  ;;  %v741_v15 = vld [vmem:[%s1252_s1 + $0x38] sm:$0xf0]  ;;  %v715_v17 = vld [vmem:[%s1252_s1] sm:$0xf]  ;;  %v736_v18 = vor.u32 %v861_v9, %v733_v10  ;;  %v740_v19 = vor.u32 %v864_v13, %v739_v12 }
  0x1f   : > { %450 = vmatpush.bf16.msra.mxu0 %v764_v56  ;;  %s1260_s12 = smov (!%p192_p4, %s927_s12), 1  ;;  %v859_v20 = vld [vmem:[%s1252_s1 + $0xc] sm:$0xf0]  ;;  %v857_v21 = vld [vmem:[%s1252_s1 + $0x4] sm:$0xf]  ;;  %v744_v23 = vor.u32 %v862_v14, %v741_v15 }
  0x20   : > { %479 = vmatpush.bf16.msra.mxu1 %v768_v57  ;;  %508 = vmatpush.bf16.msra.mxu2 %v772_v58  ;;  %v717_v22 = vld [vmem:[%s1252_s1 + $0x10] sm:$0xf0]  ;;  %v723_v24 = vld [vmem:[%s1252_s1 + $0x8] sm:$0xf]  ;;  %v860_v25 = vld [vmem:[%s1252_s1 + $0x14] sm:$0xf0]  ;;  %v716_v28 = vor.u32 %v859_v20, %v715_v17 }
  0x21   : > { %537 = vmatpush.bf16.msra.mxu3 %v776_v62  ;;  %s851_s25 = sshll.u32 %s1260_s12, 5  ;;  %v858_v26 = vld [vmem:[%s1252_s1 + $0xc] sm:$0xf]  ;;  %v725_v27 = vld [vmem:[%s1252_s1 + $0x18] sm:$0xf0]  ;;  %v720_v29 = vor.u32 %v857_v21, %v717_v22  ;;  %v724_v30 = vor.u32 %v860_v25, %v723_v24  ;;  %s852_s8 = sshll.u32 %s1260_s12, 7 }
  0x22   : > { %s199_s5 = scalar_lea.vmem %s1251_s0, %s851_s25  ;;  %v728_v31 = vor.u32 %v858_v26, %v725_v27  ;;  %v252_v36 = vld [vmem:[%s1253_s2] sm:$0xf]  ;;  %s1190_s11 = scalar_lea.vmem %s1254_s3, %s852_s8 }
  0x23   : > { %451 = vmatpush.bf16.msra.mxu0 %v748_v4  ;;  %v853_v32 = vld [vmem:[%s199_s5] sm:$0xff]  ;;  %v854_v33 = vld [vmem:[%s199_s5 + $0x8] sm:$0xff]  ;;  %v855_v34 = vld [vmem:[%s199_s5 + $0x10] sm:$0xff]  ;;  %v1180_v37 = vperm.slane %v252_v36, 0  ;;  %v1182_v38 = vperm.slane %v252_v36, 1  ;;  %v1192_v44 = vperm.slane %v252_v36, 2 }
  0x24   : > { %480 = vmatpush.bf16.msra.mxu1 %v752_v6  ;;  %509 = vmatpush.bf16.msra.mxu2 %v756_v7  ;;  %v856_v35 = vld [vmem:[%s199_s5 + $0x18] sm:$0xff]  ;;  %v1194_v45 = vperm.slane %v252_v36, 3 }
  0x25   : > { %538 = vmatpush.bf16.msra.mxu3 %v760_v11 }
  0x27   : > { %452 = vmatpush.bf16.msra.mxu0 %v732_v16 }
  0x28   : > { %481 = vmatpush.bf16.msra.mxu1 %v736_v18  ;;  %510 = vmatpush.bf16.msra.mxu2 %v740_v19 }
  0x29   : > { %539 = vmatpush.bf16.msra.mxu3 %v744_v23 }
  0x2b   : > { %453 = vmatpush.bf16.msra.mxu0 %v716_v28 }
  0x2c   : > { %482 = vmatpush.bf16.msra.mxu1 %v720_v29  ;;  %511 = vmatpush.bf16.msra.mxu2 %v724_v30 }
  0x2d   : > { %540 = vmatpush.bf16.msra.mxu3 %v728_v31 }
  0x2e   : > { %454 = vmatmul.bf16.vlgmr.msra.gmra.mxu0 %v853_v32 }
  0x2f   : > { %483 = vmatmul.bf16.vlgmr.msra.gmra.mxu1 %v853_v32  ;;  %512 = vmatmul.bf16.vlgmr.msra.gmra.mxu2 %v853_v32 }
  0x30   : > { %541 = vmatmul.bf16.vlgmr.msra.gmra.mxu3 %v853_v32 }
  0x3e   : > { %459 = vmatmul.bf16.gmra.mxu0 %v854_v33 }
  0x3f   : > { %488 = vmatmul.bf16.gmra.mxu1 %v854_v33  ;;  %517 = vmatmul.bf16.gmra.mxu2 %v854_v33 }
  0x40   : > { %546 = vmatmul.bf16.gmra.mxu3 %v854_v33 }
  0x4e   : > { %464 = vmatmul.bf16.gmra.mxu0 %v855_v34 }
  0x4f   : > { %493 = vmatmul.bf16.gmra.mxu1 %v855_v34  ;;  %522 = vmatmul.bf16.gmra.mxu2 %v855_v34 }
  0x50   : > { %551 = vmatmul.bf16.gmra.mxu3 %v855_v34 }
  0x5e   : > { %469 = vmatmul.bf16.gmra.mxu0 %v856_v35 }
  0x5f   : > { %498 = vmatmul.bf16.gmra.mxu1 %v856_v35  ;;  %527 = vmatmul.bf16.gmra.mxu2 %v856_v35 }
  0x60   : > { %556 = vmatmul.bf16.gmra.mxu3 %v856_v35 }
  0xab   : > { %v455_v39 = vpop.f32.mrf.mxu0 }
  0xac   : > { %v456_v40 = vadd.f32 %v455_v39, %v1180_v37  ;;  %v484_v41 = vpop.f32.mrf.mxu1 }
  0xad   : > { %v485_v42 = vadd.f32 %v484_v41, %v1182_v38 }
  0xaf   : > { %v562_v43 = vpack.c.bf16 %v485_v42, %v456_v40 }
  0xb1   : > { %570 = vst [vmem:[%s1190_s11] sm:$0xff] %v562_v43 }
  0xb2   : > { %v513_v46 = vpop.f32.mrf.mxu2 }
  0xb3   : > { %v514_v47 = vadd.f32 %v513_v46, %v1192_v44  ;;  %v542_v48 = vpop.f32.mrf.mxu3  ;;  %v457_v49 = vpop.f32.mrf.mxu0 }
  0xb4   : > { %v543_v50 = vadd.f32 %v542_v48, %v1194_v45  ;;  %v458_v51 = vadd.f32 %v457_v49, %v1180_v37  ;;  %v486_v52 = vpop.f32.mrf.mxu1 }
  0xb5   : > { %v487_v53 = vadd.f32 %v486_v52, %v1182_v38 }
  0xb6   : > { %v578_v54 = vpack.c.bf16 %v543_v50, %v514_v47 }
  0xb7   : > { %v563_v55 = vpack.c.bf16 %v487_v53, %v458_v51 }
  0xb8   : > { %841 = vst [vmem:[%s1190_s11 + $0x8] sm:$0xff] %v578_v54 }
  0xb9   : > { %571 = vst [vmem:[%s1190_s11 + $0x10] sm:$0xff] %v563_v55 }
  0xba   : > { %v515_v56 = vpop.f32.mrf.mxu2 }
  0xbb   : > { %v516_v57 = vadd.f32 %v515_v56, %v1192_v44  ;;  %v544_v58 = vpop.f32.mrf.mxu3  ;;  %v460_v59 = vpop.f32.mrf.mxu0 }
  0xbc   : > { %v545_v60 = vadd.f32 %v544_v58, %v1194_v45  ;;  %v461_v61 = vadd.f32 %v460_v59, %v1180_v37  ;;  %v489_v62 = vpop.f32.mrf.mxu1 }
  0xbd   : > { %v490_v63 = vadd.f32 %v489_v62, %v1182_v38 }
  0xbe   : > { %v579_v0 = vpack.c.bf16 %v545_v60, %v516_v57 }
  0xbf   : > { %v564_v1 = vpack.c.bf16 %v490_v63, %v461_v61 }
  0xc0   : > { %842 = vst [vmem:[%s1190_s11 + $0x18] sm:$0xff] %v579_v0 }
  0xc1   : > { %572 = vst [vmem:[%s1190_s11 + $0x20] sm:$0xff] %v564_v1 }
  0xc2   : > { %v518_v2 = vpop.f32.mrf.mxu2 }
  0xc3   : > { %v519_v3 = vadd.f32 %v518_v2, %v1192_v44  ;;  %v547_v4 = vpop.f32.mrf.mxu3  ;;  %v462_v5 = vpop.f32.mrf.mxu0 }
  0xc4   : > { %v548_v6 = vadd.f32 %v547_v4, %v1194_v45  ;;  %v463_v7 = vadd.f32 %v462_v5, %v1180_v37  ;;  %v491_v8 = vpop.f32.mrf.mxu1 }
  0xc5   : > { %v492_v9 = vadd.f32 %v491_v8, %v1182_v38 }
  0xc6   : > { %v580_v10 = vpack.c.bf16 %v548_v6, %v519_v3 }
  0xc7   : > { %v565_v11 = vpack.c.bf16 %v492_v9, %v463_v7 }
  0xc8   : > { %843 = vst [vmem:[%s1190_s11 + $0x28] sm:$0xff] %v580_v10 }
  0xc9   : > { %573 = vst [vmem:[%s1190_s11 + $0x30] sm:$0xff] %v565_v11 }
  0xca   : > { %v520_v12 = vpop.f32.mrf.mxu2 }
  0xcb   : > { %v521_v13 = vadd.f32 %v520_v12, %v1192_v44  ;;  %v549_v14 = vpop.f32.mrf.mxu3  ;;  %v465_v15 = vpop.f32.mrf.mxu0 }
  0xcc   : > { %v550_v16 = vadd.f32 %v549_v14, %v1194_v45  ;;  %v466_v17 = vadd.f32 %v465_v15, %v1180_v37  ;;  %v494_v18 = vpop.f32.mrf.mxu1 }
  0xcd   : > { %v495_v19 = vadd.f32 %v494_v18, %v1182_v38 }
  0xce   : > { %v581_v20 = vpack.c.bf16 %v550_v16, %v521_v13 }
  0xcf   : > { %v566_v21 = vpack.c.bf16 %v495_v19, %v466_v17 }
  0xd0   : > { %844 = vst [vmem:[%s1190_s11 + $0x38] sm:$0xff] %v581_v20 }
  0xd1   : > { %574 = vst [vmem:[%s1190_s11 + $0x40] sm:$0xff] %v566_v21 }
  0xd2   : > { %v523_v22 = vpop.f32.mrf.mxu2 }
  0xd3   : > { %v524_v23 = vadd.f32 %v523_v22, %v1192_v44  ;;  %v552_v24 = vpop.f32.mrf.mxu3  ;;  %v467_v25 = vpop.f32.mrf.mxu0 }
  0xd4   : > { %v553_v26 = vadd.f32 %v552_v24, %v1194_v45  ;;  %v468_v27 = vadd.f32 %v467_v25, %v1180_v37  ;;  %v496_v28 = vpop.f32.mrf.mxu1 }
  0xd5   : > { %v497_v29 = vadd.f32 %v496_v28, %v1182_v38 }
  0xd6   : > { %v582_v30 = vpack.c.bf16 %v553_v26, %v524_v23 }
  0xd7   : > { %v567_v31 = vpack.c.bf16 %v497_v29, %v468_v27 }
  0xd8   : > { %845 = vst [vmem:[%s1190_s11 + $0x48] sm:$0xff] %v582_v30 }
  0xd9   : > { %575 = vst [vmem:[%s1190_s11 + $0x50] sm:$0xff] %v567_v31 }
  0xda   : > { %v525_v32 = vpop.f32.mrf.mxu2 }
  0xdb   : > { %v526_v33 = vadd.f32 %v525_v32, %v1192_v44  ;;  %v554_v34 = vpop.f32.mrf.mxu3  ;;  %v470_v35 = vpop.f32.mrf.mxu0 }
  0xdc   : > { %v555_v36 = vadd.f32 %v554_v34, %v1194_v45  ;;  %v471_v39 = vadd.f32 %v470_v35, %v1180_v37  ;;  %v499_v40 = vpop.f32.mrf.mxu1 }
  0xdd   : > { %v500_v41 = vadd.f32 %v499_v40, %v1182_v38 }
  0xde   : > { %v583_v42 = vpack.c.bf16 %v555_v36, %v526_v33 }
  0xdf   : > { %v568_v43 = vpack.c.bf16 %v500_v41, %v471_v39 }
  0xe0   : > { %846 = vst [vmem:[%s1190_s11 + $0x58] sm:$0xff] %v583_v42 }
  0xe1   : > { %576 = vst [vmem:[%s1190_s11 + $0x60] sm:$0xff] %v568_v43 }
  0xe2   : > { %v528_v46 = vpop.f32.mrf.mxu2 }
  0xe3   : > { %v529_v47 = vadd.f32 %v528_v46, %v1192_v44  ;;  %v557_v48 = vpop.f32.mrf.mxu3  ;;  %v472_v49 = vpop.f32.mrf.mxu0 }
  0xe4   : > { %v558_v50 = vadd.f32 %v557_v48, %v1194_v45  ;;  %v473_v51 = vadd.f32 %v472_v49, %v1180_v37  ;;  %v501_v52 = vpop.f32.mrf.mxu1 }
  0xe5   : > { %v502_v53 = vadd.f32 %v501_v52, %v1182_v38 }
  0xe6   : > { %v584_v54 = vpack.c.bf16 %v558_v50, %v529_v47 }
  0xe7   : > { %v569_v55 = vpack.c.bf16 %v502_v53, %v473_v51 }
  0xe8   : > { %847 = vst [vmem:[%s1190_s11 + $0x68] sm:$0xff] %v584_v54 }
  0xe9   : > { %577 = vst [vmem:[%s1190_s11 + $0x70] sm:$0xff] %v569_v55 }
  0xea   : > { %v530_v56 = vpop.f32.mrf.mxu2 }
  0xeb   : > { %v531_v57 = vadd.f32 %v530_v56, %v1192_v44  ;;  %v559_v58 = vpop.f32.mrf.mxu3 }
  0xec   : > { %v560_v59 = vadd.f32 %v559_v58, %v1194_v45 }
  0xee   : > { %v585_v60 = vpack.c.bf16 %v560_v59, %v531_v57 }
  0xf0   : > { %848 = vst [vmem:[%s1190_s11 + $0x78] sm:$0xff] %v585_v60 }
  0xf1 PF: > { %s13_s14 = sadd.s32 1, %s935_s14   ;;  %s1255_s12 = smov %s931_s13 }
  0xf2   : > { %p10_p5 = scmp.ge.s32.totalorder %s13_s14, 4   ;;  %s1256_s13 = smov %s1258_s15 }
  0xf4   :  { %12 = sbr.rel (!%p10_p5) target bundleno = 2 (0x2), region = 63 }

// kernel: deconv_forward.5
= control target key start
LH: loop header
LB: loop body
LE: loop exit
PB: predicated region body
PF: predicated region fallthrough
CT: control target
= control target key end

     0   :  { %s4696_s21 = smov 0   ;;  %s4698_s22 = smov 0   ;;  %s5615_s0 = inlined_call_operand.vmem [shape: bf16[2,16,16,128], index: 0, kind: input, shape index: {}, may-alias: {0,1,2}]   ;;  %s5616_s1 = inlined_call_operand.vmem [shape: bf16[2,16,16,128], index: 1, kind: input, shape index: {}, may-alias: {0,1,2}]   ;;  %s5617_s2 = inlined_call_operand.vmem [shape: bf16[2,16,16,128], index: 2, kind: input, shape index: {}, may-alias: {0,1,2}]   ;;  %s5618_s3 = inlined_call_operand.vmem [shape: bf16[1152,128], index: 3, kind: input, shape index: {}]   ;;  %s5619_s4 = inlined_call_operand.vmem [shape: f32[1,128], index: 4, kind: input, shape index: {}]   ;;  %s5620_s5 = inlined_call_operand.vmem [shape: f32[1,128], index: 5, kind: input, shape index: {}]   ;;  %s5621_s6 = inlined_call_operand.vmem [shape: f32[2,16,16,128], index: 6, kind: output, shape index: {}]  }
   0x1   :  { %s4700_s23 = smov 0   ;;  %s4702_s24 = smov 0  }
   0x2   :  { %s4704_s25 = smov 0  }
   0x3 LB: > { %s25_s26 = sadd.s32 1, %s4651_s23  ;;  %s28_s27 = sadd.s32 1, %s4655_s24  ;;  %s4659_s25 = sphi %s4704_s25, %s16_s25   ;;  %s4655_s24 = sphi %s4702_s24, %s5638_s24   ;;  %s4651_s23 = sphi %s4700_s23, %s5637_s23   ;;  %s4647_s22 = sphi %s4698_s22, %s5636_s22   ;;  %s4643_s21 = sphi %s4696_s21, %s5635_s21  }
   0x4   : > { %p26_p0 = scmp.ge.s32.totalorder %s25_s26, 2  ;;  %p3773_p1 = scmp.ge.s32.totalorder %s4659_s25, 1 }
   0x5   : > { %p298_p2 = scmp.lt.s32.totalorder %s4659_s25, 5 }
   0x6   : > { %s5640_s26 = smov (%p26_p0, %s25_s26), 0  ;;  %s5642_s27 = smov (!%p26_p0, %s28_s27), %s4655_s24 }
   0x7   : > { %p299_p3 = pnand %p3773_p1, %p298_p2  ;;  %p30_p4 = scmp.ge.s32.totalorder %s5642_s27, 2 }
   0x8   : > { %s4732_s30 = sshll.u32 (!%p299_p3), %s4643_s21, 3  ;;  %p365_p5 = scmp.lt.s32.totalorder (!%p299_p3), %s4647_s22, 1 }
   0x9   : > { %s5644_s27 = smov (%p30_p4, %s5642_s27), 0  ;;  %302 = sbr.rel (%p299_p3) target bundleno = 499 (0x1f3), region = 44 }
   0xa   : > { %p367_p6 = scmp.lt.s32.totalorder (!%p299_p3), %s4732_s30, 15  ;;  %s4754_s12 = sadd.s32 (!%p299_p3), 4294967295, %s4732_s30 }
   0xb   : > { %p377_p7 = scmp.gt.s32.totalorder (!%p299_p3), %s4754_s12, 0  ;;  %p421_p8 = scmp.gt.s32.totalorder (!%p299_p3), %s4643_s21, 0 }
   0xc   : > { %p3780_p9 = scmp.lt.s32.totalorder (!%p299_p3), %s4754_s12, 15  ;;  %p434_p12 = scmp.lt.s32.totalorder (!%p299_p3), %s4643_s21, 1 }
   0xe   : > { %v4482_v0 = vld [vmem:[%s5618_s3 + $0x38] sm:$0xff]  ;;  %vm447_vm0 = vcmask 1040384   ;;  %vm448_vm1 = vsmask.f32 256  ;;  %v4481_v1 = vld [vmem:[%s5618_s3 + $0x30] sm:$0xff]  ;;  %s5646_s22 = smov (!%p365_p5, %s4647_s22), 1 }
   0xf   : > { %4555 = vmatpush.bf16.msra.mxu1 %v4482_v0  ;;  %4556 = vmatpush.bf16.msra.mxu2 %v4482_v0  ;;  %vm4740_vm2 = vmand %vm447_vm0, %vm448_vm1  ;;  %s368_s9 = scalar_select %p367_p6, %s4732_s30, 15  ;;  %v456_v3 = vld [vmem:[#allocation2 + $0x18] sm:$0x1]  ;;  %v462_v5 = vld [vmem:[#allocation2 + $0x30] sm:$0x1]  ;;  %vm691_vm5 = vcmask 1043456  }
  0x10   : > { %4557 = vmatpush.bf16.msra.mxu3 %v4482_v0  ;;  %3109 = vmatpush.bf16.msra.mxu0 %v4482_v0  ;;  %s4745_s10 = sshll.u32 %s5646_s22, 5  ;;  %v457_v4 = vsel %vm4740_vm2, 0, %v456_v3  ;;  %v468_v6 = vld [vmem:[#allocation2 + $0x48] sm:$0x1]  ;;  %v463_v7 = vsel %vm4740_vm2, 0, %v462_v5  ;;  %v4479_v12 = vld [vmem:[%s5618_s3 + $0x20] sm:$0xff] }
  0x11   : > { %s3775_s11 = sshll.u32 %s368_s9, 1  ;;  %458 = vst [vmem:[#allocation2 + $0x18] sm:$0x1] %v457_v4  ;;  %v469_v8 = vsel %vm4740_vm2, 0, %v468_v6  ;;  %v4480_v9 = vld [vmem:[%s5618_s3 + $0x28] sm:$0xff]  ;;  %v4478_v35 = vld [vmem:[%s5618_s3 + $0x18] sm:$0xff] }
  0x12   : > { %s4760_s15 = sadd.s32 %s4745_s10, %s3775_s11  ;;  %464 = vst [vmem:[#allocation2 + $0x30] sm:$0x1] %v463_v7  ;;  %v450_v10 = vld [vmem:[#allocation2] sm:$0x1]  ;;  %vm480_vm3 = vsmask.f32 7938 }
  0x13   : > { %4558 = vmatpush.bf16.msra.mxu1 %v4481_v1  ;;  %4559 = vmatpush.bf16.msra.mxu2 %v4481_v1  ;;  %s3777_s16 = sshll.u32 %s4760_s15, 2  ;;  %470 = vst [vmem:[#allocation2 + $0x48] sm:$0x1] %v469_v8  ;;  %v451_v11 = vsel %vm4740_vm2, 0, %v450_v10  ;;  %vm528_vm4 = vsmask.f32 4368  ;;  %vm4790_vm7 = vmand %vm691_vm5, %vm480_vm3 }
  0x14   : > { %4560 = vmatpush.bf16.msra.mxu3 %v4481_v1  ;;  %3110 = vmatpush.bf16.msra.mxu0 %v4481_v1  ;;  %s4771_s22 = scalar_lea.vmem %s5615_s0, %s3777_s16  ;;  %452 = vst [vmem:[#allocation2] sm:$0x1] %v451_v11  ;;  %vm4781_vm6 = vmor %vm448_vm1, %vm528_vm4  ;;  %v4477_v44 = vld [vmem:[%s5618_s3 + $0x10] sm:$0xff]  ;;  %v459_v56 = vld [vmem:[#allocation2 + $0x24] sm:$0x1]  ;;  %vm1161_vm12 = vcmask 1042432  }
  0x15   : > { %v514_v13 = vld [vmem:[%s4771_s22 + $0x8] sm:$0xf]  ;;  %v515_v14 = vld [vmem:[%s4771_s22 + $0xc] sm:$0xf]  ;;  %v518_v15 = vld [vmem:[%s4771_s22 + $0x18] sm:$0xf] }
  0x16   : > { %v548_v16 = vshrl.u32 %v514_v13, 16  ;;  %v551_v17 = vshll.u32 %v514_v13, 16  ;;  %v556_v18 = vshrl.u32 %v515_v14, 16  ;;  %v559_v19 = vshll.u32 %v515_v14, 16  ;;  %v519_v20 = vld [vmem:[%s4771_s22 + $0x1c] sm:$0xf]  ;;  %vm4966_vm8 = vmand %vm447_vm0, %vm480_vm3 }
  0x17   : > { %4561 = vmatpush.bf16.msra.mxu1 %v4480_v9  ;;  %4562 = vmatpush.bf16.msra.mxu2 %v4480_v9  ;;  %v582_v21 = vshrl.u32 %v518_v15, 16  ;;  %v585_v22 = vshll.u32 %v518_v15, 16  ;;  %v590_v23 = vshrl.u32 %v519_v20, 16  ;;  %v593_v24 = vshll.u32 %v519_v20, 16  ;;  %v522_v25 = vld [vmem:[%s4771_s22 + $0x28] sm:$0xf] }
  0x18   : > { %4563 = vmatpush.bf16.msra.mxu3 %v4480_v9  ;;  %3111 = vmatpush.bf16.msra.mxu0 %v4480_v9  ;;  %v550_v27 = vrot.slane %v548_v16, 7  ;;  %v4785_v28 = vrot.slane %v556_v18, 7  ;;  %v700_v29 = vld [vmem:[#allocation2 + $0x18] sm:$0xf]  ;;  %v523_v33 = vld [vmem:[%s4771_s22 + $0x2c] sm:$0xf] }
  0x19   : > { %v584_v31 = vrot.slane %v582_v21, 7  ;;  %v4794_v32 = vrot.slane %v590_v23, 7  ;;  %v616_v34 = vshrl.u32 %v522_v25, 16  ;;  %v714_v39 = vld [vmem:[#allocation2 + $0x30] sm:$0xf]  ;;  %v619_v40 = vshll.u32 %v522_v25, 16 }
  0x1a   : > { %v553_v36 = vor.u32 %v551_v17, %v550_v27  ;;  %v554_v37 = vrot.slane %v550_v27, 4  ;;  %v561_v38 = vor.u32 %v559_v19, %v4785_v28  ;;  %s378_s7 = scalar_select %p377_p7, %s4754_s12, 0  ;;  %v624_v48 = vshrl.u32 %v523_v33, 16  ;;  %v728_v52 = vld [vmem:[#allocation2 + $0x48] sm:$0xf]  ;;  %v4475_v7 = vld [vmem:[%s5618_s3] sm:$0xff] }
  0x1b   : > { %4564 = vmatpush.bf16.msra.mxu1 %v4479_v12  ;;  %4565 = vmatpush.bf16.msra.mxu2 %v4479_v12  ;;  %v587_v41 = vor.u32 %v585_v22, %v584_v31  ;;  %v588_v42 = vrot.slane %v584_v31, 4  ;;  %v595_v43 = vor.u32 %v593_v24, %v4794_v32  ;;  %v618_v47 = vrot.slane %v616_v34, 7  ;;  %s422_s11 = scalar_select %p421_p8, 1, 0  ;;  %v516_v58 = vld [vmem:[%s4771_s22 + $0x10] sm:$0xf] }
  0x1c   : > { %4566 = vmatpush.bf16.msra.mxu3 %v4479_v12  ;;  %3112 = vmatpush.bf16.msra.mxu0 %v4479_v12  ;;  %v562_v45 = vsel %vm4781_vm6, %v554_v37, %v561_v38  ;;  %v701_v46 = vsel %vm4790_vm7, %v553_v36, %v700_v29  ;;  %v627_v51 = vshll.u32 %v523_v33, 16  ;;  %s5648_s7 = smov (!%p3780_p9, %s378_s7), 15  ;;  %v4821_v55 = vrot.slane %v624_v48, 7  ;;  %v517_v61 = vld [vmem:[%s4771_s22 + $0x14] sm:$0xf]  ;;  %v4476_v63 = vld [vmem:[%s5618_s3 + $0x8] sm:$0xff] }
  0x1d   : > { %702 = vst [vmem:[#allocation2 + $0x18] sm:$0xf] %v701_v46  ;;  %v596_v49 = vsel %vm4781_vm6, %v588_v42, %v595_v43  ;;  %v715_v50 = vsel %vm4790_vm7, %v587_v41, %v714_v39  ;;  %v621_v53 = vor.u32 %v619_v40, %v618_v47  ;;  %v622_v54 = vrot.slane %v618_v47, 4  ;;  %s4823_s13 = scvt.s32.f32 %s422_s11  ;;  %s3785_s14 = sshll.u32 %s5648_s7, 1  ;;  %v4490_v11 = vld [vmem:[%s5618_s3 + $0x78] sm:$0xff]  ;;  %v4489_v24 = vld [vmem:[%s5618_s3 + $0x70] sm:$0xff] }
  0x1e   : > { %703 = vst [vmem:[#allocation2 + $0x1c] sm:$0xf] %v562_v45  ;;  %v460_v57 = vsel %vm4740_vm2, 0, %v459_v56  ;;  %v629_v59 = vor.u32 %v627_v51, %v4821_v55  ;;  %s385_s12 = sadd.s32 %s3785_s14, %s4745_s10  ;;  %v565_v62 = vshrl.u32 %v516_v58, 16  ;;  %v573_v0 = vshrl.u32 %v517_v61, 16  ;;  %v4498_v15 = vld [vmem:[%s5618_s3 + $0xb8] sm:$0xff] }
  0x1f   : > { %4567 = vmatpush.bf16.msra.mxu1 %v4478_v35  ;;  %4568 = vmatpush.bf16.msra.mxu2 %v4478_v35  ;;  %716 = vst [vmem:[#allocation2 + $0x30] sm:$0xf] %v715_v50  ;;  %v729_v60 = vsel %vm4790_vm7, %v621_v53, %v728_v52  ;;  %s3787_s18 = sshll.u32 %s385_s12, 2  ;;  %s426_s19 = sshrl.u32 %s4823_s13, 16  ;;  %v568_v4 = vshll.u32 %v516_v58, 16  ;;  %v576_v5 = vshll.u32 %v517_v61, 16 }
  0x20   : > { %4569 = vmatpush.bf16.msra.mxu3 %v4478_v35  ;;  %3113 = vmatpush.bf16.msra.mxu0 %v4478_v35  ;;  %717 = vst [vmem:[#allocation2 + $0x34] sm:$0xf] %v596_v49  ;;  %v630_v1 = vsel %vm4781_vm6, %v622_v54, %v629_v59  ;;  %p425_p10 = scmp.ne.f32.partialorder %s4823_s13, %s4823_s13  ;;  %s427_s20 = sand.u32 1, %s426_s19  ;;  %v567_v3 = vrot.slane %v565_v62, 7  ;;  %v4844_v6 = vrot.slane %v573_v0, 7  ;;  %v4506_v16 = vld [vmem:[%s5618_s3 + $0xf8] sm:$0xff] }
  0x21   : > { %730 = vst [vmem:[#allocation2 + $0x48] sm:$0xf] %v729_v60  ;;  %s387_s7 = scalar_lea.vmem %s5616_s1, %s3787_s18  ;;  %s428_s8 = sadd.s32 32767, %s427_s20  ;;  %v465_v13 = vld [vmem:[#allocation2 + $0x3c] sm:$0x1]  ;;  %v4497_v29 = vld [vmem:[%s5618_s3 + $0xb0] sm:$0xff] }
  0x22   : > { %461 = vst [vmem:[#allocation2 + $0x24] sm:$0x1] %v460_v57  ;;  %s429_s14 = sadd.s32 %s428_s8, %s4823_s13  ;;  %v571_v9 = vrot.slane %v567_v3, 4  ;;  %v578_v12 = vor.u32 %v576_v5, %v4844_v6  ;;  %v4548_v17 = vld [vmem:[%s387_s7] sm:$0xff]   ;;  %v570_v18 = vor.u32 %v568_v4, %v567_v3  ;;  %v466_v35 = vsel %vm4740_vm2, 0, %v465_v13  ;;  %v4505_v36 = vld [vmem:[%s5618_s3 + $0xf0] sm:$0xff] }
  0x23   : > { %4570 = vmatpush.bf16.msra.mxu1 %v4477_v44  ;;  %4571 = vmatpush.bf16.msra.mxu2 %v4477_v44  ;;  %731 = vst [vmem:[#allocation2 + $0x4c] sm:$0xf] %v630_v1  ;;  %s430_s17 = sand.u32 4294901760, %s429_s14  ;;  %v4866_v21 = vld [vmem:[%s4771_s22 + $0x20] sm:$0xf]  ;;  %v4549_v31 = vunpack.c.l.bf16 %v4548_v17  ;;  %v4550_v33 = vunpack.c.h.bf16 %v4548_v17  ;;  %v4514_v38 = vld [vmem:[%s5618_s3 + $0x138] sm:$0xff] }
  0x24   : > { %4572 = vmatpush.bf16.msra.mxu3 %v4477_v44  ;;  %3114 = vmatpush.bf16.msra.mxu0 %v4477_v44  ;;  %v834_v8 = vld [vmem:[#allocation2 + $0x18] sm:$0xf]  ;;  %s5650_s17 = smov (%p425_p10, %s430_s17), 2143289344  ;;  %v579_v20 = vsel %vm4781_vm6, %v571_v9, %v578_v12  ;;  %v599_v23 = vshrl.u32 %v4866_v21, 16  ;;  %v521_v39 = vld [vmem:[%s4771_s22 + $0x24] sm:$0xf] }
  0x25   : > { %v835_v10 = vld [vmem:[#allocation2 + $0x1c] sm:$0xf]  ;;  %850 = vst [vmem:[#allocation3 + $0x90] sm:$0xf] %v834_v8  ;;  %s433_s29 = sshrl.u32 %s5650_s17, 16  ;;  %v602_v43 = vshll.u32 %v4866_v21, 16 }
  0x26   : > { %851 = vst [vmem:[#allocation3 + $0xb4] sm:$0xf] %v835_v10  ;;  %v838_v14 = vld [vmem:[#allocation2 + $0x30] sm:$0xf]  ;;  %s751_s7 = sshll.u32 %s433_s29, 16  ;;  %v601_v42 = vrot.slane %v599_v23, 7 }
  0x27   : > { %4573 = vmatpush.bf16.msra.mxu1 %v4476_v63  ;;  %4574 = vmatpush.bf16.msra.mxu2 %v4476_v63  ;;  %v839_v19 = vld [vmem:[#allocation2 + $0x34] sm:$0xf]  ;;  %854 = vst [vmem:[#allocation3 + $0x120] sm:$0xf] %v838_v14  ;;  %s752_s14 = sor.u32 %s751_s7, %s433_s29  ;;  %v4488_v45 = vld [vmem:[%s5618_s3 + $0x68] sm:$0xff]  ;;  %v607_v46 = vshrl.u32 %v521_v39, 16 }
  0x28   : > { %4575 = vmatpush.bf16.msra.mxu3 %v4476_v63  ;;  %3115 = vmatpush.bf16.msra.mxu0 %v4476_v63  ;;  %855 = vst [vmem:[#allocation3 + $0x144] sm:$0xf] %v839_v19  ;;  %v842_v22 = vld [vmem:[#allocation2 + $0x48] sm:$0xf]  ;;  %v753_v37 = vstv %s752_s14  ;;  %v610_v47 = vshll.u32 %v521_v39, 16  ;;  %v605_v56 = vrot.slane %v601_v42, 4  ;;  %v604_v4 = vor.u32 %v602_v43, %v601_v42 }
  0x29   : > { %858 = vst [vmem:[#allocation3 + $0x1b0] sm:$0xf] %v842_v22  ;;  %v707_v25 = vld [vmem:[#allocation2 + $0x24] sm:$0xf]  ;;  %v757_v41 = vunpack.c.l.bf16 %v753_v37  ;;  %v471_v52 = vld [vmem:[#allocation2 + $0x54] sm:$0x1] }
  0x2a   : > { %v843_v27 = vld [vmem:[#allocation2 + $0x4c] sm:$0xf]  ;;  %v708_v34 = vsel %vm4790_vm7, %v570_v18, %v707_v25  ;;  %710 = vst [vmem:[#allocation2 + $0x28] sm:$0xf] %v579_v20  ;;  %v524_v53 = vld [vmem:[%s4771_s22 + $0x30] sm:$0xf] }
  0x2b   : > { %4576 = vmatpush.bf16.msra.mxu1 %v4475_v7  ;;  %4577 = vmatpush.bf16.msra.mxu2 %v4475_v7  ;;  %859 = vst [vmem:[#allocation3 + $0x1d4] sm:$0xf] %v843_v27  ;;  %v758_v50 = vmul.f32 %v4549_v31, %v757_v41  ;;  %v759_v51 = vmul.f32 %v4550_v33, %v757_v41  ;;  %v4891_v57 = vrot.slane %v607_v46, 7  ;;  %v472_v58 = vsel %vm4740_vm2, 0, %v471_v52  ;;  %v4496_v62 = vld [vmem:[%s5618_s3 + $0xa8] sm:$0xff]  ;;  %v4487_v17 = vld [vmem:[%s5618_s3 + $0x60] sm:$0xff] }
  0x2c   : > { %4578 = vmatpush.bf16.msra.mxu3 %v4475_v7  ;;  %v3897_v40 = vld [vmem:[#allocation3 + $0x90] sm:$0xf]  ;;  %709 = vst [vmem:[#allocation2 + $0x24] sm:$0xf] %v708_v34  ;;  %3116 = vmatpush.bf16.msra.mxu0 %v4475_v7  ;;  %v633_v59 = vshrl.u32 %v524_v53, 16  ;;  %v636_v9 = vshll.u32 %v524_v53, 16 }
  0x2d   : > { %v4425_v44 = vld [vmem:[#allocation3 + $0xb0] sm:$0xf0]  ;;  %467 = vst [vmem:[#allocation2 + $0x3c] sm:$0x1] %v466_v35  ;;  %v760_v0 = vpack.c.bf16 %v758_v50, %v758_v50  ;;  %v761_v1 = vpack.c.bf16 %v759_v51, %v759_v51  ;;  %v612_v5 = vor.u32 %v610_v47, %v4891_v57  ;;  %v525_v7 = vld [vmem:[%s4771_s22 + $0x34] sm:$0xf] }
  0x2e   : > { %v3898_v48 = vor.u32 %v4425_v44, %v3897_v40  ;;  %v3969_v49 = vld [vmem:[#allocation3 + $0x120] sm:$0xf]  ;;  %v4504_v63 = vld [vmem:[%s5618_s3 + $0xe8] sm:$0xff]  ;;  %473 = vst [vmem:[#allocation2 + $0x54] sm:$0x1] %v472_v58  ;;  %v635_v8 = vrot.slane %v633_v59, 7 }
  0x2f   : > { %3158 = vmatpush.bf16.msrb.mxu1 %v4490_v11  ;;  %3207 = vmatpush.bf16.msrb.mxu2 %v4498_v15  ;;  %v4443_v54 = vld [vmem:[#allocation3 + $0x140] sm:$0xf0]  ;;  %v763_v11 = vshrl.u32 %v760_v0, 16  ;;  %v766_v12 = vshll.u32 %v760_v0, 16  ;;  %v771_v13 = vshrl.u32 %v761_v1, 16  ;;  %v774_v14 = vshll.u32 %v761_v1, 16 }
  0x30   : > { %3256 = vmatpush.bf16.msrb.mxu3 %v4506_v16  ;;  %3305 = vmatpush.bf16.msrb.mxu0 %v4514_v38  ;;  %v3970_v60 = vor.u32 %v4443_v54, %v3969_v49  ;;  %v4041_v61 = vld [vmem:[#allocation3 + $0x1b0] sm:$0xf]  ;;  %v782_v16 = vld [vmem:[#allocation2] sm:$0xf]  ;;  %v613_v20 = vsel %vm4781_vm6, %v605_v56, %v612_v5  ;;  %v641_v27 = vshrl.u32 %v525_v7, 16  ;;  %v4513_v31 = vld [vmem:[%s5618_s3 + $0x130] sm:$0xff] }
  0x31   : > { %3127 = vmatmul.bf16.vlgmr.msra.gmra.mxu1 %v3898_v48  ;;  %v837_v3 = vld [vmem:[#allocation2 + $0x28] sm:$0xf]  ;;  %v4495_v18 = vld [vmem:[%s5618_s3 + $0xa0] sm:$0xff]  ;;  %v765_v21 = vrot.slane %v763_v11, 7  ;;  %v4911_v22 = vrot.slane %v771_v13, 7  ;;  %v639_v37 = vrot.slane %v635_v8, 4 }
  0x32   : > { %3137 = vmatmul.bf16.vlgmr.msra.gmra.mxu2 %v3970_v60  ;;  %v4461_v10 = vld [vmem:[#allocation3 + $0x1d0] sm:$0xf0]  ;;  %853 = vst [vmem:[#allocation3 + $0xfc] sm:$0xf] %v837_v3  ;;  %v4922_v38 = vrot.slane %v641_v27, 7  ;;  %v4486_v40 = vld [vmem:[%s5618_s3 + $0x58] sm:$0xff] }
  0x33   : > { %3159 = vmatpush.bf16.msrb.mxu1 %v4489_v24  ;;  %3208 = vmatpush.bf16.msrb.mxu2 %v4497_v29  ;;  %v4042_v15 = vor.u32 %v4461_v10, %v4041_v61  ;;  %v836_v19 = vld [vmem:[#allocation2 + $0x24] sm:$0xf]  ;;  %v638_v24 = vor.u32 %v636_v9, %v635_v8  ;;  %724 = vst [vmem:[#allocation2 + $0x40] sm:$0xf] %v613_v20  ;;  %v644_v29 = vshll.u32 %v525_v7, 16  ;;  %v769_v34 = vrot.slane %v765_v21, 4 }
  0x34   : > { %3257 = vmatpush.bf16.msrb.mxu3 %v4505_v36  ;;  %852 = vst [vmem:[#allocation3 + $0xd8] sm:$0xf] %v836_v19  ;;  %v721_v23 = vld [vmem:[#allocation2 + $0x3c] sm:$0xf]  ;;  %v768_v33 = vor.u32 %v766_v12, %v765_v21  ;;  %v776_v35 = vor.u32 %v774_v14, %v4911_v22  ;;  %v4503_v36 = vld [vmem:[%s5618_s3 + $0xe0] sm:$0xff]  ;;  %3306 = vmatpush.bf16.msrb.mxu0 %v4513_v31  ;;  %v4512_v41 = vld [vmem:[%s5618_s3 + $0x128] sm:$0xff] }
  0x35   : > { %3147 = vmatmul.bf16.vlgmr.msra.gmra.mxu3 %v4042_v15  ;;  %v722_v25 = vsel %vm4790_vm7, %v604_v4, %v721_v23  ;;  %v735_v39 = vld [vmem:[#allocation2 + $0x54] sm:$0xf]  ;;  %v646_v46 = vor.u32 %v644_v29, %v4922_v38  ;;  %v4502_v47 = vld [vmem:[%s5618_s3 + $0xd8] sm:$0xff]  ;;  %v453_v49 = vld [vmem:[#allocation2 + $0xc] sm:$0x1]  ;;  %vm1162_vm13 = vcmask 1046532  }
  0x36   : > { %723 = vst [vmem:[#allocation2 + $0x3c] sm:$0xf] %v722_v25  ;;  %v777_v42 = vsel %vm4781_vm6, %v769_v34, %v776_v35  ;;  %v783_v43 = vsel %vm4790_vm7, %v768_v33, %v782_v16  ;;  %v736_v44 = vsel %vm4790_vm7, %v638_v24, %v735_v39  ;;  %v4485_v48 = vld [vmem:[%s5618_s3 + $0x50] sm:$0xff]  ;;  %v4511_v52 = vld [vmem:[%s5618_s3 + $0x120] sm:$0xff]  ;;  %v454_v53 = vsel %vm4740_vm2, 0, %v453_v49  ;;  %v4484_v0 = vld [vmem:[%s5618_s3 + $0x48] sm:$0xff] }
  0x37   : > { %3160 = vmatpush.bf16.msrb.mxu1 %v4488_v45  ;;  %3209 = vmatpush.bf16.msrb.mxu2 %v4496_v62  ;;  %v4494_v45 = vld [vmem:[%s5618_s3 + $0x98] sm:$0xff]  ;;  %784 = vst [vmem:[#allocation2] sm:$0xf] %v783_v43  ;;  %v4493_v51 = vld [vmem:[%s5618_s3 + $0x90] sm:$0xff]  ;;  %v647_v56 = vsel %vm4781_vm6, %v639_v37, %v646_v46  ;;  %v512_v58 = vld [vmem:[%s4771_s22] sm:$0xf] }
  0x38   : > { %3258 = vmatpush.bf16.msrb.mxu3 %v4504_v63  ;;  %785 = vst [vmem:[#allocation2 + $0x4] sm:$0xf] %v777_v42  ;;  %3307 = vmatpush.bf16.msrb.mxu0 %v4512_v41  ;;  %v4501_v61 = vld [vmem:[%s5618_s3 + $0xd0] sm:$0xff]  ;;  %v513_v62 = vld [vmem:[%s4771_s22 + $0x4] sm:$0xf]  ;;  %v531_v1 = vshrl.u32 %v512_v58, 16  ;;  %vm5006_vm14 = vmor %vm1161_vm12, %vm1162_vm13 }
  0x39   : > { %v4434_v50 = vld [vmem:[#allocation3 + $0xf8] sm:$0xf0]  ;;  %737 = vst [vmem:[#allocation2 + $0x54] sm:$0xf] %v736_v44  ;;  %v4492_v4 = vld [vmem:[%s5618_s3 + $0x88] sm:$0xff]  ;;  %v534_v5 = vshll.u32 %v512_v58, 16 }
  0x3a   : > { %v841_v60 = vld [vmem:[#allocation2 + $0x40] sm:$0xf]  ;;  %738 = vst [vmem:[#allocation2 + $0x58] sm:$0xf] %v647_v56  ;;  %v539_v7 = vshrl.u32 %v513_v62, 16  ;;  %v542_v8 = vshll.u32 %v513_v62, 16 }
  0x3b   : > { %3161 = vmatpush.bf16.msrb.mxu1 %v4487_v17  ;;  %3210 = vmatpush.bf16.msrb.mxu2 %v4495_v18  ;;  %v3933_v54 = vld [vmem:[#allocation3 + $0xd8] sm:$0xf]  ;;  %857 = vst [vmem:[#allocation3 + $0x18c] sm:$0xf] %v841_v60  ;;  %v533_v9 = vrot.slane %v531_v1, 7  ;;  %v4510_v10 = vld [vmem:[%s5618_s3 + $0x118] sm:$0xff] }
  0x3c   : > { %3259 = vmatpush.bf16.msrb.mxu3 %v4503_v36  ;;  %v3934_v59 = vor.u32 %v4434_v50, %v3933_v54  ;;  %3308 = vmatpush.bf16.msrb.mxu0 %v4511_v52  ;;  %455 = vst [vmem:[#allocation2 + $0xc] sm:$0x1] %v454_v53  ;;  %v482_v11 = vld [vmem:[#allocation2 + $0x8] sm:$0x1]  ;;  %v4979_v14 = vrot.slane %v539_v7, 7  ;;  %v4483_v18 = vld [vmem:[%s5618_s3 + $0x40] sm:$0xff] }
  0x3d   : > { %v840_v63 = vld [vmem:[#allocation2 + $0x3c] sm:$0xf]  ;;  %v4500_v13 = vld [vmem:[%s5618_s3 + $0xc8] sm:$0xff]  ;;  %v537_v17 = vrot.slane %v533_v9, 4  ;;  %v483_v19 = vsel %vm4966_vm8, 0, %v482_v11  ;;  %v536_v27 = vor.u32 %v534_v5, %v533_v9  ;;  %v4491_v29 = vld [vmem:[%s5618_s3 + $0x80] sm:$0xff] }
  0x3e   : > { %856 = vst [vmem:[#allocation3 + $0x168] sm:$0xf] %v840_v63  ;;  %v830_v12 = vld [vmem:[#allocation2] sm:$0xf]  ;;  %v544_v21 = vor.u32 %v542_v8, %v4979_v14  ;;  %vm886_vm9 = vsmask.f32 3328 }
  0x3f   : > { %3162 = vmatpush.bf16.msrb.mxu1 %v4486_v40  ;;  %3211 = vmatpush.bf16.msrb.mxu2 %v4494_v45  ;;  %v862_v15 = vld [vmem:[#allocation2] sm:$0xf]  ;;  %v831_v16 = vld [vmem:[#allocation2 + $0x4] sm:$0xf]  ;;  %846 = vst [vmem:[#allocation3] sm:$0xf] %v830_v12 }
  0x40   : > { %3260 = vmatpush.bf16.msrb.mxu3 %v4502_v47  ;;  %847 = vst [vmem:[#allocation3 + $0x24] sm:$0xf] %v831_v16  ;;  %v844_v20 = vld [vmem:[#allocation2 + $0x54] sm:$0xf]  ;;  %v890_v23 = vshrl.u32 %v862_v15, 16  ;;  %v893_v24 = vshll.u32 %v862_v15, 16  ;;  %3309 = vmatpush.bf16.msrb.mxu0 %v4510_v10  ;;  %v545_v34 = vsel %vm4781_vm6, %v537_v17, %v544_v21 }
  0x41   : > { %3132 = vmatmul.bf16.gmra.mxu1 %v3934_v59  ;;  %v845_v25 = vld [vmem:[#allocation2 + $0x58] sm:$0xf]  ;;  %860 = vst [vmem:[#allocation3 + $0x1f8] sm:$0xf] %v844_v20  ;;  %v863_v31 = vld [vmem:[#allocation2 + $0x4] sm:$0xf] }
  0x42   : > { %v4452_v33 = vld [vmem:[#allocation3 + $0x188] sm:$0xf0]  ;;  %861 = vst [vmem:[#allocation3 + $0x21c] sm:$0xf] %v845_v25  ;;  %vm887_vm10 = vsmask.f32 7440 }
  0x43   : > { %3163 = vmatpush.bf16.msrb.mxu1 %v4485_v48  ;;  %3212 = vmatpush.bf16.msrb.mxu2 %v4493_v51  ;;  %v4499_v35 = vld [vmem:[%s5618_s3 + $0xc0] sm:$0xff]  ;;  %696 = vst [vmem:[#allocation2 + $0x10] sm:$0xf] %v545_v34  ;;  %v693_v39 = vld [vmem:[#allocation2 + $0xc] sm:$0xf]  ;;  %v892_v40 = vrot.slane %v890_v23, 4  ;;  %vm5001_vm11 = vmor %vm886_vm9, %vm887_vm10 }
  0x44   : > { %3261 = vmatpush.bf16.msrb.mxu3 %v4501_v61  ;;  %484 = vst [vmem:[#allocation2 + $0x8] sm:$0x1] %v483_v19  ;;  %v895_v41 = vrot.slane %v893_v24, 5  ;;  %v694_v42 = vsel %vm4790_vm7, %v536_v27, %v693_v39  ;;  %v899_v43 = vshll.u32 %v863_v31, 16  ;;  %v903_v44 = vshrl.u32 %v863_v31, 16  ;;  %v4509_v61 = vld [vmem:[%s5618_s3 + $0x110] sm:$0xff] }
  0x45   : > { %v4005_v36 = vld [vmem:[#allocation3 + $0x168] sm:$0xf]  ;;  %v4997_v46 = vld [vmem:[#allocation2 + $0x4] sm:$0xf]  ;;  %695 = vst [vmem:[#allocation2 + $0xc] sm:$0xf] %v694_v42  ;;  %3310 = vmatpush.bf16.msrb.mxu0 %v4509_v61 }
  0x46   : > { %v4006_v37 = vor.u32 %v4452_v33, %v4005_v36  ;;  %v1113_v45 = vld [vmem:[#allocation2] sm:$0xe]  ;;  %v3825_v47 = vld [vmem:[#allocation3] sm:$0xf]  ;;  %v896_v49 = vor.u32 %v895_v41, %v892_v40  ;;  %v778_v50 = vrot.slane %v4911_v22, 4  ;;  %v1166_v54 = vrot.slane %v4997_v46, 5 }
  0x47   : > { %3164 = vmatpush.bf16.msrb.mxu1 %v4484_v0  ;;  %3213 = vmatpush.bf16.msrb.mxu2 %v4492_v4  ;;  %v4407_v51 = vld [vmem:[#allocation3 + $0x20] sm:$0xf0]  ;;  %v3799_v53 = vrot.slane %v1113_v45, 9  ;;  %v901_v60 = vrot.slane %v899_v43, 5  ;;  %v905_v7 = vrot.slane %v903_v44, 4  ;;  %v4508_v9 = vld [vmem:[%s5618_s3 + $0x108] sm:$0xff] }
  0x48   : > { %3262 = vmatpush.bf16.msrb.mxu3 %v4500_v13  ;;  %3142 = vmatmul.bf16.gmra.mxu2 %v4006_v37  ;;  %v3826_v56 = vor.u32 %v4407_v51, %v3825_v47  ;;  %v4077_v58 = vld [vmem:[#allocation3 + $0x1f8] sm:$0xf]  ;;  %v897_v59 = vrot.slane %v896_v49, 4  ;;  %v4530_v22 = vld [vmem:[%s5618_s3 + $0x1b8] sm:$0xff]  ;;  %v485_v13 = vld [vmem:[#allocation2 + $0x14] sm:$0x1] }
  0x49   : > { %v4470_v62 = vld [vmem:[#allocation3 + $0x218] sm:$0xf0]  ;;  %v1167_v63 = vsel %vm5006_vm14, %v3799_v53, %v1166_v54  ;;  %v4538_v0 = vld [vmem:[%s5618_s3 + $0x1f8] sm:$0xff]  ;;  %v906_v17 = vor.u32 %v905_v7, %v901_v60  ;;  %v486_v19 = vsel %vm4966_vm8, 0, %v485_v13  ;;  %3311 = vmatpush.bf16.msrb.mxu0 %v4508_v9  ;;  %s393_s20 = sadd.s32 8, %s4732_s30 }
  0x4a   : > { %3117 = vmatmul.bf16.vlgmr.msra.gmra.mxu0 %v3826_v56  ;;  %v4078_v1 = vor.u32 %v4470_v62, %v4077_v58  ;;  %v833_v4 = vld [vmem:[#allocation2 + $0x10] sm:$0xf]  ;;  %v902_v5 = vsel %vm5001_vm11, %v897_v59, %v901_v60  ;;  %1236 = vst [vmem:[#allocation3 + $0x8] sm:$0xf] %v1167_v63  ;;  %v4522_v10 = vld [vmem:[%s5618_s3 + $0x178] sm:$0xff]  ;;  %p5366_p11 = scmp.lt.s32.totalorder %s393_s20, 15 }
  0x4b   : > { %3165 = vmatpush.bf16.msrb.mxu1 %v4483_v18  ;;  %3214 = vmatpush.bf16.msrb.mxu2 %v4491_v29  ;;  %849 = vst [vmem:[#allocation3 + $0x6c] sm:$0xf] %v833_v4  ;;  %v786_v8 = vld [vmem:[#allocation2 + $0x8] sm:$0x1]  ;;  %v1253_v12 = vld [vmem:[#allocation2 + $0x10] sm:$0xf] }
  0x4c   : > { %3263 = vmatpush.bf16.msrb.mxu3 %v4499_v35  ;;  %v787_v11 = vsel %vm4740_vm2, %v778_v50, %v786_v8  ;;  %1097 = vst [vmem:[#allocation3 + $0x4] sm:$0xf] %v902_v5  ;;  %v832_v15 = vld [vmem:[#allocation2 + $0xc] sm:$0xf]  ;;  %v4507_v18 = vld [vmem:[%s5618_s3 + $0x100] sm:$0xff]  ;;  %v546_v29 = vrot.slane %v4979_v14, 4 }
  0x4d   : > { %3152 = vmatmul.bf16.gmra.mxu3 %v4078_v1  ;;  %788 = vst [vmem:[#allocation2 + $0x8] sm:$0x1] %v787_v11  ;;  %v1252_v16 = vld [vmem:[#allocation2 + $0xc] sm:$0xf]  ;;  %v1285_v21 = vld [vmem:[#allocation2 + $0x10] sm:$0xf]  ;;  %3312 = vmatpush.bf16.msrb.mxu0 %v4507_v18 }
  0x4e   : > { %848 = vst [vmem:[#allocation3 + $0x48] sm:$0xf] %v832_v15  ;;  %v1284_v20 = vld [vmem:[#allocation2 + $0xc] sm:$0xf]  ;;  %v1318_v25 = vshll.u32 %v1285_v21, 16  ;;  %v907_v34 = vrot.slane %v906_v17, 4 }
  0x4f   : > { %3403 = vmatpush.bf16.msra.mxu2 %v4530_v22  ;;  %3354 = vmatpush.bf16.msra.mxu1 %v4522_v10  ;;  %1268 = vst [vmem:[#allocation3 + $0xc] sm:$0xf] %v1252_v16  ;;  %v1309_v23 = vshrl.u32 %v1284_v20, 16  ;;  %v1312_v24 = vshll.u32 %v1284_v20, 16  ;;  %v865_v27 = vld [vmem:[#allocation2 + $0xc] sm:$0xf] }
  0x50   : > { %3452 = vmatpush.bf16.msra.mxu3 %v4538_v0  ;;  %1269 = vst [vmem:[#allocation3 + $0x30] sm:$0xf] %v1253_v12  ;;  %v1168_v35 = vrot.slane %v1166_v54, 4  ;;  %v1322_v36 = vshrl.u32 %v1285_v21, 16  ;;  %v4546_v37 = vld [vmem:[%s5618_s3 + $0x238] sm:$0xff]  ;;  %v914_v39 = vshrl.u32 %v865_v27, 16 }
  0x51   : > { %487 = vst [vmem:[#allocation2 + $0x14] sm:$0x1] %v486_v19  ;;  %v1311_v31 = vrot.slane %v1309_v23, 4  ;;  %v1314_v33 = vrot.slane %v1312_v24, 5  ;;  %v1320_v42 = vrot.slane %v1318_v25, 5  ;;  %v917_v44 = vshll.u32 %v865_v27, 16  ;;  %3501 = vmatpush.bf16.msra.mxu0 %v4546_v37 }
  0x52   : > { %v4416_v40 = vld [vmem:[#allocation3 + $0x68] sm:$0xf0]  ;;  %v866_v43 = vld [vmem:[#allocation2 + $0x10] sm:$0xf]  ;;  %v916_v14 = vrot.slane %v914_v39, 4  ;;  %v1324_v59 = vrot.slane %v1322_v36, 4 }
  0x53   : > { %v1315_v41 = vor.u32 %v1314_v33, %v1311_v31  ;;  %v923_v47 = vshll.u32 %v866_v43, 16  ;;  %v919_v54 = vrot.slane %v917_v44, 5  ;;  %v927_v61 = vshrl.u32 %v866_v43, 16  ;;  %v4529_v22 = vld [vmem:[%s5618_s3 + $0x1b0] sm:$0xff]  ;;  %v1116_v5 = vld [vmem:[#allocation2 + $0xc] sm:$0xe] }
  0x54   : > { %v864_v45 = vld [vmem:[#allocation2 + $0x8] sm:$0x1]  ;;  %v4537_v7 = vld [vmem:[%s5618_s3 + $0x1f0] sm:$0xff]  ;;  %v3800_v11 = vrot.slane %v1116_v5, 9  ;;  %3404 = vmatpush.bf16.msra.mxu2 %v4529_v22  ;;  %v1325_v18 = vor.u32 %v1324_v59, %v1320_v42  ;;  %v3833_v20 = vld [vmem:[#allocation3 + $0x8] sm:$0xf] }
  0x55   : > { %v1115_v46 = vld [vmem:[#allocation2 + $0x8] sm:$0x1]  ;;  %v3861_v49 = vld [vmem:[#allocation3 + $0x48] sm:$0xf]  ;;  %v909_v50 = vshll.u32 %v864_v45, 16  ;;  %v1316_v53 = vrot.slane %v1315_v41, 4  ;;  %v920_v4 = vor.u32 %v919_v54, %v916_v14  ;;  %3453 = vmatpush.bf16.msra.mxu3 %v4537_v7 }
  0x56   : > { %v1169_v51 = vrot.slane %v1115_v46, 5  ;;  %v3862_v56 = vor.u32 %v4416_v40, %v3861_v49  ;;  %v4404_v58 = vld [vmem:[#allocation3 + $0xc] sm:$0xf]  ;;  %v925_v60 = vrot.slane %v923_v47, 5  ;;  %v929_v10 = vrot.slane %v927_v61, 4  ;;  %v4521_v17 = vld [vmem:[%s5618_s3 + $0x170] sm:$0xff] }
  0x57   : > { %v911_v62 = vrot.slane %v909_v50, 5  ;;  %v3835_v0 = vld [vmem:[#allocation3 + $0x2c] sm:$0xf0]  ;;  %v1321_v1 = vsel %vm5001_vm11, %v1316_v53, %v1320_v42  ;;  %v921_v15 = vrot.slane %v920_v4, 4  ;;  %v1117_v16 = vld [vmem:[#allocation2 + $0x10] sm:$0xf]  ;;  %3355 = vmatpush.bf16.msra.mxu1 %v4521_v17 }
  0x58   : > { %v1170_v63 = vsel %vm5006_vm14, %v1168_v35, %v1169_v51  ;;  %v3838_v8 = vor.u32 %v4404_v58, %v3835_v0  ;;  %v697_v9 = vld [vmem:[#allocation2 + $0x14] sm:$0x1]  ;;  %1516 = vst [vmem:[#allocation3 + $0x10] sm:$0xf] %v1321_v1  ;;  %v1173_v19 = vrot.slane %v1117_v16, 5  ;;  %v930_v23 = vor.u32 %v929_v10, %v925_v60  ;;  %s5652_s20 = smov (!%p5366_p11, %s393_s20), 15 }
  0x59   : > { %1237 = vst [vmem:[#allocation3 + $0x2c] sm:$0xf] %v1170_v63  ;;  %v912_v12 = vsel %vm5001_vm11, %v907_v34, %v911_v62  ;;  %v698_v13 = vsel %vm4740_vm2, %v546_v29, %v697_v9  ;;  %v926_v21 = vsel %vm5001_vm11, %v921_v15, %v925_v60  ;;  %v1254_v24 = vld [vmem:[#allocation2 + $0x18] sm:$0xf]  ;;  %v488_v25 = vld [vmem:[#allocation2 + $0x20] sm:$0x1] }
  0x5a   : > { %3122 = vmatmul.bf16.gmra.mxu0 %v3862_v56  ;;  %1098 = vst [vmem:[#allocation3 + $0x28] sm:$0xf] %v912_v12  ;;  %v563_v27 = vrot.slane %v4785_v28, 4  ;;  %v1174_v29 = vsel %vm5006_vm14, %v3800_v11, %v1173_v19  ;;  %v1255_v31 = vld [vmem:[#allocation2 + $0x1c] sm:$0xf]  ;;  %v489_v33 = vsel %vm4966_vm8, 0, %v488_v25 }
  0x5b   : > { %699 = vst [vmem:[#allocation2 + $0x14] sm:$0x1] %v698_v13  ;;  %v4403_v34 = vld [vmem:[#allocation3 + $0x4] sm:$0xf]  ;;  %v1287_v35 = vld [vmem:[#allocation2 + $0x18] sm:$0xf] }
  0x5c   : > { %1099 = vst [vmem:[#allocation3 + $0x4c] sm:$0xf] %v926_v21  ;;  %v1288_v36 = vld [vmem:[#allocation2 + $0x1c] sm:$0xf]  ;;  %v1326_v37 = vrot.slane %v1325_v18, 4  ;;  %v1333_v39 = vshrl.u32 %v1287_v35, 16 }
  0x5d   : > { %3264 = vmatmul.bf16.vlgmr.msrb.gmra.mxu3 %v3838_v8  ;;  %1238 = vst [vmem:[#allocation3 + $0x50] sm:$0xf] %v1174_v29  ;;  %v1336_v40 = vshll.u32 %v1287_v35, 16  ;;  %v1342_v41 = vshll.u32 %v1288_v36, 16  ;;  %v931_v43 = vrot.slane %v930_v23, 4  ;;  %v1346_v44 = vshrl.u32 %v1288_v36, 16 }
  0x5e   : > { %1270 = vst [vmem:[#allocation3 + $0x54] sm:$0xf] %v1254_v24  ;;  %v1335_v46 = vrot.slane %v1333_v39, 4  ;;  %v868_v47 = vld [vmem:[#allocation2 + $0x18] sm:$0xf]  ;;  %v1175_v50 = vrot.slane %v1173_v19, 4 }
  0x5f   : > { %1271 = vst [vmem:[#allocation3 + $0x78] sm:$0xf] %v1255_v31  ;;  %v1338_v14 = vrot.slane %v1336_v40, 5  ;;  %v1344_v51 = vrot.slane %v1342_v41, 5  ;;  %v869_v53 = vld [vmem:[#allocation2 + $0x1c] sm:$0xf] }
  0x60   : > { %v4408_v42 = vld [vmem:[#allocation3 + $0x28] sm:$0xf0]  ;;  %490 = vst [vmem:[#allocation2 + $0x20] sm:$0x1] %v489_v33  ;;  %v1348_v63 = vrot.slane %v1346_v44, 4  ;;  %v4545_v0 = vld [vmem:[%s5618_s3 + $0x230] sm:$0xff] }
  0x61   : > { %v3834_v45 = vor.u32 %v4408_v42, %v3833_v20  ;;  %v3827_v49 = vld [vmem:[#allocation3 + $0x24] sm:$0xf0]  ;;  %v1339_v60 = vor.u32 %v1338_v14, %v1335_v46  ;;  %v938_v4 = vshrl.u32 %v868_v47, 16  ;;  %v941_v5 = vshll.u32 %v868_v47, 16  ;;  %3502 = vmatpush.bf16.msra.mxu0 %v4545_v0  ;;  %v4528_v12 = vld [vmem:[%s5618_s3 + $0x1a8] sm:$0xff]  ;;  %s399_s30 = scalar_select %p5366_p11, %s5652_s20, 15 }
  0x62   : > { %v3830_v54 = vor.u32 %v4403_v34, %v3827_v49  ;;  %v1286_v56 = vld [vmem:[#allocation2 + $0x14] sm:$0x1]  ;;  %v947_v7 = vshll.u32 %v869_v53, 16  ;;  %v1349_v21 = vor.u32 %v1348_v63, %v1344_v51  ;;  %3405 = vmatpush.bf16.msra.mxu2 %v4528_v12  ;;  %v4536_v24 = vld [vmem:[%s5618_s3 + $0x1e8] sm:$0xff]  ;;  %v951_v33 = vshrl.u32 %v869_v53, 16 }
  0x63   : > { %3215 = vmatmul.bf16.vlgmr.msrb.gmra.mxu2 %v3834_v45  ;;  %v867_v58 = vld [vmem:[#allocation2 + $0x14] sm:$0x1]  ;;  %v1328_v61 = vshll.u32 %v1286_v56, 16  ;;  %v1340_v1 = vrot.slane %v1339_v60, 4  ;;  %v940_v16 = vrot.slane %v938_v4, 4  ;;  %v943_v17 = vrot.slane %v941_v5, 5  ;;  %3454 = vmatpush.bf16.msra.mxu3 %v4536_v24 }
  0x64   : > { %v1118_v59 = vld [vmem:[#allocation2 + $0x14] sm:$0x1]  ;;  %v933_v22 = vshll.u32 %v867_v58, 16  ;;  %3166 = vmatmul.bf16.vlgmr.msrb.gmra.mxu1 %v3830_v54  ;;  %v949_v23 = vrot.slane %v947_v7, 5  ;;  %v1119_v34 = vld [vmem:[#allocation2 + $0x18] sm:$0xe] }
  0x65   : > { %v1176_v62 = vrot.slane %v1118_v59, 5  ;;  %v1330_v8 = vrot.slane %v1328_v61, 5  ;;  %v4413_v11 = vld [vmem:[#allocation3 + $0x54] sm:$0xf]  ;;  %v1345_v15 = vsel %vm5001_vm11, %v1340_v1, %v1344_v51  ;;  %v944_v31 = vor.u32 %v943_v17, %v940_v16  ;;  %v3869_v36 = vld [vmem:[#allocation3 + $0x50] sm:$0xf] }
  0x66   : > { %v935_v9 = vrot.slane %v933_v22, 5  ;;  %v3871_v13 = vld [vmem:[#allocation3 + $0x74] sm:$0xf0]  ;;  %1518 = vst [vmem:[#allocation3 + $0x58] sm:$0xf] %v1345_v15  ;;  %v4520_v35 = vld [vmem:[%s5618_s3 + $0x168] sm:$0xff] }
  0x67   : > { %v1177_v10 = vsel %vm5006_vm14, %v1175_v50, %v1176_v62  ;;  %v1331_v18 = vsel %vm5001_vm11, %v1326_v37, %v1330_v8  ;;  %v704_v20 = vld [vmem:[#allocation2 + $0x20] sm:$0x1]  ;;  %v3874_v25 = vor.u32 %v4413_v11, %v3871_v13  ;;  %v1120_v37 = vld [vmem:[#allocation2 + $0x1c] sm:$0xf]  ;;  %v3801_v39 = vrot.slane %v1119_v34, 9  ;;  %3356 = vmatpush.bf16.msra.mxu1 %v4520_v35  ;;  %v4544_v15 = vld [vmem:[%s5618_s3 + $0x228] sm:$0xff] }
  0x68   : > { %1239 = vst [vmem:[#allocation3 + $0x74] sm:$0xf] %v1177_v10  ;;  %v936_v19 = vsel %vm5001_vm11, %v931_v43, %v935_v9  ;;  %v705_v29 = vsel %vm4740_vm2, %v563_v27, %v704_v20  ;;  %v945_v40 = vrot.slane %v944_v31, 4  ;;  %v953_v41 = vrot.slane %v951_v33, 4  ;;  %v3841_v27 = vld [vmem:[#allocation3 + $0x10] sm:$0xf]  ;;  %3503 = vmatpush.bf16.msra.mxu0 %v4544_v15 }
  0x69   : > { %1517 = vst [vmem:[#allocation3 + $0x34] sm:$0xf] %v1331_v18  ;;  %v1180_v42 = vrot.slane %v1120_v37, 5  ;;  %v580_v28 = vrot.slane %v4844_v6, 4  ;;  %v1350_v43 = vrot.slane %v1349_v21, 4  ;;  %s5412_s8 = sshll.u32 %s399_s30, 1 }
  0x6a   : > { %1100 = vst [vmem:[#allocation3 + $0x70] sm:$0xf] %v936_v19  ;;  %v1256_v44 = vld [vmem:[#allocation2 + $0x24] sm:$0xf]  ;;  %v491_v45 = vld [vmem:[#allocation2 + $0x2c] sm:$0x1]  ;;  %v950_v14 = vsel %vm5001_vm11, %v945_v40, %v949_v23  ;;  %v954_v47 = vor.u32 %v953_v41, %v949_v23  ;;  %s402_s13 = sadd.s32 %s5412_s8, %s4745_s10 }
  0x6b   : > { %706 = vst [vmem:[#allocation2 + $0x20] sm:$0x1] %v705_v29  ;;  %v4412_v46 = vld [vmem:[#allocation3 + $0x4c] sm:$0xf]  ;;  %v1181_v49 = vsel %vm5006_vm14, %v3801_v39, %v1180_v42  ;;  %v1257_v50 = vld [vmem:[#allocation2 + $0x28] sm:$0xf] }
  0x6c   : > { %1272 = vst [vmem:[#allocation3 + $0x9c] sm:$0xf] %v1256_v44  ;;  %v1290_v51 = vld [vmem:[#allocation2 + $0x24] sm:$0xf]  ;;  %v492_v54 = vsel %vm4966_vm8, 0, %v491_v45  ;;  %v955_v59 = vrot.slane %v954_v47, 4 }
  0x6d   : > { %3269 = vmatmul.bf16.gmra.mxu3 %v3874_v25  ;;  %1101 = vst [vmem:[#allocation3 + $0x94] sm:$0xf] %v950_v14  ;;  %v1357_v56 = vshrl.u32 %v1290_v51, 16  ;;  %v1182_v60 = vrot.slane %v1180_v42, 4  ;;  %v1360_v61 = vshll.u32 %v1290_v51, 16  ;;  %v4527_v29 = vld [vmem:[%s5618_s3 + $0x1a0] sm:$0xff] }
  0x6e   : > { %1240 = vst [vmem:[#allocation3 + $0x98] sm:$0xf] %v1181_v49  ;;  %v1291_v62 = vld [vmem:[#allocation2 + $0x28] sm:$0xf]  ;;  %v871_v19 = vld [vmem:[#allocation2 + $0x24] sm:$0xf]  ;;  %3406 = vmatpush.bf16.msra.mxu2 %v4527_v29 }
  0x6f   : > { %v4417_v53 = vld [vmem:[#allocation3 + $0x70] sm:$0xf0]  ;;  %1273 = vst [vmem:[#allocation3 + $0xc0] sm:$0xf] %v1257_v50  ;;  %v1359_v1 = vrot.slane %v1357_v56, 4  ;;  %v1362_v4 = vrot.slane %v1360_v61, 5 }
  0x70   : > { %v3870_v58 = vor.u32 %v4417_v53, %v3869_v36  ;;  %v4409_v22 = vld [vmem:[#allocation3 + $0x30] sm:$0xf0]  ;;  %493 = vst [vmem:[#allocation2 + $0x2c] sm:$0x1] %v492_v54  ;;  %v1366_v17 = vshll.u32 %v1291_v62, 16  ;;  %v1370_v18 = vshrl.u32 %v1291_v62, 16 }
  0x71   : > { %v3842_v63 = vor.u32 %v4409_v22, %v3841_v27  ;;  %v3863_v0 = vld [vmem:[#allocation3 + $0x6c] sm:$0xf0]  ;;  %v1363_v13 = vor.u32 %v1362_v4, %v1359_v1  ;;  %v962_v37 = vshrl.u32 %v871_v19, 16  ;;  %v965_v39 = vshll.u32 %v871_v19, 16  ;;  %v1122_v40 = vld [vmem:[#allocation2 + $0x24] sm:$0xe] }
  0x72   : > { %v3866_v5 = vor.u32 %v4412_v46, %v3863_v0  ;;  %v1289_v7 = vld [vmem:[#allocation2 + $0x20] sm:$0x1]  ;;  %v872_v25 = vld [vmem:[#allocation2 + $0x28] sm:$0xf]  ;;  %v1368_v31 = vrot.slane %v1366_v17, 5  ;;  %v1372_v33 = vrot.slane %v1370_v18, 4 }
  0x73   : > { %v870_v8 = vld [vmem:[#allocation2 + $0x20] sm:$0x1]  ;;  %3313 = vmatmul.bf16.vlgmr.msrb.gmra.mxu0 %v3842_v63  ;;  %3220 = vmatmul.bf16.gmra.mxu2 %v3870_v58  ;;  %v1352_v10 = vshll.u32 %v1289_v7, 16  ;;  %v4422_v16 = vld [vmem:[#allocation3 + $0x9c] sm:$0xf]  ;;  %v1364_v24 = vrot.slane %v1363_v13, 4 }
  0x74   : > { %v1121_v9 = vld [vmem:[#allocation2 + $0x20] sm:$0x1]  ;;  %v957_v11 = vshll.u32 %v870_v8, 16  ;;  %3171 = vmatmul.bf16.gmra.mxu1 %v3866_v5  ;;  %v1373_v44 = vor.u32 %v1372_v33, %v1368_v31  ;;  %v971_v45 = vshll.u32 %v872_v25, 16  ;;  %v964_v14 = vrot.slane %v962_v37, 4  ;;  %s5432_s10 = sshll.u32 %s402_s13, 2 }
  0x75   : > { %v1183_v12 = vrot.slane %v1121_v9, 5  ;;  %v1354_v20 = vrot.slane %v1352_v10, 5  ;;  %v1369_v27 = vsel %vm5001_vm11, %v1364_v24, %v1368_v31  ;;  %v967_v47 = vrot.slane %v965_v39, 5  ;;  %v4519_v50 = vld [vmem:[%s5618_s3 + $0x160] sm:$0xff]  ;;  %v3905_v51 = vld [vmem:[#allocation3 + $0x98] sm:$0xf]  ;;  %s404_s12 = scalar_lea.vmem %s5617_s2, %s5432_s10 }
  0x76   : > { %v959_v21 = vrot.slane %v957_v11, 5  ;;  %v3907_v36 = vld [vmem:[#allocation3 + $0xbc] sm:$0xf0]  ;;  %v975_v49 = vshrl.u32 %v872_v25, 16  ;;  %v973_v53 = vrot.slane %v971_v45, 5  ;;  %v3802_v6 = vrot.slane %v1122_v40, 9  ;;  %3357 = vmatpush.bf16.msra.mxu1 %v4519_v50 }
  0x77   : > { %v1184_v23 = vsel %vm5006_vm14, %v1182_v60, %v1183_v12  ;;  %v1355_v34 = vsel %vm5001_vm11, %v1350_v43, %v1354_v20  ;;  %v3910_v41 = vor.u32 %v4422_v16, %v3907_v36  ;;  %v711_v42 = vld [vmem:[#allocation2 + $0x2c] sm:$0x1]  ;;  %v4535_v43 = vld [vmem:[%s5618_s3 + $0x1e0] sm:$0xff]  ;;  %v1123_v54 = vld [vmem:[#allocation2 + $0x28] sm:$0xf]  ;;  %v968_v58 = vor.u32 %v967_v47, %v964_v14 }
  0x78   : > { %1241 = vst [vmem:[#allocation3 + $0xbc] sm:$0xf] %v1184_v23  ;;  %v960_v35 = vsel %vm5001_vm11, %v955_v59, %v959_v21  ;;  %v712_v46 = vsel %vm4740_vm2, %v580_v28, %v711_v42  ;;  %3455 = vmatpush.bf16.msra.mxu3 %v4535_v43  ;;  %v3877_v56 = vld [vmem:[#allocation3 + $0x58] sm:$0xf]  ;;  %v977_v59 = vrot.slane %v975_v49, 4  ;;  %v1187_v60 = vrot.slane %v1123_v54, 5 }
  0x79   : > { %1519 = vst [vmem:[#allocation3 + $0x7c] sm:$0xf] %v1355_v34  ;;  %v4421_v28 = vld [vmem:[#allocation3 + $0x94] sm:$0xf]  ;;  %v1258_v61 = vld [vmem:[#allocation2 + $0x30] sm:$0xf] }
  0x7a   : > { %1102 = vst [vmem:[#allocation3 + $0xb8] sm:$0xf] %v960_v35  ;;  %v1259_v22 = vld [vmem:[#allocation2 + $0x34] sm:$0xf]  ;;  %v494_v62 = vld [vmem:[#allocation2 + $0x38] sm:$0x1]  ;;  %v978_v4 = vor.u32 %v977_v59, %v973_v53  ;;  %v1188_v5 = vsel %vm5006_vm14, %v3802_v6, %v1187_v60 }
  0x7b   : > { %713 = vst [vmem:[#allocation2 + $0x2c] sm:$0x1] %v712_v46  ;;  %v1374_v0 = vrot.slane %v1373_v44, 4  ;;  %v969_v1 = vrot.slane %v968_v58, 4  ;;  %v1189_v7 = vrot.slane %v1187_v60, 4  ;;  %v495_v8 = vsel %vm4966_vm8, 0, %v494_v62 }
  0x7c   : > { %1520 = vst [vmem:[#allocation3 + $0xa0] sm:$0xf] %v1369_v27  ;;  %v1293_v9 = vld [vmem:[#allocation2 + $0x30] sm:$0xf]  ;;  %v979_v13 = vrot.slane %v978_v4, 4  ;;  %v4543_v36 = vld [vmem:[%s5618_s3 + $0x220] sm:$0xff] }
  0x7d   : > { %3274 = vmatmul.bf16.gmra.mxu3 %v3910_v41  ;;  %1274 = vst [vmem:[#allocation3 + $0xe4] sm:$0xf] %v1258_v61  ;;  %v974_v12 = vsel %vm5001_vm11, %v969_v1, %v973_v53  ;;  %v1381_v15 = vshrl.u32 %v1293_v9, 16  ;;  %v1294_v18 = vld [vmem:[#allocation2 + $0x34] sm:$0xf]  ;;  %v1384_v33 = vshll.u32 %v1293_v9, 16  ;;  %3504 = vmatpush.bf16.msra.mxu0 %v4543_v36 }
  0x7e   : > { %1242 = vst [vmem:[#allocation3 + $0xe0] sm:$0xf] %v1188_v5  ;;  %v1390_v34 = vshll.u32 %v1294_v18, 16  ;;  %v1394_v35 = vshrl.u32 %v1294_v18, 16  ;;  %v874_v41 = vld [vmem:[#allocation2 + $0x30] sm:$0xf] }
  0x7f   : > { %v4426_v63 = vld [vmem:[#allocation3 + $0xb8] sm:$0xf0]  ;;  %1275 = vst [vmem:[#allocation3 + $0x108] sm:$0xf] %v1259_v22  ;;  %v1383_v31 = vrot.slane %v1381_v15, 4  ;;  %v1386_v27 = vrot.slane %v1384_v33, 5 }
  0x80   : > { %v4418_v10 = vld [vmem:[#allocation3 + $0x78] sm:$0xf0]  ;;  %v3906_v11 = vor.u32 %v4426_v63, %v3905_v51  ;;  %1103 = vst [vmem:[#allocation3 + $0xdc] sm:$0xf] %v974_v12  ;;  %v1392_v44 = vrot.slane %v1390_v34, 5  ;;  %v1396_v14 = vrot.slane %v1394_v35, 4 }
  0x81   : > { %v3878_v16 = vor.u32 %v4418_v10, %v3877_v56  ;;  %v3899_v17 = vld [vmem:[#allocation3 + $0xb4] sm:$0xf0]  ;;  %496 = vst [vmem:[#allocation2 + $0x38] sm:$0x1] %v495_v8  ;;  %v875_v47 = vld [vmem:[#allocation2 + $0x34] sm:$0xf]  ;;  %v1387_v51 = vor.u32 %v1386_v27, %v1383_v31 }
  0x82   : > { %v3902_v19 = vor.u32 %v4421_v28, %v3899_v17  ;;  %v1292_v20 = vld [vmem:[#allocation2 + $0x2c] sm:$0x1]  ;;  %v986_v49 = vshrl.u32 %v874_v41, 16  ;;  %v597_v50 = vrot.slane %v4794_v32, 4  ;;  %v989_v53 = vshll.u32 %v874_v41, 16  ;;  %v4526_v32 = vld [vmem:[%s5618_s3 + $0x198] sm:$0xff] }
  0x83   : > { %v873_v21 = vld [vmem:[#allocation2 + $0x2c] sm:$0x1]  ;;  %v1376_v24 = vshll.u32 %v1292_v20, 16  ;;  %3318 = vmatmul.bf16.gmra.mxu0 %v3878_v16  ;;  %3225 = vmatmul.bf16.gmra.mxu2 %v3906_v11  ;;  %v995_v54 = vshll.u32 %v875_v47, 16  ;;  %v1397_v58 = vor.u32 %v1396_v14, %v1392_v44  ;;  %v999_v6 = vshrl.u32 %v875_v47, 16  ;;  %v4534_v12 = vld [vmem:[%s5618_s3 + $0x1d8] sm:$0xff] }
  0x84   : > { %v1124_v23 = vld [vmem:[#allocation2 + $0x2c] sm:$0x1]  ;;  %v981_v25 = vshll.u32 %v873_v21, 16  ;;  %3176 = vmatmul.bf16.gmra.mxu1 %v3902_v19  ;;  %v4431_v42 = vld [vmem:[#allocation3 + $0xe4] sm:$0xf]  ;;  %v988_v59 = vrot.slane %v986_v49, 4  ;;  %3407 = vmatpush.bf16.msra.mxu2 %v4526_v32 }
  0x85   : > { %v1190_v29 = vrot.slane %v1124_v23, 5  ;;  %v1378_v37 = vrot.slane %v1376_v24, 5  ;;  %v1125_v60 = vld [vmem:[#allocation2 + $0x30] sm:$0xe]  ;;  %v1388_v28 = vrot.slane %v1387_v51, 4  ;;  %v991_v61 = vrot.slane %v989_v53, 5  ;;  %3456 = vmatpush.bf16.msra.mxu3 %v4534_v12 }
  0x86   : > { %v983_v39 = vrot.slane %v981_v25, 5  ;;  %v3943_v46 = vld [vmem:[#allocation3 + $0x104] sm:$0xf0]  ;;  %v997_v22 = vrot.slane %v995_v54, 5  ;;  %v1126_v62 = vld [vmem:[#allocation2 + $0x34] sm:$0xf] }
  0x87   : > { %v1191_v40 = vsel %vm5006_vm14, %v1189_v7, %v1190_v29  ;;  %v1379_v45 = vsel %vm5001_vm11, %v1374_v0, %v1378_v37  ;;  %v3946_v56 = vor.u32 %v4431_v42, %v3943_v46  ;;  %v3803_v63 = vrot.slane %v1125_v60, 9  ;;  %v3913_v0 = vld [vmem:[#allocation3 + $0xa0] sm:$0xf]  ;;  %v1260_v11 = vld [vmem:[#allocation2 + $0x3c] sm:$0xf]  ;;  %v4533_v12 = vld [vmem:[%s5618_s3 + $0x1d0] sm:$0xff] }
  0x88   : > { %1243 = vst [vmem:[#allocation3 + $0x104] sm:$0xf] %v1191_v40  ;;  %v984_v43 = vsel %vm5001_vm11, %v979_v13, %v983_v39  ;;  %v718_v1 = vld [vmem:[#allocation2 + $0x38] sm:$0x1]  ;;  %v1001_v4 = vrot.slane %v999_v6, 4  ;;  %v1194_v5 = vrot.slane %v1126_v62, 5  ;;  %v1393_v9 = vsel %vm5001_vm11, %v1388_v28, %v1392_v44 }
  0x89   : > { %1521 = vst [vmem:[#allocation3 + $0xc4] sm:$0xf] %v1379_v45  ;;  %v3941_v7 = vld [vmem:[#allocation3 + $0xe0] sm:$0xf]  ;;  %v719_v8 = vsel %vm4740_vm2, %v597_v50, %v718_v1  ;;  %v992_v10 = vor.u32 %v991_v61, %v988_v59  ;;  %v614_v13 = vrot.slane %v4891_v57, 4  ;;  %v5152_v20 = vrot.slane %v1397_v58, 4  ;;  %3457 = vmatpush.bf16.msra.mxu3 %v4533_v12 }
  0x8a   : > { %1104 = vst [vmem:[#allocation3 + $0x100] sm:$0xf] %v984_v43  ;;  %v4430_v15 = vld [vmem:[#allocation3 + $0xdc] sm:$0xf]  ;;  %v1195_v17 = vsel %vm5006_vm14, %v3803_v63, %v1194_v5  ;;  %v1261_v18 = vld [vmem:[#allocation2 + $0x40] sm:$0xf]  ;;  %v1002_v23 = vor.u32 %v1001_v4, %v997_v22 }
  0x8b   : > { %720 = vst [vmem:[#allocation2 + $0x38] sm:$0x1] %v719_v8  ;;  %v4518_v19 = vld [vmem:[%s5618_s3 + $0x158] sm:$0xff]  ;;  %v993_v21 = vrot.slane %v992_v10, 4  ;;  %v497_v24 = vld [vmem:[#allocation2 + $0x44] sm:$0x1] }
  0x8c   : > { %1522 = vst [vmem:[#allocation3 + $0xe8] sm:$0xf] %v1393_v9  ;;  %v1196_v29 = vrot.slane %v1194_v5, 4  ;;  %3358 = vmatpush.bf16.msra.mxu1 %v4518_v19  ;;  %v498_v31 = vsel %vm4966_vm8, 0, %v497_v24  ;;  %v1296_v37 = vld [vmem:[#allocation2 + $0x3c] sm:$0xf] }
  0x8d   : > { %3279 = vmatmul.bf16.gmra.mxu3 %v3946_v56  ;;  %1244 = vst [vmem:[#allocation3 + $0x128] sm:$0xf] %v1195_v17  ;;  %v998_v36 = vsel %vm5001_vm11, %v993_v21, %v997_v22  ;;  %v1297_v39 = vld [vmem:[#allocation2 + $0x40] sm:$0xf]  ;;  %v1405_v40 = vshrl.u32 %v1296_v37, 16  ;;  %v1408_v41 = vshll.u32 %v1296_v37, 16 }
  0x8e   : > { %1276 = vst [vmem:[#allocation3 + $0x12c] sm:$0xf] %v1260_v11  ;;  %v1003_v27 = vrot.slane %v1002_v23, 4  ;;  %v1414_v44 = vshll.u32 %v1297_v39, 16  ;;  %v1418_v45 = vshrl.u32 %v1297_v39, 16  ;;  %v4542_v58 = vld [vmem:[%s5618_s3 + $0x218] sm:$0xff] }
  0x8f   : > { %v4435_v16 = vld [vmem:[#allocation3 + $0x100] sm:$0xf0]  ;;  %1105 = vst [vmem:[#allocation3 + $0x124] sm:$0xf] %v998_v36  ;;  %v1407_v43 = vrot.slane %v1405_v40, 4  ;;  %v1410_v46 = vrot.slane %v1408_v41, 5  ;;  %3505 = vmatpush.bf16.msra.mxu0 %v4542_v58 }
  0x90   : > { %v4427_v25 = vld [vmem:[#allocation3 + $0xc0] sm:$0xf0]  ;;  %v3942_v35 = vor.u32 %v4435_v16, %v3941_v7  ;;  %1277 = vst [vmem:[#allocation3 + $0x150] sm:$0xf] %v1261_v18  ;;  %v1416_v59 = vrot.slane %v1414_v44, 5  ;;  %v1420_v6 = vrot.slane %v1418_v45, 4 }
  0x91   : > { %v3914_v33 = vor.u32 %v4427_v25, %v3913_v0  ;;  %v3935_v34 = vld [vmem:[#allocation3 + $0xfc] sm:$0xf0]  ;;  %499 = vst [vmem:[#allocation2 + $0x44] sm:$0x1] %v498_v31  ;;  %v877_v14 = vld [vmem:[#allocation2 + $0x3c] sm:$0xf]  ;;  %v1411_v56 = vor.u32 %v1410_v46, %v1407_v43 }
  0x92   : > { %v3938_v42 = vor.u32 %v4430_v15, %v3935_v34  ;;  %v1295_v47 = vld [vmem:[#allocation2 + $0x38] sm:$0x1]  ;;  %v878_v60 = vld [vmem:[#allocation2 + $0x40] sm:$0xf]  ;;  %v1010_v28 = vshrl.u32 %v877_v14, 16  ;;  %v1013_v61 = vshll.u32 %v877_v14, 16  ;;  %v1421_v21 = vor.u32 %v1420_v6, %v1416_v59 }
  0x93   : > { %3323 = vmatmul.bf16.gmra.mxu0 %v3914_v33  ;;  %3230 = vmatmul.bf16.gmra.mxu2 %v3942_v35  ;;  %v876_v49 = vld [vmem:[#allocation2 + $0x38] sm:$0x1]  ;;  %v1400_v51 = vshll.u32 %v1295_v47, 16  ;;  %v1412_v1 = vrot.slane %v1411_v56, 4  ;;  %v4525_v4 = vld [vmem:[%s5618_s3 + $0x190] sm:$0xff]  ;;  %v1019_v10 = vshll.u32 %v878_v60, 16 }
  0x94   : > { %v1127_v50 = vld [vmem:[#allocation2 + $0x38] sm:$0x1]  ;;  %v1005_v53 = vshll.u32 %v876_v49, 16  ;;  %3181 = vmatmul.bf16.gmra.mxu1 %v3938_v42  ;;  %v1012_v5 = vrot.slane %v1010_v28, 4  ;;  %v1015_v32 = vrot.slane %v1013_v61, 5  ;;  %3408 = vmatpush.bf16.msra.mxu2 %v4525_v4  ;;  %v1023_v19 = vshrl.u32 %v878_v60, 16 }
  0x95   : > { %v1197_v54 = vrot.slane %v1127_v50, 5  ;;  %v1402_v22 = vrot.slane %v1400_v51, 5  ;;  %v4440_v0 = vld [vmem:[#allocation3 + $0x12c] sm:$0xf]  ;;  %v1128_v11 = vld [vmem:[#allocation2 + $0x3c] sm:$0xe]  ;;  %v1417_v17 = vsel %vm5001_vm11, %v1412_v1, %v1416_v59 }
  0x96   : > { %v1007_v62 = vrot.slane %v1005_v53, 5  ;;  %v1016_v18 = vor.u32 %v1015_v32, %v1012_v5  ;;  %v1021_v23 = vrot.slane %v1019_v10, 5  ;;  %v1129_v24 = vld [vmem:[#allocation2 + $0x40] sm:$0xf]  ;;  %v3804_v25 = vrot.slane %v1128_v11, 9  ;;  %v4517_v34 = vld [vmem:[%s5618_s3 + $0x150] sm:$0xff] }
  0x97   : > { %v1198_v63 = vsel %vm5006_vm14, %v1196_v29, %v1197_v54  ;;  %v1403_v7 = vsel %vm5001_vm11, %v5152_v20, %v1402_v22  ;;  %v3979_v9 = vld [vmem:[#allocation3 + $0x14c] sm:$0xf0]  ;;  %v1025_v31 = vrot.slane %v1023_v19, 4  ;;  %v1201_v33 = vrot.slane %v1129_v24, 5  ;;  %v3949_v35 = vld [vmem:[#allocation3 + $0xe8] sm:$0xf]  ;;  %3359 = vmatpush.bf16.msra.mxu1 %v4517_v34 }
  0x98   : > { %1245 = vst [vmem:[#allocation3 + $0x14c] sm:$0xf] %v1198_v63  ;;  %v1008_v8 = vsel %vm5001_vm11, %v1003_v27, %v1007_v62  ;;  %v3982_v15 = vor.u32 %v4440_v0, %v3979_v9  ;;  %v725_v16 = vld [vmem:[#allocation2 + $0x44] sm:$0x1]  ;;  %v1017_v29 = vrot.slane %v1016_v18, 4  ;;  %v1422_v44 = vrot.slane %v1421_v21, 4 }
  0x99   : > { %1523 = vst [vmem:[#allocation3 + $0x10c] sm:$0xf] %v1403_v7  ;;  %v726_v20 = vsel %vm4740_vm2, %v614_v13, %v725_v16  ;;  %v3977_v36 = vld [vmem:[#allocation3 + $0x128] sm:$0xf]  ;;  %v1262_v57 = vld [vmem:[#allocation2 + $0x48] sm:$0xf]  ;;  %v1026_v39 = vor.u32 %v1025_v31, %v1021_v23  ;;  %v1202_v40 = vsel %vm5006_vm14, %v3804_v25, %v1201_v33 }
  0x9a   : > { %1106 = vst [vmem:[#allocation3 + $0x148] sm:$0xf] %v1008_v8  ;;  %v4439_v37 = vld [vmem:[#allocation3 + $0x124] sm:$0xf]  ;;  %v1022_v13 = vsel %vm5001_vm11, %v1017_v29, %v1021_v23  ;;  %v1263_v41 = vld [vmem:[#allocation2 + $0x4c] sm:$0xf] }
  0x9b   : > { %727 = vst [vmem:[#allocation2 + $0x44] sm:$0x1] %v726_v20  ;;  %v500_v42 = vld [vmem:[#allocation2 + $0x50] sm:$0x1]  ;;  %v1027_v46 = vrot.slane %v1026_v39, 4  ;;  %v1203_v14 = vrot.slane %v1201_v33, 4 }
  0x9c   : > { %1524 = vst [vmem:[#allocation3 + $0x130] sm:$0xf] %v1417_v17  ;;  %v501_v45 = vsel %vm4966_vm8, 0, %v500_v42  ;;  %v1299_v47 = vld [vmem:[#allocation2 + $0x48] sm:$0xf]  ;;  %v631_v63 = vrot.slane %v4821_v55, 4 }
  0x9d   : > { %3284 = vmatmul.bf16.gmra.mxu3 %v3982_v15  ;;  %1278 = vst [vmem:[#allocation3 + $0x174] sm:$0xf] %v1262_v57  ;;  %v1300_v50 = vld [vmem:[#allocation2 + $0x4c] sm:$0xf]  ;;  %v1429_v54 = vshrl.u32 %v1299_v47, 16  ;;  %v1432_v56 = vshll.u32 %v1299_v47, 16 }
  0x9e   : > { %1107 = vst [vmem:[#allocation3 + $0x16c] sm:$0xf] %v1022_v13  ;;  %v1438_v1 = vshll.u32 %v1300_v50, 16  ;;  %v1442_v4 = vshrl.u32 %v1300_v50, 16  ;;  %v4541_v5 = vld [vmem:[%s5618_s3 + $0x210] sm:$0xff]  ;;  %v4532_v47 = vld [vmem:[%s5618_s3 + $0x1c8] sm:$0xff] }
  0x9f   : > { %v4444_v27 = vld [vmem:[#allocation3 + $0x148] sm:$0xf0]  ;;  %1246 = vst [vmem:[#allocation3 + $0x170] sm:$0xf] %v1202_v40  ;;  %v1431_v62 = vrot.slane %v1429_v54, 4  ;;  %v1434_v0 = vrot.slane %v1432_v56, 5  ;;  %3506 = vmatpush.bf16.msra.mxu0 %v4541_v5  ;;  %3458 = vmatpush.bf16.msra.mxu3 %v4532_v47 }
  0xa0   : > { %v3978_v43 = vor.u32 %v4444_v27, %v3977_v36  ;;  %v4436_v49 = vld [vmem:[#allocation3 + $0x108] sm:$0xf0]  ;;  %1279 = vst [vmem:[#allocation3 + $0x198] sm:$0xf] %v1263_v41  ;;  %v880_v10 = vld [vmem:[#allocation2 + $0x48] sm:$0xf] }
  0xa1   : > { %v3950_v51 = vor.u32 %v4436_v49, %v3949_v35  ;;  %v3971_v53 = vld [vmem:[#allocation3 + $0x144] sm:$0xf0]  ;;  %502 = vst [vmem:[#allocation2 + $0x50] sm:$0x1] %v501_v45  ;;  %v1435_v11 = vor.u32 %v1434_v0, %v1431_v62  ;;  %v1440_v12 = vrot.slane %v1438_v1, 5  ;;  %v1444_v15 = vrot.slane %v1442_v4, 4 }
  0xa2   : > { %v3974_v58 = vor.u32 %v4439_v37, %v3971_v53  ;;  %v1298_v59 = vld [vmem:[#allocation2 + $0x44] sm:$0x1]  ;;  %v881_v18 = vld [vmem:[#allocation2 + $0x4c] sm:$0xf]  ;;  %v1034_v19 = vshrl.u32 %v880_v10, 16  ;;  %v1037_v20 = vshll.u32 %v880_v10, 16 }
  0xa3   : > { %v879_v6 = vld [vmem:[#allocation2 + $0x44] sm:$0x1]  ;;  %3328 = vmatmul.bf16.gmra.mxu0 %v3950_v51  ;;  %3235 = vmatmul.bf16.gmra.mxu2 %v3978_v43  ;;  %v1424_v28 = vshll.u32 %v1298_v59, 16  ;;  %v1436_v24 = vrot.slane %v1435_v11, 4  ;;  %v1043_v25 = vshll.u32 %v881_v18, 16  ;;  %v1047_v34 = vshrl.u32 %v881_v18, 16 }
  0xa4   : > { %v1130_v60 = vld [vmem:[#allocation2 + $0x44] sm:$0x1]  ;;  %v1029_v61 = vshll.u32 %v879_v6, 16  ;;  %3186 = vmatmul.bf16.gmra.mxu1 %v3974_v58  ;;  %v4449_v9 = vld [vmem:[#allocation3 + $0x174] sm:$0xf]  ;;  %v1036_v31 = vrot.slane %v1034_v19, 4  ;;  %v1445_v37 = vor.u32 %v1444_v15, %v1440_v12 }
  0xa5   : > { %v1204_v22 = vrot.slane %v1130_v60, 5  ;;  %v1426_v32 = vrot.slane %v1424_v28, 5  ;;  %v1039_v33 = vrot.slane %v1037_v20, 5  ;;  %v4524_v35 = vld [vmem:[%s5618_s3 + $0x188] sm:$0xff]  ;;  %v1441_v57 = vsel %vm5001_vm11, %v1436_v24, %v1440_v12  ;;  %v4448_v45 = vld [vmem:[#allocation3 + $0x16c] sm:$0xf] }
  0xa6   : > { %v1031_v7 = vrot.slane %v1029_v61, 5  ;;  %v4013_v36 = vld [vmem:[#allocation3 + $0x170] sm:$0xf]  ;;  %v1045_v13 = vrot.slane %v1043_v25, 5  ;;  %1526 = vst [vmem:[#allocation3 + $0x178] sm:$0xf] %v1441_v57  ;;  %3409 = vmatpush.bf16.msra.mxu2 %v4524_v35 }
  0xa7   : > { %v1205_v8 = vsel %vm5006_vm14, %v1203_v14, %v1204_v22  ;;  %v1427_v55 = vsel %vm5001_vm11, %v1422_v44, %v1426_v32  ;;  %v4015_v17 = vld [vmem:[#allocation3 + $0x194] sm:$0xf0]  ;;  %v1131_v39 = vld [vmem:[#allocation2 + $0x48] sm:$0xe]  ;;  %v1040_v41 = vor.u32 %v1039_v33, %v1036_v31  ;;  %v1049_v42 = vrot.slane %v1047_v34, 4 }
  0xa8   : > { %1247 = vst [vmem:[#allocation3 + $0x194] sm:$0xf] %v1205_v8  ;;  %v1032_v16 = vsel %vm5001_vm11, %v1027_v46, %v1031_v7  ;;  %v4018_v21 = vor.u32 %v4449_v9, %v4015_v17  ;;  %v732_v23 = vld [vmem:[#allocation2 + $0x50] sm:$0x1]  ;;  %v3985_v40 = vld [vmem:[#allocation3 + $0x130] sm:$0xf] }
  0xa9   : > { %1525 = vst [vmem:[#allocation3 + $0x154] sm:$0xf] %v1427_v55  ;;  %v733_v29 = vsel %vm4740_vm2, %v631_v63, %v732_v23  ;;  %v1132_v27 = vld [vmem:[#allocation2 + $0x4c] sm:$0xf]  ;;  %v3805_v44 = vrot.slane %v1131_v39, 9  ;;  %v1041_v50 = vrot.slane %v1040_v41, 4  ;;  %v1050_v51 = vor.u32 %v1049_v42, %v1045_v13 }
  0xaa   : > { %1108 = vst [vmem:[#allocation3 + $0x190] sm:$0xf] %v1032_v16  ;;  %v1208_v43 = vrot.slane %v1132_v27, 5  ;;  %v1264_v46 = vld [vmem:[#allocation2 + $0x54] sm:$0xf]  ;;  %v4516_v53 = vld [vmem:[%s5618_s3 + $0x148] sm:$0xff] }
  0xab   : > { %734 = vst [vmem:[#allocation2 + $0x50] sm:$0x1] %v733_v29  ;;  %v1265_v14 = vld [vmem:[#allocation2 + $0x58] sm:$0xf]  ;;  %v1446_v54 = vrot.slane %v1445_v37, 4  ;;  %v1046_v28 = vsel %vm5001_vm11, %v1041_v50, %v1045_v13  ;;  %v1051_v61 = vrot.slane %v1050_v51, 4  ;;  %3360 = vmatpush.bf16.msra.mxu1 %v4516_v53 }
  0xac   : > { %1280 = vst [vmem:[#allocation3 + $0x1bc] sm:$0xf] %v1264_v46  ;;  %v1209_v56 = vsel %vm5006_vm14, %v3805_v44, %v1208_v43  ;;  %v1210_v58 = vrot.slane %v1208_v43, 4  ;;  %v503_v59 = vld [vmem:[#allocation2 + $0x5c] sm:$0x1]  ;;  %v4540_v15 = vld [vmem:[%s5618_s3 + $0x208] sm:$0xff] }
  0xad   : > { %3289 = vmatmul.bf16.gmra.mxu3 %v4018_v21  ;;  %1281 = vst [vmem:[#allocation3 + $0x1e0] sm:$0xf] %v1265_v14  ;;  %v504_v22 = vsel %vm4966_vm8, 0, %v503_v59  ;;  %v1302_v0 = vld [vmem:[#allocation2 + $0x54] sm:$0xf]  ;;  %3507 = vmatpush.bf16.msra.mxu0 %v4540_v15  ;;  %v648_v33 = vrot.slane %v4922_v38, 4 }
  0xae   : > { %1248 = vst [vmem:[#allocation3 + $0x1b8] sm:$0xf] %v1209_v56  ;;  %v1453_v10 = vshrl.u32 %v1302_v0, 16  ;;  %v1303_v11 = vld [vmem:[#allocation2 + $0x58] sm:$0xf]  ;;  %v1456_v12 = vshll.u32 %v1302_v0, 16 }
  0xaf   : > { %v4453_v49 = vld [vmem:[#allocation3 + $0x190] sm:$0xf0]  ;;  %1109 = vst [vmem:[#allocation3 + $0x1b4] sm:$0xf] %v1046_v28  ;;  %v1462_v23 = vshll.u32 %v1303_v11, 16  ;;  %v1466_v29 = vshrl.u32 %v1303_v11, 16 }
  0xb0   : > { %v4445_v6 = vld [vmem:[#allocation3 + $0x150] sm:$0xf0]  ;;  %v4014_v60 = vor.u32 %v4453_v49, %v4013_v36  ;;  %505 = vst [vmem:[#allocation2 + $0x5c] sm:$0x1] %v504_v22  ;;  %v1455_v19 = vrot.slane %v1453_v10, 4  ;;  %v1458_v21 = vrot.slane %v1456_v12, 5 }
  0xb1   : > { %v3986_v62 = vor.u32 %v4445_v6, %v3985_v40  ;;  %v4007_v63 = vld [vmem:[#allocation3 + $0x18c] sm:$0xf0]  ;;  %v883_v31 = vld [vmem:[#allocation2 + $0x54] sm:$0xf]  ;;  %v1464_v35 = vrot.slane %v1462_v23, 5  ;;  %v1468_v37 = vrot.slane %v1466_v29, 4 }
  0xb2   : > { %v4010_v1 = vor.u32 %v4448_v45, %v4007_v63  ;;  %v1301_v4 = vld [vmem:[#allocation2 + $0x50] sm:$0x1]  ;;  %v1459_v34 = vor.u32 %v1458_v21, %v1455_v19  ;;  %v1058_v36 = vshrl.u32 %v883_v31, 16  ;;  %v884_v13 = vld [vmem:[#allocation2 + $0x58] sm:$0xf]  ;;  %v1061_v39 = vshll.u32 %v883_v31, 16  ;;  %v5228_v45 = vpop.f32.mrf.mxu1 }
  0xb3   : > { %v882_v5 = vld [vmem:[#allocation2 + $0x50] sm:$0x1]  ;;  %v1448_v7 = vshll.u32 %v1301_v4, 16  ;;  %3333 = vmatmul.bf16.gmra.mxu0 %v3986_v62  ;;  %3240 = vmatmul.bf16.gmra.mxu2 %v4014_v60  ;;  %v4458_v18 = vld [vmem:[#allocation3 + $0x1bc] sm:$0xf]  ;;  %v1067_v42 = vshll.u32 %v884_v13, 16  ;;  %v1469_v28 = vor.u32 %v1468_v37, %v1464_v35 }
  0xb4   : > { %v1133_v32 = vld [vmem:[#allocation2 + $0x50] sm:$0x1]  ;;  %v1053_v8 = vshll.u32 %v882_v5, 16  ;;  %3191 = vmatmul.bf16.gmra.mxu1 %v4010_v1  ;;  %v4051_v20 = vld [vmem:[#allocation3 + $0x1dc] sm:$0xf0]  ;;  %v1460_v40 = vrot.slane %v1459_v34, 4 }
  0xb5   : > { %v1211_v9 = vrot.slane %v1133_v32, 5  ;;  %v1450_v55 = vrot.slane %v1448_v7, 5  ;;  %v4054_v57 = vor.u32 %v4458_v18, %v4051_v20  ;;  %v1060_v41 = vrot.slane %v1058_v36, 4  ;;  %v1134_v44 = vld [vmem:[#allocation2 + $0x54] sm:$0xe]  ;;  %v5240_v4 = vpop.f32.mrf.mxu2  ;;  %v4531_v18 = vld [vmem:[%s5618_s3 + $0x1c0] sm:$0xff] }
  0xb6   : > { %v1055_v16 = vrot.slane %v1053_v8, 5  ;;  %v1071_v27 = vshrl.u32 %v884_v13, 16  ;;  %v4021_v43 = vld [vmem:[#allocation3 + $0x178] sm:$0xf]  ;;  %v1063_v14 = vrot.slane %v1061_v39, 5  ;;  %v3806_v49 = vrot.slane %v1134_v44, 9  ;;  %3459 = vmatpush.bf16.msra.mxu3 %v4531_v18 }
  0xb7   : > { %v1212_v17 = vsel %vm5006_vm14, %v1210_v58, %v1211_v9  ;;  %v1451_v24 = vsel %vm5001_vm11, %v1446_v54, %v1450_v55  ;;  %v4049_v46 = vld [vmem:[#allocation3 + $0x1b8] sm:$0xf]  ;;  %v739_v38 = vld [vmem:[#allocation2 + $0x5c] sm:$0x1]  ;;  %v1135_v47 = vld [vmem:[#allocation2 + $0x58] sm:$0xf]  ;;  %v1465_v51 = vsel %vm5001_vm11, %v1460_v40, %v1464_v35 }
  0xb8   : > { %1249 = vst [vmem:[#allocation3 + $0x1dc] sm:$0xf] %v1212_v17  ;;  %v1056_v25 = vsel %vm5001_vm11, %v1051_v61, %v1055_v16  ;;  %v740_v50 = vsel %vm4740_vm2, %v648_v33, %v739_v38  ;;  %v1069_v53 = vrot.slane %v1067_v42, 5  ;;  %v1073_v54 = vrot.slane %v1071_v27, 4  ;;  %v474_v56 = vld [vmem:[#allocation2 + $0x60] sm:$0x1]  ;;  %v5235_v60 = vpop.f32.mrf.mxu3 }
  0xb9   : > { %1527 = vst [vmem:[#allocation3 + $0x19c] sm:$0xf] %v1451_v24  ;;  %v526_v58 = vld [vmem:[%s4771_s22 + $0x38] sm:$0xf]  ;;  %v4457_v59 = vld [vmem:[#allocation3 + $0x1b4] sm:$0xf]  ;;  %v1064_v61 = vor.u32 %v1063_v14, %v1060_v41 }
  0xba   : > { %1110 = vst [vmem:[#allocation3 + $0x1d8] sm:$0xf] %v1056_v25  ;;  %v1215_v22 = vrot.slane %v1135_v47, 5  ;;  %v475_v62 = vsel %vm4740_vm2, 0, %v474_v56  ;;  %v527_v63 = vld [vmem:[%s4771_s22 + $0x3c] sm:$0xf]  ;;  %v1074_v32 = vor.u32 %v1073_v54, %v1069_v53  ;;  %v5257_v13 = vpop.f32.mrf.mxu1 }
  0xbb   : > { %741 = vst [vmem:[#allocation2 + $0x5c] sm:$0x1] %v740_v50  ;;  %v650_v0 = vshrl.u32 %v526_v58, 16  ;;  %v1065_v5 = vrot.slane %v1064_v61, 4  ;;  %v1470_v12 = vrot.slane %v1469_v28, 4  ;;  %v653_v55 = vshll.u32 %v526_v58, 16 }
  0xbc   : > { %1528 = vst [vmem:[#allocation3 + $0x1c0] sm:$0xf] %v1465_v51  ;;  %v1216_v7 = vsel %vm5006_vm14, %v3806_v49, %v1215_v22  ;;  %v658_v16 = vshrl.u32 %v527_v63, 16  ;;  %v4523_v17 = vld [vmem:[%s5618_s3 + $0x180] sm:$0xff]  ;;  %v1217_v21 = vrot.slane %v1215_v22, 4  ;;  %v661_v23 = vshll.u32 %v527_v63, 16 }
  0xbd   : > { %3294 = vmatmul.bf16.gmra.mxu3 %v4054_v57  ;;  %476 = vst [vmem:[#allocation2 + $0x60] sm:$0x1] %v475_v62  ;;  %v652_v11 = vrot.slane %v650_v0, 7  ;;  %v1070_v15 = vsel %vm5001_vm11, %v1065_v5, %v1069_v53  ;;  %v4515_v19 = vld [vmem:[%s5618_s3 + $0x140] sm:$0xff]  ;;  %v506_v24 = vld [vmem:[#allocation2 + $0x68] sm:$0x1]  ;;  %3410 = vmatpush.bf16.msra.mxu2 %v4523_v17  ;;  %v5270_v56 = vpop.f32.mrf.mxu2 }
  0xbe   : > { %1250 = vst [vmem:[#allocation3 + $0x200] sm:$0xf] %v1216_v7  ;;  %v1075_v25 = vrot.slane %v1074_v32, 4  ;;  %v660_v31 = vrot.slane %v658_v16, 7  ;;  %v507_v33 = vsel %vm4966_vm8, 0, %v506_v24  ;;  %3361 = vmatpush.bf16.msra.mxu1 %v4515_v19  ;;  %v4539_v49 = vld [vmem:[%s5618_s3 + $0x200] sm:$0xff] }
  0xbf   : > { %v4462_v6 = vld [vmem:[#allocation3 + $0x1d8] sm:$0xf0]  ;;  %1111 = vst [vmem:[#allocation3 + $0x1fc] sm:$0xf] %v1070_v15  ;;  %v656_v29 = vrot.slane %v652_v11, 4  ;;  %v655_v37 = vor.u32 %v653_v55, %v652_v11  ;;  %3508 = vmatpush.bf16.msra.mxu0 %v4539_v49 }
  0xc0   : > { %v4454_v1 = vld [vmem:[#allocation3 + $0x198] sm:$0xf0]  ;;  %v4050_v10 = vor.u32 %v4462_v6, %v4049_v46  ;;  %v1532_v34 = vld [vmem:[#allocation2 + $0xc] sm:$0xe]  ;;  %v663_v42 = vor.u32 %v661_v23, %v660_v31  ;;  %v1533_v27 = vld [vmem:[#allocation2 + $0x10] sm:$0xf]  ;;  %v5259_v46 = vpop.f32.mrf.mxu3 }
  0xc1   : > { %v4022_v8 = vor.u32 %v4454_v1, %v4021_v43  ;;  %v4043_v9 = vld [vmem:[#allocation3 + $0x1d4] sm:$0xf0]  ;;  %508 = vst [vmem:[#allocation2 + $0x68] sm:$0x1] %v507_v33  ;;  %v3807_v43 = vrot.slane %v1532_v34, 9  ;;  %v1582_v53 = vrot.slane %v1533_v27, 5 }
  0xc2   : > { %v4046_v20 = vor.u32 %v4457_v59, %v4043_v9  ;;  %v1304_v35 = vld [vmem:[#allocation2 + $0x5c] sm:$0x1]  ;;  %v1534_v51 = vld [vmem:[#allocation2 + $0x14] sm:$0x1]  ;;  %v664_v6 = vsel %vm4781_vm6, %v656_v29, %v663_v42  ;;  %v665_v61 = vrot.slane %v660_v31, 4  ;;  %v5284_v19 = vpop.f32.mrf.mxu1 }
  0xc3   : > { %3338 = vmatmul.bf16.gmra.mxu0 %v4022_v8  ;;  %3245 = vmatmul.bf16.gmra.mxu2 %v4050_v10  ;;  %v885_v36 = vld [vmem:[#allocation2 + $0x5c] sm:$0x1]  ;;  %v1472_v39 = vshll.u32 %v1304_v35, 16  ;;  %v1585_v28 = vrot.slane %v1534_v51, 5  ;;  %v1583_v22 = vsel %vm5006_vm14, %v3807_v43, %v1582_v53  ;;  %v1584_v62 = vrot.slane %v1582_v53, 4 }
  0xc4   : > { %v1136_v57 = vld [vmem:[#allocation2 + $0x5c] sm:$0x1]  ;;  %v1077_v40 = vshll.u32 %v885_v36, 16  ;;  %3196 = vmatmul.bf16.gmra.mxu1 %v4046_v20  ;;  %v742_v44 = vld [vmem:[#allocation2 + $0x60] sm:$0xf] }
  0xc5   : > { %v1218_v41 = vrot.slane %v1136_v57, 5  ;;  %v1474_v38 = vrot.slane %v1472_v39, 5  ;;  %v743_v50 = vsel %vm4790_vm7, %v655_v37, %v742_v44  ;;  %v4085_v63 = vld [vmem:[#allocation3 + $0x200] sm:$0xf]  ;;  %745 = vst [vmem:[#allocation2 + $0x64] sm:$0xf] %v664_v6  ;;  %v1586_v5 = vsel %vm5006_vm14, %v1584_v62, %v1585_v28 }
  0xc6   : > { %v1079_v14 = vrot.slane %v1077_v40, 5  ;;  %744 = vst [vmem:[#allocation2 + $0x60] sm:$0xf] %v743_v50  ;;  %v1669_v0 = vld [vmem:[#allocation2 + $0x18] sm:$0xf] }
  0xc7   : > { %v1219_v47 = vsel %vm5006_vm14, %v1217_v21, %v1218_v41  ;;  %v5268_v54 = vpop.f32.mrf.mxu0  ;;  %v1475_v58 = vsel %vm5001_vm11, %v1470_v12, %v1474_v38  ;;  %v1701_v1 = vld [vmem:[#allocation2 + $0x18] sm:$0xf]  ;;  %v1702_v32 = vld [vmem:[#allocation2 + $0x1c] sm:$0xf]  ;;  %v1703_v7 = vld [vmem:[#allocation2 + $0x20] sm:$0x1] }
  0xc8   : > { %1251 = vst [vmem:[#allocation3 + $0x224] sm:$0xf] %v1219_v47  ;;  %v1080_v59 = vsel %vm5001_vm11, %v1075_v25, %v1079_v14  ;;  %v4057_v8 = vld [vmem:[#allocation3 + $0x1c0] sm:$0xf]  ;;  %v746_v9 = vld [vmem:[#allocation2 + $0x68] sm:$0x1] }
  0xc9   : > { %1529 = vst [vmem:[#allocation3 + $0x1e4] sm:$0xf] %v1475_v58  ;;  %v1670_v10 = vld [vmem:[#allocation2 + $0x1c] sm:$0xf]  ;;  %v1726_v11 = vshrl.u32 %v1701_v1, 16  ;;  %v1729_v12 = vshll.u32 %v1701_v1, 16  ;;  %v747_v55 = vsel %vm4740_vm2, %v665_v61, %v746_v9 }
  0xca   : > { %1112 = vst [vmem:[#allocation3 + $0x220] sm:$0xf] %v1080_v59  ;;  %v4466_v15 = vld [vmem:[#allocation3 + $0x1fc] sm:$0xf]  ;;  %v1735_v16 = vshll.u32 %v1702_v32, 16  ;;  %v1739_v17 = vshrl.u32 %v1702_v32, 16  ;;  %v5296_v9 = vpop.f32.mrf.mxu1 }
  0xcb   : > { %1652 = vst [vmem:[#allocation3 + $0x14] sm:$0xf] %v1583_v22  ;;  %v1745_v18 = vshll.u32 %v1703_v7, 16  ;;  %v1728_v21 = vrot.slane %v1726_v11, 4  ;;  %v1731_v23 = vrot.slane %v1729_v12, 5  ;;  %v5290_v44 = vpop.f32.mrf.mxu2 }
  0xcc   : > { %1653 = vst [vmem:[#allocation3 + $0x38] sm:$0xf] %v1586_v5  ;;  %v1737_v39 = vrot.slane %v1735_v16, 5  ;;  %v1741_v40 = vrot.slane %v1739_v17, 4  ;;  %v1267_v42 = vld [vmem:[#allocation2 + $0x64] sm:$0xf] }
  0xcd   : > { %748 = vst [vmem:[#allocation2 + $0x68] sm:$0x1] %v747_v55  ;;  %v1266_v25 = vld [vmem:[#allocation2 + $0x60] sm:$0xf]  ;;  %v1732_v36 = vor.u32 %v1731_v23, %v1728_v21  ;;  %v1306_v43 = vld [vmem:[#allocation2 + $0x64] sm:$0xf] }
  0xce   : > { %v1305_v29 = vld [vmem:[#allocation2 + $0x60] sm:$0xf]  ;;  %1685 = vst [vmem:[#allocation3 + $0x18] sm:$0xf] %v1669_v0  ;;  %v1486_v47 = vshll.u32 %v1306_v43, 16  ;;  %v1490_v49 = vshrl.u32 %v1306_v43, 16  ;;  %v1742_v50 = vor.u32 %v1741_v40, %v1737_v39 }
  0xcf   : > { %v4471_v20 = vld [vmem:[#allocation3 + $0x220] sm:$0xf0]  ;;  %1282 = vst [vmem:[#allocation3 + $0x204] sm:$0xf] %v1266_v25  ;;  %v1477_v34 = vshrl.u32 %v1305_v29, 16  ;;  %v1480_v35 = vshll.u32 %v1305_v29, 16  ;;  %v5288_v27 = vpop.f32.mrf.mxu0 }
  0xd0   : > { %v4086_v24 = vor.u32 %v4471_v20, %v4085_v63  ;;  %v4463_v31 = vld [vmem:[#allocation3 + $0x1e0] sm:$0xf0]  ;;  %v5286_v33 = vpop.f32.mrf.mxu3  ;;  %1686 = vst [vmem:[#allocation3 + $0x3c] sm:$0xf] %v1670_v10  ;;  %v1733_v53 = vrot.slane %v1732_v36, 4  ;;  %v1747_v58 = vrot.slane %v1745_v18, 5 }
  0xd1   : > { %v4058_v57 = vor.u32 %v4463_v31, %v4057_v8  ;;  %v4079_v37 = vld [vmem:[#allocation3 + $0x21c] sm:$0xf0]  ;;  %v1479_v38 = vrot.slane %v1477_v34, 4  ;;  %v1482_v14 = vrot.slane %v1480_v35, 5  ;;  %1283 = vst [vmem:[#allocation3 + $0x228] sm:$0xf] %v1267_v42 }
  0xd2   : > { %v4082_v41 = vor.u32 %v4466_v15, %v4079_v37  ;;  %v1949_v59 = vld [vmem:[#allocation2 + $0x18] sm:$0xe]  ;;  %v1488_v28 = vrot.slane %v1486_v47, 5  ;;  %v1492_v61 = vrot.slane %v1490_v49, 4  ;;  %v1743_v22 = vrot.slane %v1742_v50, 4 }
  0xd3   : > { %3343 = vmatmul.bf16.gmra.mxu0 %v4058_v57  ;;  %3250 = vmatmul.bf16.gmra.mxu2 %v4086_v24  ;;  %v1483_v51 = vor.u32 %v1482_v14, %v1479_v38  ;;  %v1738_v0 = vsel %vm5001_vm11, %v1733_v53, %v1737_v39  ;;  %v1950_v1 = vld [vmem:[#allocation2 + $0x1c] sm:$0xf]  ;;  %v1951_v7 = vld [vmem:[#allocation2 + $0x20] sm:$0x1]  ;;  %v3815_v15 = vrot.slane %v1949_v59, 9  ;;  %v5308_v39 = vpop.f32.mrf.mxu2 }
  0xd4   : > { %3201 = vmatmul.bf16.gmra.mxu1 %v4082_v41  ;;  %v1307_v6 = vld [vmem:[#allocation2 + $0x68] sm:$0x1]  ;;  %v1493_v5 = vor.u32 %v1492_v61, %v1488_v28  ;;  %v1748_v32 = vsel %vm5001_vm11, %v1743_v22, %v1747_v58  ;;  %1933 = vst [vmem:[#allocation3 + $0x1c] sm:$0xf] %v1738_v0  ;;  %v1999_v16 = vrot.slane %v1950_v1, 5  ;;  %v2002_v17 = vrot.slane %v1951_v7, 5 }
  0xd5   : > { %v1484_v62 = vrot.slane %v1483_v51, 4  ;;  %v1496_v63 = vshll.u32 %v1307_v6, 16  ;;  %1934 = vst [vmem:[#allocation3 + $0x40] sm:$0xf] %v1748_v32  ;;  %v3849_v20 = vld [vmem:[#allocation3 + $0x18] sm:$0xf] }
  0xd6   : > { %v4467_v8 = vld [vmem:[#allocation3 + $0x204] sm:$0xf]  ;;  %v1494_v55 = vrot.slane %v1493_v5, 4  ;;  %v1535_v21 = vld [vmem:[#allocation2 + $0x18] sm:$0xe]  ;;  %v2000_v35 = vsel %vm5006_vm14, %v3815_v15, %v1999_v16  ;;  %v2001_v36 = vrot.slane %v1999_v16, 4 }
  0xd7   : > { %v1489_v11 = vsel %vm5001_vm11, %v1484_v62, %v1488_v28  ;;  %v1498_v12 = vrot.slane %v1496_v63, 5  ;;  %v1536_v23 = vld [vmem:[#allocation2 + $0x1c] sm:$0xf]  ;;  %v4405_v29 = vld [vmem:[#allocation3 + $0x14] sm:$0xf]  ;;  %v5306_v37 = vpop.f32.mrf.mxu0  ;;  %v3808_v40 = vrot.slane %v1535_v21, 9 }
  0xd8   : > { %v5298_v10 = vpop.f32.mrf.mxu3  ;;  %1530 = vst [vmem:[#allocation3 + $0x208] sm:$0xf] %v1489_v11  ;;  %v4087_v18 = vld [vmem:[#allocation3 + $0x224] sm:$0xf0]  ;;  %v3843_v31 = vld [vmem:[#allocation3 + $0x34] sm:$0xf0]  ;;  %v2003_v43 = vsel %vm5006_vm14, %v2001_v36, %v2002_v17 }
  0xd9   : > { %v4090_v24 = vor.u32 %v4467_v8, %v4087_v18  ;;  %v1499_v25 = vsel %vm5001_vm11, %v1494_v55, %v1498_v12  ;;  %v4410_v34 = vld [vmem:[#allocation3 + $0x38] sm:$0xf0]  ;;  %v1537_v57 = vld [vmem:[#allocation2 + $0x20] sm:$0x1]  ;;  %v1589_v41 = vrot.slane %v1536_v23, 5  ;;  %v3846_v6 = vor.u32 %v4405_v29, %v3843_v31 }
  0xda   : > { %1531 = vst [vmem:[#allocation3 + $0x22c] sm:$0xf] %v1499_v25  ;;  %v1592_v42 = vrot.slane %v1537_v57, 5  ;;  %v1671_v38 = vld [vmem:[#allocation2 + $0x24] sm:$0xf]  ;;  %v3850_v51 = vor.u32 %v4410_v34, %v3849_v20 }
  0xdb   : > { %3299 = vmatmul.bf16.gmra.mxu3 %v4090_v24  ;;  %2069 = vst [vmem:[#allocation3 + $0x20] sm:$0xf] %v2000_v35  ;;  %v1704_v14 = vld [vmem:[#allocation2 + $0x24] sm:$0xf]  ;;  %v1590_v47 = vsel %vm5006_vm14, %v3808_v40, %v1589_v41  ;;  %v1591_v49 = vrot.slane %v1589_v41, 4 }
  0xdc   : > { %2070 = vst [vmem:[#allocation3 + $0x44] sm:$0xf] %v2003_v43  ;;  %v1750_v50 = vshrl.u32 %v1704_v14, 16  ;;  %v1672_v53 = vld [vmem:[#allocation2 + $0x28] sm:$0xf]  ;;  %v1753_v63 = vshll.u32 %v1704_v14, 16 }
  0xdd   : > { %1654 = vst [vmem:[#allocation3 + $0x5c] sm:$0xf] %v1590_v47  ;;  %v1705_v58 = vld [vmem:[#allocation2 + $0x28] sm:$0xf]  ;;  %v1593_v61 = vsel %vm5006_vm14, %v1591_v49, %v1592_v42  ;;  %v1706_v22 = vld [vmem:[#allocation2 + $0x2c] sm:$0x1] }
  0xde   : > { %1687 = vst [vmem:[#allocation3 + $0x60] sm:$0xf] %v1671_v38  ;;  %v1752_v62 = vrot.slane %v1750_v50, 4  ;;  %v1759_v0 = vshll.u32 %v1705_v58, 16  ;;  %v1763_v1 = vshrl.u32 %v1705_v58, 16  ;;  %v1769_v32 = vshll.u32 %v1706_v22, 16 }
  0xdf   : > { %v4093_v59 = vld [vmem:[#allocation3 + $0x208] sm:$0xf]  ;;  %1655 = vst [vmem:[#allocation3 + $0x80] sm:$0xf] %v1593_v61  ;;  %v1952_v7 = vld [vmem:[#allocation2 + $0x24] sm:$0xe]  ;;  %v5317_v34 = vpop.f32.mrf.mxu0 }
  0xe0   : > { %v3265_v28 = vpop.f32.mrf.mxu3  ;;  %1688 = vst [vmem:[#allocation3 + $0x84] sm:$0xf] %v1672_v53  ;;  %v1755_v12 = vrot.slane %v1753_v63, 5  ;;  %v1761_v15 = vrot.slane %v1759_v0, 5  ;;  %v1765_v55 = vrot.slane %v1763_v1, 4  ;;  %v3816_v18 = vrot.slane %v1952_v7, 9 }
  0xe1   : > { %v3167_v5 = vpop.f32.mrf.mxu1  ;;  %v4472_v11 = vld [vmem:[#allocation3 + $0x228] sm:$0xf0]  ;;  %v1953_v17 = vld [vmem:[#allocation2 + $0x28] sm:$0xf]  ;;  %v4406_v20 = vld [vmem:[#allocation3 + $0x1c] sm:$0xf] }
  0xe2   : > { %v3168_v8 = vadd.f32 %v3167_v5, %v5268_v54  ;;  %v4094_v16 = vor.u32 %v4472_v11, %v4093_v59  ;;  %v1756_v21 = vor.u32 %v1755_v12, %v1752_v62  ;;  %v1766_v23 = vor.u32 %v1765_v55, %v1761_v15  ;;  %v1954_v25 = vld [vmem:[#allocation2 + $0x2c] sm:$0x1]  ;;  %v3851_v31 = vld [vmem:[#allocation3 + $0x3c] sm:$0xf0]  ;;  %v1538_v36 = vld [vmem:[#allocation2 + $0x24] sm:$0xe] }
  0xe3   : > { %3411 = vmatmul.bf16.vlgmr.msra.gmra.mxu2 %v3850_v51  ;;  %v1771_v24 = vrot.slane %v1769_v32, 5  ;;  %v2006_v29 = vrot.slane %v1953_v17, 5  ;;  %v2009_v35 = vrot.slane %v1954_v25, 5  ;;  %v1539_v43 = vld [vmem:[#allocation2 + $0x28] sm:$0xf]  ;;  %v3809_v47 = vrot.slane %v1538_v36, 9 }
  0xe4   : > { %3362 = vmatmul.bf16.vlgmr.msra.gmra.mxu1 %v3846_v6  ;;  %3348 = vmatmul.bf16.gmra.mxu0 %v4094_v16  ;;  %v1757_v40 = vrot.slane %v1756_v21, 4  ;;  %v1767_v41 = vrot.slane %v1766_v23, 4  ;;  %v3854_v49 = vor.u32 %v4406_v20, %v3851_v31  ;;  %v1540_v58 = vld [vmem:[#allocation2 + $0x2c] sm:$0x1]  ;;  %v1596_v62 = vrot.slane %v1539_v43, 5 }
  0xe5   : > { %v2007_v42 = vsel %vm5006_vm14, %v3816_v18, %v2006_v29  ;;  %v2008_v14 = vrot.slane %v2006_v29, 4  ;;  %v3885_v6 = vld [vmem:[#allocation3 + $0x60] sm:$0xf]  ;;  %v1599_v63 = vrot.slane %v1540_v58, 5  ;;  %v1673_v0 = vld [vmem:[#allocation2 + $0x30] sm:$0xf] }
  0xe6   : > { %v3216_v54 = vpop.f32.mrf.mxu2  ;;  %2071 = vst [vmem:[#allocation3 + $0x68] sm:$0xf] %v2007_v42  ;;  %v1762_v51 = vsel %vm5001_vm11, %v1757_v40, %v1761_v15  ;;  %v1772_v53 = vsel %vm5001_vm11, %v1767_v41, %v1771_v24  ;;  %v4411_v5 = vld [vmem:[#allocation3 + $0x40] sm:$0xf0]  ;;  %v4414_v32 = vld [vmem:[#allocation3 + $0x5c] sm:$0xf]  ;;  %v1597_v15 = vsel %vm5006_vm14, %v3809_v47, %v1596_v62 }
  0xe7   : > { %v3217_v57 = vadd.f32 %v3216_v54, %v3168_v8  ;;  %v4419_v61 = vld [vmem:[#allocation3 + $0x80] sm:$0xf0]  ;;  %1935 = vst [vmem:[#allocation3 + $0x64] sm:$0xf] %v1762_v51  ;;  %v2010_v22 = vsel %vm5006_vm14, %v2008_v14, %v2009_v35  ;;  %v3879_v7 = vld [vmem:[#allocation3 + $0x7c] sm:$0xf0] }
  0xe8   : > { %v3267_v38 = vpop.f32.mrf.mxu3  ;;  %1936 = vst [vmem:[#allocation3 + $0x88] sm:$0xf] %v1772_v53  ;;  %v1674_v8 = vld [vmem:[#allocation2 + $0x34] sm:$0xf]  ;;  %v1707_v11 = vld [vmem:[#allocation2 + $0x30] sm:$0xf]  ;;  %v3886_v54 = vor.u32 %v4419_v61, %v3885_v6  ;;  %v3882_v41 = vor.u32 %v4414_v32, %v3879_v7 }
  0xe9   : > { %v3266_v50 = vadd.f32 %v3265_v28, %v3217_v57  ;;  %v3169_v59 = vpop.f32.mrf.mxu1  ;;  %v3857_v28 = vld [vmem:[#allocation3 + $0x20] sm:$0xf]  ;;  %v1708_v12 = vld [vmem:[#allocation2 + $0x34] sm:$0xf]  ;;  %2072 = vst [vmem:[#allocation3 + $0x8c] sm:$0xf] %v2010_v22 }
  0xea   : > { %v3170_v1 = vadd.f32 %v3169_v59, %v5288_v27  ;;  %v1598_v55 = vrot.slane %v1596_v62, 4  ;;  %v1709_v16 = vld [vmem:[#allocation2 + $0x38] sm:$0x1]  ;;  %v1774_v17 = vshrl.u32 %v1707_v11, 16  ;;  %1656 = vst [vmem:[#allocation3 + $0xa4] sm:$0xf] %v1597_v15  ;;  %v3858_v40 = vor.u32 %v4411_v5, %v3857_v28 }
  0xeb   : > { %3460 = vmatmul.bf16.vlgmr.msra.gmra.mxu3 %v3854_v49  ;;  %v1777_v18 = vshll.u32 %v1707_v11, 16  ;;  %v1783_v20 = vshll.u32 %v1708_v12, 16  ;;  %v1787_v27 = vshrl.u32 %v1708_v12, 16  ;;  %1689 = vst [vmem:[#allocation3 + $0xa8] sm:$0xf] %v1673_v0  ;;  %v1793_v25 = vshll.u32 %v1709_v16, 16 }
  0xec   : > { %v1600_v23 = vsel %vm5006_vm14, %v1598_v55, %v1599_v63  ;;  %v1776_v24 = vrot.slane %v1774_v17, 4  ;;  %v1955_v29 = vld [vmem:[#allocation2 + $0x30] sm:$0xe]  ;;  %1690 = vst [vmem:[#allocation3 + $0xcc] sm:$0xf] %v1674_v8 }
  0xed   : > { %1657 = vst [vmem:[#allocation3 + $0xc8] sm:$0xf] %v1600_v23  ;;  %v1779_v35 = vrot.slane %v1777_v18, 5  ;;  %v1785_v36 = vrot.slane %v1783_v20, 5  ;;  %v1789_v43 = vrot.slane %v1787_v27, 4  ;;  %v3817_v58 = vrot.slane %v1955_v29, 9 }
  0xee   : > { %v3218_v21 = vpop.f32.mrf.mxu2  ;;  %v1956_v14 = vld [vmem:[#allocation2 + $0x34] sm:$0xf]  ;;  %v1957_v53 = vld [vmem:[#allocation2 + $0x38] sm:$0x1]  ;;  %v1795_v62 = vrot.slane %v1793_v25, 5 }
  0xef   : > { %v3219_v31 = vadd.f32 %v3218_v21, %v3170_v1  ;;  %v1780_v51 = vor.u32 %v1779_v35, %v1776_v24  ;;  %v1790_v22 = vor.u32 %v1789_v43, %v1785_v36  ;;  %v2013_v6 = vrot.slane %v1956_v14, 5  ;;  %v1541_v63 = vld [vmem:[#allocation2 + $0x30] sm:$0xe]  ;;  %v1542_v28 = vld [vmem:[#allocation2 + $0x34] sm:$0xf] }
  0xf0   : > { %v3314_v57 = vpop.f32.mrf.mxu0  ;;  %v3270_v42 = vpop.f32.mrf.mxu3  ;;  %v2016_v61 = vrot.slane %v1957_v53, 5  ;;  %v3810_v5 = vrot.slane %v1541_v63, 9  ;;  %v1543_v7 = vld [vmem:[#allocation2 + $0x38] sm:$0x1]  ;;  %v1603_v11 = vrot.slane %v1542_v28, 5 }
  0xf1   : > { %v5332_v47 = vadd.f32 %v3314_v57, %v3266_v50  ;;  %v3268_v49 = vadd.f32 %v3267_v38, %v3219_v31  ;;  %v3172_v59 = vpop.f32.mrf.mxu1  ;;  %v1781_v1 = vrot.slane %v1780_v51, 4  ;;  %v1791_v32 = vrot.slane %v1790_v22, 4  ;;  %v4415_v15 = vld [vmem:[#allocation3 + $0x64] sm:$0xf]  ;;  %v1676_v25 = vld [vmem:[#allocation2 + $0x40] sm:$0xf] }
  0xf2   : > { %v3173_v0 = vadd.f32 %v3172_v59, %v5306_v37  ;;  %v2014_v50 = vsel %vm5006_vm14, %v3817_v58, %v2013_v6  ;;  %v2015_v38 = vrot.slane %v2013_v6, 4  ;;  %v1606_v12 = vrot.slane %v1543_v7, 5  ;;  %v3887_v37 = vld [vmem:[#allocation3 + $0x84] sm:$0xf0]  ;;  %v1675_v21 = vld [vmem:[#allocation2 + $0x3c] sm:$0xf] }
  0xf3   : > { %3416 = vmatmul.bf16.gmra.mxu2 %v3886_v54  ;;  %v1786_v8 = vsel %vm5001_vm11, %v1781_v1, %v1785_v36  ;;  %2073 = vst [vmem:[#allocation3 + $0xb0] sm:$0xf] %v2014_v50  ;;  %v1796_v16 = vsel %vm5001_vm11, %v1791_v32, %v1795_v62  ;;  %v1604_v20 = vsel %vm5006_vm14, %v3810_v5, %v1603_v11  ;;  %v1605_v27 = vrot.slane %v1603_v11, 4  ;;  %v1710_v29 = vld [vmem:[#allocation2 + $0x3c] sm:$0xf] }
  0xf4   : > { %3367 = vmatmul.bf16.gmra.mxu1 %v3882_v41  ;;  %3509 = vmatmul.bf16.vlgmr.msra.gmra.mxu0 %v3858_v40  ;;  %1937 = vst [vmem:[#allocation3 + $0xac] sm:$0xf] %v1786_v8  ;;  %v2017_v17 = vsel %vm5006_vm14, %v2015_v38, %v2016_v61  ;;  %v3890_v31 = vor.u32 %v4415_v15, %v3887_v37  ;;  %v3921_v36 = vld [vmem:[#allocation3 + $0xa8] sm:$0xf]  ;;  %v4428_v57 = vld [vmem:[#allocation3 + $0xc8] sm:$0xf0] }
  0xf5   : > { %1938 = vst [vmem:[#allocation3 + $0xd0] sm:$0xf] %v1796_v16  ;;  %v1607_v40 = vsel %vm5006_vm14, %v1605_v27, %v1606_v12  ;;  %v1711_v41 = vld [vmem:[#allocation2 + $0x40] sm:$0xf]  ;;  %v1712_v43 = vld [vmem:[#allocation2 + $0x44] sm:$0x1]  ;;  %v3922_v32 = vor.u32 %v4428_v57, %v3921_v36 }
  0xf6   : > { %v3221_v55 = vpop.f32.mrf.mxu2  ;;  %2074 = vst [vmem:[#allocation3 + $0xd4] sm:$0xf] %v2017_v17  ;;  %v1798_v51 = vshrl.u32 %v1710_v29, 16  ;;  %v1801_v53 = vshll.u32 %v1710_v29, 16  ;;  %v1807_v58 = vshll.u32 %v1711_v41, 16  ;;  %v1811_v59 = vshrl.u32 %v1711_v41, 16 }
  0xf7   : > { %v3222_v18 = vadd.f32 %v3221_v55, %v3173_v0  ;;  %1658 = vst [vmem:[#allocation3 + $0xec] sm:$0xf] %v1604_v20  ;;  %v1959_v62 = vld [vmem:[#allocation2 + $0x40] sm:$0xf]  ;;  %v1958_v38 = vld [vmem:[#allocation2 + $0x3c] sm:$0xe] }
  0xf8   : > { %v3316_v23 = vpop.f32.mrf.mxu0  ;;  %v3272_v24 = vpop.f32.mrf.mxu3  ;;  %1659 = vst [vmem:[#allocation3 + $0x110] sm:$0xf] %v1607_v40  ;;  %v1800_v6 = vrot.slane %v1798_v51, 4  ;;  %v1803_v61 = vrot.slane %v1801_v53, 5  ;;  %v3915_v63 = vld [vmem:[#allocation3 + $0xc4] sm:$0xf0] }
  0xf9   : > { %v5345_v54 = vadd.f32 %v3316_v23, %v3268_v49  ;;  %v3271_v35 = vadd.f32 %v3270_v42, %v3222_v18  ;;  %v3174_v14 = vpop.f32.mrf.mxu1  ;;  %1691 = vst [vmem:[#allocation3 + $0xf0] sm:$0xf] %v1675_v21  ;;  %v1817_v49 = vshll.u32 %v1712_v43, 16  ;;  %v4423_v42 = vld [vmem:[#allocation3 + $0xa4] sm:$0xf]  ;;  %v1809_v0 = vrot.slane %v1807_v58, 5 }
  0xfa   : > { %v3175_v22 = vadd.f32 %v3174_v14, %v5317_v34  ;;  %1692 = vst [vmem:[#allocation3 + $0x114] sm:$0xf] %v1676_v25  ;;  %v1813_v1 = vrot.slane %v1811_v59, 4  ;;  %v2020_v28 = vrot.slane %v1959_v62, 5  ;;  %v1804_v50 = vor.u32 %v1803_v61, %v1800_v6  ;;  %v1960_v7 = vld [vmem:[#allocation2 + $0x44] sm:$0x1] }
  0xfb   : > { %3465 = vmatmul.bf16.gmra.mxu3 %v3890_v31  ;;  %v3893_v11 = vld [vmem:[#allocation3 + $0x68] sm:$0xf]  ;;  %v4420_v34 = vld [vmem:[#allocation3 + $0x88] sm:$0xf0]  ;;  %v1819_v15 = vrot.slane %v1817_v49, 5  ;;  %v3818_v37 = vrot.slane %v1958_v38, 9  ;;  %v3918_v16 = vor.u32 %v4423_v42, %v3915_v63 }
  0xfc   : > { %v1814_v12 = vor.u32 %v1813_v1, %v1809_v0  ;;  %v1805_v18 = vrot.slane %v1804_v50, 4  ;;  %v2022_v20 = vrot.slane %v2020_v28, 4  ;;  %v2023_v27 = vrot.slane %v1960_v7, 5  ;;  %v1544_v21 = vld [vmem:[#allocation2 + $0x3c] sm:$0xe] }
  0xfd   : > { %v2021_v31 = vsel %vm5006_vm14, %v3818_v37, %v2020_v28  ;;  %v1545_v36 = vld [vmem:[#allocation2 + $0x40] sm:$0xf]  ;;  %v3894_v40 = vor.u32 %v4420_v34, %v3893_v11  ;;  %v1546_v14 = vld [vmem:[#allocation2 + $0x44] sm:$0x1]  ;;  %v3811_v53 = vrot.slane %v1544_v21, 9 }
  0xfe   : > { %v3223_v5 = vpop.f32.mrf.mxu2  ;;  %v1815_v29 = vrot.slane %v1814_v12, 4  ;;  %v1810_v41 = vsel %vm5001_vm11, %v1805_v18, %v1809_v0  ;;  %v2024_v43 = vsel %vm5006_vm14, %v2022_v20, %v2023_v27  ;;  %2075 = vst [vmem:[#allocation3 + $0xf8] sm:$0xf] %v2021_v31  ;;  %v1610_v58 = vrot.slane %v1545_v36, 5  ;;  %v1678_v6 = vld [vmem:[#allocation2 + $0x4c] sm:$0xf] }
  0xff   : > { %v3224_v8 = vadd.f32 %v3223_v5, %v3175_v22  ;;  %1939 = vst [vmem:[#allocation3 + $0xf4] sm:$0xf] %v1810_v41  ;;  %v1613_v59 = vrot.slane %v1546_v14, 5  ;;  %v1677_v22 = vld [vmem:[#allocation2 + $0x48] sm:$0xf] }
 0x100   : > { %v3319_v55 = vpop.f32.mrf.mxu0  ;;  %v3275_v17 = vpop.f32.mrf.mxu3  ;;  %v1820_v51 = vsel %vm5001_vm11, %v1815_v29, %v1819_v15  ;;  %2076 = vst [vmem:[#allocation3 + $0x11c] sm:$0xf] %v2024_v43  ;;  %v1611_v62 = vsel %vm5006_vm14, %v3811_v53, %v1610_v58  ;;  %v1612_v42 = vrot.slane %v1610_v58, 4  ;;  %v1713_v63 = vld [vmem:[#allocation2 + $0x48] sm:$0xf] }
 0x101   : > { %v5350_v23 = vadd.f32 %v3319_v55, %v3271_v35  ;;  %v3273_v25 = vadd.f32 %v3272_v24, %v3224_v8  ;;  %v3177_v57 = vpop.f32.mrf.mxu1  ;;  %v4424_v35 = vld [vmem:[#allocation3 + $0xac] sm:$0xf]  ;;  %v3923_v24 = vld [vmem:[#allocation3 + $0xcc] sm:$0xf0]  ;;  %1940 = vst [vmem:[#allocation3 + $0x118] sm:$0xf] %v1820_v51 }
 0x102   : > { %v3178_v49 = vadd.f32 %v3177_v57, %v5228_v45  ;;  %1660 = vst [vmem:[#allocation3 + $0x134] sm:$0xf] %v1611_v62  ;;  %v1714_v0 = vld [vmem:[#allocation2 + $0x4c] sm:$0xf]  ;;  %v1614_v45 = vsel %vm5006_vm14, %v1612_v42, %v1613_v59  ;;  %v1715_v28 = vld [vmem:[#allocation2 + $0x50] sm:$0x1]  ;;  %v3926_v50 = vor.u32 %v4424_v35, %v3923_v24 }
 0x103   : > { %3421 = vmatmul.bf16.gmra.mxu2 %v3922_v32  ;;  %1693 = vst [vmem:[#allocation3 + $0x138] sm:$0xf] %v1677_v22  ;;  %v1822_v5 = vshrl.u32 %v1713_v63, 16  ;;  %v1825_v32 = vshll.u32 %v1713_v63, 16  ;;  %v1831_v8 = vshll.u32 %v1714_v0, 16  ;;  %v1835_v11 = vshrl.u32 %v1714_v0, 16 }
 0x104   : > { %3372 = vmatmul.bf16.gmra.mxu1 %v3918_v16  ;;  %3514 = vmatmul.bf16.gmra.mxu0 %v3894_v40  ;;  %1661 = vst [vmem:[#allocation3 + $0x158] sm:$0xf] %v1614_v45  ;;  %v1841_v34 = vshll.u32 %v1715_v28, 16  ;;  %v5380_v27 = vld [vmem:[#allocation3 + $0xb0] sm:$0xf] }
 0x105   : > { %1694 = vst [vmem:[#allocation3 + $0x15c] sm:$0xf] %v1678_v6  ;;  %v1824_v37 = vrot.slane %v1822_v5, 4  ;;  %v1827_v55 = vrot.slane %v1825_v32, 5  ;;  %v1833_v18 = vrot.slane %v1831_v8, 5  ;;  %v1837_v20 = vrot.slane %v1835_v11, 4 }
 0x106   : > { %v3226_v61 = vpop.f32.mrf.mxu2  ;;  %v5382_v21 = vld [vmem:[#allocation3 + $0xd0] sm:$0xf0]  ;;  %v3957_v29 = vld [vmem:[#allocation3 + $0xf0] sm:$0xf]  ;;  %v1963_v41 = vld [vmem:[#allocation2 + $0x50] sm:$0x1] }
 0x107   : > { %v3227_v1 = vadd.f32 %v3226_v61, %v3178_v49  ;;  %v4437_v31 = vld [vmem:[#allocation3 + $0x110] sm:$0xf0]  ;;  %v1828_v36 = vor.u32 %v1827_v55, %v1824_v37  ;;  %v1838_v57 = vor.u32 %v1837_v20, %v1833_v18  ;;  %v1961_v40 = vld [vmem:[#allocation2 + $0x48] sm:$0xe]  ;;  %v4432_v14 = vld [vmem:[#allocation3 + $0xec] sm:$0xf]  ;;  %v3930_v45 = vor.u32 %v5382_v21, %v5380_v27 }
 0x108   : > { %v3321_v38 = vpop.f32.mrf.mxu0  ;;  %v3277_v7 = vpop.f32.mrf.mxu3  ;;  %v3819_v24 = vrot.slane %v1961_v40, 9  ;;  %v3951_v58 = vld [vmem:[#allocation3 + $0x10c] sm:$0xf0]  ;;  %v3958_v59 = vor.u32 %v4437_v31, %v3957_v29  ;;  %v2030_v49 = vrot.slane %v1963_v41, 5  ;;  %v1716_v62 = vld [vmem:[#allocation2 + $0x54] sm:$0xf] }
 0x109   : > { %v5372_v12 = vadd.f32 %v3321_v38, %v3273_v25  ;;  %v3276_v15 = vadd.f32 %v3275_v17, %v3227_v1  ;;  %v3179_v16 = vpop.f32.mrf.mxu1  ;;  %v1962_v25 = vld [vmem:[#allocation2 + $0x4c] sm:$0xf]  ;;  %v1843_v17 = vrot.slane %v1841_v34, 5  ;;  %v1829_v35 = vrot.slane %v1828_v36, 4  ;;  %v1547_v63 = vld [vmem:[#allocation2 + $0x48] sm:$0xe] }
 0x10a   : > { %v3180_v43 = vadd.f32 %v3179_v16, %v5257_v13  ;;  %v2027_v51 = vrot.slane %v1962_v25, 5  ;;  %v1839_v22 = vrot.slane %v1838_v57, 4  ;;  %v1548_v0 = vld [vmem:[#allocation2 + $0x4c] sm:$0xf]  ;;  %v1549_v32 = vld [vmem:[#allocation2 + $0x50] sm:$0x1]  ;;  %v3954_v8 = vor.u32 %v4432_v14, %v3951_v58 }
 0x10b   : > { %3470 = vmatmul.bf16.gmra.mxu3 %v3926_v50  ;;  %v1834_v6 = vsel %vm5001_vm11, %v1829_v35, %v1833_v18  ;;  %v1717_v34 = vld [vmem:[#allocation2 + $0x58] sm:$0xf]  ;;  %v1718_v37 = vld [vmem:[#allocation2 + $0x5c] sm:$0x1]  ;;  %v3812_v16 = vrot.slane %v1547_v63, 9  ;;  %v1617_v18 = vrot.slane %v1548_v0, 5 }
 0x10c   : > { %v2028_v13 = vsel %vm5006_vm14, %v3819_v24, %v2027_v51  ;;  %v2029_v61 = vrot.slane %v2027_v51, 4  ;;  %v1844_v5 = vsel %vm5001_vm11, %v1839_v22, %v1843_v17  ;;  %1941 = vst [vmem:[#allocation3 + $0x13c] sm:$0xf] %v1834_v6  ;;  %v1620_v20 = vrot.slane %v1549_v32, 5  ;;  %v4433_v21 = vld [vmem:[#allocation3 + $0xf4] sm:$0xf] }
 0x10d   : > { %1942 = vst [vmem:[#allocation3 + $0x160] sm:$0xf] %v1844_v5  ;;  %v1846_v27 = vshrl.u32 %v1716_v62, 16  ;;  %v3959_v29 = vld [vmem:[#allocation3 + $0x114] sm:$0xf0]  ;;  %v1619_v36 = vrot.slane %v1617_v18, 4 }
 0x10e   : > { %v3228_v53 = vpop.f32.mrf.mxu2  ;;  %v2031_v11 = vsel %vm5006_vm14, %v2029_v61, %v2030_v49  ;;  %2077 = vst [vmem:[#allocation3 + $0x140] sm:$0xf] %v2028_v13  ;;  %v1680_v31 = vld [vmem:[#allocation2 + $0x58] sm:$0xf]  ;;  %v1849_v57 = vshll.u32 %v1716_v62, 16  ;;  %v1855_v40 = vshll.u32 %v1717_v34, 16  ;;  %v3962_v58 = vor.u32 %v4433_v21, %v3959_v29 }
 0x10f   : > { %v3229_v42 = vadd.f32 %v3228_v53, %v3180_v43  ;;  %2078 = vst [vmem:[#allocation3 + $0x164] sm:$0xf] %v2031_v11  ;;  %v1848_v25 = vrot.slane %v1846_v27, 4  ;;  %v1859_v41 = vshrl.u32 %v1717_v34, 16  ;;  %v1865_v43 = vshll.u32 %v1718_v37, 16 }
 0x110   : > { %v3324_v1 = vpop.f32.mrf.mxu0  ;;  %v3280_v28 = vpop.f32.mrf.mxu3  ;;  %v1621_v35 = vsel %vm5006_vm14, %v1619_v36, %v1620_v20  ;;  %1696 = vst [vmem:[#allocation3 + $0x1a4] sm:$0xf] %v1680_v31  ;;  %v1851_v24 = vrot.slane %v1849_v57, 5  ;;  %s435_s29 = scalar_select %p434_p12, 1, 0  ;;  %v1857_v53 = vrot.slane %v1855_v40, 5 }
 0x111   : > { %v5397_v50 = vadd.f32 %v3324_v1, %v3276_v15  ;;  %v3278_v38 = vadd.f32 %v3277_v7, %v3229_v42  ;;  %v3182_v55 = vpop.f32.mrf.mxu1  ;;  %v1679_v15 = vld [vmem:[#allocation2 + $0x54] sm:$0xf]  ;;  %v1618_v7 = vsel %vm5006_vm14, %v3812_v16, %v1617_v18  ;;  %1663 = vst [vmem:[#allocation3 + $0x1a0] sm:$0xf] %v1621_v35  ;;  %v1867_v13 = vrot.slane %v1865_v43, 5 }
 0x112   : > { %1695 = vst [vmem:[#allocation3 + $0x180] sm:$0xf] %v1679_v15  ;;  %v3183_v17 = vadd.f32 %v3182_v55, %v5284_v19  ;;  %v1861_v19 = vrot.slane %v1859_v41, 4  ;;  %v1852_v49 = vor.u32 %v1851_v24, %v1848_v25  ;;  %v5416_v61 = vld [vmem:[#allocation2 + $0x60] sm:$0xf]  ;;  %s5418_s21 = scvt.s32.f32 %s435_s29 }
 0x113   : > { %3426 = vmatmul.bf16.gmra.mxu2 %v3958_v59  ;;  %1662 = vst [vmem:[#allocation3 + $0x17c] sm:$0xf] %v1618_v7  ;;  %v5420_v0 = vld [vmem:[#allocation3 + $0x134] sm:$0xf]  ;;  %v1870_v5 = vshrl.u32 %v5416_v61, 16 }
 0x114   : > { %3377 = vmatmul.bf16.gmra.mxu1 %v3954_v8  ;;  %3519 = vmatmul.bf16.gmra.mxu0 %v3930_v45  ;;  %v1862_v6 = vor.u32 %v1861_v19, %v1857_v53  ;;  %v1853_v1 = vrot.slane %v1852_v49, 4  ;;  %v1965_v45 = vld [vmem:[#allocation2 + $0x58] sm:$0xf]  ;;  %v5426_v8 = vld [vmem:[#allocation3 + $0x154] sm:$0xf0]  ;;  %s439_s7 = sshrl.u32 %s5418_s21, 16  ;;  %p438_p13 = scmp.ne.f32.partialorder %s5418_s21, %s5418_s21 }
 0x115   : > { %v2034_v11 = vrot.slane %v1965_v45, 5  ;;  %v4446_v34 = vld [vmem:[#allocation3 + $0x158] sm:$0xf0]  ;;  %v1966_v16 = vld [vmem:[#allocation2 + $0x5c] sm:$0x1]  ;;  %v1872_v7 = vrot.slane %v1870_v5, 4  ;;  %v3990_v25 = vor.u32 %v5420_v0, %v5426_v8 }
 0x116   : > { %v3231_v14 = vpop.f32.mrf.mxu2  ;;  %v1858_v37 = vsel %vm5001_vm11, %v1853_v1, %v1857_v53  ;;  %v1964_v55 = vld [vmem:[#allocation2 + $0x54] sm:$0xe]  ;;  %v3965_v18 = vld [vmem:[#allocation3 + $0xf8] sm:$0xf]  ;;  %v2037_v15 = vrot.slane %v1966_v16, 5  ;;  %s440_s9 = sand.u32 1, %s439_s7 }
 0x117   : > { %v3232_v51 = vadd.f32 %v3231_v14, %v3183_v17  ;;  %v4438_v20 = vld [vmem:[#allocation3 + $0x118] sm:$0xf0]  ;;  %1943 = vst [vmem:[#allocation3 + $0x184] sm:$0xf] %v1858_v37  ;;  %v2036_v21 = vrot.slane %v2034_v11, 4  ;;  %s441_s22 = sadd.s32 32767, %s440_s9 }
 0x118   : > { %v3326_v59 = vpop.f32.mrf.mxu0  ;;  %v3282_v22 = vpop.f32.mrf.mxu3  ;;  %v1720_v31 = vld [vmem:[#allocation2 + $0x64] sm:$0xf]  ;;  %v1550_v40 = vld [vmem:[#allocation2 + $0x54] sm:$0xe]  ;;  %v1551_v41 = vld [vmem:[#allocation2 + $0x58] sm:$0xf]  ;;  %v3966_v1 = vor.u32 %v4438_v20, %v3965_v18  ;;  %s442_s16 = sadd.s32 %s441_s22, %s5418_s21 }
 0x119   : > { %v5414_v62 = vadd.f32 %v3326_v59, %v3278_v38  ;;  %v3281_v42 = vadd.f32 %v3280_v28, %v3232_v51  ;;  %v3184_v63 = vpop.f32.mrf.mxu1  ;;  %v3993_v28 = vld [vmem:[#allocation3 + $0x138] sm:$0xf]  ;;  %v1863_v38 = vrot.slane %v1862_v6, 4  ;;  %v1552_v43 = vld [vmem:[#allocation2 + $0x5c] sm:$0x1]  ;;  %v2038_v51 = vsel %vm5006_vm14, %v2036_v21, %v2037_v15  ;;  %s443_s17 = sand.u32 4294901760, %s442_s16 }
 0x11a   : > { %v3185_v32 = vadd.f32 %v3184_v63, %v5296_v9  ;;  %v3820_v9 = vrot.slane %v1964_v55, 9  ;;  %v3994_v57 = vor.u32 %v4446_v34, %v3993_v28  ;;  %v477_v14 = vld [vmem:[#allocation2 + $0x6c] sm:$0x1]  ;;  %v3813_v53 = vrot.slane %v1550_v40, 9  ;;  %2080 = vst [vmem:[#allocation3 + $0x1ac] sm:$0xf] %v2038_v51 }
 0x11b   : > { %3475 = vmatmul.bf16.gmra.mxu3 %v3962_v58  ;;  %v1868_v27 = vsel %vm5001_vm11, %v1863_v38, %v1867_v13  ;;  %v1624_v19 = vrot.slane %v1551_v41, 5  ;;  %v1627_v58 = vrot.slane %v1552_v43, 5  ;;  %v1721_v6 = vld [vmem:[#allocation2 + $0x68] sm:$0x1]  ;;  %v1873_v13 = vshll.u32 %v5416_v61, 16  ;;  %s5654_s17 = smov (%p438_p13, %s443_s17), 2143289344 }
 0x11c   : > { %1944 = vst [vmem:[#allocation3 + $0x1a8] sm:$0xf] %v1868_v27  ;;  %v2035_v17 = vsel %vm5006_vm14, %v3820_v9, %v2034_v11  ;;  %v1879_v63 = vshll.u32 %v1720_v31, 16  ;;  %v1682_v8 = vld [vmem:[#allocation2 + $0x64] sm:$0xf]  ;;  %v1883_v28 = vshrl.u32 %v1720_v31, 16 }
 0x11d   : > { %2079 = vst [vmem:[#allocation3 + $0x188] sm:$0xf] %v2035_v17  ;;  %v1625_v45 = vsel %vm5006_vm14, %v3813_v53, %v1624_v19  ;;  %v1626_v5 = vrot.slane %v1624_v19, 4  ;;  %v1889_v38 = vshll.u32 %v1721_v6, 16  ;;  %v4442_v61 = vld [vmem:[#allocation3 + $0x13c] sm:$0xf] }
 0x11e   : > { %v3233_v29 = vpop.f32.mrf.mxu2  ;;  %1664 = vst [vmem:[#allocation3 + $0x1c4] sm:$0xf] %v1625_v45  ;;  %v1885_v34 = vrot.slane %v1883_v28, 4  ;;  %v478_v37 = vsel %vm4740_vm2, 0, %v477_v14  ;;  %v3995_v16 = vld [vmem:[#allocation3 + $0x15c] sm:$0xf0] }
 0x11f   : > { %v3234_v36 = vadd.f32 %v3233_v29, %v3185_v32  ;;  %v1681_v32 = vld [vmem:[#allocation2 + $0x60] sm:$0xf]  ;;  %v1628_v11 = vsel %vm5006_vm14, %v1626_v5, %v1627_v58  ;;  %1698 = vst [vmem:[#allocation3 + $0x1ec] sm:$0xf] %v1682_v8  ;;  %v1891_v9 = vrot.slane %v1889_v38, 5  ;;  %s446_s18 = sshrl.u32 %s5654_s17, 16 }
 0x120   : > { %v3329_v35 = vpop.f32.mrf.mxu0  ;;  %v3285_v24 = vpop.f32.mrf.mxu3  ;;  %1697 = vst [vmem:[#allocation3 + $0x1c8] sm:$0xf] %v1681_v32  ;;  %v509_v21 = vld [vmem:[#allocation2 + $0x74] sm:$0x1]  ;;  %v4552_v31 = vld [vmem:[%s404_s12] sm:$0xff]   ;;  %s791_s19 = sshll.u32 %s446_s18, 16 }
 0x121   : > { %v5441_v59 = vadd.f32 %v3329_v35, %v3281_v42  ;;  %v3283_v49 = vadd.f32 %v3282_v22, %v3234_v36  ;;  %v3187_v0 = vpop.f32.mrf.mxu1  ;;  %v1875_v22 = vrot.slane %v1873_v13, 5  ;;  %v1881_v42 = vrot.slane %v1879_v63, 5  ;;  %1665 = vst [vmem:[#allocation3 + $0x1e8] sm:$0xf] %v1628_v11  ;;  %v5465_v41 = vld [vmem:[#allocation3 + $0x140] sm:$0xf]  ;;  %s792_s20 = sor.u32 %s791_s19, %s446_s18 }
 0x122   : > { %v3188_v55 = vadd.f32 %v3187_v0, %v5240_v4  ;;  %479 = vst [vmem:[#allocation2 + $0x6c] sm:$0x1] %v478_v37  ;;  %v510_v4 = vsel %vm4966_vm8, 0, %v509_v21  ;;  %v5467_v43 = vld [vmem:[#allocation3 + $0x160] sm:$0xf0]  ;;  %v4553_v19 = vunpack.c.l.bf16 %v4552_v31  ;;  %v4554_v58 = vunpack.c.h.bf16 %v4552_v31  ;;  %s3798_s21 = sshll.u32 %s4760_s15, 3 }
 0x123   : > { %3431 = vmatmul.bf16.gmra.mxu2 %v3994_v57  ;;  %v1876_v18 = vor.u32 %v1875_v22, %v1872_v7  ;;  %v1886_v27 = vor.u32 %v1885_v34, %v1881_v42  ;;  %511 = vst [vmem:[#allocation2 + $0x74] sm:$0x1] %v510_v4  ;;  %v3998_v7 = vor.u32 %v4442_v61, %v3995_v16  ;;  %v4029_v3 = vld [vmem:[#allocation3 + $0x180] sm:$0xf]  ;;  %v1968_v53 = vld [vmem:[#allocation2 + $0x64] sm:$0xf]  ;;  %v793_v6 = vstv %s792_s20  ;;  %s5538_s7 = scalar_lea.vmem %s5621_s6, %s3798_s21 }
 0x124   : > { %3382 = vmatmul.bf16.gmra.mxu1 %v3990_v25  ;;  %3524 = vmatmul.bf16.gmra.mxu0 %v3966_v1  ;;  %v1967_v13 = vld [vmem:[#allocation2 + $0x60] sm:$0xe]  ;;  %v1969_v63 = vld [vmem:[#allocation2 + $0x68] sm:$0x1]  ;;  %v797_v0 = vunpack.c.l.bf16 %v793_v6  ;;  %v4002_v28 = vor.u32 %v5467_v43, %v5465_v41  ;;  %v4450_v22 = vld [vmem:[#allocation3 + $0x17c] sm:$0xf] }
 0x125   : > { %v1877_v15 = vrot.slane %v1876_v18, 4  ;;  %v1887_v57 = vrot.slane %v1886_v27, 4  ;;  %v3821_v45 = vrot.slane %v1967_v13, 9  ;;  %v2044_v32 = vrot.slane %v1969_v63, 5  ;;  %v1554_v61 = vld [vmem:[#allocation2 + $0x64] sm:$0xf] }
 0x126   : > { %v3236_v20 = vpop.f32.mrf.mxu2  ;;  %v798_v11 = vmul.f32 %v4553_v19, %v797_v0  ;;  %v799_v34 = vmul.f32 %v4554_v58, %v797_v0  ;;  %v1553_v16 = vld [vmem:[#allocation2 + $0x60] sm:$0xe]  ;;  %v1555_v18 = vld [vmem:[#allocation2 + $0x68] sm:$0x1]  ;;  %v4459_v30 = vld [vmem:[#allocation3 + $0x1c4] sm:$0xf] }
 0x127   : > { %v3237_v29 = vadd.f32 %v3236_v20, %v3188_v55  ;;  %v1882_v14 = vsel %vm5001_vm11, %v1877_v15, %v1881_v42  ;;  %v1892_v51 = vsel %vm5001_vm11, %v1887_v57, %v1891_v9  ;;  %v4023_v42 = vld [vmem:[#allocation3 + $0x19c] sm:$0xf0]  ;;  %v1631_v20 = vrot.slane %v1554_v61, 5  ;;  %v4031_v6 = vld [vmem:[#allocation3 + $0x1a4] sm:$0xf0] }
 0x128   : > { %v3331_v36 = vpop.f32.mrf.mxu0  ;;  %v3287_v25 = vpop.f32.mrf.mxu3  ;;  %1945 = vst [vmem:[#allocation3 + $0x1cc] sm:$0xf] %v1882_v14  ;;  %v3814_v9 = vrot.slane %v1553_v16, 9  ;;  %v1634_v21 = vrot.slane %v1555_v18, 5  ;;  %v801_v15 = vpack.c.bf16 %v799_v34, %v799_v34  ;;  %v4065_v34 = vld [vmem:[#allocation3 + $0x1c8] sm:$0xf] }
 0x129   : > { %v5463_v17 = vadd.f32 %v3331_v36, %v3283_v49  ;;  %v3286_v40 = vadd.f32 %v3285_v24, %v3237_v29  ;;  %v3189_v35 = vpop.f32.mrf.mxu1  ;;  %v4455_v49 = vld [vmem:[#allocation3 + $0x1a0] sm:$0xf0]  ;;  %1946 = vst [vmem:[#allocation3 + $0x1f0] sm:$0xf] %v1892_v51  ;;  %v2041_v24 = vrot.slane %v1968_v53, 5  ;;  %v800_v29 = vpack.c.bf16 %v798_v11, %v798_v11 }
 0x12a   : > { %v3190_v1 = vadd.f32 %v3189_v35, %v5270_v56  ;;  %v4030_v38 = vor.u32 %v4455_v49, %v4029_v3  ;;  %v4026_v36 = vor.u32 %v4450_v22, %v4023_v42  ;;  %v1633_v57 = vrot.slane %v1631_v20, 4  ;;  %v823_v58 = vld [vmem:[#allocation2 + $0x6c] sm:$0xf]  ;;  %v827_v49 = vld [vmem:[#allocation2 + $0x74] sm:$0x1] }
 0x12b   : > { %3480 = vmatmul.bf16.gmra.mxu3 %v3998_v7  ;;  %v2043_v5 = vrot.slane %v2041_v24, 4  ;;  %v2042_v55 = vsel %vm5006_vm14, %v3821_v45, %v2041_v24  ;;  %v1632_v43 = vsel %vm5006_vm14, %v3814_v9, %v1631_v20  ;;  %v803_v14 = vshrl.u32 %v800_v29, 16  ;;  %v4451_v24 = vld [vmem:[#allocation3 + $0x184] sm:$0xf]  ;;  %v4037_v2 = vld [vmem:[#allocation3 + $0x188] sm:$0xf] }
 0x12c   : > { %2081 = vst [vmem:[#allocation3 + $0x1d0] sm:$0xf] %v2042_v55  ;;  %v806_v35 = vshll.u32 %v800_v29, 16  ;;  %v811_v3 = vshrl.u32 %v801_v15, 16  ;;  %v1635_v51 = vsel %vm5006_vm14, %v1633_v57, %v1634_v21  ;;  %v814_v53 = vshll.u32 %v801_v15, 16 }
 0x12d   : > { %v2045_v56 = vsel %vm5006_vm14, %v2043_v5, %v2044_v32  ;;  %1666 = vst [vmem:[#allocation3 + $0x20c] sm:$0xf] %v1632_v43  ;;  %v4034_v42 = vor.u32 %v4451_v24, %v4031_v6  ;;  %v4456_v18 = vld [vmem:[#allocation3 + $0x1a8] sm:$0xf0] }
 0x12e   : > { %v3238_v8 = vpop.f32.mrf.mxu2  ;;  %2082 = vst [vmem:[#allocation3 + $0x1f4] sm:$0xf] %v2045_v56  ;;  %v4059_v56 = vld [vmem:[#allocation3 + $0x1e4] sm:$0xf0] }
 0x12f   : > { %v3239_v37 = vadd.f32 %v3238_v8, %v3190_v1  ;;  %1667 = vst [vmem:[#allocation3 + $0x230] sm:$0xf] %v1635_v51 }
 0x130   : > { %v3334_v27 = vpop.f32.mrf.mxu0  ;;  %v3290_v41 = vpop.f32.mrf.mxu3 }
 0x131   : > { %v5480_v31 = vadd.f32 %v3334_v27, %v3286_v40  ;;  %v3288_v4 = vadd.f32 %v3287_v25, %v3239_v37  ;;  %v3192_v7 = vpop.f32.mrf.mxu1  ;;  %v805_v40 = vrot.slane %v803_v14, 7  ;;  %v813_v25 = vrot.slane %v811_v3, 7  ;;  %v4464_v37 = vld [vmem:[#allocation3 + $0x1e8] sm:$0xf0] }
 0x132   : > { %v3193_v19 = vadd.f32 %v3192_v7, %v5290_v44  ;;  %v4066_v20 = vor.u32 %v4464_v37, %v4065_v34 }
 0x133   : > { %3436 = vmatmul.bf16.gmra.mxu2 %v4030_v38  ;;  %v808_v63 = vor.u32 %v806_v35, %v805_v40  ;;  %v809_v0 = vrot.slane %v805_v40, 4  ;;  %v816_v1 = vor.u32 %v814_v53, %v813_v25  ;;  %v818_v45 = vrot.slane %v813_v25, 4 }
 0x134   : > { %3387 = vmatmul.bf16.gmra.mxu1 %v4026_v36  ;;  %3529 = vmatmul.bf16.gmra.mxu0 %v4002_v28  ;;  %v4062_v36 = vor.u32 %v4459_v30, %v4059_v56 }
 0x135   : > { %v817_v8 = vsel %vm4781_vm6, %v809_v0, %v816_v1  ;;  %v824_v22 = vsel %vm4790_vm7, %v808_v63, %v823_v58  ;;  %v828_v44 = vsel %vm4740_vm2, %v818_v45, %v827_v49  ;;  %v4460_v1 = vld [vmem:[#allocation3 + $0x1cc] sm:$0xf]  ;;  %v4067_v45 = vld [vmem:[#allocation3 + $0x1ec] sm:$0xf0] }
 0x136   : > { %v3241_v13 = vpop.f32.mrf.mxu2  ;;  %825 = vst [vmem:[#allocation2 + $0x6c] sm:$0xf] %v824_v22  ;;  %v4070_v37 = vor.u32 %v4460_v1, %v4067_v45 }
 0x137   : > { %v3242_v5 = vadd.f32 %v3241_v13, %v3193_v19  ;;  %826 = vst [vmem:[#allocation2 + $0x70] sm:$0xf] %v817_v8 }
 0x138   : > { %v3336_v32 = vpop.f32.mrf.mxu0  ;;  %829 = vst [vmem:[#allocation2 + $0x74] sm:$0x1] %v828_v44  ;;  %v3292_v11 = vpop.f32.mrf.mxu3 }
 0x139   : > { %v5493_v28 = vadd.f32 %v3336_v32, %v3288_v4  ;;  %v3291_v38 = vadd.f32 %v3290_v41, %v3242_v5  ;;  %v3194_v61 = vpop.f32.mrf.mxu1 }
 0x13a   : > { %v3195_v26 = vadd.f32 %v3194_v61, %v5308_v39  ;;  %v4038_v39 = vor.u32 %v4456_v18, %v4037_v2 }
 0x13b   : > { %3485 = vmatmul.bf16.gmra.mxu3 %v4034_v42 }
 0x13d   : > { %v1683_v9 = vld [vmem:[#allocation2 + $0x6c] sm:$0xf] }
 0x13e   : > { %v3243_v55 = vpop.f32.mrf.mxu2  ;;  %v1722_v21 = vld [vmem:[#allocation2 + $0x6c] sm:$0xf]  ;;  %v1684_v57 = vld [vmem:[#allocation2 + $0x70] sm:$0xf]  ;;  %1699 = vst [vmem:[#allocation3 + $0x210] sm:$0xf] %v1683_v9 }
 0x13f   : > { %v3244_v16 = vadd.f32 %v3243_v55, %v3195_v26  ;;  %v1970_v29 = vld [vmem:[#allocation2 + $0x6c] sm:$0xe]  ;;  %v1723_v7 = vld [vmem:[#allocation2 + $0x70] sm:$0xf]  ;;  %1700 = vst [vmem:[#allocation3 + $0x234] sm:$0xf] %v1684_v57 }
 0x140   : > { %v3339_v27 = vpop.f32.mrf.mxu0  ;;  %v1724_v43 = vld [vmem:[#allocation2 + $0x74] sm:$0x1]  ;;  %v1894_v14 = vshrl.u32 %v1722_v21, 16  ;;  %v1897_v35 = vshll.u32 %v1722_v21, 16  ;;  %v1903_v3 = vshll.u32 %v1723_v7, 16  ;;  %v1907_v51 = vshrl.u32 %v1723_v7, 16  ;;  %v3295_v32 = vpop.f32.mrf.mxu3 }
 0x141   : > { %v5496_v15 = vadd.f32 %v3339_v27, %v3291_v38  ;;  %v3293_v4 = vadd.f32 %v3292_v11, %v3244_v16  ;;  %v3197_v41 = vpop.f32.mrf.mxu1  ;;  %v1913_v53 = vshll.u32 %v1724_v43, 16  ;;  %v1971_v40 = vld [vmem:[#allocation2 + $0x70] sm:$0xf]  ;;  %v1972_v58 = vld [vmem:[#allocation2 + $0x74] sm:$0x1]  ;;  %v3822_v49 = vrot.slane %v1970_v29, 9 }
 0x142   : > { %v1896_v25 = vrot.slane %v1894_v14, 4  ;;  %v1899_v19 = vrot.slane %v1897_v35, 5  ;;  %v2048_v24 = vrot.slane %v1971_v40, 5  ;;  %v3198_v6 = vadd.f32 %v3197_v41, %v5235_v60  ;;  %v4468_v9 = vld [vmem:[#allocation3 + $0x20c] sm:$0xf] }
 0x143   : > { %3441 = vmatmul.bf16.gmra.mxu2 %v4066_v20  ;;  %v1905_v13 = vrot.slane %v1903_v3, 5  ;;  %v1909_v63 = vrot.slane %v1907_v51, 4  ;;  %v2051_v0 = vrot.slane %v1972_v58, 5  ;;  %v1915_v61 = vrot.slane %v1913_v53, 5  ;;  %v4095_v21 = vld [vmem:[#allocation3 + $0x22c] sm:$0xf0] }
 0x144   : > { %3392 = vmatmul.bf16.gmra.mxu1 %v4062_v36  ;;  %3534 = vmatmul.bf16.gmra.mxu0 %v4038_v39  ;;  %v1900_v8 = vor.u32 %v1899_v19, %v1896_v25  ;;  %v2049_v22 = vsel %vm5006_vm14, %v3822_v49, %v2048_v24  ;;  %v2050_v44 = vrot.slane %v2048_v24, 4  ;;  %v4465_v36 = vld [vmem:[#allocation3 + $0x1f0] sm:$0xf0]  ;;  %v4098_v43 = vor.u32 %v4468_v9, %v4095_v21 }
 0x145   : > { %v1910_v38 = vor.u32 %v1909_v63, %v1905_v13  ;;  %2083 = vst [vmem:[#allocation3 + $0x218] sm:$0xf] %v2049_v22  ;;  %v4101_v18 = vld [vmem:[#allocation3 + $0x210] sm:$0xf] }
 0x146   : > { %v3246_v5 = vpop.f32.mrf.mxu2  ;;  %v1901_v60 = vrot.slane %v1900_v8, 4  ;;  %v2052_v34 = vsel %vm5006_vm14, %v2050_v44, %v2051_v0  ;;  %v4473_v20 = vld [vmem:[#allocation3 + $0x230] sm:$0xf0] }
 0x147   : > { %v3247_v42 = vadd.f32 %v3246_v5, %v3198_v6  ;;  %v1911_v30 = vrot.slane %v1910_v38, 4  ;;  %2084 = vst [vmem:[#allocation3 + $0x23c] sm:$0xf] %v2052_v34  ;;  %v4102_v57 = vor.u32 %v4473_v20, %v4101_v18 }
 0x148   : > { %v3341_v11 = vpop.f32.mrf.mxu0  ;;  %v1906_v16 = vsel %vm5001_vm11, %v1901_v60, %v1905_v13  ;;  %v3297_v41 = vpop.f32.mrf.mxu3 }
 0x149   : > { %v5503_v26 = vadd.f32 %v3341_v11, %v3293_v4  ;;  %v3296_v55 = vadd.f32 %v3295_v32, %v3247_v42  ;;  %v3199_v56 = vpop.f32.mrf.mxu1  ;;  %v1916_v2 = vsel %vm5001_vm11, %v1911_v30, %v1915_v61  ;;  %1947 = vst [vmem:[#allocation3 + $0x214] sm:$0xf] %v1906_v16  ;;  %v4073_v4 = vld [vmem:[#allocation3 + $0x1d0] sm:$0xf]  ;;  %v5524_v30 = vld [vmem:[%s5619_s4] ss:$0 sm:$0xff] }
 0x14a   : > { %1948 = vst [vmem:[#allocation3 + $0x238] sm:$0xf] %v1916_v2  ;;  %v3200_v52 = vadd.f32 %v3199_v56, %v5259_v46  ;;  %v4074_v35 = vor.u32 %v4465_v36, %v4073_v4 }
 0x14b   : > { %3490 = vmatmul.bf16.gmra.mxu3 %v4070_v37 }
 0x14c   : > { %v4109_v63 = vld [vmem:[#allocation3 + $0x218] sm:$0xf] }
 0x14e   : > { %v3248_v27 = vpop.f32.mrf.mxu2  ;;  %v4474_v0 = vld [vmem:[#allocation3 + $0x238] sm:$0xf0] }
 0x14f   : > { %v3249_v29 = vadd.f32 %v3248_v27, %v3200_v52  ;;  %v4110_v5 = vor.u32 %v4474_v0, %v4109_v63 }
 0x150   : > { %v3344_v7 = vpop.f32.mrf.mxu0  ;;  %v4469_v46 = vld [vmem:[#allocation3 + $0x214] sm:$0xf] }
 0x151   : > { %v5510_v39 = vadd.f32 %v3344_v7, %v3296_v55  ;;  %v3298_v48 = vadd.f32 %v3297_v41, %v3249_v29  ;;  %v3202_v14 = vpop.f32.mrf.mxu1  ;;  %v4103_v51 = vld [vmem:[#allocation3 + $0x234] sm:$0xf0] }
 0x152   : > { %v3203_v3 = vadd.f32 %v3202_v14, %v5286_v33  ;;  %v4106_v19 = vor.u32 %v4469_v46, %v4103_v51 }
 0x153   : > { %3446 = vmatmul.bf16.gmra.mxu2 %v4102_v57 }
 0x154   : > { %3397 = vmatmul.bf16.gmra.mxu1 %v4098_v43  ;;  %3539 = vmatmul.bf16.gmra.mxu0 %v4074_v35 }
 0x156   : > { %v3251_v53 = vpop.f32.mrf.mxu2 }
 0x157   : > { %v3252_v40 = vadd.f32 %v3251_v53, %v3203_v3 }
 0x158   : > { %v3346_v25 = vpop.f32.mrf.mxu0 }
 0x159   : > { %v5513_v58 = vadd.f32 %v3346_v25, %v3298_v48  ;;  %v3204_v49 = vpop.f32.mrf.mxu1 }
 0x15a   : > { %v3205_v24 = vadd.f32 %v3204_v49, %v5298_v10 }
 0x15b   : > { %3495 = vmatmul.bf16.gmra.mxu3 %v4106_v19 }
 0x15e   : > { %v3253_v6 = vpop.f32.mrf.mxu2  ;;  %v3300_v1 = vpop.f32.mrf.mxu3 }
 0x15f   : > { %v3254_v13 = vadd.f32 %v3253_v6, %v3205_v24  ;;  %v3301_v33 = vadd.f32 %v3300_v1, %v3252_v40 }
 0x161   : > { %v3363_v45 = vpop.f32.mrf.mxu1  ;;  %v3349_v32 = vpop.f32.mrf.mxu0 }
 0x162   : > { %v5516_v8 = vadd.f32 %v3349_v32, %v3301_v33  ;;  %v3364_v10 = vadd.f32 %v3363_v45, %v5332_v47  ;;  %v5530_v47 = vld [vmem:[%s5620_s5] ss:$0 sm:$0xff] }
 0x164   : > { %3544 = vmatmul.bf16.gmra.mxu0 %v4110_v5 }
 0x166   : > { %v3412_v22 = vpop.f32.mrf.mxu2  ;;  %v3302_v44 = vpop.f32.mrf.mxu3 }
 0x167   : > { %v3303_v42 = vadd.f32 %v3302_v44, %v3254_v13  ;;  %v3413_v60 = vadd.f32 %v3412_v22, %v3364_v10 }
 0x169   : > { %v3365_v38 = vpop.f32.mrf.mxu1  ;;  %v3351_v61 = vpop.f32.mrf.mxu0 }
 0x16a   : > { %v5519_v11 = vadd.f32 %v3351_v61, %v3303_v42  ;;  %v3366_v2 = vadd.f32 %v3365_v38, %v5345_v54 }
 0x16e   : > { %v3414_v34 = vpop.f32.mrf.mxu2  ;;  %v3461_v37 = vpop.f32.mrf.mxu3 }
 0x16f   : > { %v3462_v55 = vadd.f32 %v3461_v37, %v3413_v60  ;;  %v3415_v52 = vadd.f32 %v3414_v34, %v3366_v2 }
 0x171   : > { %v3368_v56 = vpop.f32.mrf.mxu1  ;;  %v3510_v16 = vpop.f32.mrf.mxu0 }
 0x172   : > { %v3511_v18 = vadd.f32 %v3510_v16, %v3462_v55  ;;  %v3369_v57 = vadd.f32 %v3368_v56, %v5350_v23 }
 0x174   : > { %v3554_v20 = vmul.f32 %v5524_v30, %v3511_v18 }
 0x176   : > { %v3417_v27 = vpop.f32.mrf.mxu2  ;;  %v3574_v9 = vadd.f32 %v5530_v47, %v3554_v20  ;;  %v3463_v21 = vpop.f32.mrf.mxu3 }
 0x177   : > { %v3464_v29 = vadd.f32 %v3463_v21, %v3415_v52  ;;  %v3418_v48 = vadd.f32 %v3417_v27, %v3369_v57 }
 0x178   : > { %v3590_v54 = vmax.f32 %v3574_v9, 0.0 }
 0x179   : > { %v3370_v4 = vpop.f32.mrf.mxu1  ;;  %v3512_v36 = vpop.f32.mrf.mxu0 }
 0x17a   : > { %3606 = vst [vmem:[%s5538_s7] sm:$0xff] %v3590_v54  ;;  %v3513_v7 = vadd.f32 %v3512_v36, %v3464_v29  ;;  %v3371_v40 = vadd.f32 %v3370_v4, %v5372_v12 }
 0x17c   : > { %v3555_v41 = vmul.f32 %v5524_v30, %v3513_v7 }
 0x17e   : > { %v3419_v43 = vpop.f32.mrf.mxu2  ;;  %v3575_v14 = vadd.f32 %v5530_v47, %v3555_v41  ;;  %v3466_v35 = vpop.f32.mrf.mxu3 }
 0x17f   : > { %v3467_v46 = vadd.f32 %v3466_v35, %v3418_v48  ;;  %v3420_v23 = vadd.f32 %v3419_v43, %v3371_v40 }
 0x180   : > { %v3591_v3 = vmax.f32 %v3575_v14, 0.0 }
 0x181   : > { %v3373_v51 = vpop.f32.mrf.mxu1  ;;  %v3515_v53 = vpop.f32.mrf.mxu0 }
 0x182   : > { %3607 = vst [vmem:[%s5538_s7 + $0x8] sm:$0xff] %v3591_v3  ;;  %v3516_v25 = vadd.f32 %v3515_v53, %v3467_v46  ;;  %v3374_v33 = vadd.f32 %v3373_v51, %v5397_v50 }
 0x184   : > { %v3556_v19 = vmul.f32 %v5524_v30, %v3516_v25 }
 0x186   : > { %v3422_v49 = vpop.f32.mrf.mxu2  ;;  %v3576_v24 = vadd.f32 %v5530_v47, %v3556_v19  ;;  %v3468_v6 = vpop.f32.mrf.mxu3 }
 0x187   : > { %v3469_v63 = vadd.f32 %v3468_v6, %v3420_v23  ;;  %v3423_v12 = vadd.f32 %v3422_v49, %v3374_v33 }
 0x188   : > { %v3592_v13 = vmax.f32 %v3576_v24, 0.0 }
 0x189   : > { %v3375_v0 = vpop.f32.mrf.mxu1  ;;  %v3517_v1 = vpop.f32.mrf.mxu0 }
 0x18a   : > { %3608 = vst [vmem:[%s5538_s7 + $0x10] sm:$0xff] %v3592_v13  ;;  %v3518_v45 = vadd.f32 %v3517_v1, %v3469_v63  ;;  %v3376_v60 = vadd.f32 %v3375_v0, %v5414_v62 }
 0x18c   : > { %v3557_v5 = vmul.f32 %v5524_v30, %v3518_v45 }
 0x18e   : > { %v3424_v32 = vpop.f32.mrf.mxu2  ;;  %v3577_v22 = vadd.f32 %v5530_v47, %v3557_v5  ;;  %v3471_v44 = vpop.f32.mrf.mxu3 }
 0x18f   : > { %v3472_v38 = vadd.f32 %v3471_v44, %v3423_v12  ;;  %v3425_v50 = vadd.f32 %v3424_v32, %v3376_v60 }
 0x190   : > { %v3593_v42 = vmax.f32 %v3577_v22, 0.0 }
 0x191   : > { %v3378_v61 = vpop.f32.mrf.mxu1  ;;  %v3520_v10 = vpop.f32.mrf.mxu0 }
 0x192   : > { %3609 = vst [vmem:[%s5538_s7 + $0x18] sm:$0xff] %v3593_v42  ;;  %v3521_v34 = vadd.f32 %v3520_v10, %v3472_v38  ;;  %v3379_v27 = vadd.f32 %v3378_v61, %v5441_v59 }
 0x194   : > { %v3558_v37 = vmul.f32 %v5524_v30, %v3521_v34 }
 0x196   : > { %v3427_v55 = vpop.f32.mrf.mxu2  ;;  %v3578_v56 = vadd.f32 %v5530_v47, %v3558_v37  ;;  %v3473_v16 = vpop.f32.mrf.mxu3 }
 0x197   : > { %v3474_v18 = vadd.f32 %v3473_v16, %v3425_v50  ;;  %v3428_v62 = vadd.f32 %v3427_v55, %v3379_v27 }
 0x198   : > { %v3594_v2 = vmax.f32 %v3578_v56, 0.0 }
 0x199   : > { %v3380_v20 = vpop.f32.mrf.mxu1  ;;  %v3522_v52 = vpop.f32.mrf.mxu0 }
 0x19a   : > { %3610 = vst [vmem:[%s5538_s7 + $0x20] sm:$0xff] %v3594_v2  ;;  %v3523_v9 = vadd.f32 %v3522_v52, %v3474_v18  ;;  %v3381_v48 = vadd.f32 %v3380_v20, %v5463_v17 }
 0x19c   : > { %v3559_v21 = vmul.f32 %v5524_v30, %v3523_v9 }
 0x19e   : > { %v3429_v54 = vpop.f32.mrf.mxu2  ;;  %v3579_v29 = vadd.f32 %v5530_v47, %v3559_v21  ;;  %v3476_v4 = vpop.f32.mrf.mxu3 }
 0x19f   : > { %v3477_v57 = vadd.f32 %v3476_v4, %v3428_v62  ;;  %v3430_v59 = vadd.f32 %v3429_v54, %v3381_v48 }
 0x1a0   : > { %v3595_v36 = vmax.f32 %v3579_v29, 0.0 }
 0x1a1   : > { %v3383_v7 = vpop.f32.mrf.mxu1  ;;  %v3525_v41 = vpop.f32.mrf.mxu0 }
 0x1a2   : > { %3611 = vst [vmem:[%s5538_s7 + $0x28] sm:$0xff] %v3595_v36  ;;  %v3526_v43 = vadd.f32 %v3525_v41, %v3477_v57  ;;  %v3384_v19 = vadd.f32 %v3383_v7, %v5480_v31 }
 0x1a4   : > { %v3560_v14 = vmul.f32 %v5524_v30, %v3526_v43 }
 0x1a6   : > { %v3432_v35 = vpop.f32.mrf.mxu2  ;;  %v3580_v3 = vadd.f32 %v5530_v47, %v3560_v14  ;;  %v3478_v46 = vpop.f32.mrf.mxu3 }
 0x1a7   : > { %v3479_v53 = vadd.f32 %v3478_v46, %v3430_v59  ;;  %v3433_v17 = vadd.f32 %v3432_v35, %v3384_v19 }
 0x1a8   : > { %v3596_v51 = vmax.f32 %v3580_v3, 0.0 }
 0x1a9   : > { %v3385_v40 = vpop.f32.mrf.mxu1  ;;  %v3527_v25 = vpop.f32.mrf.mxu0 }
 0x1aa   : > { %3612 = vst [vmem:[%s5538_s7 + $0x30] sm:$0xff] %v3596_v51  ;;  %v3528_v23 = vadd.f32 %v3527_v25, %v3479_v53  ;;  %v3386_v45 = vadd.f32 %v3385_v40, %v5493_v28 }
 0x1ac   : > { %v3561_v49 = vmul.f32 %v5524_v30, %v3528_v23 }
 0x1ae   : > { %v3434_v24 = vpop.f32.mrf.mxu2  ;;  %v3581_v6 = vadd.f32 %v5530_v47, %v3561_v49  ;;  %v3481_v13 = vpop.f32.mrf.mxu3 }
 0x1af   : > { %v3482_v0 = vadd.f32 %v3481_v13, %v3433_v17  ;;  %v3435_v31 = vadd.f32 %v3434_v24, %v3386_v45 }
 0x1b0   : > { %v3597_v63 = vmax.f32 %v3581_v6, 0.0 }
 0x1b1   : > { %v3388_v1 = vpop.f32.mrf.mxu1  ;;  %v3530_v33 = vpop.f32.mrf.mxu0 }
 0x1b2   : > { %3613 = vst [vmem:[%s5538_s7 + $0x38] sm:$0xff] %v3597_v63  ;;  %v3531_v5 = vadd.f32 %v3530_v33, %v3482_v0  ;;  %v3389_v60 = vadd.f32 %v3388_v1, %v5496_v15 }
 0x1b4   : > { %v3562_v12 = vmul.f32 %v5524_v30, %v3531_v5 }
 0x1b6   : > { %v3437_v32 = vpop.f32.mrf.mxu2  ;;  %v3582_v22 = vadd.f32 %v5530_v47, %v3562_v12  ;;  %v3483_v44 = vpop.f32.mrf.mxu3 }
 0x1b7   : > { %v3484_v38 = vadd.f32 %v3483_v44, %v3435_v31  ;;  %v3438_v28 = vadd.f32 %v3437_v32, %v3389_v60 }
 0x1b8   : > { %v3598_v42 = vmax.f32 %v3582_v22, 0.0 }
 0x1b9   : > { %v3390_v61 = vpop.f32.mrf.mxu1  ;;  %v3532_v10 = vpop.f32.mrf.mxu0 }
 0x1ba   : > { %3614 = vst [vmem:[%s5538_s7 + $0x40] sm:$0xff] %v3598_v42  ;;  %v3533_v34 = vadd.f32 %v3532_v10, %v3484_v38  ;;  %v3391_v52 = vadd.f32 %v3390_v61, %v5503_v26 }
 0x1bc   : > { %v3563_v37 = vmul.f32 %v5524_v30, %v3533_v34 }
 0x1be   : > { %v3439_v50 = vpop.f32.mrf.mxu2  ;;  %v3583_v55 = vadd.f32 %v5530_v47, %v3563_v37  ;;  %v3486_v56 = vpop.f32.mrf.mxu3 }
 0x1bf   : > { %v3487_v2 = vadd.f32 %v3486_v56, %v3438_v28  ;;  %v3440_v15 = vadd.f32 %v3439_v50, %v3391_v52 }
 0x1c0   : > { %v3599_v16 = vmax.f32 %v3583_v55, 0.0 }
 0x1c1   : > { %v3535_v18 = vpop.f32.mrf.mxu0  ;;  %v3393_v20 = vpop.f32.mrf.mxu1 }
 0x1c2   : > { %3615 = vst [vmem:[%s5538_s7 + $0x48] sm:$0xff] %v3599_v16  ;;  %v3536_v27 = vadd.f32 %v3535_v18, %v3487_v2  ;;  %v3394_v57 = vadd.f32 %v3393_v20, %v5510_v39 }
 0x1c4   : > { %v3564_v9 = vmul.f32 %v5524_v30, %v3536_v27 }
 0x1c6   : > { %v3442_v21 = vpop.f32.mrf.mxu2  ;;  %v3584_v62 = vadd.f32 %v5530_v47, %v3564_v9  ;;  %v3488_v54 = vpop.f32.mrf.mxu3 }
 0x1c7   : > { %v3489_v4 = vadd.f32 %v3488_v54, %v3440_v15  ;;  %v3443_v26 = vadd.f32 %v3442_v21, %v3394_v57 }
 0x1c8   : > { %v3600_v29 = vmax.f32 %v3584_v62, 0.0 }
 0x1c9   : > { %v3537_v36 = vpop.f32.mrf.mxu0  ;;  %v3395_v41 = vpop.f32.mrf.mxu1 }
 0x1ca   : > { %3616 = vst [vmem:[%s5538_s7 + $0x50] sm:$0xff] %v3600_v29  ;;  %v3538_v7 = vadd.f32 %v3537_v36, %v3489_v4  ;;  %v3396_v51 = vadd.f32 %v3395_v41, %v5513_v58 }
 0x1cc   : > { %v3565_v48 = vmul.f32 %v5524_v30, %v3538_v7 }
 0x1ce   : > { %v3444_v43 = vpop.f32.mrf.mxu2  ;;  %v3585_v14 = vadd.f32 %v5530_v47, %v3565_v48  ;;  %v3491_v59 = vpop.f32.mrf.mxu3 }
 0x1cf   : > { %v3492_v3 = vadd.f32 %v3491_v59, %v3443_v26  ;;  %v3445_v39 = vadd.f32 %v3444_v43, %v3396_v51 }
 0x1d0   : > { %v3601_v35 = vmax.f32 %v3585_v14, 0.0 }
 0x1d1   : > { %v3540_v46 = vpop.f32.mrf.mxu0  ;;  %v3398_v25 = vpop.f32.mrf.mxu1 }
 0x1d2   : > { %3617 = vst [vmem:[%s5538_s7 + $0x58] sm:$0xff] %v3601_v35  ;;  %v3541_v53 = vadd.f32 %v3540_v46, %v3492_v3  ;;  %v3399_v13 = vadd.f32 %v3398_v25, %v5516_v8 }
 0x1d4   : > { %v3566_v40 = vmul.f32 %v5524_v30, %v3541_v53 }
 0x1d6   : > { %v3586_v19 = vadd.f32 %v5530_v47, %v3566_v40  ;;  %v3493_v23 = vpop.f32.mrf.mxu3  ;;  %v3447_v49 = vpop.f32.mrf.mxu2 }
 0x1d7   : > { %v3494_v24 = vadd.f32 %v3493_v23, %v3445_v39  ;;  %v3448_v58 = vadd.f32 %v3447_v49, %v3399_v13 }
 0x1d8   : > { %v3602_v17 = vmax.f32 %v3586_v19, 0.0 }
 0x1d9   : > { %v3542_v6 = vpop.f32.mrf.mxu0  ;;  %v3400_v45 = vpop.f32.mrf.mxu1 }
 0x1da   : > { %3618 = vst [vmem:[%s5538_s7 + $0x60] sm:$0xff] %v3602_v17  ;;  %v3543_v63 = vadd.f32 %v3542_v6, %v3494_v24  ;;  %v3401_v22 = vadd.f32 %v3400_v45, %v5519_v11 }
 0x1dc   : > { %v3567_v0 = vmul.f32 %v5524_v30, %v3543_v63 }
 0x1de   : > { %v3587_v1 = vadd.f32 %v5530_v47, %v3567_v0  ;;  %v3496_v33 = vpop.f32.mrf.mxu3  ;;  %v3449_v32 = vpop.f32.mrf.mxu2 }
 0x1df   : > { %v3497_v12 = vadd.f32 %v3496_v33, %v3448_v58  ;;  %v3450_v42 = vadd.f32 %v3449_v32, %v3401_v22 }
 0x1e0   : > { %v3603_v5 = vmax.f32 %v3587_v1, 0.0 }
 0x1e1   : > { %v3545_v31 = vpop.f32.mrf.mxu0 }
 0x1e2   : > { %3619 = vst [vmem:[%s5538_s7 + $0x68] sm:$0xff] %v3603_v5  ;;  %v3546_v44 = vadd.f32 %v3545_v31, %v3497_v12 }
 0x1e4   : > { %v3568_v8 = vmul.f32 %v5524_v30, %v3546_v44 }
 0x1e6   : > { %v3588_v38 = vadd.f32 %v5530_v47, %v3568_v8  ;;  %v3498_v61 = vpop.f32.mrf.mxu3 }
 0x1e7   : > { %v3499_v60 = vadd.f32 %v3498_v61, %v3450_v42 }
 0x1e8   : > { %v3604_v10 = vmax.f32 %v3588_v38, 0.0 }
 0x1e9   : > { %v3547_v34 = vpop.f32.mrf.mxu0 }
 0x1ea   : > { %3620 = vst [vmem:[%s5538_s7 + $0x70] sm:$0xff] %v3604_v10  ;;  %v3548_v37 = vadd.f32 %v3547_v34, %v3499_v60 }
 0x1ec   : > { %v3569_v28 = vmul.f32 %v5524_v30, %v3548_v37 }
 0x1ee   : > { %v3589_v50 = vadd.f32 %v5530_v47, %v3569_v28 }
 0x1f0   : > { %v3605_v55 = vmax.f32 %v3589_v50, 0.0 }
 0x1f2   : > { %3621 = vst [vmem:[%s5538_s7 + $0x78] sm:$0xff] %v3605_v55 }
 0x1f3 PF: > { %s16_s25 = sadd.s32 1, %s4659_s25   ;;  %s5635_s21 = smov %s4651_s23 }
 0x1f4   : > { %p13_p0 = scmp.ge.s32.totalorder %s16_s25, 6   ;;  %s5636_s22 = smov %s4655_s24 }
 0x1f5   : > { %s5637_s23 = smov %s5640_s26  ;;  %s5638_s24 = smov %s5644_s27 }
 0x1f6   :  { %15 = sbr.rel (!%p13_p0) target bundleno = 3 (0x3), region = 83 }

// kernel: deconv_forward.4
= control target key start
LH: loop header
LB: loop body
LE: loop exit
PB: predicated region body
PF: predicated region fallthrough
CT: control target
= control target key end

     0   :  { %s7572_s30 = smov 0   ;;  %s7574_s10 = smov 0   ;;  %s9066_s0 = inlined_call_operand.vmem [shape: bf16[2,16,16,128], index: 0, kind: input, shape index: {}, may-alias: {0,1,2}]   ;;  %s9067_s1 = inlined_call_operand.vmem [shape: bf16[2,16,16,128], index: 1, kind: input, shape index: {}, may-alias: {0,1,2}]   ;;  %s9068_s2 = inlined_call_operand.vmem [shape: bf16[2,16,16,128], index: 2, kind: input, shape index: {}, may-alias: {0,1,2}]   ;;  %s9069_s3 = inlined_call_operand.vmem [shape: bf16[2,16,16,128], index: 3, kind: input, shape index: {}, may-alias: {3,4,5}]   ;;  %s9070_s4 = inlined_call_operand.vmem [shape: bf16[2,16,16,128], index: 4, kind: input, shape index: {}, may-alias: {3,4,5}]   ;;  %s9071_s5 = inlined_call_operand.vmem [shape: bf16[2,16,16,128], index: 5, kind: input, shape index: {}, may-alias: {3,4,5}]   ;;  %s9072_s6 = inlined_call_operand.vmem [shape: bf16[2304,128], index: 6, kind: input, shape index: {}]   ;;  %s9073_s7 = inlined_call_operand.vmem [shape: f32[1,128], index: 7, kind: input, shape index: {}]   ;;  %s9074_s8 = inlined_call_operand.vmem [shape: f32[1,128], index: 8, kind: input, shape index: {}]   ;;  %s9075_s9 = inlined_call_operand.vmem [shape: bf16[2,16,16,128], index: 9, kind: output, shape index: {}]  }
   0x1   :  { %9076 = sst [smem:[#allocation4_spill]] %s9066_s0  ;;  %s7576_s11 = smov 0  }
   0x2   :  { %9077 = sst [smem:[#allocation5_spill]] %s9069_s3  ;;  %s7578_s12 = smov 0  }
   0x3   :  { %s7580_s13 = smov 0  }
   0x4 LB: > { %s28_s14 = sadd.s32 1, %s7512_s11  ;;  %s31_s15 = sadd.s32 1, %s7516_s12  ;;  %s7520_s13 = sphi %s7580_s13, %s19_s13   ;;  %s7516_s12 = sphi %s7578_s12, %s9098_s12   ;;  %s7512_s11 = sphi %s7576_s11, %s9097_s11   ;;  %s7508_s10 = sphi %s7574_s10, %s9096_s10   ;;  %s7504_s30 = sphi %s7572_s30, %s9095_s30  }
   0x5   : > { %p29_p0 = scmp.ge.s32.totalorder %s28_s14, 2  ;;  %p5844_p1 = scmp.ge.s32.totalorder %s7520_s13, 1 }
   0x6   : > { %p455_p2 = scmp.lt.s32.totalorder %s7520_s13, 5 }
   0x7   : > { %s9100_s14 = smov (%p29_p0, %s28_s14), 0  ;;  %s9102_s15 = smov (!%p29_p0, %s31_s15), %s7516_s12 }
   0x8   : > { %p456_p3 = pnand %p5844_p1, %p455_p2  ;;  %p33_p4 = scmp.ge.s32.totalorder %s9102_s15, 2 }
   0x9   : > { %s7611_s20 = sshll.u32 (!%p456_p3), %s7504_s30, 3  ;;  %p564_p5 = scmp.lt.s32.totalorder (!%p456_p3), %s7508_s10, 1 }
   0xa   : > { %s9104_s15 = smov (%p33_p4, %s9102_s15), 0  ;;  %459 = sbr.rel (%p456_p3) target bundleno = 785 (0x311), region = 56 }
   0xb   : > { %p566_p6 = scmp.lt.s32.totalorder (!%p456_p3), %s7611_s20, 15  ;;  %s9082_s0 = sld [smem:[#allocation4_spill]] (!%p456_p3) }
   0xc   : > { %s9083_s3 = sld [smem:[#allocation5_spill]] (!%p456_p3)  ;;  %p665_p9 = scmp.gt.s32.totalorder (!%p456_p3), %s7504_s30, 0 }
   0xd   : > { %p678_p11 = scmp.lt.s32.totalorder (!%p456_p3), %s7504_s30, 1 }
   0xf   : > { %v7224_v0 = vld [vmem:[%s9072_s6 + $0x38] sm:$0xff]  ;;  %v7223_v2 = vld [vmem:[%s9072_s6 + $0x30] sm:$0xff]  ;;  %s9106_s10 = smov (!%p564_p5, %s7508_s10), 1  ;;  %vm691_vm0 = vcmask 1040384   ;;  %vm692_vm1 = vsmask.f32 256 }
  0x10   : > { %v7232_v1 = vld [vmem:[%s9072_s6 + $0x78] sm:$0xff]  ;;  %7424 = vmatpush.bf16.msra.mxu2 %v7224_v0  ;;  %v7231_v3 = vld [vmem:[%s9072_s6 + $0x70] sm:$0xff]  ;;  %4654 = vmatpush.bf16.msra.mxu0 %v7224_v0  ;;  %s567_s25 = scalar_select %p566_p6, %s7611_s20, 15  ;;  %vm694_vm2 = vcmask 1044484   ;;  %vm695_vm3 = vsmask.f32 4352  ;;  %vm7631_vm4 = vmand %vm691_vm0, %vm692_vm1 }
  0x11   : > { %7432 = vmatpush.bf16.msra.mxu3 %v7232_v1  ;;  %4703 = vmatpush.bf16.msra.mxu1 %v7232_v1  ;;  %v7222_v4 = vld [vmem:[%s9072_s6 + $0x28] sm:$0xff]  ;;  %s7624_s28 = sshll.u32 %s9106_s10, 5  ;;  %v710_v7 = vld [vmem:[#allocation2 + $0x60] sm:$0x11]  ;;  %vm696_vm5 = vmand %vm694_vm2, %vm695_vm3  ;;  %vm728_vm6 = vsmask.f32 7938 }
  0x12   : > { %v7230_v5 = vld [vmem:[%s9072_s6 + $0x68] sm:$0xff]  ;;  %s5846_s17 = sshll.u32 %s567_s25, 1  ;;  %vm730_vm7 = vsmask.f32 7954  ;;  %vm942_vm8 = vcmask 1043456   ;;  %s7638_s10 = sadd.s32 4294967295, %s7611_s20  ;;  %vm7644_vm9 = vmor %vm696_vm5, %vm7631_vm4 }
  0x13   : > { %s570_s18 = sadd.s32 %s7624_s28, %s5846_s17  ;;  %vm779_vm10 = vsmask.f32 4368  ;;  %p576_p7 = scmp.gt.s32.totalorder %s7638_s10, 0  ;;  %v698_v9 = vld [vmem:[#allocation2] sm:$0x11]  ;;  %v711_v12 = vsel %vm7644_vm9, 0, %v710_v7  ;;  %vm729_vm11 = vmand %vm691_vm0, %vm728_vm6 }
  0x14   : > { %7425 = vmatpush.bf16.msra.mxu2 %v7223_v2  ;;  %4655 = vmatpush.bf16.msra.mxu0 %v7223_v2  ;;  %s7640_s19 = sshll.u32 %s570_s18, 2  ;;  %v7221_v10 = vld [vmem:[%s9072_s6 + $0x20] sm:$0xff]  ;;  %v699_v13 = vsel %vm7644_vm9, 0, %v698_v9  ;;  %v713_v14 = vld [vmem:[#allocation2 + $0x78] sm:$0x11]  ;;  %vm731_vm12 = vmand %vm694_vm2, %vm730_vm7  ;;  %p5851_p8 = scmp.lt.s32.totalorder %s7638_s10, 15 }
  0x15   : > { %7433 = vmatpush.bf16.msra.mxu3 %v7231_v3  ;;  %4704 = vmatpush.bf16.msra.mxu1 %v7231_v3  ;;  %v7229_v11 = vld [vmem:[%s9072_s6 + $0x60] sm:$0xff]  ;;  %s7659_s27 = scalar_lea.vmem %s9082_s0, %s7640_s19  ;;  %s7665_s17 = scalar_lea.vmem %s9083_s3, %s7640_s19  ;;  %712 = vst [vmem:[#allocation2 + $0x60] sm:$0x11] %v711_v12  ;;  %vm7677_vm13 = vmor %vm731_vm12, %vm729_vm11  ;;  %v714_v26 = vsel %vm7644_vm9, 0, %v713_v14  ;;  %v7220_v34 = vld [vmem:[%s9072_s6 + $0x18] sm:$0xff]  ;;  %vm1714_vm3 = vcmask 1042432  }
  0x16   : > { %v769_v15 = vld [vmem:[%s7659_s27 + $0x18] sm:$0xf]  ;;  %v770_v16 = vld [vmem:[%s7659_s27 + $0x1c] sm:$0xf]  ;;  %s577_s18 = scalar_select %p576_p7, %s7638_s10, 0  ;;  %vm7694_vm14 = vmor %vm692_vm1, %vm779_vm10  ;;  %vm1715_vm5 = vcmask 1046532  }
  0x17   : > { %v833_v18 = vshrl.u32 %v769_v15, 16  ;;  %v836_v19 = vshll.u32 %v769_v15, 16  ;;  %v841_v20 = vshrl.u32 %v770_v16, 16  ;;  %v844_v21 = vshll.u32 %v770_v16, 16  ;;  %v1087_v22 = vld [vmem:[%s7665_s17 + $0x18] sm:$0xf]  ;;  %vm7708_vm15 = vmand %vm942_vm8, %vm728_vm6 }
  0x18   : > { %7426 = vmatpush.bf16.msra.mxu2 %v7222_v4  ;;  %4656 = vmatpush.bf16.msra.mxu0 %v7222_v4  ;;  %v1088_v23 = vld [vmem:[%s7665_s17 + $0x1c] sm:$0xf]  ;;  %v1149_v24 = vshrl.u32 %v1087_v22, 16  ;;  %v1152_v25 = vshll.u32 %v1087_v22, 16  ;;  %700 = vst [vmem:[#allocation2] sm:$0x11] %v699_v13  ;;  %vm8077_vm6 = vmor %vm1714_vm3, %vm1715_vm5 }
  0x19   : > { %7434 = vmatpush.bf16.msra.mxu3 %v7230_v5  ;;  %4705 = vmatpush.bf16.msra.mxu1 %v7230_v5  ;;  %v835_v27 = vrot.slane %v833_v18, 7  ;;  %v7688_v28 = vrot.slane %v841_v20, 7  ;;  %v1157_v29 = vshrl.u32 %v1088_v23, 16  ;;  %v1160_v32 = vshll.u32 %v1088_v23, 16  ;;  %v771_v33 = vld [vmem:[%s7659_s27 + $0x20] sm:$0xf] }
  0x1a   : > { %v1151_v31 = vrot.slane %v1149_v24, 7  ;;  %v7228_v35 = vld [vmem:[%s9072_s6 + $0x58] sm:$0xff]  ;;  %s9108_s18 = smov (!%p5851_p8, %s577_s18), 15  ;;  %715 = vst [vmem:[#allocation2 + $0x78] sm:$0x11] %v714_v26  ;;  %v850_v47 = vshrl.u32 %v771_v33, 16 }
  0x1b   : > { %v838_v36 = vor.u32 %v836_v19, %v835_v27  ;;  %v839_v37 = vrot.slane %v835_v27, 4  ;;  %v846_v38 = vor.u32 %v844_v21, %v7688_v28  ;;  %v7714_v42 = vrot.slane %v1157_v29, 7  ;;  %s666_s25 = scalar_select %p665_p9, 1, 0  ;;  %v772_v43 = vld [vmem:[%s7659_s27 + $0x24] sm:$0xf] }
  0x1c   : > { %7427 = vmatpush.bf16.msra.mxu2 %v7221_v10  ;;  %4657 = vmatpush.bf16.msra.mxu0 %v7221_v10  ;;  %v1154_v40 = vor.u32 %v1152_v25, %v1151_v31  ;;  %v1155_v41 = vrot.slane %v1151_v31, 4  ;;  %v965_v45 = vld [vmem:[#allocation2 + $0x60] sm:$0xf]  ;;  %v1278_v46 = vld [vmem:[#allocation2 + $0x64] sm:$0xf]  ;;  %s5856_s26 = sshll.u32 %s9108_s18, 1 }
  0x1d   : > { %7435 = vmatpush.bf16.msra.mxu3 %v7229_v11  ;;  %4706 = vmatpush.bf16.msra.mxu1 %v7229_v11  ;;  %v847_v44 = vsel %vm7694_vm14, %v839_v37, %v846_v38  ;;  %v7219_v48 = vld [vmem:[%s9072_s6 + $0x10] sm:$0xff]  ;;  %v966_v50 = vsel %vm7708_vm15, %v838_v36, %v965_v45  ;;  %v1162_v51 = vor.u32 %v1160_v32, %v7714_v42  ;;  %s584_s22 = sadd.s32 %s5856_s26, %s7624_s28  ;;  %s7733_s18 = scvt.s32.f32 %s666_s25  ;;  %v1089_v53 = vld [vmem:[%s7665_s17 + $0x20] sm:$0xf]  ;;  %v852_v54 = vrot.slane %v850_v47, 7  ;;  %v1090_v61 = vld [vmem:[%s7665_s17 + $0x24] sm:$0xf] }
  0x1e   : > { %v7227_v49 = vld [vmem:[%s9072_s6 + $0x50] sm:$0xff]  ;;  %968 = vst [vmem:[#allocation2 + $0x68] sm:$0xf] %v847_v44  ;;  %v1279_v52 = vsel %vm7708_vm15, %v1154_v40, %v1278_v46  ;;  %s5858_s23 = sshll.u32 %s584_s22, 2  ;;  %v853_v55 = vshll.u32 %v771_v33, 16  ;;  %v858_v56 = vshrl.u32 %v772_v43, 16 }
  0x1f   : > { %967 = vst [vmem:[#allocation2 + $0x60] sm:$0xf] %v966_v50  ;;  %v1163_v57 = vsel %vm7694_vm14, %v1155_v41, %v1162_v51  ;;  %s586_s26 = scalar_lea.vmem %s9067_s1, %s5858_s23  ;;  %v861_v58 = vshll.u32 %v772_v43, 16  ;;  %v1166_v59 = vshrl.u32 %v1089_v53, 16  ;;  %s631_s16 = scalar_lea.vmem %s9070_s4, %s5858_s23  ;;  %v7218_v62 = vld [vmem:[%s9072_s6 + $0x8] sm:$0xff]  ;;  %v856_v63 = vrot.slane %v852_v54, 4 }
  0x20   : > { %7428 = vmatpush.bf16.msra.mxu2 %v7220_v34  ;;  %4658 = vmatpush.bf16.msra.mxu0 %v7220_v34  ;;  %1280 = vst [vmem:[#allocation2 + $0x64] sm:$0xf] %v1279_v52  ;;  %s670_s21 = sshrl.u32 %s7733_s18, 16  ;;  %v855_v60 = vor.u32 %v853_v55, %v852_v54  ;;  %p669_p10 = scmp.ne.f32.partialorder %s7733_s18, %s7733_s18  ;;  %v7751_v0 = vrot.slane %v858_v56, 7  ;;  %v7226_v1 = vld [vmem:[%s9072_s6 + $0x48] sm:$0xff]  ;;  %v1169_v4 = vshll.u32 %v1089_v53, 16 }
  0x21   : > { %7436 = vmatpush.bf16.msra.mxu3 %v7228_v35  ;;  %4707 = vmatpush.bf16.msra.mxu1 %v7228_v35  ;;  %1281 = vst [vmem:[#allocation2 + $0x6c] sm:$0xf] %v1163_v57  ;;  %s671_s3 = sand.u32 1, %s670_s21  ;;  %v972_v2 = vld [vmem:[#allocation2 + $0x78] sm:$0xf]  ;;  %v1168_v3 = vrot.slane %v1166_v59, 7 }
  0x22   : > { %s672_s23 = sadd.s32 32767, %s671_s3  ;;  %v7757_v5 = vld [vmem:[%s586_s26] sm:$0xff]   ;;  %v863_v7 = vor.u32 %v861_v58, %v7751_v0  ;;  %v973_v9 = vsel %vm7708_vm15, %v855_v60, %v972_v2  ;;  %v1174_v10 = vshrl.u32 %v1090_v61, 16  ;;  %v1177_v11 = vshll.u32 %v1090_v61, 16  ;;  %v1285_v12 = vld [vmem:[#allocation2 + $0x7c] sm:$0xf] }
  0x23   : > { %s673_s0 = sadd.s32 %s672_s23, %s7733_s18  ;;  %v701_v13 = vld [vmem:[#allocation2 + $0x18] sm:$0x11]  ;;  %v7217_v14 = vld [vmem:[%s9072_s6] sm:$0xff]  ;;  %974 = vst [vmem:[#allocation2 + $0x78] sm:$0xf] %v973_v9  ;;  %v1171_v18 = vor.u32 %v1169_v4, %v1168_v3  ;;  %v1172_v19 = vrot.slane %v1168_v3, 4  ;;  %v7363_v36 = vunpack.c.l.bf16 %v7757_v5  ;;  %v7364_v37 = vunpack.c.h.bf16 %v7757_v5 }
  0x24   : > { %7429 = vmatpush.bf16.msra.mxu2 %v7219_v48  ;;  %4659 = vmatpush.bf16.msra.mxu0 %v7219_v48  ;;  %v7225_v15 = vld [vmem:[%s9072_s6 + $0x40] sm:$0xff]  ;;  %s674_s26 = sand.u32 4294901760, %s673_s0  ;;  %v702_v20 = vsel %vm7644_vm9, 0, %v701_v13  ;;  %v7240_v21 = vld [vmem:[%s9072_s6 + $0xb8] sm:$0xff]  ;;  %v864_v22 = vsel %vm7694_vm14, %v856_v63, %v863_v7  ;;  %v7782_v23 = vrot.slane %v1174_v10, 7  ;;  %v7239_v51 = vld [vmem:[%s9072_s6 + $0xb0] sm:$0xff] }
  0x25   : > { %7437 = vmatpush.bf16.msra.mxu3 %v7227_v49  ;;  %4708 = vmatpush.bf16.msra.mxu1 %v7227_v49  ;;  %v7768_v16 = vld [vmem:[%s631_s16] sm:$0xff]   ;;  %s9110_s26 = smov (%p669_p10, %s674_s26), 2143289344  ;;  %703 = vst [vmem:[#allocation2 + $0x18] sm:$0x11] %v702_v20  ;;  %v1286_v26 = vsel %vm7708_vm15, %v1171_v18, %v1285_v12  ;;  %v7248_v32 = vld [vmem:[%s9072_s6 + $0xf8] sm:$0xff]  ;;  %v7247_v63 = vld [vmem:[%s9072_s6 + $0xf0] sm:$0xff] }
  0x26   : > { %v763_v24 = vld [vmem:[%s7659_s27] sm:$0xf]  ;;  %975 = vst [vmem:[#allocation2 + $0x80] sm:$0xf] %v864_v22  ;;  %v764_v27 = vld [vmem:[%s7659_s27 + $0x4] sm:$0xf]  ;;  %v1179_v33 = vor.u32 %v1177_v11, %v7782_v23  ;;  %v7371_v43 = vunpack.c.l.bf16 %v7768_v16  ;;  %v7372_v44 = vunpack.c.h.bf16 %v7768_v16 }
  0x27   : > { %v1391_v25 = vld [vmem:[#allocation2 + $0x60] sm:$0xff]  ;;  %v782_v29 = vshrl.u32 %v763_v24, 16  ;;  %s677_s25 = sshrl.u32 %s9110_s26, 16  ;;  %v785_v34 = vshll.u32 %v763_v24, 16  ;;  %v790_v35 = vshrl.u32 %v764_v27, 16  ;;  %v793_v40 = vshll.u32 %v764_v27, 16 }
  0x28   : > { %7430 = vmatpush.bf16.msra.mxu2 %v7218_v62  ;;  %v1392_v31 = vld [vmem:[#allocation2 + $0x68] sm:$0xff]  ;;  %1407 = vst [vmem:[#allocation3 + $0x240] sm:$0xff] %v1391_v25  ;;  %4660 = vmatpush.bf16.msra.mxu0 %v7218_v62  ;;  %s1002_s23 = sshll.u32 %s677_s25, 16  ;;  %v7796_v41 = vld [vmem:[%s7665_s17] sm:$0xf]  ;;  %v1180_v45 = vsel %vm7694_vm14, %v1172_v19, %v1179_v33  ;;  %v7264_v2 = vld [vmem:[%s9072_s6 + $0x178] sm:$0xff] }
  0x29   : > { %7438 = vmatpush.bf16.msra.mxu3 %v7226_v1  ;;  %4709 = vmatpush.bf16.msra.mxu1 %v7226_v1  ;;  %1408 = vst [vmem:[#allocation3 + $0x288] sm:$0xff] %v1392_v31  ;;  %v784_v38 = vrot.slane %v782_v29, 7  ;;  %s1003_s0 = sor.u32 %s1002_s23, %s677_s25  ;;  %v7802_v46 = vrot.slane %v790_v35, 7  ;;  %v1098_v49 = vshrl.u32 %v7796_v41, 16  ;;  %v716_v50 = vld [vmem:[#allocation2 + $0x90] sm:$0x11] }
  0x2a   : > { %1287 = vst [vmem:[#allocation2 + $0x7c] sm:$0xf] %v1286_v26  ;;  %v1004_v47 = vstv %s1003_s0  ;;  %v7809_v53 = vld [vmem:[%s7665_s17 + $0x4] sm:$0xf]  ;;  %v1101_v57 = vshll.u32 %v7796_v41, 16  ;;  %v717_v58 = vsel %vm7644_vm9, 0, %v716_v50 }
  0x2b   : > { %1288 = vst [vmem:[#allocation2 + $0x84] sm:$0xf] %v1180_v45  ;;  %v787_v48 = vor.u32 %v785_v34, %v784_v38  ;;  %v1008_v52 = vunpack.c.l.bf16 %v1004_v47  ;;  %v788_v54 = vrot.slane %v784_v38, 4  ;;  %v795_v55 = vor.u32 %v793_v40, %v7802_v46  ;;  %v7256_v1 = vld [vmem:[%s9072_s6 + $0x138] sm:$0xff]  ;;  %v7238_v16 = vld [vmem:[%s9072_s6 + $0xa8] sm:$0xff]  ;;  %v7255_v22 = vld [vmem:[%s9072_s6 + $0x130] sm:$0xff] }
  0x2c   : > { %7431 = vmatpush.bf16.msra.mxu2 %v7217_v14  ;;  %4661 = vmatpush.bf16.msra.mxu0 %v7217_v14  ;;  %v944_v56 = vld [vmem:[#allocation2 + $0x18] sm:$0xf]  ;;  %718 = vst [vmem:[#allocation2 + $0x90] sm:$0x11] %v717_v58  ;;  %v7826_v7 = vrot.slane %v1098_v49, 7  ;;  %v1106_v9 = vshrl.u32 %v7809_v53, 16 }
  0x2d   : > { %7439 = vmatpush.bf16.msra.mxu3 %v7225_v15  ;;  %4710 = vmatpush.bf16.msra.mxu1 %v7225_v15  ;;  %v1009_v59 = vmul.f32 %v7363_v36, %v1008_v52  ;;  %v1010_v60 = vmul.f32 %v7364_v37, %v1008_v52  ;;  %v1317_v61 = vmul.f32 %v7371_v43, %v1008_v52  ;;  %v7263_v37 = vld [vmem:[%s9072_s6 + $0x170] sm:$0xff]  ;;  %v7237_v41 = vld [vmem:[%s9072_s6 + $0xa0] sm:$0xff]  ;;  %v1109_v43 = vshll.u32 %v7809_v53, 16  ;;  %s679_s26 = scalar_select %p678_p11, 1, 0 }
  0x2e   : > { %v1318_v62 = vmul.f32 %v7372_v44, %v1008_v52  ;;  %v945_v5 = vsel %vm7708_vm15, %v787_v48, %v944_v56  ;;  %v796_v24 = vsel %vm7694_vm14, %v788_v54, %v795_v55  ;;  %v1033_v44 = vld [vmem:[#allocation2] sm:$0xf]  ;;  %v1103_v48 = vor.u32 %v1101_v57, %v7826_v7  ;;  %v1341_v54 = vld [vmem:[#allocation2 + $0x4] sm:$0xf]  ;;  %s592_s25 = sadd.s32 8, %s7611_s20 }
  0x2f   : > { %v6205_v3 = vld [vmem:[#allocation3 + $0x240] sm:$0xf]  ;;  %v7145_v4 = vld [vmem:[#allocation3 + $0x244] sm:$0xf]  ;;  %v1011_v12 = vpack.c.bf16 %v1009_v59, %v1009_v59  ;;  %v1012_v13 = vpack.c.bf16 %v1010_v60, %v1010_v60  ;;  %v1319_v14 = vpack.c.bf16 %v1317_v61, %v1317_v61  ;;  %946 = vst [vmem:[#allocation2 + $0x18] sm:$0xf] %v945_v5  ;;  %s8655_s22 = scvt.s32.f32 %s679_s26 }
  0x30   : > { %4752 = vmatpush.bf16.msrb.mxu2 %v7240_v21  ;;  %v7154_v10 = vld [vmem:[#allocation3 + $0x284] sm:$0xf0]  ;;  %v6207_v11 = vld [vmem:[#allocation3 + $0x288] sm:$0xf0]  ;;  %v1320_v15 = vpack.c.bf16 %v1318_v62, %v1318_v62  ;;  %4850 = vmatpush.bf16.msrb.mxu0 %v7256_v1  ;;  %v7246_v21 = vld [vmem:[%s9072_s6 + $0xe8] sm:$0xff]  ;;  %v7855_v49 = vrot.slane %v1106_v9, 7 }
  0x31   : > { %4801 = vmatpush.bf16.msrb.mxu3 %v7248_v32  ;;  %v6206_v18 = vor.u32 %v7154_v10, %v6205_v3  ;;  %v6210_v19 = vor.u32 %v7145_v4, %v6207_v11  ;;  %v1393_v20 = vld [vmem:[#allocation2 + $0x78] sm:$0xff]  ;;  %v1014_v25 = vshrl.u32 %v1011_v12, 16  ;;  %v1017_v26 = vshll.u32 %v1011_v12, 16  ;;  %4899 = vmatpush.bf16.msrb.mxu1 %v7264_v2  ;;  %v7841_v32 = vld [vmem:[%s7659_s27 + $0x28] sm:$0xf]  ;;  %s683_s23 = sshrl.u32 %s8655_s22, 16  ;;  %p682_p13 = scmp.ne.f32.partialorder %s8655_s22, %s8655_s22 }
  0x32   : > { %v1022_v27 = vshrl.u32 %v1012_v13, 16  ;;  %v1025_v29 = vshll.u32 %v1012_v13, 16  ;;  %v1394_v31 = vld [vmem:[#allocation2 + $0x80] sm:$0xff]  ;;  %1409 = vst [vmem:[#allocation3 + $0x2d0] sm:$0xff] %v1393_v20  ;;  %v1322_v33 = vshrl.u32 %v1319_v14, 16  ;;  %v1325_v34 = vshll.u32 %v1319_v14, 16 }
  0x33   : > { %4682 = vmatmul.bf16.vlgmr.msra.gmra.mxu2 %v6206_v18  ;;  %4731 = vmatmul.bf16.vlgmr.msra.gmra.mxu3 %v6210_v19  ;;  %v1330_v35 = vshrl.u32 %v1320_v15, 16  ;;  %v1333_v36 = vshll.u32 %v1320_v15, 16  ;;  %1410 = vst [vmem:[#allocation3 + $0x318] sm:$0xff] %v1394_v31  ;;  %v1016_v38 = vrot.slane %v1014_v25, 7  ;;  %v1104_v53 = vrot.slane %v7826_v7, 4  ;;  %p8670_p12 = scmp.lt.s32.totalorder %s592_s25, 15 }
  0x34   : > { %4753 = vmatpush.bf16.msrb.mxu2 %v7239_v51  ;;  %v7846_v40 = vrot.slane %v1022_v27, 7  ;;  %947 = vst [vmem:[#allocation2 + $0x20] sm:$0xf] %v796_v24  ;;  %v1324_v45 = vrot.slane %v1322_v33, 7  ;;  %4851 = vmatpush.bf16.msrb.mxu0 %v7255_v22  ;;  %v1257_v59 = vld [vmem:[#allocation2 + $0x1c] sm:$0xf]  ;;  %v1111_v62 = vor.u32 %v1109_v43, %v7855_v49 }
  0x35   : > { %4802 = vmatpush.bf16.msrb.mxu3 %v7247_v63  ;;  %v7852_v47 = vrot.slane %v1330_v35, 7  ;;  %v1019_v50 = vor.u32 %v1017_v26, %v1016_v38  ;;  %v1020_v51 = vrot.slane %v1016_v38, 4  ;;  %4900 = vmatpush.bf16.msrb.mxu1 %v7263_v37  ;;  %v867_v57 = vshrl.u32 %v7841_v32, 16  ;;  %v774_v63 = vld [vmem:[%s7659_s27 + $0x2c] sm:$0xf]  ;;  %s9112_s25 = smov (!%p8670_p12, %s592_s25), 15 }
  0x36   : > { %v1027_v52 = vor.u32 %v1025_v29, %v7846_v40  ;;  %v1327_v55 = vor.u32 %v1325_v34, %v1324_v45  ;;  %v1328_v56 = vrot.slane %v1324_v45, 4  ;;  %v1091_v1 = vld [vmem:[%s7665_s17 + $0x28] sm:$0xf]  ;;  %v1092_v5 = vld [vmem:[%s7665_s17 + $0x2c] sm:$0xf]  ;;  %v1258_v10 = vsel %vm7708_vm15, %v1103_v48, %v1257_v59  ;;  %s9114_s25 = smov (!%p8670_p12, %s9112_s25), 15 }
  0x37   : > { %v1335_v58 = vor.u32 %v1333_v36, %v7852_v47  ;;  %v1034_v61 = vsel %vm7708_vm15, %v1019_v50, %v1033_v44  ;;  %v979_v11 = vld [vmem:[#allocation2 + $0x90] sm:$0xf]  ;;  %v1112_v14 = vsel %vm7694_vm14, %v1104_v53, %v1111_v62  ;;  %v869_v15 = vrot.slane %v867_v57, 7  ;;  %v7879_v18 = vld [vmem:[%s7659_s27 + $0x8] sm:$0xf]  ;;  %v7236_v44 = vld [vmem:[%s9072_s6 + $0x98] sm:$0xff] }
  0x38   : > { %4754 = vmatpush.bf16.msrb.mxu2 %v7238_v16  ;;  %v1028_v60 = vsel %vm7694_vm14, %v1020_v51, %v1027_v52  ;;  %1035 = vst [vmem:[#allocation2] sm:$0xf] %v1034_v61  ;;  %v1342_v3 = vsel %vm7708_vm15, %v1327_v55, %v1341_v54  ;;  %v704_v12 = vld [vmem:[#allocation2 + $0x30] sm:$0x11]  ;;  %v870_v16 = vshll.u32 %v7841_v32, 16  ;;  %v875_v19 = vshrl.u32 %v774_v63, 16 }
  0x39   : > { %4803 = vmatpush.bf16.msrb.mxu3 %v7246_v21  ;;  %v1336_v2 = vsel %vm7694_vm14, %v1328_v56, %v1335_v58  ;;  %v6277_v4 = vld [vmem:[#allocation3 + $0x2d0] sm:$0xf]  ;;  %1036 = vst [vmem:[#allocation2 + $0x8] sm:$0xf] %v1028_v60  ;;  %v7163_v9 = vld [vmem:[#allocation3 + $0x2d4] sm:$0xf] }
  0x3a   : > { %v7172_v7 = vld [vmem:[#allocation3 + $0x314] sm:$0xf0]  ;;  %1343 = vst [vmem:[#allocation2 + $0x4] sm:$0xf] %v1342_v3  ;;  %v6279_v13 = vld [vmem:[#allocation3 + $0x318] sm:$0xf0]  ;;  %v872_v24 = vor.u32 %v870_v16, %v869_v15 }
  0x3b   : > { %1344 = vst [vmem:[#allocation2 + $0xc] sm:$0xf] %v1336_v2  ;;  %v878_v20 = vshll.u32 %v774_v63, 16  ;;  %v1183_v21 = vshrl.u32 %v1091_v1, 16  ;;  %v1186_v22 = vshll.u32 %v1091_v1, 16  ;;  %v873_v25 = vrot.slane %v869_v15, 4 }
  0x3c   : > { %4755 = vmatpush.bf16.msrb.mxu2 %v7237_v41  ;;  %1259 = vst [vmem:[#allocation2 + $0x1c] sm:$0xf] %v1258_v10  ;;  %v1191_v26 = vshrl.u32 %v1092_v5, 16  ;;  %v1194_v27 = vshll.u32 %v1092_v5, 16  ;;  %v7882_v29 = vld [vmem:[%s7659_s27 + $0xc] sm:$0xf]  ;;  %v6278_v31 = vor.u32 %v7172_v7, %v6277_v4  ;;  %v6282_v33 = vor.u32 %v7163_v9, %v6279_v13 }
  0x3d   : > { %1260 = vst [vmem:[#allocation2 + $0x24] sm:$0xf] %v1112_v14  ;;  %v7245_v32 = vld [vmem:[%s9072_s6 + $0xe0] sm:$0xff]  ;;  %v7254_v34 = vld [vmem:[%s9072_s6 + $0x128] sm:$0xff]  ;;  %v7893_v36 = vrot.slane %v875_v19, 7  ;;  %v980_v37 = vsel %vm7708_vm15, %v872_v24, %v979_v11  ;;  %v1185_v38 = vrot.slane %v1183_v21, 7 }
  0x3e   : > { %v7262_v35 = vld [vmem:[%s9072_s6 + $0x168] sm:$0xff]  ;;  %v7897_v41 = vrot.slane %v1191_v26, 7  ;;  %v1292_v43 = vld [vmem:[#allocation2 + $0x94] sm:$0xf]  ;;  %v705_v45 = vsel %vm7644_vm9, 0, %v704_v12  ;;  %4804 = vmatpush.bf16.msrb.mxu3 %v7245_v32  ;;  %4852 = vmatpush.bf16.msrb.mxu0 %v7254_v34  ;;  %v7244_v51 = vld [vmem:[%s9072_s6 + $0xd8] sm:$0xff] }
  0x3f   : > { %v1083_v48 = vld [vmem:[%s7665_s17 + $0x8] sm:$0xf]  ;;  %v880_v50 = vor.u32 %v878_v20, %v7893_v36  ;;  %981 = vst [vmem:[#allocation2 + $0x90] sm:$0xf] %v980_v37  ;;  %v7253_v52 = vld [vmem:[%s9072_s6 + $0x120] sm:$0xff]  ;;  %v799_v53 = vshrl.u32 %v7879_v18, 16  ;;  %4901 = vmatpush.bf16.msrb.mxu1 %v7262_v35  ;;  %v1188_v55 = vor.u32 %v1186_v22, %v1185_v38 }
  0x40   : > { %v7261_v54 = vld [vmem:[%s9072_s6 + $0x160] sm:$0xff]  ;;  %v1189_v56 = vrot.slane %v1185_v38, 4  ;;  %4756 = vmatpush.bf16.msrb.mxu2 %v7236_v44  ;;  %v7235_v58 = vld [vmem:[%s9072_s6 + $0x90] sm:$0xff]  ;;  %706 = vst [vmem:[#allocation2 + $0x30] sm:$0x11] %v705_v45  ;;  %v1196_v60 = vor.u32 %v1194_v27, %v7897_v41  ;;  %v802_v62 = vshll.u32 %v7879_v18, 16 }
  0x41   : > { %v1084_v59 = vld [vmem:[%s7665_s17 + $0xc] sm:$0xf]  ;;  %v7920_v57 = vld [vmem:[#allocation2] sm:$0xff]  ;;  %v801_v61 = vrot.slane %v799_v53, 7  ;;  %v807_v63 = vshrl.u32 %v7882_v29, 16  ;;  %v881_v3 = vsel %vm7694_vm14, %v873_v25, %v880_v50  ;;  %v810_v4 = vshll.u32 %v7882_v29, 16 }
  0x42   : > { %v719_v1 = vld [vmem:[#allocation2 + $0xa8] sm:$0x11]  ;;  %1399 = vst [vmem:[#allocation3] sm:$0xff] %v7920_v57  ;;  %v1115_v5 = vshrl.u32 %v1083_v48, 16  ;;  %v7932_v7 = vld [vmem:[%s7659_s27 + $0x30] sm:$0xf]  ;;  %v1293_v10 = vsel %vm7708_vm15, %v1188_v55, %v1292_v43  ;;  %4805 = vmatpush.bf16.msrb.mxu3 %v7244_v51  ;;  %4853 = vmatpush.bf16.msrb.mxu0 %v7253_v52  ;;  %v1197_v20 = vsel %vm7694_vm14, %v1189_v56, %v1196_v60 }
  0x43   : > { %v7925_v2 = vld [vmem:[#allocation2 + $0x8] sm:$0xff]  ;;  %4687 = vmatmul.bf16.gmra.mxu2 %v6278_v31  ;;  %4736 = vmatmul.bf16.gmra.mxu3 %v6282_v33  ;;  %v7935_v9 = vld [vmem:[#allocation2 + $0x18] sm:$0xff]  ;;  %v805_v11 = vrot.slane %v801_v61, 4  ;;  %v7939_v12 = vrot.slane %v807_v63, 7  ;;  %v1118_v13 = vshll.u32 %v1083_v48, 16  ;;  %v804_v15 = vor.u32 %v802_v62, %v801_v61  ;;  %v7243_v55 = vld [vmem:[%s9072_s6 + $0xd0] sm:$0xff] }
  0x44   : > { %1400 = vst [vmem:[#allocation3 + $0x48] sm:$0xff] %v7925_v2  ;;  %v7941_v14 = vld [vmem:[#allocation2 + $0x20] sm:$0xff]  ;;  %4902 = vmatpush.bf16.msrb.mxu1 %v7261_v54  ;;  %4757 = vmatpush.bf16.msrb.mxu2 %v7235_v58  ;;  %v1117_v16 = vrot.slane %v1115_v5, 7  ;;  %v1123_v18 = vshrl.u32 %v1084_v59, 16  ;;  %v1126_v19 = vshll.u32 %v1084_v59, 16  ;;  %v720_v22 = vsel %vm7644_vm9, 0, %v719_v1 }
  0x45   : > { %1401 = vst [vmem:[#allocation3 + $0x90] sm:$0xff] %v7935_v9  ;;  %v812_v21 = vor.u32 %v810_v4, %v7939_v12  ;;  %v776_v24 = vld [vmem:[%s7659_s27 + $0x34] sm:$0xf]  ;;  %v884_v29 = vshrl.u32 %v7932_v7, 16  ;;  %v1093_v54 = vld [vmem:[%s7665_s17 + $0x30] sm:$0xf] }
  0x46   : > { %1402 = vst [vmem:[#allocation3 + $0xd8] sm:$0xff] %v7941_v14  ;;  %v1120_v25 = vor.u32 %v1118_v13, %v1117_v16  ;;  %v1121_v26 = vrot.slane %v1117_v16, 4  ;;  %v7951_v27 = vrot.slane %v1123_v18, 7  ;;  %v892_v38 = vshrl.u32 %v776_v24, 16  ;;  %v7252_v56 = vld [vmem:[%s9072_s6 + $0x118] sm:$0xff]  ;;  %4806 = vmatpush.bf16.msrb.mxu3 %v7243_v55  ;;  %v7242_v16 = vld [vmem:[%s9072_s6 + $0xc8] sm:$0xff] }
  0x47   : > { %982 = vst [vmem:[#allocation2 + $0x98] sm:$0xf] %v881_v3  ;;  %v813_v31 = vsel %vm7694_vm14, %v805_v11, %v812_v21  ;;  %v951_v33 = vld [vmem:[#allocation2 + $0x30] sm:$0xf]  ;;  %v1264_v32 = vld [vmem:[#allocation2 + $0x34] sm:$0xf]  ;;  %4854 = vmatpush.bf16.msrb.mxu0 %v7252_v56 }
  0x48   : > { %1294 = vst [vmem:[#allocation2 + $0x94] sm:$0xf] %v1293_v10  ;;  %v952_v34 = vsel %vm7708_vm15, %v804_v15, %v951_v33  ;;  %v1128_v35 = vor.u32 %v1126_v19, %v7951_v27  ;;  %v1265_v37 = vsel %vm7708_vm15, %v1120_v25, %v1264_v32  ;;  %v887_v53 = vshll.u32 %v7932_v7, 16  ;;  %v7260_v58 = vld [vmem:[%s9072_s6 + $0x158] sm:$0xff]  ;;  %v1094_v63 = vld [vmem:[%s7665_s17 + $0x34] sm:$0xf] }
  0x49   : > { %1295 = vst [vmem:[#allocation2 + $0x9c] sm:$0xf] %v1197_v20  ;;  %v5917_v43 = vld [vmem:[#allocation3] sm:$0xf]  ;;  %v7073_v44 = vld [vmem:[#allocation3 + $0x4] sm:$0xf]  ;;  %4903 = vmatpush.bf16.msrb.mxu1 %v7260_v58 }
  0x4a   : > { %953 = vst [vmem:[#allocation2 + $0x30] sm:$0xf] %v952_v34  ;;  %v1129_v50 = vsel %vm7694_vm14, %v1121_v26, %v1128_v35  ;;  %v886_v59 = vrot.slane %v884_v29, 7  ;;  %v7974_v61 = vrot.slane %v892_v38, 7  ;;  %v895_v62 = vshll.u32 %v776_v24, 16  ;;  %v7234_v10 = vld [vmem:[%s9072_s6 + $0x88] sm:$0xff]  ;;  %4807 = vmatpush.bf16.msrb.mxu3 %v7242_v16 }
  0x4b   : > { %v7082_v45 = vld [vmem:[#allocation3 + $0x44] sm:$0xf0]  ;;  %v5919_v48 = vld [vmem:[#allocation3 + $0x48] sm:$0xf0]  ;;  %954 = vst [vmem:[#allocation2 + $0x38] sm:$0xf] %v813_v31  ;;  %4758 = vmatpush.bf16.msrb.mxu2 %v7234_v10 }
  0x4c   : > { %v5918_v51 = vor.u32 %v7082_v45, %v5917_v43  ;;  %v5922_v52 = vor.u32 %v7073_v44, %v5919_v48  ;;  %1266 = vst [vmem:[#allocation2 + $0x34] sm:$0xf] %v1265_v37  ;;  %v1200_v1 = vshrl.u32 %v1093_v54, 16  ;;  %v890_v4 = vrot.slane %v886_v59, 4  ;;  %v7251_v18 = vld [vmem:[%s9072_s6 + $0x110] sm:$0xff] }
  0x4d   : > { %1267 = vst [vmem:[#allocation2 + $0x3c] sm:$0xf] %v1129_v50  ;;  %v1203_v5 = vshll.u32 %v1093_v54, 16  ;;  %v1208_v7 = vshrl.u32 %v1094_v63, 16  ;;  %v897_v11 = vor.u32 %v895_v62, %v7974_v61  ;;  %v1211_v15 = vshll.u32 %v1094_v63, 16  ;;  %v7259_v21 = vld [vmem:[%s9072_s6 + $0x150] sm:$0xff]  ;;  %4855 = vmatpush.bf16.msrb.mxu0 %v7251_v18 }
  0x4e   : > { %4662 = vmatmul.bf16.vlgmr.msra.gmra.mxu0 %v5918_v51  ;;  %4711 = vmatmul.bf16.vlgmr.msra.gmra.mxu1 %v5922_v52  ;;  %721 = vst [vmem:[#allocation2 + $0xa8] sm:$0x11] %v720_v22  ;;  %v1202_v13 = vrot.slane %v1200_v1, 7  ;;  %v889_v19 = vor.u32 %v887_v53, %v886_v59  ;;  %v7233_v22 = vld [vmem:[%s9072_s6 + $0x80] sm:$0xff]  ;;  %v707_v24 = vld [vmem:[#allocation2 + $0x48] sm:$0x11] }
  0x4f   : > { %v1395_v60 = vld [vmem:[#allocation2 + $0x90] sm:$0xff]  ;;  %v7987_v20 = vrot.slane %v1208_v7, 7  ;;  %v5989_v25 = vld [vmem:[#allocation3 + $0x90] sm:$0xf]  ;;  %v7100_v26 = vld [vmem:[#allocation3 + $0xd4] sm:$0xf0]  ;;  %v898_v32 = vsel %vm7694_vm14, %v890_v4, %v897_v11  ;;  %4904 = vmatpush.bf16.msrb.mxu1 %v7259_v21  ;;  %4759 = vmatpush.bf16.msrb.mxu2 %v7233_v22 }
  0x50   : > { %v1396_v3 = vld [vmem:[#allocation2 + $0x98] sm:$0xff]  ;;  %1411 = vst [vmem:[#allocation3 + $0x360] sm:$0xff] %v1395_v60  ;;  %v7091_v29 = vld [vmem:[#allocation3 + $0x94] sm:$0xf]  ;;  %v5991_v31 = vld [vmem:[#allocation3 + $0xd8] sm:$0xf0]  ;;  %v1205_v34 = vor.u32 %v1203_v5, %v1202_v13  ;;  %v5990_v60 = vor.u32 %v7100_v26, %v5989_v25 }
  0x51   : > { %1412 = vst [vmem:[#allocation3 + $0x3a8] sm:$0xff] %v1396_v3  ;;  %v1206_v35 = vrot.slane %v1202_v13, 4  ;;  %v767_v37 = vld [vmem:[%s7659_s27 + $0x10] sm:$0xf]  ;;  %v1213_v43 = vor.u32 %v1211_v15, %v7987_v20  ;;  %v768_v44 = vld [vmem:[%s7659_s27 + $0x14] sm:$0xf]  ;;  %v5994_v62 = vor.u32 %v7091_v29, %v5991_v31 }
  0x52   : > { %v816_v45 = vshrl.u32 %v767_v37, 16  ;;  %v708_v51 = vsel %vm7644_vm9, 0, %v707_v24  ;;  %989 = vst [vmem:[#allocation2 + $0xb0] sm:$0xf] %v898_v32  ;;  %v1085_v56 = vld [vmem:[%s7665_s17 + $0x10] sm:$0xf] }
  0x53   : > { %v7995_v33 = vld [vmem:[#allocation2 + $0x30] sm:$0xff]  ;;  %v1214_v54 = vsel %vm7694_vm14, %v1206_v35, %v1213_v43  ;;  %v819_v5 = vshll.u32 %v767_v37, 16  ;;  %v824_v7 = vshrl.u32 %v768_v44, 16  ;;  %709 = vst [vmem:[#allocation2 + $0x48] sm:$0x11] %v708_v51  ;;  %v827_v11 = vshll.u32 %v768_v44, 16 }
  0x54   : > { %v8000_v38 = vld [vmem:[#allocation2 + $0x38] sm:$0xff]  ;;  %1403 = vst [vmem:[#allocation3 + $0x120] sm:$0xff] %v7995_v33  ;;  %v818_v55 = vrot.slane %v816_v45, 7  ;;  %v1086_v10 = vld [vmem:[%s7665_s17 + $0x14] sm:$0xf]  ;;  %v1132_v13 = vshrl.u32 %v1085_v56, 16 }
  0x55   : > { %1404 = vst [vmem:[#allocation3 + $0x168] sm:$0xff] %v8000_v38  ;;  %v986_v48 = vld [vmem:[#allocation2 + $0xa8] sm:$0xf]  ;;  %v1299_v50 = vld [vmem:[#allocation2 + $0xac] sm:$0xf]  ;;  %v1135_v15 = vshll.u32 %v1085_v56, 16 }
  0x56   : > { %v987_v52 = vsel %vm7708_vm15, %v889_v19, %v986_v48  ;;  %v1300_v53 = vsel %vm7708_vm15, %v1205_v34, %v1299_v50  ;;  %1302 = vst [vmem:[#allocation2 + $0xb4] sm:$0xf] %v1214_v54  ;;  %v1140_v16 = vshrl.u32 %v1086_v10, 16  ;;  %v822_v18 = vrot.slane %v818_v55, 4  ;;  %v7241_v26 = vld [vmem:[%s9072_s6 + $0xc0] sm:$0xff]  ;;  %v7250_v35 = vld [vmem:[%s9072_s6 + $0x108] sm:$0xff] }
  0x57   : > { %v6349_v58 = vld [vmem:[#allocation3 + $0x360] sm:$0xf]  ;;  %v7181_v59 = vld [vmem:[#allocation3 + $0x364] sm:$0xf]  ;;  %988 = vst [vmem:[#allocation2 + $0xa8] sm:$0xf] %v987_v52  ;;  %v821_v29 = vor.u32 %v819_v5, %v818_v55  ;;  %4808 = vmatpush.bf16.msrb.mxu3 %v7241_v26  ;;  %4856 = vmatpush.bf16.msrb.mxu0 %v7250_v35 }
  0x58   : > { %v7190_v63 = vld [vmem:[#allocation3 + $0x3a4] sm:$0xf0]  ;;  %v6351_v1 = vld [vmem:[#allocation3 + $0x3a8] sm:$0xf0]  ;;  %1301 = vst [vmem:[#allocation2 + $0xac] sm:$0xf] %v1300_v53 }
  0x59   : > { %v6350_v3 = vor.u32 %v7190_v63, %v6349_v58  ;;  %v6354_v4 = vor.u32 %v7181_v59, %v6351_v1  ;;  %v8016_v19 = vrot.slane %v824_v7, 7  ;;  %v1143_v21 = vshll.u32 %v1086_v10, 16  ;;  %v7258_v37 = vld [vmem:[%s9072_s6 + $0x148] sm:$0xff]  ;;  %v733_v43 = vld [vmem:[#allocation2 + $0x10] sm:$0x11] }
  0x5a   : > { %v1134_v22 = vrot.slane %v1132_v13, 7  ;;  %v8018_v24 = vrot.slane %v1140_v16, 7  ;;  %vm1439_vm0 = vsmask.f32 3328  ;;  %vm1440_vm1 = vsmask.f32 7440  ;;  %4905 = vmatpush.bf16.msrb.mxu1 %v7258_v37 }
  0x5b   : > { %4692 = vmatmul.bf16.gmra.mxu2 %v6350_v3  ;;  %4741 = vmatmul.bf16.gmra.mxu3 %v6354_v4  ;;  %v829_v25 = vor.u32 %v827_v11, %v8016_v19  ;;  %v1443_v50 = vshrl.u32 %v7920_v57, 16  ;;  %v1446_v51 = vshll.u32 %v7920_v57, 16  ;;  %v1452_v52 = vshll.u32 %v7925_v2, 16  ;;  %v958_v54 = vld [vmem:[#allocation2 + $0x48] sm:$0xf]  ;;  %vm8051_vm2 = vmor %vm1439_vm0, %vm1440_vm1 }
  0x5c   : > { %v1137_v31 = vor.u32 %v1135_v15, %v1134_v22  ;;  %v1138_v32 = vrot.slane %v1134_v22, 4  ;;  %v1145_v34 = vor.u32 %v1143_v21, %v8018_v24  ;;  %v1271_v55 = vld [vmem:[#allocation2 + $0x4c] sm:$0xf]  ;;  %v959_v56 = vsel %vm7708_vm15, %v821_v29, %v958_v54  ;;  %v6061_v7 = vld [vmem:[#allocation3 + $0x120] sm:$0xf] }
  0x5d   : > { %v830_v45 = vsel %vm7694_vm14, %v822_v18, %v829_v25  ;;  %v1398_v48 = vld [vmem:[#allocation2 + $0xb0] sm:$0xff]  ;;  %v1445_v59 = vrot.slane %v1443_v50, 4  ;;  %v1029_v57 = vrot.slane %v7846_v40, 4  ;;  %960 = vst [vmem:[#allocation2 + $0x48] sm:$0xf] %v959_v56  ;;  %v734_v63 = vsel %vm7677_vm13, 0, %v733_v43 }
  0x5e   : > { %4667 = vmatmul.bf16.gmra.mxu0 %v5990_v60  ;;  %4716 = vmatmul.bf16.gmra.mxu1 %v5994_v62  ;;  %1414 = vst [vmem:[#allocation3 + $0x438] sm:$0xff] %v1398_v48  ;;  %v1146_v53 = vsel %vm7694_vm14, %v1138_v32, %v1145_v34  ;;  %v1272_v58 = vsel %vm7708_vm15, %v1137_v31, %v1271_v55  ;;  %v1448_v60 = vrot.slane %v1446_v51, 5  ;;  %v736_v62 = vld [vmem:[#allocation2 + $0x28] sm:$0x11]  ;;  %v8045_v3 = vrot.slane %v1452_v52, 5  ;;  %v7272_v34 = vld [vmem:[%s9072_s6 + $0x1b8] sm:$0xff] }
  0x5f   : > { %v1397_v44 = vld [vmem:[#allocation2 + $0xa8] sm:$0xff]  ;;  %961 = vst [vmem:[#allocation2 + $0x50] sm:$0xf] %v830_v45  ;;  %v1456_v4 = vshrl.u32 %v7925_v2, 16  ;;  %v1467_v5 = vshrl.u32 %v7935_v9, 16  ;;  %v1719_v16 = vrot.slane %v7925_v2, 5  ;;  %4948 = vmatpush.bf16.msra.mxu2 %v7272_v34 }
  0x60   : > { %1413 = vst [vmem:[#allocation3 + $0x3f0] sm:$0xff] %v1397_v44  ;;  %v1449_v1 = vor.u32 %v1448_v60, %v1445_v59  ;;  %v7118_v10 = vld [vmem:[#allocation3 + $0x164] sm:$0xf0]  ;;  %v7109_v11 = vld [vmem:[#allocation3 + $0x124] sm:$0xf]  ;;  %v737_v18 = vsel %vm7677_vm13, 0, %v736_v62 }
  0x61   : > { %1273 = vst [vmem:[#allocation2 + $0x4c] sm:$0xf] %v1272_v58  ;;  %v6063_v13 = vld [vmem:[#allocation3 + $0x168] sm:$0xf0]  ;;  %v1470_v21 = vshll.u32 %v7935_v9, 16  ;;  %v1476_v22 = vshll.u32 %v7941_v14, 16 }
  0x62   : > { %1274 = vst [vmem:[#allocation2 + $0x54] sm:$0xf] %v1146_v53  ;;  %v1450_v25 = vrot.slane %v1449_v1, 4  ;;  %v1666_v26 = vld [vmem:[#allocation2] sm:$0xee]  ;;  %v1480_v29 = vshrl.u32 %v7941_v14, 16  ;;  %v6062_v53 = vor.u32 %v7118_v10, %v6061_v7  ;;  %v6066_v55 = vor.u32 %v7109_v11, %v6063_v13 }
  0x63   : > { %735 = vst [vmem:[#allocation2 + $0x10] sm:$0x11] %v734_v63  ;;  %v1469_v35 = vrot.slane %v1467_v5, 4  ;;  %v7249_v44 = vld [vmem:[%s9072_s6 + $0x100] sm:$0xff]  ;;  %v7280_v50 = vld [vmem:[%s9072_s6 + $0x1f8] sm:$0xff]  ;;  %v5891_v52 = vrot.slane %v1666_v26, 9 }
  0x64   : > { %v1455_v9 = vsel %vm8051_vm2, %v1450_v25, %v8045_v3  ;;  %v7257_v51 = vld [vmem:[%s9072_s6 + $0x140] sm:$0xff]  ;;  %v1337_v54 = vrot.slane %v7852_v47, 4  ;;  %4857 = vmatpush.bf16.msrb.mxu0 %v7249_v44  ;;  %738 = vst [vmem:[#allocation2 + $0x28] sm:$0x11] %v737_v18  ;;  %v1472_v58 = vrot.slane %v1470_v21, 5  ;;  %v1458_v60 = vrot.slane %v1456_v4, 4  ;;  %4997 = vmatpush.bf16.msra.mxu3 %v7280_v50 }
  0x65   : > { %v7208_v37 = vld [vmem:[#allocation3 + $0x434] sm:$0xf0]  ;;  %v6423_v43 = vld [vmem:[#allocation3 + $0x438] sm:$0xf0]  ;;  %1650 = vst [vmem:[#allocation3 + $0x8] sm:$0xff] %v1455_v9  ;;  %v1720_v62 = vsel %vm8077_vm6, %v5891_v52, %v1719_v16  ;;  %4906 = vmatpush.bf16.msrb.mxu1 %v7257_v51  ;;  %v1478_v1 = vrot.slane %v1476_v22, 5 }
  0x66   : > { %v1473_v63 = vor.u32 %v1472_v58, %v1469_v35  ;;  %v1482_v5 = vrot.slane %v1480_v29, 4  ;;  %v739_v7 = vld [vmem:[#allocation2 + $0x40] sm:$0x11]  ;;  %v797_v10 = vrot.slane %v7802_v46, 4  ;;  %v1113_v13 = vrot.slane %v7855_v49, 4  ;;  %1789 = vst [vmem:[#allocation3 + $0x10] sm:$0xff] %v1720_v62 }
  0x67   : > { %v6421_v31 = vld [vmem:[#allocation3 + $0x3f0] sm:$0xf]  ;;  %v7199_v32 = vld [vmem:[#allocation3 + $0x3f4] sm:$0xf]  ;;  %v7288_v46 = vld [vmem:[%s9072_s6 + $0x238] sm:$0xff]  ;;  %v740_v40 = vsel %vm7677_vm13, 0, %v739_v7 }
  0x68   : > { %v6422_v45 = vor.u32 %v7208_v37, %v6421_v31  ;;  %v6426_v48 = vor.u32 %v7199_v32, %v6423_v43  ;;  %v8081_v59 = vld [vmem:[#allocation2 + $0x48] sm:$0xff]  ;;  %v7296_v22 = vld [vmem:[%s9072_s6 + $0x278] sm:$0xff]  ;;  %v1474_v49 = vrot.slane %v1473_v63, 4  ;;  %5046 = vmatpush.bf16.msra.mxu0 %v7288_v46  ;;  %v1483_v26 = vor.u32 %v1482_v5, %v1478_v1  ;;  %741 = vst [vmem:[#allocation2 + $0x40] sm:$0x11] %v740_v40 }
  0x69   : > { %v8087_v47 = vld [vmem:[#allocation2 + $0x50] sm:$0xff]  ;;  %1405 = vst [vmem:[#allocation3 + $0x1b0] sm:$0xff] %v8081_v59  ;;  %5095 = vmatpush.bf16.msra.mxu1 %v7296_v22  ;;  %v814_v35 = vrot.slane %v7939_v12, 4  ;;  %v1721_v43 = vrot.slane %v1719_v16, 4  ;;  %v1669_v51 = vld [vmem:[#allocation2 + $0x18] sm:$0xee] }
  0x6a   : > { %1406 = vst [vmem:[#allocation3 + $0x1f8] sm:$0xff] %v8087_v47  ;;  %v1037_v4 = vld [vmem:[#allocation2 + $0x10] sm:$0x1]  ;;  %v1345_v11 = vld [vmem:[#allocation2 + $0x14] sm:$0x1]  ;;  %v1479_v25 = vsel %vm8051_vm2, %v1474_v49, %v1478_v1  ;;  %v1484_v9 = vrot.slane %v1483_v26, 4 }
  0x6b   : > { %4697 = vmatmul.bf16.gmra.mxu2 %v6422_v45  ;;  %4746 = vmatmul.bf16.gmra.mxu3 %v6426_v48  ;;  %v1038_v18 = vsel %vm7631_vm4, %v1029_v57, %v1037_v4  ;;  %v1346_v21 = vsel %vm7631_vm4, %v1337_v54, %v1345_v11  ;;  %v1459_v57 = vor.u32 %v1458_v60, %v8045_v3  ;;  %v948_v29 = vld [vmem:[#allocation2 + $0x28] sm:$0x1]  ;;  %v1261_v31 = vld [vmem:[#allocation2 + $0x2c] sm:$0x1]  ;;  %v1130_v3 = vrot.slane %v7951_v27, 4  ;;  %v7271_v27 = vld [vmem:[%s9072_s6 + $0x1b0] sm:$0xff] }
  0x6c   : > { %1039 = vst [vmem:[#allocation2 + $0x10] sm:$0x1] %v1038_v18  ;;  %v949_v32 = vsel %vm7631_vm4, %v797_v10, %v948_v29  ;;  %v1262_v34 = vsel %vm7631_vm4, %v1113_v13, %v1261_v31  ;;  %v1726_v52 = vrot.slane %v7941_v14, 5  ;;  %v1491_v54 = vshrl.u32 %v7995_v33, 16  ;;  %4949 = vmatpush.bf16.msra.mxu2 %v7271_v27  ;;  %v7279_v14 = vld [vmem:[%s9072_s6 + $0x1f0] sm:$0xff] }
  0x6d   : > { %1347 = vst [vmem:[#allocation2 + $0x14] sm:$0x1] %v1346_v21  ;;  %v1460_v37 = vrot.slane %v1459_v57, 4  ;;  %v1494_v58 = vshll.u32 %v7995_v33, 16  ;;  %v1500_v60 = vshll.u32 %v8000_v38, 16  ;;  %v1504_v10 = vshrl.u32 %v8000_v38, 16  ;;  %4998 = vmatpush.bf16.msra.mxu3 %v7279_v14 }
  0x6e   : > { %4672 = vmatmul.bf16.gmra.mxu0 %v6062_v53  ;;  %4721 = vmatmul.bf16.gmra.mxu1 %v6066_v55  ;;  %1652 = vst [vmem:[#allocation3 + $0x98] sm:$0xff] %v1479_v25  ;;  %v5892_v55 = vrot.slane %v1669_v51, 9  ;;  %v1728_v11 = vrot.slane %v1726_v52, 4  ;;  %v742_v18 = vld [vmem:[#allocation2 + $0x58] sm:$0x11]  ;;  %v1493_v49 = vrot.slane %v1491_v54, 4 }
  0x6f   : > { %950 = vst [vmem:[#allocation2 + $0x28] sm:$0x1] %v949_v32  ;;  %v955_v5 = vld [vmem:[#allocation2 + $0x40] sm:$0x1]  ;;  %v1268_v7 = vld [vmem:[#allocation2 + $0x44] sm:$0x1] }
  0x70   : > { %1263 = vst [vmem:[#allocation2 + $0x2c] sm:$0x1] %v1262_v34  ;;  %v6133_v44 = vld [vmem:[#allocation3 + $0x1b0] sm:$0xf]  ;;  %v7127_v48 = vld [vmem:[#allocation3 + $0x1b4] sm:$0xf]  ;;  %v1727_v1 = vsel %vm8077_vm6, %v5892_v55, %v1726_v52  ;;  %v956_v13 = vsel %vm7631_vm4, %v814_v35, %v955_v5  ;;  %v1269_v22 = vsel %vm7631_vm4, %v1130_v3, %v1268_v7 }
  0x71   : > { %v7136_v45 = vld [vmem:[#allocation3 + $0x1f4] sm:$0xf0]  ;;  %v6135_v50 = vld [vmem:[#allocation3 + $0x1f8] sm:$0xf0]  ;;  %1791 = vst [vmem:[#allocation3 + $0xa0] sm:$0xff] %v1727_v1  ;;  %v1496_v26 = vrot.slane %v1494_v58, 5 }
  0x72   : > { %v6134_v62 = vor.u32 %v7136_v45, %v6133_v44  ;;  %v6138_v63 = vor.u32 %v7127_v48, %v6135_v50  ;;  %957 = vst [vmem:[#allocation2 + $0x40] sm:$0x1] %v956_v13  ;;  %v1502_v29 = vrot.slane %v1500_v60, 5  ;;  %v1506_v31 = vrot.slane %v1504_v10, 4  ;;  %v7287_v3 = vld [vmem:[%s9072_s6 + $0x230] sm:$0xff] }
  0x73   : > { %v743_v32 = vsel %vm7677_vm13, 0, %v742_v18  ;;  %1270 = vst [vmem:[#allocation2 + $0x44] sm:$0x1] %v1269_v22  ;;  %5047 = vmatpush.bf16.msra.mxu0 %v7287_v3  ;;  %v5925_v50 = vld [vmem:[#allocation3 + $0x8] sm:$0xf]  ;;  %v831_v54 = vrot.slane %v8016_v19, 4 }
  0x74   : > { %v1417_v53 = vld [vmem:[#allocation2 + $0x10] sm:$0x11]  ;;  %744 = vst [vmem:[#allocation2 + $0x58] sm:$0x11] %v743_v32  ;;  %v1507_v48 = vor.u32 %v1506_v31, %v1502_v29  ;;  %v7074_v51 = vld [vmem:[#allocation3 + $0xc] sm:$0xf] }
  0x75   : > { %v1668_v12 = vld [vmem:[#allocation2 + $0x10] sm:$0x11]  ;;  %v1462_v2 = vshll.u32 %v1417_v53, 16  ;;  %v5933_v27 = vld [vmem:[#allocation3 + $0x10] sm:$0xf]  ;;  %v1515_v55 = vshrl.u32 %v8081_v59, 16 }
  0x76   : > { %v1722_v16 = vrot.slane %v1668_v12, 5  ;;  %v7075_v58 = vld [vmem:[#allocation3 + $0x14] sm:$0xf]  ;;  %v7270_v19 = vld [vmem:[%s9072_s6 + $0x1a8] sm:$0xff]  ;;  %v1672_v10 = vld [vmem:[#allocation2 + $0x30] sm:$0xee] }
  0x77   : > { %v1464_v4 = vrot.slane %v1462_v2, 5  ;;  %v1420_v21 = vld [vmem:[#allocation2 + $0x28] sm:$0x11]  ;;  %v1517_v7 = vrot.slane %v1515_v55, 4  ;;  %v5893_v13 = vrot.slane %v1672_v10, 9  ;;  %4950 = vmatpush.bf16.msra.mxu2 %v7270_v19 }
  0x78   : > { %v1723_v33 = vsel %vm8077_vm6, %v1721_v43, %v1722_v16  ;;  %v1671_v46 = vld [vmem:[#allocation2 + $0x28] sm:$0x11]  ;;  %v1486_v57 = vshll.u32 %v1420_v21, 16  ;;  %v1497_v43 = vor.u32 %v1496_v26, %v1493_v49  ;;  %v1675_v19 = vld [vmem:[#allocation2 + $0x48] sm:$0xee] }
  0x79   : > { %1790 = vst [vmem:[#allocation3 + $0x58] sm:$0xff] %v1723_v33  ;;  %v1465_v40 = vsel %vm8051_vm2, %v1460_v37, %v1464_v4  ;;  %v1729_v25 = vrot.slane %v1671_v46, 5  ;;  %v7295_v37 = vld [vmem:[%s9072_s6 + $0x270] sm:$0xff]  ;;  %v1524_v33 = vshll.u32 %v8087_v47, 16 }
  0x7a   : > { %1651 = vst [vmem:[#allocation3 + $0x50] sm:$0xff] %v1465_v40  ;;  %v1488_v34 = vrot.slane %v1486_v57, 5  ;;  %5096 = vmatpush.bf16.msra.mxu1 %v7295_v37  ;;  %v1498_v45 = vrot.slane %v1497_v43, 4  ;;  %v1423_v60 = vld [vmem:[#allocation2 + $0x40] sm:$0x11] }
  0x7b   : > { %v1730_v35 = vsel %vm8077_vm6, %v1728_v11, %v1729_v25  ;;  %v1510_v5 = vshll.u32 %v1423_v60, 16  ;;  %v1674_v46 = vld [vmem:[#allocation2 + $0x40] sm:$0x11]  ;;  %v962_v22 = vld [vmem:[#allocation2 + $0x58] sm:$0x1]  ;;  %v1526_v32 = vrot.slane %v1524_v33, 5 }
  0x7c   : > { %1792 = vst [vmem:[#allocation3 + $0xe8] sm:$0xff] %v1730_v35  ;;  %v1489_v44 = vsel %vm8051_vm2, %v1484_v9, %v1488_v34  ;;  %v1503_v52 = vsel %vm8051_vm2, %v1498_v45, %v1502_v29  ;;  %v1518_v9 = vshll.u32 %v8081_v59, 16  ;;  %v7278_v59 = vld [vmem:[%s9072_s6 + $0x1e8] sm:$0xff]  ;;  %v1275_v49 = vld [vmem:[#allocation2 + $0x5c] sm:$0x1]  ;;  %v1736_v29 = vrot.slane %v1674_v46, 5 }
  0x7d   : > { %1653 = vst [vmem:[#allocation3 + $0xe0] sm:$0xff] %v1489_v44  ;;  %v1512_v11 = vrot.slane %v1510_v5, 5  ;;  %4999 = vmatpush.bf16.msra.mxu3 %v7278_v59  ;;  %v1528_v34 = vshrl.u32 %v8087_v47, 16  ;;  %v745_v35 = vld [vmem:[#allocation2 + $0x70] sm:$0x11]  ;;  %v7286_v45 = vld [vmem:[%s9072_s6 + $0x228] sm:$0xff] }
  0x7e   : > { %4677 = vmatmul.bf16.gmra.mxu0 %v6134_v62  ;;  %4726 = vmatmul.bf16.gmra.mxu1 %v6138_v63  ;;  %1654 = vst [vmem:[#allocation3 + $0x128] sm:$0xff] %v1503_v52  ;;  %v1508_v62 = vrot.slane %v1507_v48, 4  ;;  %v1733_v63 = vrot.slane %v8000_v38, 5  ;;  %v1520_v4 = vrot.slane %v1518_v9, 5  ;;  %v1147_v38 = vrot.slane %v8018_v24, 4  ;;  %v7294_v48 = vld [vmem:[%s9072_s6 + $0x268] sm:$0xff] }
  0x7f   : > { %v963_v24 = vsel %vm7631_vm4, %v831_v54, %v962_v22  ;;  %v5997_v44 = vld [vmem:[#allocation3 + $0x98] sm:$0xf]  ;;  %v1530_v52 = vrot.slane %v1528_v34, 4  ;;  %5048 = vmatpush.bf16.msra.mxu0 %v7286_v45  ;;  %5097 = vmatpush.bf16.msra.mxu1 %v7294_v48  ;;  %v1427_v9 = vld [vmem:[#allocation2 + $0x60] sm:$0xff]  ;;  %v1164_v60 = vrot.slane %v7714_v42, 4 }
  0x80   : > { %v7084_v14 = vld [vmem:[#allocation3 + $0x54] sm:$0xf0]  ;;  %v5935_v1 = vld [vmem:[#allocation3 + $0x58] sm:$0xf0]  ;;  %v1735_v18 = vrot.slane %v1733_v63, 4  ;;  %v1521_v40 = vor.u32 %v1520_v4, %v1517_v7  ;;  %v1513_v25 = vsel %vm8051_vm2, %v1508_v62, %v1512_v11  ;;  %v1734_v26 = vsel %vm8077_vm6, %v5893_v13, %v1733_v63  ;;  %v7285_v45 = vld [vmem:[%s9072_s6 + $0x220] sm:$0xff] }
  0x81   : > { %v7083_v53 = vld [vmem:[#allocation3 + $0x4c] sm:$0xf0]  ;;  %v5927_v12 = vld [vmem:[#allocation3 + $0x50] sm:$0xf0]  ;;  %v5934_v21 = vor.u32 %v7084_v14, %v5933_v27  ;;  %v5938_v57 = vor.u32 %v7075_v58, %v5935_v1  ;;  %1655 = vst [vmem:[#allocation3 + $0x170] sm:$0xff] %v1513_v25  ;;  %v1276_v37 = vsel %vm7631_vm4, %v1147_v38, %v1275_v49  ;;  %v1531_v55 = vor.u32 %v1530_v52, %v1526_v32  ;;  %v8192_v33 = vld [vmem:[#allocation2 + $0x68] sm:$0xff] }
  0x82   : > { %v5926_v2 = vor.u32 %v7083_v53, %v5925_v50  ;;  %v5930_v16 = vor.u32 %v7074_v51, %v5927_v12  ;;  %v1522_v31 = vrot.slane %v1521_v40, 4  ;;  %v1737_v3 = vsel %vm8077_vm6, %v1735_v18, %v1736_v29  ;;  %1793 = vst [vmem:[#allocation3 + $0x130] sm:$0xff] %v1734_v26  ;;  %v7092_v51 = vld [vmem:[#allocation3 + $0x9c] sm:$0xf]  ;;  %v7093_v62 = vld [vmem:[#allocation3 + $0xa4] sm:$0xf] }
  0x83   : > { %1794 = vst [vmem:[#allocation3 + $0x178] sm:$0xff] %v1737_v3  ;;  %v746_v50 = vsel %vm7677_vm13, 0, %v745_v35  ;;  %v7102_v58 = vld [vmem:[#allocation3 + $0xe4] sm:$0xf0]  ;;  %v6007_v63 = vld [vmem:[#allocation3 + $0xe8] sm:$0xf0]  ;;  %5049 = vmatpush.bf16.msra.mxu0 %v7285_v45 }
  0x84   : > { %4760 = vmatmul.bf16.vlgmr.msrb.gmra.mxu2 %v5926_v2  ;;  %4809 = vmatmul.bf16.vlgmr.msrb.gmra.mxu3 %v5930_v16  ;;  %v1527_v43 = vsel %vm8051_vm2, %v1522_v31, %v1526_v32  ;;  %964 = vst [vmem:[#allocation2 + $0x58] sm:$0x1] %v963_v24  ;;  %v7101_v54 = vld [vmem:[#allocation3 + $0xdc] sm:$0xf0]  ;;  %v5999_v53 = vld [vmem:[#allocation3 + $0xe0] sm:$0xf0]  ;;  %v6010_v25 = vor.u32 %v7093_v62, %v6007_v63 }
  0x85   : > { %1277 = vst [vmem:[#allocation2 + $0x5c] sm:$0x1] %v1276_v37  ;;  %v5998_v12 = vor.u32 %v7101_v54, %v5997_v44  ;;  %v6002_v27 = vor.u32 %v7092_v51, %v5999_v53  ;;  %v848_v2 = vrot.slane %v7688_v28, 4  ;;  %v6005_v16 = vld [vmem:[#allocation3 + $0xa0] sm:$0xf]  ;;  %v1740_v14 = vrot.slane %v8087_v47, 5 }
  0x86   : > { %1656 = vst [vmem:[#allocation3 + $0x1b8] sm:$0xff] %v1527_v43  ;;  %v1539_v1 = vshrl.u32 %v1427_v9, 16  ;;  %v1542_v5 = vshll.u32 %v1427_v9, 16  ;;  %v1532_v10 = vrot.slane %v1531_v55, 4  ;;  %v7269_v28 = vld [vmem:[%s9072_s6 + $0x1a0] sm:$0xff]  ;;  %v6006_v38 = vor.u32 %v7102_v58, %v6005_v16 }
  0x87   : > { %747 = vst [vmem:[#allocation2 + $0x70] sm:$0x11] %v746_v50  ;;  %v748_v42 = vld [vmem:[#allocation2 + $0x88] sm:$0x11]  ;;  %v7277_v47 = vld [vmem:[%s9072_s6 + $0x1e0] sm:$0xff]  ;;  %v5894_v11 = vrot.slane %v1675_v19, 9  ;;  %4951 = vmatpush.bf16.msra.mxu2 %v7269_v28 }
  0x88   : > { %v1742_v13 = vrot.slane %v1740_v14, 4  ;;  %v1541_v40 = vrot.slane %v1539_v1, 4  ;;  %5000 = vmatpush.bf16.msra.mxu3 %v7277_v47  ;;  %v1548_v24 = vshll.u32 %v8192_v33, 16  ;;  %v1552_v35 = vshrl.u32 %v8192_v33, 16  ;;  %v7293_v48 = vld [vmem:[%s9072_s6 + $0x260] sm:$0xff] }
  0x89   : > { %v1741_v26 = vsel %vm8077_vm6, %v5894_v11, %v1740_v14  ;;  %v749_v3 = vsel %vm7677_vm13, 0, %v748_v42  ;;  %v6069_v50 = vld [vmem:[#allocation3 + $0x128] sm:$0xf]  ;;  %v7110_v51 = vld [vmem:[#allocation3 + $0x12c] sm:$0xf]  ;;  %5098 = vmatpush.bf16.msra.mxu1 %v7293_v48  ;;  %v865_v63 = vrot.slane %v7751_v0, 4 }
  0x8a   : > { %1795 = vst [vmem:[#allocation3 + $0x1c0] sm:$0xff] %v1741_v26  ;;  %v1550_v43 = vrot.slane %v1548_v24, 5  ;;  %v1554_v44 = vrot.slane %v1552_v35, 4  ;;  %v7119_v54 = vld [vmem:[#allocation3 + $0x16c] sm:$0xf0]  ;;  %v1181_v28 = vrot.slane %v7782_v23, 4 }
  0x8b   : > { %750 = vst [vmem:[#allocation2 + $0x88] sm:$0x11] %v749_v3  ;;  %v6071_v53 = vld [vmem:[#allocation3 + $0x170] sm:$0xf0]  ;;  %v6077_v9 = vld [vmem:[#allocation3 + $0x130] sm:$0xf] }
  0x8c   : > { %v1426_v7 = vld [vmem:[#allocation2 + $0x58] sm:$0x11]  ;;  %v6074_v55 = vor.u32 %v7110_v51, %v6071_v53  ;;  %v7120_v16 = vld [vmem:[#allocation3 + $0x174] sm:$0xf0]  ;;  %v7111_v58 = vld [vmem:[#allocation3 + $0x134] sm:$0xf] }
  0x8d   : > { %v1677_v59 = vld [vmem:[#allocation2 + $0x58] sm:$0x11]  ;;  %v1534_v4 = vshll.u32 %v1426_v7, 16  ;;  %v6078_v47 = vor.u32 %v7120_v16, %v6077_v9  ;;  %v6141_v45 = vld [vmem:[#allocation3 + $0x1b8] sm:$0xf]  ;;  %v882_v53 = vrot.slane %v7893_v36, 4 }
  0x8e   : > { %4858 = vmatmul.bf16.vlgmr.msrb.gmra.mxu0 %v5934_v21  ;;  %4907 = vmatmul.bf16.vlgmr.msrb.gmra.mxu1 %v5938_v57  ;;  %v1743_v18 = vrot.slane %v1677_v59, 5  ;;  %v969_v21 = vld [vmem:[#allocation2 + $0x70] sm:$0x1]  ;;  %v1282_v49 = vld [vmem:[#allocation2 + $0x74] sm:$0x1]  ;;  %v1544_v57 = vrot.slane %v1542_v5, 5 }
  0x8f   : > { %v1536_v46 = vrot.slane %v1534_v4, 5  ;;  %v970_v22 = vsel %vm7631_vm4, %v848_v2, %v969_v21  ;;  %v1283_v32 = vsel %vm7631_vm4, %v1164_v60, %v1282_v49  ;;  %v1430_v2 = vld [vmem:[#allocation2 + $0x78] sm:$0xff]  ;;  %v6079_v60 = vld [vmem:[#allocation3 + $0x178] sm:$0xf0]  ;;  %v1747_v5 = vrot.slane %v8192_v33, 5  ;;  %v8221_v4 = vld [vmem:[#allocation2 + $0x80] sm:$0xff] }
  0x90   : > { %v1744_v29 = vsel %vm8077_vm6, %v1742_v13, %v1743_v18  ;;  %971 = vst [vmem:[#allocation2 + $0x70] sm:$0x1] %v970_v22  ;;  %v1545_v34 = vor.u32 %v1544_v57, %v1541_v40  ;;  %v1563_v62 = vshrl.u32 %v1430_v2, 16  ;;  %v1566_v7 = vshll.u32 %v1430_v2, 16  ;;  %v1678_v59 = vld [vmem:[#allocation2 + $0x60] sm:$0xee] }
  0x91   : > { %v1537_v31 = vsel %vm8051_vm2, %v1532_v10, %v1536_v46  ;;  %1796 = vst [vmem:[#allocation3 + $0x208] sm:$0xff] %v1744_v29  ;;  %v7268_v42 = vld [vmem:[%s9072_s6 + $0x198] sm:$0xff]  ;;  %v1749_v13 = vrot.slane %v1747_v5, 4  ;;  %v6082_v46 = vor.u32 %v7111_v58, %v6079_v60  ;;  %v1572_v40 = vshll.u32 %v8221_v4, 16  ;;  %v751_v57 = vld [vmem:[#allocation2 + $0xa0] sm:$0x11] }
  0x92   : > { %1657 = vst [vmem:[#allocation3 + $0x200] sm:$0xff] %v1537_v31  ;;  %v1546_v37 = vrot.slane %v1545_v34, 4  ;;  %v1565_v0 = vrot.slane %v1563_v62, 4  ;;  %v7276_v33 = vld [vmem:[%s9072_s6 + $0x1d8] sm:$0xff]  ;;  %v976_v21 = vld [vmem:[#allocation2 + $0x88] sm:$0x1]  ;;  %4952 = vmatpush.bf16.msra.mxu2 %v7268_v42 }
  0x93   : > { %1284 = vst [vmem:[#allocation2 + $0x74] sm:$0x1] %v1283_v32  ;;  %v1289_v22 = vld [vmem:[#allocation2 + $0x8c] sm:$0x1]  ;;  %v1568_v49 = vrot.slane %v1566_v7, 5  ;;  %5001 = vmatpush.bf16.msra.mxu3 %v7276_v33  ;;  %v977_v29 = vsel %vm7631_vm4, %v865_v63, %v976_v21  ;;  %v1576_v24 = vshrl.u32 %v8221_v4, 16 }
  0x94   : > { %4765 = vmatmul.bf16.gmra.mxu2 %v5998_v12  ;;  %4814 = vmatmul.bf16.gmra.mxu3 %v6002_v27  ;;  %v1551_v52 = vsel %vm8051_vm2, %v1546_v37, %v1550_v43  ;;  %v1555_v12 = vor.u32 %v1554_v44, %v1550_v43  ;;  %v6070_v27 = vor.u32 %v7119_v54, %v6069_v50  ;;  %v752_v34 = vsel %vm7677_vm13, 0, %v751_v57  ;;  %v7284_v37 = vld [vmem:[%s9072_s6 + $0x218] sm:$0xff]  ;;  %v7128_v48 = vld [vmem:[#allocation3 + $0x1bc] sm:$0xf]  ;;  %v6149_v9 = vld [vmem:[#allocation3 + $0x1c0] sm:$0xf] }
  0x95   : > { %1658 = vst [vmem:[#allocation3 + $0x248] sm:$0xff] %v1551_v52  ;;  %v1290_v31 = vsel %vm7631_vm4, %v1181_v28, %v1289_v22  ;;  %v1569_v32 = vor.u32 %v1568_v49, %v1565_v0  ;;  %v1574_v3 = vrot.slane %v1572_v40, 5  ;;  %v7292_v43 = vld [vmem:[%s9072_s6 + $0x258] sm:$0xff]  ;;  %v1578_v44 = vrot.slane %v1576_v24, 4  ;;  %5050 = vmatpush.bf16.msra.mxu0 %v7284_v37  ;;  %v1433_v2 = vld [vmem:[#allocation2 + $0x90] sm:$0xff] }
  0x96   : > { %v1556_v1 = vrot.slane %v1555_v12, 4  ;;  %978 = vst [vmem:[#allocation2 + $0x88] sm:$0x1] %v977_v29  ;;  %5099 = vmatpush.bf16.msra.mxu1 %v7292_v43  ;;  %v1198_v12 = vrot.slane %v7897_v41, 4  ;;  %v7129_v58 = vld [vmem:[#allocation3 + $0x1c4] sm:$0xf] }
  0x97   : > { %v1570_v35 = vrot.slane %v1569_v32, 4  ;;  %1291 = vst [vmem:[#allocation2 + $0x8c] sm:$0x1] %v1290_v31  ;;  %v1579_v54 = vor.u32 %v1578_v44, %v1574_v3  ;;  %v8254_v60 = vld [vmem:[#allocation2 + $0x98] sm:$0xff]  ;;  %v1587_v62 = vshrl.u32 %v1433_v2, 16  ;;  %v7267_v42 = vld [vmem:[%s9072_s6 + $0x190] sm:$0xff] }
  0x98   : > { %753 = vst [vmem:[#allocation2 + $0xa0] sm:$0x11] %v752_v34  ;;  %v7138_v16 = vld [vmem:[#allocation3 + $0x204] sm:$0xf0]  ;;  %v6151_v63 = vld [vmem:[#allocation3 + $0x208] sm:$0xf0]  ;;  %4953 = vmatpush.bf16.msra.mxu2 %v7267_v42 }
  0x99   : > { %v1575_v50 = vsel %vm8051_vm2, %v1570_v35, %v1574_v3  ;;  %v7137_v51 = vld [vmem:[#allocation3 + $0x1fc] sm:$0xf0]  ;;  %v6143_v52 = vld [vmem:[#allocation3 + $0x200] sm:$0xf0]  ;;  %v1589_v0 = vrot.slane %v1587_v62, 4  ;;  %v1600_v40 = vshrl.u32 %v8254_v60, 16 }
  0x9a   : > { %v1429_v14 = vld [vmem:[#allocation2 + $0x70] sm:$0x11]  ;;  %1660 = vst [vmem:[#allocation3 + $0x2d8] sm:$0xff] %v1575_v50  ;;  %v754_v57 = vld [vmem:[#allocation2 + $0xb8] sm:$0x11] }
  0x9b   : > { %v1558_v19 = vshll.u32 %v1429_v14, 16  ;;  %v1680_v10 = vld [vmem:[#allocation2 + $0x70] sm:$0x11]  ;;  %v755_v32 = vsel %vm7677_vm13, 0, %v754_v57  ;;  %v1602_v3 = vrot.slane %v1600_v40, 4 }
  0x9c   : > { %v1750_v18 = vrot.slane %v1680_v10, 5  ;;  %v1681_v10 = vld [vmem:[#allocation2 + $0x78] sm:$0xee]  ;;  %v7275_v33 = vld [vmem:[%s9072_s6 + $0x1d0] sm:$0xff]  ;;  %756 = vst [vmem:[#allocation2 + $0xb8] sm:$0x11] %v755_v32 }
  0x9d   : > { %v1560_v11 = vrot.slane %v1558_v19, 5  ;;  %5002 = vmatpush.bf16.msra.mxu3 %v7275_v33  ;;  %v7283_v44 = vld [vmem:[%s9072_s6 + $0x210] sm:$0xff]  ;;  %v7146_v50 = vld [vmem:[#allocation3 + $0x24c] sm:$0xf]  ;;  %v7274_v33 = vld [vmem:[%s9072_s6 + $0x1c8] sm:$0xff] }
  0x9e   : > { %4863 = vmatmul.bf16.gmra.mxu0 %v6006_v38  ;;  %4912 = vmatmul.bf16.gmra.mxu1 %v6010_v25  ;;  %v5895_v38 = vrot.slane %v1678_v59, 9  ;;  %v1751_v26 = vsel %vm8077_vm6, %v1749_v13, %v1750_v18  ;;  %v1432_v14 = vld [vmem:[#allocation2 + $0x88] sm:$0x11]  ;;  %v1580_v59 = vrot.slane %v1579_v54, 4  ;;  %v8293_v42 = vld [vmem:[#allocation2 + $0xb0] sm:$0xff] }
  0x9f   : > { %v1561_v25 = vsel %vm8051_vm2, %v1556_v1, %v1560_v11  ;;  %1798 = vst [vmem:[#allocation3 + $0x298] sm:$0xff] %v1751_v26  ;;  %v1754_v1 = vrot.slane %v8221_v4, 5  ;;  %v1582_v36 = vshll.u32 %v1432_v14, 16  ;;  %v1683_v41 = vld [vmem:[#allocation2 + $0x88] sm:$0x11]  ;;  %v6150_v4 = vor.u32 %v7138_v16, %v6149_v9  ;;  %5051 = vmatpush.bf16.msra.mxu0 %v7283_v44 }
  0xa0   : > { %v1748_v23 = vsel %vm8077_vm6, %v5895_v38, %v1747_v5  ;;  %1659 = vst [vmem:[#allocation3 + $0x290] sm:$0xff] %v1561_v25  ;;  %v1590_v5 = vshll.u32 %v1433_v2, 16  ;;  %v5896_v38 = vrot.slane %v1681_v10, 9  ;;  %v1757_v18 = vrot.slane %v1683_v41, 5  ;;  %v983_v21 = vld [vmem:[#allocation2 + $0xa0] sm:$0x1] }
  0xa1   : > { %1797 = vst [vmem:[#allocation3 + $0x250] sm:$0xff] %v1748_v23  ;;  %v1584_v11 = vrot.slane %v1582_v36, 5  ;;  %v1756_v13 = vrot.slane %v1754_v1, 4  ;;  %v1296_v22 = vld [vmem:[#allocation2 + $0xa4] sm:$0x1]  ;;  %v984_v29 = vsel %vm7631_vm4, %v882_v53, %v983_v21  ;;  %v1436_v9 = vld [vmem:[#allocation2 + $0xa8] sm:$0xff]  ;;  %5003 = vmatpush.bf16.msra.mxu3 %v7274_v33 }
  0xa2   : > { %v1755_v23 = vsel %vm8077_vm6, %v5896_v38, %v1754_v1  ;;  %v1592_v49 = vrot.slane %v1590_v5, 5  ;;  %v1297_v24 = vsel %vm7631_vm4, %v1198_v12, %v1296_v22  ;;  %985 = vst [vmem:[#allocation2 + $0xa0] sm:$0x1] %v984_v29  ;;  %v1611_v62 = vshrl.u32 %v1436_v9, 16  ;;  %v1684_v10 = vld [vmem:[#allocation2 + $0x90] sm:$0xee] }
  0xa3   : > { %v1585_v25 = vsel %vm8051_vm2, %v1580_v59, %v1584_v11  ;;  %v1758_v26 = vsel %vm8077_vm6, %v1756_v13, %v1757_v18  ;;  %1799 = vst [vmem:[#allocation3 + $0x2e0] sm:$0xff] %v1755_v23  ;;  %v1761_v5 = vrot.slane %v8254_v60, 5  ;;  %v1215_v38 = vrot.slane %v7987_v20, 4  ;;  %v990_v21 = vld [vmem:[#allocation2 + $0xb8] sm:$0x1]  ;;  %v7282_v44 = vld [vmem:[%s9072_s6 + $0x208] sm:$0xff] }
  0xa4   : > { %4770 = vmatmul.bf16.gmra.mxu2 %v6070_v27  ;;  %4819 = vmatmul.bf16.gmra.mxu3 %v6074_v55  ;;  %v6142_v27 = vor.u32 %v7137_v51, %v6141_v45  ;;  %v6146_v55 = vor.u32 %v7128_v48, %v6143_v52  ;;  %1661 = vst [vmem:[#allocation3 + $0x320] sm:$0xff] %v1585_v25  ;;  %v7291_v45 = vld [vmem:[%s9072_s6 + $0x250] sm:$0xff]  ;;  %v6213_v48 = vld [vmem:[#allocation3 + $0x248] sm:$0xf]  ;;  %v1303_v23 = vld [vmem:[#allocation2 + $0xbc] sm:$0x1] }
  0xa5   : > { %v1593_v31 = vor.u32 %v1592_v49, %v1589_v0  ;;  %1800 = vst [vmem:[#allocation3 + $0x328] sm:$0xff] %v1758_v26  ;;  %5100 = vmatpush.bf16.msra.mxu1 %v7291_v45  ;;  %v1763_v13 = vrot.slane %v1761_v5, 4  ;;  %v1620_v49 = vshll.u32 %v8293_v42, 16  ;;  %v1624_v26 = vshrl.u32 %v8293_v42, 16  ;;  %v7290_v45 = vld [vmem:[%s9072_s6 + $0x248] sm:$0xff]  ;;  %5052 = vmatpush.bf16.msra.mxu0 %v7282_v44 }
  0xa6   : > { %1298 = vst [vmem:[#allocation2 + $0xa4] sm:$0x1] %v1297_v24  ;;  %v7156_v2 = vld [vmem:[#allocation3 + $0x294] sm:$0xf0] }
  0xa7   : > { %v1594_v34 = vrot.slane %v1593_v31, 4  ;;  %v7155_v52 = vld [vmem:[#allocation3 + $0x28c] sm:$0xf0]  ;;  %v6215_v54 = vld [vmem:[#allocation3 + $0x290] sm:$0xf0]  ;;  %v1304_v31 = vsel %vm7631_vm4, %v1215_v38, %v1303_v23 }
  0xa8   : > { %v6214_v12 = vor.u32 %v7155_v52, %v6213_v48  ;;  %v7147_v16 = vld [vmem:[#allocation3 + $0x254] sm:$0xf]  ;;  %1305 = vst [vmem:[#allocation2 + $0xbc] sm:$0x1] %v1304_v31  ;;  %v1626_v48 = vrot.slane %v1624_v26, 4 }
  0xa9   : > { %5101 = vmatpush.bf16.msra.mxu1 %v7290_v45  ;;  %v7265_v38 = vld [vmem:[%s9072_s6 + $0x180] sm:$0xff] }
  0xaa   : > { %v7289_v26 = vld [vmem:[%s9072_s6 + $0x240] sm:$0xff] }
  0xad   : > { %v1435_v14 = vld [vmem:[#allocation2 + $0xa0] sm:$0x11]  ;;  %5102 = vmatpush.bf16.msra.mxu1 %v7289_v26 }
  0xae   : > { %4868 = vmatmul.bf16.gmra.mxu0 %v6078_v47  ;;  %4917 = vmatmul.bf16.gmra.mxu1 %v6082_v46  ;;  %v1596_v47 = vshll.u32 %v8254_v60, 16  ;;  %v6154_v46 = vor.u32 %v7129_v58, %v6151_v63  ;;  %v6223_v58 = vld [vmem:[#allocation3 + $0x298] sm:$0xf0]  ;;  %v899_v63 = vrot.slane %v7974_v61, 4  ;;  %v1606_v36 = vshll.u32 %v1435_v14, 16 }
  0xaf   : > { %v1686_v41 = vld [vmem:[#allocation2 + $0xa0] sm:$0x11]  ;;  %v7266_v61 = vld [vmem:[%s9072_s6 + $0x188] sm:$0xff]  ;;  %v1613_v60 = vrot.slane %v1611_v62, 4  ;;  %v6226_v20 = vor.u32 %v7147_v16, %v6223_v58  ;;  %v7174_v14 = vld [vmem:[#allocation3 + $0x324] sm:$0xf0] }
  0xb0   : > { %v1598_v35 = vrot.slane %v1596_v47, 5  ;;  %v5897_v47 = vrot.slane %v1684_v10, 9  ;;  %v1608_v11 = vrot.slane %v1606_v36, 5  ;;  %v1764_v18 = vrot.slane %v1686_v41, 5  ;;  %4954 = vmatpush.bf16.msra.mxu2 %v7266_v61  ;;  %v7165_v10 = vld [vmem:[#allocation3 + $0x2e4] sm:$0xf] }
  0xb1   : > { %v991_v25 = vsel %vm7631_vm4, %v899_v63, %v990_v21  ;;  %v6293_v63 = vld [vmem:[#allocation3 + $0x2e0] sm:$0xf]  ;;  %v6295_v41 = vld [vmem:[#allocation3 + $0x328] sm:$0xf0] }
  0xb2   : > { %v1599_v51 = vsel %vm8051_vm2, %v1594_v34, %v1598_v35  ;;  %v1603_v53 = vor.u32 %v1602_v3, %v1598_v35  ;;  %v1765_v57 = vsel %vm8077_vm6, %v1763_v13, %v1764_v18  ;;  %992 = vst [vmem:[#allocation2 + $0xb8] sm:$0x1] %v991_v25  ;;  %v1622_v3 = vrot.slane %v1620_v49, 5  ;;  %v1806_v49 = vld [vmem:[#allocation2 + $0x20] sm:$0xff] }
  0xb3   : > { %1662 = vst [vmem:[#allocation3 + $0x368] sm:$0xff] %v1599_v51  ;;  %v7164_v51 = vld [vmem:[#allocation3 + $0x2dc] sm:$0xf]  ;;  %v6298_v13 = vor.u32 %v7165_v10, %v6295_v41  ;;  %v7281_v25 = vld [vmem:[%s9072_s6 + $0x200] sm:$0xff]  ;;  %v1871_v45 = vshll.u32 %v1806_v49, 16 }
  0xb4   : > { %4775 = vmatmul.bf16.gmra.mxu2 %v6142_v27  ;;  %4824 = vmatmul.bf16.gmra.mxu3 %v6146_v55  ;;  %v6218_v27 = vor.u32 %v7146_v50, %v6215_v54  ;;  %v6221_v55 = vld [vmem:[#allocation3 + $0x250] sm:$0xf]  ;;  %v1604_v1 = vrot.slane %v1603_v53, 4  ;;  %1802 = vst [vmem:[#allocation3 + $0x3b8] sm:$0xff] %v1765_v57  ;;  %v6285_v50 = vld [vmem:[#allocation3 + $0x2d8] sm:$0xf] }
  0xb5   : > { %v7173_v54 = vld [vmem:[#allocation3 + $0x31c] sm:$0xf0]  ;;  %v6287_v53 = vld [vmem:[#allocation3 + $0x320] sm:$0xf0]  ;;  %4955 = vmatpush.bf16.msra.mxu2 %v7265_v38  ;;  %1822 = vst [vmem:[#allocation3 + $0x60] sm:$0xff] %v1806_v49  ;;  %5053 = vmatpush.bf16.msra.mxu0 %v7281_v25 }
  0xb6   : > { %v4683_v7 = vpop.f32.mrf.mxu2  ;;  %v4732_v19 = vpop.f32.mrf.mxu3  ;;  %v1609_v40 = vsel %vm8051_vm2, %v1604_v1, %v1608_v11  ;;  %v6294_v11 = vor.u32 %v7174_v14, %v6293_v63 }
  0xb7   : > { %v8257_v28 = vadd.f32 %v4732_v19, %v4683_v7  ;;  %v1614_v7 = vshll.u32 %v1436_v9, 16  ;;  %1663 = vst [vmem:[#allocation3 + $0x3b0] sm:$0xff] %v1609_v40 }
  0xb9   : > { %v1616_v22 = vrot.slane %v1614_v7, 5  ;;  %v1438_v1 = vld [vmem:[#allocation2 + $0xb8] sm:$0x11] }
  0xba   : > { %v1689_v36 = vld [vmem:[#allocation2 + $0xb8] sm:$0x11] }
  0xbb   : > { %v1617_v32 = vor.u32 %v1616_v22, %v1613_v60  ;;  %v7273_v60 = vld [vmem:[%s9072_s6 + $0x1c0] sm:$0xff]  ;;  %v1805_v22 = vld [vmem:[#allocation2 + $0x18] sm:$0xff]  ;;  %v6367_v10 = vld [vmem:[#allocation3 + $0x3b8] sm:$0xf0] }
  0xbc   : > { %5004 = vmatpush.bf16.msra.mxu3 %v7273_v60  ;;  %1821 = vst [vmem:[#allocation3 + $0x18] sm:$0xff] %v1805_v22  ;;  %v1865_v44 = vshll.u32 %v1805_v22, 16 }
  0xbd   : > { %v1618_v35 = vrot.slane %v1617_v32, 4  ;;  %v7182_v32 = vld [vmem:[#allocation3 + $0x36c] sm:$0xf] }
  0xbe   : > { %4873 = vmatmul.bf16.gmra.mxu0 %v6150_v4  ;;  %4922 = vmatmul.bf16.gmra.mxu1 %v6154_v46  ;;  %v8279_v37 = vpop.f32.mrf.mxu2  ;;  %v8281_v43 = vpop.f32.mrf.mxu3  ;;  %v6222_v4 = vor.u32 %v7156_v2, %v6221_v55  ;;  %v1762_v46 = vsel %vm8077_vm6, %v5897_v47, %v1761_v5  ;;  %v6290_v55 = vor.u32 %v7164_v51, %v6287_v53  ;;  %v1768_v5 = vrot.slane %v8293_v42, 5  ;;  %v7191_v31 = vld [vmem:[#allocation3 + $0x3ac] sm:$0xf0] }
  0xbf   : > { %1801 = vst [vmem:[#allocation3 + $0x370] sm:$0xff] %v1762_v46  ;;  %v1623_v52 = vsel %vm8051_vm2, %v1618_v35, %v1622_v3  ;;  %v1771_v42 = vrot.slane %v1689_v36, 5  ;;  %v6359_v35 = vld [vmem:[#allocation3 + $0x3b0] sm:$0xf0]  ;;  %v7192_v36 = vld [vmem:[#allocation3 + $0x3b4] sm:$0xf0] }
  0xc0   : > { %1664 = vst [vmem:[#allocation3 + $0x3f8] sm:$0xff] %v1623_v52  ;;  %v6362_v51 = vor.u32 %v7182_v32, %v6359_v35 }
  0xc4   : > { %4780 = vmatmul.bf16.gmra.mxu2 %v6214_v12  ;;  %4829 = vmatmul.bf16.gmra.mxu3 %v6218_v27  ;;  %v1627_v12 = vor.u32 %v1626_v48, %v1622_v3  ;;  %v6286_v27 = vor.u32 %v7173_v54, %v6285_v50  ;;  %v1862_v3 = vshrl.u32 %v1805_v22, 16  ;;  %v1875_v48 = vshrl.u32 %v1806_v49, 16  ;;  %v7312_v22 = vld [vmem:[%s9072_s6 + $0x2f8] sm:$0xff] }
  0xc5   : > { %5193 = vmatpush.bf16.msrb.mxu3 %v7312_v22  ;;  %v1809_v22 = vld [vmem:[#allocation2 + $0x48] sm:$0xff] }
  0xc6   : > { %v4688_v19 = vpop.f32.mrf.mxu2  ;;  %v4737_v59 = vpop.f32.mrf.mxu3  ;;  %v1628_v7 = vrot.slane %v1627_v12, 4  ;;  %v1864_v53 = vrot.slane %v1862_v3, 4  ;;  %v1867_v12 = vrot.slane %v1865_v44, 5  ;;  %v1877_v63 = vrot.slane %v1875_v48, 4  ;;  %1825 = vst [vmem:[#allocation3 + $0x138] sm:$0xff] %v1809_v22 }
  0xc7   : > { %v8296_v0 = vadd.f32 %v4737_v59, %v4688_v19  ;;  %v1630_v19 = vshll.u32 %v1438_v1, 16  ;;  %v1687_v59 = vld [vmem:[#allocation2 + $0xa8] sm:$0xee] }
  0xc8   : > { %v5898_v61 = vrot.slane %v1687_v59, 9 }
  0xc9   : > { %v1632_v47 = vrot.slane %v1630_v19, 5 }
  0xca   : > { %v1769_v33 = vsel %vm8077_vm6, %v5898_v61, %v1768_v5 }
  0xcb   : > { %v4663_v29 = vpop.f32.mrf.mxu0  ;;  %v4712_v24 = vpop.f32.mrf.mxu1  ;;  %v1633_v18 = vsel %vm8051_vm2, %v1628_v7, %v1632_v47  ;;  %1803 = vst [vmem:[#allocation3 + $0x400] sm:$0xff] %v1769_v33  ;;  %v7183_v7 = vld [vmem:[#allocation3 + $0x374] sm:$0xf] }
  0xcc   : > { %v8316_v34 = vadd.f32 %v4712_v24, %v4663_v29  ;;  %1665 = vst [vmem:[#allocation3 + $0x440] sm:$0xff] %v1633_v18  ;;  %v6357_v29 = vld [vmem:[#allocation3 + $0x368] sm:$0xf] }
  0xcd   : > { %v6358_v50 = vor.u32 %v7191_v31, %v6357_v29  ;;  %v7200_v29 = vld [vmem:[#allocation3 + $0x3fc] sm:$0xf] }
  0xce   : > { %4878 = vmatmul.bf16.gmra.mxu0 %v6222_v4  ;;  %4927 = vmatmul.bf16.gmra.mxu1 %v6226_v20  ;;  %v8328_v58 = vpop.f32.mrf.mxu2  ;;  %v8330_v62 = vpop.f32.mrf.mxu3  ;;  %v1770_v4 = vrot.slane %v1768_v5, 4  ;;  %v6365_v5 = vld [vmem:[#allocation3 + $0x370] sm:$0xf] }
  0xd0   : > { %v1772_v21 = vsel %vm8077_vm6, %v1770_v4, %v1771_v42  ;;  %v6366_v4 = vor.u32 %v7192_v36, %v6365_v5  ;;  %v6370_v42 = vor.u32 %v7183_v7, %v6367_v10 }
  0xd1   : > { %1804 = vst [vmem:[#allocation3 + $0x448] sm:$0xff] %v1772_v21  ;;  %v1807_v21 = vld [vmem:[#allocation2 + $0x30] sm:$0xff] }
  0xd2   : > { %1823 = vst [vmem:[#allocation3 + $0xa8] sm:$0xff] %v1807_v21  ;;  %v1886_v32 = vshrl.u32 %v1807_v21, 16  ;;  %v1889_v35 = vshll.u32 %v1807_v21, 16  ;;  %v6437_v7 = vld [vmem:[#allocation3 + $0x400] sm:$0xf] }
  0xd3   : > { %v4665_v9 = vpop.f32.mrf.mxu0  ;;  %v4714_v2 = vpop.f32.mrf.mxu1  ;;  %v7209_v26 = vld [vmem:[#allocation3 + $0x43c] sm:$0xf0]  ;;  %v6431_v31 = vld [vmem:[#allocation3 + $0x440] sm:$0xf0] }
  0xd4   : > { %v8326_v16 = vadd.f32 %v4714_v2, %v4665_v9  ;;  %4785 = vmatmul.bf16.gmra.mxu2 %v6286_v27  ;;  %4834 = vmatmul.bf16.gmra.mxu3 %v6290_v55  ;;  %v1839_v55 = vld [vmem:[#allocation2 + $0x28] sm:$0x11]  ;;  %v1868_v9 = vor.u32 %v1867_v12, %v1864_v53  ;;  %v1873_v2 = vrot.slane %v1871_v45, 5  ;;  %v6434_v48 = vor.u32 %v7200_v29, %v6431_v31  ;;  %v1842_v12 = vld [vmem:[#allocation2 + $0x40] sm:$0x11] }
  0xd5   : > { %v1881_v19 = vshll.u32 %v1839_v55, 16  ;;  %v7320_v55 = vld [vmem:[%s9072_s6 + $0x338] sm:$0xff]  ;;  %v1905_v36 = vshll.u32 %v1842_v12, 16  ;;  %v7085_v29 = vld [vmem:[#allocation3 + $0x5c] sm:$0xf0] }
  0xd6   : > { %v1869_v41 = vrot.slane %v1868_v9, 4  ;;  %v1878_v38 = vor.u32 %v1877_v63, %v1873_v2  ;;  %v7328_v9 = vld [vmem:[%s9072_s6 + $0x378] sm:$0xff]  ;;  %5242 = vmatpush.bf16.msrb.mxu0 %v7320_v55  ;;  %v7076_v31 = vld [vmem:[#allocation3 + $0x1c] sm:$0xf] }
  0xd7   : > { %v1883_v61 = vrot.slane %v1881_v19, 5  ;;  %v7201_v19 = vld [vmem:[#allocation3 + $0x404] sm:$0xf]  ;;  %5291 = vmatpush.bf16.msrb.mxu1 %v7328_v9  ;;  %v1845_v9 = vld [vmem:[#allocation2 + $0x58] sm:$0x11] }
  0xd8   : > { %v1874_v47 = vsel %vm8051_vm2, %v1869_v41, %v1873_v2  ;;  %v1879_v60 = vrot.slane %v1878_v38, 4  ;;  %v7210_v41 = vld [vmem:[#allocation3 + $0x444] sm:$0xf0]  ;;  %v6439_v38 = vld [vmem:[#allocation3 + $0x448] sm:$0xf0] }
  0xd9   : > { %2069 = vst [vmem:[#allocation3 + $0x20] sm:$0xff] %v1874_v47 }
  0xdb   : > { %v4668_v20 = vpop.f32.mrf.mxu0  ;;  %v4717_v46 = vpop.f32.mrf.mxu1 }
  0xdc   : > { %v8345_v23 = vadd.f32 %v4717_v46, %v4668_v20  ;;  %v1808_v20 = vld [vmem:[#allocation2 + $0x38] sm:$0xff] }
  0xdd   : > { %v7304_v46 = vld [vmem:[%s9072_s6 + $0x2b8] sm:$0xff]  ;;  %1824 = vst [vmem:[#allocation3 + $0xf0] sm:$0xff] %v1808_v20  ;;  %v1895_v3 = vshll.u32 %v1808_v20, 16  ;;  %v1899_v44 = vshrl.u32 %v1808_v20, 16 }
  0xde   : > { %4883 = vmatmul.bf16.gmra.mxu0 %v6294_v11  ;;  %4932 = vmatmul.bf16.gmra.mxu1 %v6298_v13  ;;  %v4693_v40 = vpop.f32.mrf.mxu2  ;;  %v4742_v57 = vpop.f32.mrf.mxu3  ;;  %v1884_v13 = vsel %vm8051_vm2, %v1879_v60, %v1883_v61  ;;  %v1907_v60 = vrot.slane %v1905_v36, 5  ;;  %v1929_v36 = vshll.u32 %v1845_v9, 16 }
  0xdf   : > { %v8353_v24 = vadd.f32 %v4742_v57, %v4693_v40  ;;  %2070 = vst [vmem:[#allocation3 + $0x68] sm:$0xff] %v1884_v13  ;;  %v6429_v57 = vld [vmem:[#allocation3 + $0x3f8] sm:$0xf]  ;;  %5144 = vmatpush.bf16.msrb.mxu2 %v7304_v46  ;;  %v1897_v63 = vrot.slane %v1895_v3, 5  ;;  %v1913_v3 = vshll.u32 %v1809_v22, 16 }
  0xe0   : > { %v6430_v45 = vor.u32 %v7209_v26, %v6429_v57  ;;  %v7311_v57 = vld [vmem:[%s9072_s6 + $0x2f0] sm:$0xff]  ;;  %v5941_v26 = vld [vmem:[#allocation3 + $0x18] sm:$0xf] }
  0xe1   : > { %5194 = vmatpush.bf16.msrb.mxu3 %v7311_v57  ;;  %v1915_v12 = vrot.slane %v1913_v3, 5  ;;  %v1811_v57 = vld [vmem:[#allocation2 + $0x60] sm:$0xff] }
  0xe2   : > { %1827 = vst [vmem:[#allocation3 + $0x1c8] sm:$0xff] %v1811_v57 }
  0xe3   : > { %v4670_v52 = vpop.f32.mrf.mxu0  ;;  %v4719_v54 = vpop.f32.mrf.mxu1 }
  0xe4   : > { %v8355_v27 = vadd.f32 %v4719_v54, %v4670_v52  ;;  %4790 = vmatmul.bf16.gmra.mxu2 %v6358_v50  ;;  %4839 = vmatmul.bf16.gmra.mxu3 %v6362_v51  ;;  %v1888_v52 = vrot.slane %v1886_v32, 4  ;;  %v1891_v54 = vrot.slane %v1889_v35, 5  ;;  %v5943_v32 = vld [vmem:[#allocation3 + $0x60] sm:$0xf0]  ;;  %v1910_v35 = vshrl.u32 %v1809_v22, 16 }
  0xe5   : > { %v7103_v3 = vld [vmem:[#allocation3 + $0xec] sm:$0xf0] }
  0xe6   : > { %v4695_v14 = vpop.f32.mrf.mxu2  ;;  %v4744_v1 = vpop.f32.mrf.mxu3  ;;  %v1892_v2 = vor.u32 %v1891_v54, %v1888_v52  ;;  %v1912_v54 = vrot.slane %v1910_v35, 4  ;;  %v6013_v35 = vld [vmem:[#allocation3 + $0xa8] sm:$0xf] }
  0xe7   : > { %v8357_v59 = vadd.f32 %v4744_v1, %v4695_v14  ;;  %v1901_v14 = vrot.slane %v1899_v44, 4 }
  0xe8   : > { %v1893_v61 = vrot.slane %v1892_v2, 4  ;;  %v7319_v2 = vld [vmem:[%s9072_s6 + $0x330] sm:$0xff] }
  0xe9   : > { %v1902_v47 = vor.u32 %v1901_v14, %v1897_v63  ;;  %v1916_v14 = vor.u32 %v1915_v12, %v1912_v54  ;;  %5243 = vmatpush.bf16.msrb.mxu0 %v7319_v2  ;;  %v6014_v12 = vor.u32 %v7103_v3, %v6013_v35 }
  0xeb   : > { %v4673_v11 = vpop.f32.mrf.mxu0  ;;  %v4722_v33 = vpop.f32.mrf.mxu1 }
  0xec   : > { %v8363_v18 = vadd.f32 %v4722_v33, %v4673_v11  ;;  %v6438_v11 = vor.u32 %v7210_v41, %v6437_v7  ;;  %v6442_v33 = vor.u32 %v7201_v19, %v6439_v38  ;;  %v5949_v7 = vld [vmem:[#allocation3 + $0x20] sm:$0xf]  ;;  %v7077_v19 = vld [vmem:[#allocation3 + $0x24] sm:$0xf]  ;;  %v7086_v41 = vld [vmem:[#allocation3 + $0x64] sm:$0xf0] }
  0xed   : > { %v5951_v38 = vld [vmem:[#allocation3 + $0x68] sm:$0xf0] }
  0xee   : > { %4888 = vmatmul.bf16.gmra.mxu0 %v6366_v4  ;;  %4937 = vmatmul.bf16.gmra.mxu1 %v6370_v42  ;;  %v4698_v49 = vpop.f32.mrf.mxu2  ;;  %v4747_v40 = vpop.f32.mrf.mxu3  ;;  %v1898_v4 = vsel %vm8051_vm2, %v1893_v61, %v1897_v63  ;;  %v1903_v42 = vrot.slane %v1902_v47, 4  ;;  %v7327_v63 = vld [vmem:[%s9072_s6 + $0x370] sm:$0xff]  ;;  %v1917_v61 = vrot.slane %v1916_v14, 4 }
  0xef   : > { %v8371_v25 = vadd.f32 %v4747_v40, %v4698_v49  ;;  %2071 = vst [vmem:[#allocation3 + $0xb0] sm:$0xff] %v1898_v4  ;;  %v1810_v49 = vld [vmem:[#allocation2 + $0x50] sm:$0xff]  ;;  %5292 = vmatpush.bf16.msrb.mxu1 %v7327_v63 }
  0xf0   : > { %v1908_v20 = vsel %vm8051_vm2, %v1903_v42, %v1907_v60  ;;  %v7303_v40 = vld [vmem:[%s9072_s6 + $0x2b0] sm:$0xff]  ;;  %1826 = vst [vmem:[#allocation3 + $0x180] sm:$0xff] %v1810_v49  ;;  %v1919_v44 = vshll.u32 %v1810_v49, 16  ;;  %v1931_v60 = vrot.slane %v1929_v36, 5 }
  0xf1   : > { %2072 = vst [vmem:[#allocation3 + $0xf8] sm:$0xff] %v1908_v20  ;;  %5145 = vmatpush.bf16.msrb.mxu2 %v7303_v40  ;;  %v1848_v36 = vld [vmem:[#allocation2 + $0x70] sm:$0x11] }
  0xf3   : > { %v4675_v50 = vpop.f32.mrf.mxu0  ;;  %v4724_v51 = vpop.f32.mrf.mxu1 }
  0xf4   : > { %v8373_v53 = vadd.f32 %v4724_v51, %v4675_v50  ;;  %4795 = vmatmul.bf16.gmra.mxu2 %v6430_v45  ;;  %4844 = vmatmul.bf16.gmra.mxu3 %v6434_v48  ;;  %v1923_v45 = vshrl.u32 %v1810_v49, 16  ;;  %v5942_v48 = vor.u32 %v7085_v29, %v5941_v26  ;;  %v5946_v50 = vor.u32 %v7076_v31, %v5943_v32  ;;  %v1812_v26 = vld [vmem:[#allocation2 + $0x68] sm:$0xff] }
  0xf5   : > { %v7302_v31 = vld [vmem:[%s9072_s6 + $0x2a8] sm:$0xff]  ;;  %1828 = vst [vmem:[#allocation3 + $0x210] sm:$0xff] %v1812_v26  ;;  %v1943_v9 = vshll.u32 %v1812_v26, 16  ;;  %v1947_v2 = vshrl.u32 %v1812_v26, 16 }
  0xf6   : > { %v4700_v1 = vpop.f32.mrf.mxu2  ;;  %v4749_v5 = vpop.f32.mrf.mxu3  ;;  %v7310_v32 = vld [vmem:[%s9072_s6 + $0x2e8] sm:$0xff]  ;;  %5146 = vmatpush.bf16.msrb.mxu2 %v7302_v31 }
  0xf7   : > { %v8381_v10 = vadd.f32 %v4749_v5, %v4700_v1  ;;  %v1921_v1 = vrot.slane %v1919_v44, 5  ;;  %v1925_v5 = vrot.slane %v1923_v45, 4  ;;  %5195 = vmatpush.bf16.msrb.mxu3 %v7310_v32  ;;  %v7094_v44 = vld [vmem:[#allocation3 + $0xac] sm:$0xf]  ;;  %v6015_v45 = vld [vmem:[#allocation3 + $0xf0] sm:$0xf0] }
  0xf8   : > { %v6018_v14 = vor.u32 %v7094_v44, %v6015_v45 }
  0xf9   : > { %v1926_v47 = vor.u32 %v1925_v5, %v1921_v1  ;;  %v1922_v4 = vsel %vm8051_vm2, %v1917_v61, %v1921_v1  ;;  %v7326_v61 = vld [vmem:[%s9072_s6 + $0x368] sm:$0xff] }
  0xfa   : > { %2073 = vst [vmem:[#allocation3 + $0x140] sm:$0xff] %v1922_v4  ;;  %v1949_v4 = vrot.slane %v1947_v2, 4  ;;  %5293 = vmatpush.bf16.msrb.mxu1 %v7326_v61  ;;  %v7121_v2 = vld [vmem:[#allocation3 + $0x17c] sm:$0xf0] }
  0xfb   : > { %v4678_v13 = vpop.f32.mrf.mxu0  ;;  %v4727_v21 = vpop.f32.mrf.mxu1  ;;  %v1927_v42 = vrot.slane %v1926_v47, 4 }
  0xfc   : > { %v8387_v46 = vadd.f32 %v4727_v21, %v4678_v13  ;;  %v5950_v13 = vor.u32 %v7086_v41, %v5949_v7  ;;  %v5954_v21 = vor.u32 %v7077_v19, %v5951_v38  ;;  %v7318_v38 = vld [vmem:[%s9072_s6 + $0x328] sm:$0xff] }
  0xfd   : > { %v1932_v40 = vsel %vm8051_vm2, %v1927_v42, %v1931_v60  ;;  %v1945_v60 = vrot.slane %v1943_v9, 5  ;;  %v6021_v42 = vld [vmem:[#allocation3 + $0xb0] sm:$0xf]  ;;  %5244 = vmatpush.bf16.msrb.mxu0 %v7318_v38  ;;  %v6085_v9 = vld [vmem:[#allocation3 + $0x138] sm:$0xf] }
  0xfe   : > { %4893 = vmatmul.bf16.gmra.mxu0 %v6438_v11  ;;  %4942 = vmatmul.bf16.gmra.mxu1 %v6442_v33  ;;  %2074 = vst [vmem:[#allocation3 + $0x188] sm:$0xff] %v1932_v40 }
 0x103   : > { %v4680_v51 = vpop.f32.mrf.mxu0  ;;  %v4729_v52 = vpop.f32.mrf.mxu1 }
 0x104   : > { %v8395_v55 = vadd.f32 %v4729_v52, %v4680_v51  ;;  %4956 = vmatmul.bf16.vlgmr.msra.gmra.mxu2 %v5942_v48  ;;  %5005 = vmatmul.bf16.vlgmr.msra.gmra.mxu3 %v5946_v50  ;;  %v1934_v50 = vshrl.u32 %v1811_v57, 16  ;;  %v1937_v51 = vshll.u32 %v1811_v57, 16 }
 0x106   : > { %v1936_v7 = vrot.slane %v1934_v50, 4  ;;  %v1939_v19 = vrot.slane %v1937_v51, 5  ;;  %v1813_v50 = vld [vmem:[#allocation2 + $0x78] sm:$0xff]  ;;  %v1814_v51 = vld [vmem:[#allocation2 + $0x80] sm:$0xff] }
 0x107   : > { %v4761_v11 = vpop.f32.mrf.mxu2  ;;  %v4810_v33 = vpop.f32.mrf.mxu3  ;;  %1829 = vst [vmem:[#allocation3 + $0x258] sm:$0xff] %v1813_v50  ;;  %v1967_v38 = vshll.u32 %v1814_v51, 16  ;;  %v1971_v61 = vshrl.u32 %v1814_v51, 16 }
 0x108   : > { %v4762_v20 = vadd.f32 %v4761_v11, %v8316_v34  ;;  %v1940_v47 = vor.u32 %v1939_v19, %v1936_v7  ;;  %v1953_v11 = vshll.u32 %v1848_v36, 16  ;;  %1830 = vst [vmem:[#allocation3 + $0x2a0] sm:$0xff] %v1814_v51  ;;  %v1961_v7 = vshll.u32 %v1813_v50, 16 }
 0x10a   : > { %v4811_v29 = vadd.f32 %v4810_v33, %v4762_v20  ;;  %v1941_v20 = vrot.slane %v1940_v47, 4 }
 0x10b   : > { %v4859_v22 = vpop.f32.mrf.mxu0  ;;  %v4908_v49 = vpop.f32.mrf.mxu1 }
 0x10c   : > { %v4860_v34 = vadd.f32 %v4859_v22, %v4811_v29  ;;  %v1950_v22 = vor.u32 %v1949_v4, %v1945_v60  ;;  %v1946_v57 = vsel %vm8051_vm2, %v1941_v20, %v1945_v60  ;;  %v7325_v20 = vld [vmem:[%s9072_s6 + $0x360] sm:$0xff] }
 0x10d   : > { %2075 = vst [vmem:[#allocation3 + $0x1d0] sm:$0xff] %v1946_v57  ;;  %v1973_v57 = vrot.slane %v1971_v61, 4  ;;  %5294 = vmatpush.bf16.msrb.mxu1 %v7325_v20  ;;  %v7139_v61 = vld [vmem:[#allocation3 + $0x20c] sm:$0xf0] }
 0x10e   : > { %5054 = vmatmul.bf16.vlgmr.msra.gmra.mxu0 %v5950_v13  ;;  %5103 = vmatmul.bf16.vlgmr.msra.gmra.mxu1 %v5954_v21  ;;  %v8414_v48 = vadd.f32 %v4908_v49, %v4860_v34  ;;  %v7104_v13 = vld [vmem:[#allocation3 + $0xf4] sm:$0xf0]  ;;  %v6023_v21 = vld [vmem:[#allocation3 + $0xf8] sm:$0xf0]  ;;  %v1955_v49 = vrot.slane %v1953_v11, 5  ;;  %v1951_v26 = vrot.slane %v1950_v22, 4 }
 0x10f   : > { %v4763_v52 = vpop.f32.mrf.mxu2  ;;  %v4812_v54 = vpop.f32.mrf.mxu3  ;;  %v6022_v32 = vor.u32 %v7104_v13, %v6021_v42  ;;  %v1963_v11 = vrot.slane %v1961_v7, 5  ;;  %v1816_v7 = vld [vmem:[#allocation2 + $0x98] sm:$0xff] }
 0x110   : > { %v4764_v63 = vadd.f32 %v4763_v52, %v8326_v16  ;;  %v7095_v16 = vld [vmem:[#allocation3 + $0xb4] sm:$0xf]  ;;  %v1956_v45 = vsel %vm8051_vm2, %v1951_v26, %v1955_v49  ;;  %v1969_v49 = vrot.slane %v1967_v38, 5  ;;  %v6093_v26 = vld [vmem:[#allocation3 + $0x140] sm:$0xf]  ;;  %1832 = vst [vmem:[#allocation3 + $0x330] sm:$0xff] %v1816_v7 }
 0x111   : > { %v6026_v34 = vor.u32 %v7095_v16, %v6023_v21  ;;  %2076 = vst [vmem:[#allocation3 + $0x218] sm:$0xff] %v1956_v45  ;;  %v7317_v21 = vld [vmem:[%s9072_s6 + $0x320] sm:$0xff]  ;;  %v6157_v38 = vld [vmem:[#allocation3 + $0x1c8] sm:$0xf]  ;;  %v1995_v20 = vshrl.u32 %v1816_v7, 16 }
 0x112   : > { %v4813_v41 = vadd.f32 %v4812_v54, %v4764_v63  ;;  %v7301_v54 = vld [vmem:[%s9072_s6 + $0x2a0] sm:$0xff]  ;;  %v7112_v63 = vld [vmem:[#allocation3 + $0x13c] sm:$0xf]  ;;  %5245 = vmatpush.bf16.msrb.mxu0 %v7317_v21  ;;  %v1991_v21 = vshll.u32 %v1816_v7, 16 }
 0x113   : > { %v4861_v1 = vpop.f32.mrf.mxu0  ;;  %v4910_v5 = vpop.f32.mrf.mxu1  ;;  %5147 = vmatpush.bf16.msrb.mxu2 %v7301_v54 }
 0x114   : > { %4961 = vmatmul.bf16.gmra.mxu2 %v6014_v12  ;;  %5010 = vmatmul.bf16.gmra.mxu3 %v6018_v14  ;;  %v4862_v33 = vadd.f32 %v4861_v1, %v4813_v41  ;;  %v7309_v12 = vld [vmem:[%s9072_s6 + $0x2e0] sm:$0xff]  ;;  %v6087_v14 = vld [vmem:[#allocation3 + $0x180] sm:$0xf0]  ;;  %v6086_v41 = vor.u32 %v7121_v2, %v6085_v9 }
 0x115   : > { %5196 = vmatpush.bf16.msrb.mxu3 %v7309_v12  ;;  %v6090_v60 = vor.u32 %v7112_v63, %v6087_v14 }
 0x116   : > { %v8423_v40 = vadd.f32 %v4910_v5, %v4862_v33  ;;  %v1958_v5 = vshrl.u32 %v1813_v50, 16  ;;  %v1851_v33 = vld [vmem:[#allocation2 + $0x88] sm:$0x11] }
 0x117   : > { %v4766_v29 = vpop.f32.mrf.mxu2  ;;  %v4815_v31 = vpop.f32.mrf.mxu3 }
 0x118   : > { %v4767_v35 = vadd.f32 %v4766_v29, %v8345_v23  ;;  %v1960_v16 = vrot.slane %v1958_v5, 4  ;;  %v1977_v29 = vshll.u32 %v1851_v33, 16  ;;  %v1815_v5 = vld [vmem:[#allocation2 + $0x90] sm:$0xff] }
 0x119   : > { %1831 = vst [vmem:[#allocation3 + $0x2e8] sm:$0xff] %v1815_v5 }
 0x11a   : > { %v4816_v52 = vadd.f32 %v4815_v31, %v4767_v35  ;;  %v1964_v22 = vor.u32 %v1963_v11, %v1960_v16  ;;  %v1985_v16 = vshll.u32 %v1815_v5, 16 }
 0x11b   : > { %v4864_v3 = vpop.f32.mrf.mxu0  ;;  %v4913_v44 = vpop.f32.mrf.mxu1 }
 0x11c   : > { %v4865_v23 = vadd.f32 %v4864_v3, %v4816_v52  ;;  %v1965_v35 = vrot.slane %v1964_v22, 4  ;;  %v1974_v3 = vor.u32 %v1973_v57, %v1969_v49 }
 0x11e   : > { %5059 = vmatmul.bf16.gmra.mxu0 %v6022_v32  ;;  %5108 = vmatmul.bf16.gmra.mxu1 %v6026_v34  ;;  %v8436_v1 = vadd.f32 %v4913_v44, %v4865_v23  ;;  %v7122_v32 = vld [vmem:[#allocation3 + $0x184] sm:$0xf0]  ;;  %v6095_v34 = vld [vmem:[#allocation3 + $0x188] sm:$0xf0]  ;;  %v1979_v44 = vrot.slane %v1977_v29, 5  ;;  %v1970_v50 = vsel %vm8051_vm2, %v1965_v35, %v1969_v49  ;;  %v1975_v51 = vrot.slane %v1974_v3, 4 }
 0x11f   : > { %v4768_v19 = vpop.f32.mrf.mxu2  ;;  %v4817_v36 = vpop.f32.mrf.mxu3  ;;  %v6094_v12 = vor.u32 %v7122_v32, %v6093_v26  ;;  %2077 = vst [vmem:[#allocation3 + $0x260] sm:$0xff] %v1970_v50  ;;  %v1987_v29 = vrot.slane %v1985_v16, 5  ;;  %v7324_v35 = vld [vmem:[%s9072_s6 + $0x358] sm:$0xff]  ;;  %v1997_v50 = vrot.slane %v1995_v20, 4  ;;  %v1817_v16 = vld [vmem:[#allocation2 + $0xa8] sm:$0xff] }
 0x120   : > { %v4769_v47 = vadd.f32 %v4768_v19, %v8355_v27  ;;  %v7113_v27 = vld [vmem:[#allocation3 + $0x144] sm:$0xf]  ;;  %v1980_v14 = vsel %vm8051_vm2, %v1975_v51, %v1979_v44  ;;  %v1993_v44 = vrot.slane %v1991_v21, 5  ;;  %v6165_v51 = vld [vmem:[#allocation3 + $0x1d0] sm:$0xf]  ;;  %5295 = vmatpush.bf16.msrb.mxu1 %v7324_v35  ;;  %1833 = vst [vmem:[#allocation3 + $0x378] sm:$0xff] %v1817_v16 }
 0x121   : > { %v6098_v23 = vor.u32 %v7113_v27, %v6095_v34  ;;  %2078 = vst [vmem:[#allocation3 + $0x2a8] sm:$0xff] %v1980_v14  ;;  %v7316_v34 = vld [vmem:[%s9072_s6 + $0x318] sm:$0xff]  ;;  %v7299_v21 = vld [vmem:[%s9072_s6 + $0x290] sm:$0xff] }
 0x122   : > { %v4818_v13 = vadd.f32 %v4817_v36, %v4769_v47  ;;  %v7300_v36 = vld [vmem:[%s9072_s6 + $0x298] sm:$0xff]  ;;  %5246 = vmatpush.bf16.msrb.mxu0 %v7316_v34 }
 0x123   : > { %v4866_v4 = vpop.f32.mrf.mxu0  ;;  %v4915_v42 = vpop.f32.mrf.mxu1  ;;  %5148 = vmatpush.bf16.msrb.mxu2 %v7300_v36  ;;  %v7130_v47 = vld [vmem:[#allocation3 + $0x1cc] sm:$0xf]  ;;  %v777_v20 = vld [vmem:[%s7659_s27 + $0x38] sm:$0xf] }
 0x124   : > { %4966 = vmatmul.bf16.gmra.mxu2 %v6086_v41  ;;  %5015 = vmatmul.bf16.gmra.mxu3 %v6090_v60  ;;  %v4867_v31 = vadd.f32 %v4866_v4, %v4818_v13  ;;  %v7308_v41 = vld [vmem:[%s9072_s6 + $0x2d8] sm:$0xff]  ;;  %v6159_v60 = vld [vmem:[#allocation3 + $0x210] sm:$0xf0]  ;;  %v6158_v13 = vor.u32 %v7139_v61, %v6157_v38  ;;  %v904_v34 = vshll.u32 %v777_v20, 16 }
 0x125   : > { %5197 = vmatpush.bf16.msrb.mxu3 %v7308_v41  ;;  %v6162_v49 = vor.u32 %v7130_v47, %v6159_v60  ;;  %v722_v38 = vld [vmem:[#allocation2 + $0xc0] sm:$0x11] }
 0x126   : > { %v8445_v45 = vadd.f32 %v4915_v42, %v4867_v31  ;;  %v1982_v42 = vshrl.u32 %v1815_v5, 16  ;;  %v1854_v31 = vld [vmem:[#allocation2 + $0xa0] sm:$0x11] }
 0x127   : > { %v4771_v52 = vpop.f32.mrf.mxu2  ;;  %v4820_v54 = vpop.f32.mrf.mxu3  ;;  %5149 = vmatpush.bf16.msrb.mxu2 %v7299_v21 }
 0x128   : > { %v4772_v9 = vadd.f32 %v4771_v52, %v8363_v18  ;;  %v1984_v27 = vrot.slane %v1982_v42, 4  ;;  %v2001_v52 = vshll.u32 %v1854_v31, 16  ;;  %v6231_v31 = vld [vmem:[#allocation3 + $0x2a0] sm:$0xf0] }
 0x12a   : > { %v4821_v19 = vadd.f32 %v4820_v54, %v4772_v9  ;;  %v1988_v3 = vor.u32 %v1987_v29, %v1984_v27  ;;  %v778_v27 = vld [vmem:[%s7659_s27 + $0x3c] sm:$0xf]  ;;  %v7148_v29 = vld [vmem:[#allocation3 + $0x25c] sm:$0xf]  ;;  %s684_s27 = sand.u32 1, %s683_s23  ;;  %s5863_s23 = sshll.u32 %s9114_s25, 1 }
 0x12b   : > { %v4869_v2 = vpop.f32.mrf.mxu0  ;;  %v4918_v63 = vpop.f32.mrf.mxu1  ;;  %s685_s21 = sadd.s32 32767, %s684_s27 }
 0x12c   : > { %v4870_v18 = vadd.f32 %v4869_v2, %v4821_v19  ;;  %v1989_v9 = vrot.slane %v1988_v3, 4  ;;  %v1998_v2 = vor.u32 %v1997_v50, %v1993_v44  ;;  %v2006_v3 = vshrl.u32 %v1817_v16, 16  ;;  %v1095_v50 = vld [vmem:[%s7665_s17 + $0x38] sm:$0xf]  ;;  %s686_s26 = sadd.s32 %s685_s21, %s8655_s22  ;;  %s601_s22 = sadd.s32 %s5863_s23, %s7624_s28 }
 0x12d   : > { %s687_s20 = sand.u32 4294901760, %s686_s26  ;;  %s8725_s28 = sshll.u32 %s601_s22, 2 }
 0x12e   : > { %5064 = vmatmul.bf16.gmra.mxu0 %v6094_v12  ;;  %5113 = vmatmul.bf16.gmra.mxu1 %v6098_v23  ;;  %v8458_v4 = vadd.f32 %v4918_v63, %v4870_v18  ;;  %v7140_v12 = vld [vmem:[#allocation3 + $0x214] sm:$0xf0]  ;;  %v6167_v23 = vld [vmem:[#allocation3 + $0x218] sm:$0xf0]  ;;  %v2003_v63 = vrot.slane %v2001_v52, 5  ;;  %v1994_v5 = vsel %vm8051_vm2, %v1989_v9, %v1993_v44  ;;  %v1999_v7 = vrot.slane %v1998_v2, 4  ;;  %s603_s26 = scalar_lea.vmem %s9068_s2, %s8725_s28  ;;  %s648_s18 = scalar_lea.vmem %s9071_s5, %s8725_s28 }
 0x12f   : > { %v4773_v11 = vpop.f32.mrf.mxu2  ;;  %v4822_v33 = vpop.f32.mrf.mxu3  ;;  %v6166_v41 = vor.u32 %v7140_v12, %v6165_v51  ;;  %2079 = vst [vmem:[#allocation3 + $0x2f0] sm:$0xff] %v1994_v5  ;;  %v2009_v44 = vshll.u32 %v1817_v16, 16  ;;  %v6234_v2 = vor.u32 %v7148_v29, %v6231_v31  ;;  %v6239_v29 = vld [vmem:[#allocation3 + $0x2a8] sm:$0xf0]  ;;  %s9116_s20 = smov (%p682_p13, %s687_s20), 2143289344 }
 0x130   : > { %v4774_v22 = vadd.f32 %v4773_v11, %v8373_v53  ;;  %v7131_v53 = vld [vmem:[#allocation3 + $0x1d4] sm:$0xf]  ;;  %v2004_v42 = vsel %vm8051_vm2, %v1999_v7, %v2003_v63  ;;  %v1818_v11 = vld [vmem:[#allocation2 + $0xb0] sm:$0xff]  ;;  %s690_s25 = sshrl.u32 %s9116_s20, 16 }
 0x131   : > { %v6170_v18 = vor.u32 %v7131_v53, %v6167_v23  ;;  %2080 = vst [vmem:[#allocation3 + $0x338] sm:$0xff] %v2004_v42  ;;  %v2019_v12 = vshrl.u32 %v1818_v11, 16  ;;  %v909_v23 = vshrl.u32 %v778_v27, 16  ;;  %v8490_v7 = vld [vmem:[#allocation3 + $0x260] sm:$0xf]  ;;  %s1042_s29 = sshll.u32 %s690_s25, 16 }
 0x132   : > { %v4823_v32 = vadd.f32 %v4822_v33, %v4774_v22  ;;  %v723_v33 = vsel %vm7644_vm9, 0, %v722_v38  ;;  %v6229_v22 = vld [vmem:[#allocation3 + $0x258] sm:$0xf]  ;;  %1834 = vst [vmem:[#allocation3 + $0x3c0] sm:$0xff] %v1818_v11  ;;  %v7315_v42 = vld [vmem:[%s9072_s6 + $0x310] sm:$0xff]  ;;  %s1043_s20 = sor.u32 %s1042_s29, %s690_s25  ;;  %s9000_s29 = scalar_lea.vmem %s9075_s9, %s7640_s19 }
 0x133   : > { %v4871_v57 = vpop.f32.mrf.mxu0  ;;  %v4920_v26 = vpop.f32.mrf.mxu1  ;;  %724 = vst [vmem:[#allocation2 + $0xc0] sm:$0x11] %v723_v33  ;;  %v2021_v33 = vrot.slane %v2019_v12, 4  ;;  %5247 = vmatpush.bf16.msrb.mxu0 %v7315_v42 }
 0x134   : > { %4971 = vmatmul.bf16.gmra.mxu2 %v6158_v13  ;;  %5020 = vmatmul.bf16.gmra.mxu3 %v6162_v49  ;;  %v4872_v54 = vadd.f32 %v4871_v57, %v4823_v32  ;;  %v901_v49 = vshrl.u32 %v777_v20, 16  ;;  %v8501_v20 = vrot.slane %v909_v23, 7 }
 0x136   : > { %v8467_v14 = vadd.f32 %v4920_v26, %v4872_v54  ;;  %v7157_v26 = vld [vmem:[#allocation3 + $0x29c] sm:$0xf0]  ;;  %v8484_v32 = vrot.slane %v901_v49, 7  ;;  %v2015_v54 = vshll.u32 %v1818_v11, 16  ;;  %v1220_v49 = vshll.u32 %v1095_v50, 16 }
 0x137   : > { %v4776_v19 = vpop.f32.mrf.mxu2  ;;  %v4825_v36 = vpop.f32.mrf.mxu3  ;;  %v6230_v52 = vor.u32 %v7157_v26, %v6229_v22 }
 0x138   : > { %v4777_v61 = vadd.f32 %v4776_v19, %v8387_v46  ;;  %v7307_v46 = vld [vmem:[%s9072_s6 + $0x2d0] sm:$0xff]  ;;  %v2008_v19 = vrot.slane %v2006_v3, 4  ;;  %v906_v38 = vor.u32 %v904_v34, %v8484_v32  ;;  %v2017_v11 = vrot.slane %v2015_v54, 5 }
 0x139   : > { %5198 = vmatpush.bf16.msrb.mxu3 %v7307_v46  ;;  %v907_v46 = vrot.slane %v8484_v32, 4 }
 0x13a   : > { %v4826_v13 = vadd.f32 %v4825_v36, %v4777_v61  ;;  %v2011_v36 = vrot.slane %v2009_v44, 5  ;;  %v912_v61 = vshll.u32 %v778_v27, 16  ;;  %v993_v22 = vld [vmem:[#allocation2 + $0xc0] sm:$0xf]  ;;  %v7149_v27 = vld [vmem:[#allocation3 + $0x264] sm:$0xf]  ;;  %v2022_v34 = vor.u32 %v2021_v33, %v2017_v11 }
 0x13b   : > { %v4874_v47 = vpop.f32.mrf.mxu0  ;;  %v4923_v60 = vpop.f32.mrf.mxu1  ;;  %v994_v32 = vsel %vm7708_vm15, %v906_v38, %v993_v22  ;;  %v1306_v23 = vld [vmem:[#allocation2 + $0xc4] sm:$0xf]  ;;  %v7175_v22 = vld [vmem:[#allocation3 + $0x32c] sm:$0xf0] }
 0x13c   : > { %v4875_v57 = vadd.f32 %v4874_v47, %v4826_v13  ;;  %v1217_v47 = vshrl.u32 %v1095_v50, 16  ;;  %v2012_v16 = vor.u32 %v2011_v36, %v2008_v19  ;;  %v1096_v13 = vld [vmem:[%s7665_s17 + $0x3c] sm:$0xf]  ;;  %v914_v44 = vor.u32 %v912_v61, %v8501_v20  ;;  %995 = vst [vmem:[#allocation2 + $0xc0] sm:$0xf] %v994_v32 }
 0x13d   : > { %v2023_v54 = vrot.slane %v2022_v34, 4  ;;  %v1225_v12 = vshrl.u32 %v1096_v13, 16 }
 0x13e   : > { %5069 = vmatmul.bf16.gmra.mxu0 %v6166_v41  ;;  %5118 = vmatmul.bf16.gmra.mxu1 %v6170_v18  ;;  %v8486_v35 = vadd.f32 %v4923_v60, %v4875_v57  ;;  %v7158_v41 = vld [vmem:[#allocation3 + $0x2a4] sm:$0xf0]  ;;  %v2013_v31 = vrot.slane %v2012_v16, 4  ;;  %v7306_v16 = vld [vmem:[%s9072_s6 + $0x2c8] sm:$0xff] }
 0x13f   : > { %v4778_v51 = vpop.f32.mrf.mxu2  ;;  %v4827_v53 = vpop.f32.mrf.mxu3  ;;  %v1857_v18 = vld [vmem:[#allocation2 + $0xb8] sm:$0x11]  ;;  %v6238_v26 = vor.u32 %v7158_v41, %v8490_v7  ;;  %v915_v7 = vsel %vm7694_vm14, %v907_v46, %v914_v44  ;;  %v1227_v61 = vrot.slane %v1225_v12, 7  ;;  %5199 = vmatpush.bf16.msrb.mxu3 %v7306_v16  ;;  %v7167_v12 = vld [vmem:[#allocation3 + $0x2f4] sm:$0xf] }
 0x140   : > { %v4779_v9 = vadd.f32 %v4778_v51, %v8395_v55  ;;  %v7323_v55 = vld [vmem:[%s9072_s6 + $0x350] sm:$0xff]  ;;  %v2025_v21 = vshll.u32 %v1857_v18, 16  ;;  %v1219_v51 = vrot.slane %v1217_v47, 7  ;;  %996 = vst [vmem:[#allocation2 + $0xc8] sm:$0xf] %v915_v7  ;;  %v1228_v47 = vshll.u32 %v1096_v13, 16 }
 0x141   : > { %5296 = vmatpush.bf16.msrb.mxu1 %v7323_v55  ;;  %v6301_v13 = vld [vmem:[#allocation3 + $0x2e8] sm:$0xf] }
 0x142   : > { %v4828_v60 = vadd.f32 %v4827_v53, %v4779_v9  ;;  %v2027_v3 = vrot.slane %v2025_v21, 5  ;;  %v757_v53 = vld [vmem:[#allocation2 + $0xd0] sm:$0x11]  ;;  %v1222_v19 = vor.u32 %v1220_v49, %v1219_v51  ;;  %v1223_v36 = vrot.slane %v1219_v51, 4  ;;  %v7166_v21 = vld [vmem:[#allocation3 + $0x2ec] sm:$0xf] }
 0x143   : > { %v4876_v63 = vpop.f32.mrf.mxu0  ;;  %v4925_v5 = vpop.f32.mrf.mxu1  ;;  %v758_v42 = vsel %vm7677_vm13, 0, %v757_v53  ;;  %v6303_v49 = vld [vmem:[#allocation3 + $0x330] sm:$0xf0]  ;;  %v1232_v53 = vrot.slane %v1227_v61, 4 }
 0x144   : > { %4976 = vmatmul.bf16.gmra.mxu2 %v6230_v52  ;;  %5025 = vmatmul.bf16.gmra.mxu3 %v6234_v2  ;;  %v4877_v57 = vadd.f32 %v4876_v63, %v4828_v60  ;;  %v2018_v52 = vsel %vm8051_vm2, %v2013_v31, %v2017_v11  ;;  %v6242_v63 = vor.u32 %v7149_v27, %v6239_v29  ;;  %v916_v31 = vrot.slane %v8501_v20, 4 }
 0x145   : > { %2081 = vst [vmem:[#allocation3 + $0x380] sm:$0xff] %v2018_v52  ;;  %v2028_v38 = vsel %vm8051_vm2, %v2023_v54, %v2027_v3  ;;  %v1307_v60 = vsel %vm7708_vm15, %v1222_v19, %v1306_v23  ;;  %v1230_v11 = vor.u32 %v1228_v47, %v1227_v61  ;;  %v6302_v3 = vor.u32 %v7175_v22, %v6301_v13  ;;  %v6309_v52 = vld [vmem:[#allocation3 + $0x2f0] sm:$0xf]  ;;  %v7176_v54 = vld [vmem:[#allocation3 + $0x334] sm:$0xf0] }
 0x146   : > { %v8507_v50 = vadd.f32 %v4925_v5, %v4877_v57  ;;  %2082 = vst [vmem:[#allocation3 + $0x3c8] sm:$0xff] %v2028_v38  ;;  %v4735_v57 = vadd.f32 %v8281_v43, %v8279_v37  ;;  %v6306_v44 = vor.u32 %v7166_v21, %v6303_v49  ;;  %v7314_v37 = vld [vmem:[%s9072_s6 + $0x308] sm:$0xff]  ;;  %v2086_v61 = vld [vmem:[#allocation2 + $0x20] sm:$0xff]  ;;  %v6310_v16 = vor.u32 %v7176_v54, %v6309_v52 }
 0x147   : > { %v4781_v9 = vpop.f32.mrf.mxu2  ;;  %v4830_v2 = vpop.f32.mrf.mxu3  ;;  %1308 = vst [vmem:[#allocation2 + $0xc4] sm:$0xf] %v1307_v60  ;;  %v1231_v46 = vsel %vm7694_vm14, %v1223_v36, %v1230_v11  ;;  %v7322_v43 = vld [vmem:[%s9072_s6 + $0x348] sm:$0xff]  ;;  %5248 = vmatpush.bf16.msrb.mxu0 %v7314_v37  ;;  %v7297_v52 = vld [vmem:[%s9072_s6 + $0x280] sm:$0xff] }
 0x148   : > { %v4782_v41 = vadd.f32 %v4781_v9, %v8257_v28  ;;  %v7298_v28 = vld [vmem:[%s9072_s6 + $0x288] sm:$0xff]  ;;  %759 = vst [vmem:[#allocation2 + $0xd0] sm:$0x11] %v758_v42  ;;  %5297 = vmatpush.bf16.msrb.mxu1 %v7322_v43  ;;  %v7305_v54 = vld [vmem:[%s9072_s6 + $0x2c0] sm:$0xff] }
 0x149   : > { %5150 = vmatpush.bf16.msrb.mxu2 %v7298_v28  ;;  %1309 = vst [vmem:[#allocation2 + $0xcc] sm:$0xf] %v1231_v46  ;;  %v2087_v13 = vld [vmem:[#allocation2 + $0x28] sm:$0x11]  ;;  %5200 = vmatpush.bf16.msrb.mxu3 %v7305_v54 }
 0x14a   : > { %v4831_v55 = vadd.f32 %v4830_v2, %v4782_v41  ;;  %v6373_v37 = vld [vmem:[#allocation3 + $0x378] sm:$0xf]  ;;  %v7184_v43 = vld [vmem:[#allocation3 + $0x37c] sm:$0xf] }
 0x14b   : > { %v4879_v5 = vpop.f32.mrf.mxu0  ;;  %v4928_v18 = vpop.f32.mrf.mxu1 }
 0x14c   : > { %v4880_v33 = vadd.f32 %v4879_v5, %v4831_v55  ;;  %v2135_v55 = vrot.slane %v2086_v61, 5 }
 0x14d   : > { %5151 = vmatpush.bf16.msrb.mxu2 %v7297_v52 }
 0x14e   : > { %5074 = vmatmul.bf16.gmra.mxu0 %v6238_v26  ;;  %5123 = vmatmul.bf16.gmra.mxu1 %v6242_v63  ;;  %v8530_v27 = vadd.f32 %v4928_v18, %v4880_v33  ;;  %v1819_v23 = vld [vmem:[#allocation2 + $0xc0] sm:$0xff]  ;;  %v6311_v63 = vld [vmem:[#allocation3 + $0x338] sm:$0xf0]  ;;  %v2085_v33 = vld [vmem:[#allocation2 + $0x18] sm:$0xee] }
 0x14f   : > { %v4783_v29 = vpop.f32.mrf.mxu2  ;;  %v4832_v26 = vpop.f32.mrf.mxu3  ;;  %1835 = vst [vmem:[#allocation3 + $0x408] sm:$0xff] %v1819_v23  ;;  %v997_v20 = vld [vmem:[#allocation2 + $0xd0] sm:$0x1]  ;;  %v2030_v2 = vshrl.u32 %v1819_v23, 16  ;;  %v1310_v19 = vld [vmem:[#allocation2 + $0xd4] sm:$0x1]  ;;  %v6314_v11 = vor.u32 %v7167_v12, %v6311_v63 }
 0x150   : > { %v4784_v34 = vadd.f32 %v4783_v29, %v4735_v57  ;;  %v998_v7 = vsel %vm7631_vm4, %v916_v31, %v997_v20  ;;  %v2033_v36 = vshll.u32 %v1819_v23, 16  ;;  %2250 = vst [vmem:[#allocation3 + $0x390] sm:$0xff] %v1819_v23  ;;  %v1820_v5 = vld [vmem:[#allocation2 + $0xc8] sm:$0xff]  ;;  %v1311_v18 = vsel %vm7631_vm4, %v1232_v53, %v1310_v19  ;;  %v7193_v20 = vld [vmem:[#allocation3 + $0x3bc] sm:$0xf0] }
 0x151   : > { %999 = vst [vmem:[#allocation2 + $0xd0] sm:$0x1] %v998_v7  ;;  %v2032_v38 = vrot.slane %v2030_v2, 4  ;;  %v2039_v60 = vshll.u32 %v1820_v5, 16  ;;  %v2043_v42 = vshrl.u32 %v1820_v5, 16  ;;  %v5899_v29 = vrot.slane %v2085_v33, 9 }
 0x152   : > { %v4833_v9 = vadd.f32 %v4832_v26, %v4784_v34  ;;  %1836 = vst [vmem:[#allocation3 + $0x450] sm:$0xff] %v1820_v5  ;;  %v2035_v47 = vrot.slane %v2033_v36, 5  ;;  %v6375_v2 = vld [vmem:[#allocation3 + $0x3c0] sm:$0xf0]  ;;  %v4740_v7 = vadd.f32 %v8330_v62, %v8328_v58  ;;  %v6374_v61 = vor.u32 %v7193_v20, %v6373_v37  ;;  %v7313_v58 = vld [vmem:[%s9072_s6 + $0x300] sm:$0xff]  ;;  %v7336_v20 = vld [vmem:[%s9072_s6 + $0x3b8] sm:$0xff] }
 0x153   : > { %v4881_v32 = vpop.f32.mrf.mxu0  ;;  %v4930_v51 = vpop.f32.mrf.mxu1  ;;  %1312 = vst [vmem:[#allocation2 + $0xd4] sm:$0x1] %v1311_v18  ;;  %v2041_v49 = vrot.slane %v2039_v60, 5  ;;  %v2045_v57 = vrot.slane %v2043_v42, 4  ;;  %v7321_v62 = vld [vmem:[%s9072_s6 + $0x340] sm:$0xff]  ;;  %5249 = vmatpush.bf16.msrb.mxu0 %v7313_v58  ;;  %5340 = vmatpush.bf16.msra.mxu2 %v7336_v20  ;;  %v7360_v58 = vld [vmem:[%s9072_s6 + $0x478] sm:$0xff] }
 0x154   : > { %4981 = vmatmul.bf16.gmra.mxu2 %v6302_v3  ;;  %5030 = vmatmul.bf16.gmra.mxu3 %v6306_v44  ;;  %v4882_v41 = vadd.f32 %v4881_v32, %v4833_v9  ;;  %v2036_v22 = vor.u32 %v2035_v47, %v2032_v38  ;;  %2251 = vst [vmem:[#allocation3 + $0x3d8] sm:$0xff] %v1820_v5  ;;  %v2137_v3 = vrot.slane %v2135_v55, 4  ;;  %v2138_v44 = vrot.slane %v2087_v13, 5  ;;  %v6381_v33 = vld [vmem:[#allocation3 + $0x380] sm:$0xf] }
 0x155   : > { %v2046_v12 = vor.u32 %v2045_v57, %v2041_v49  ;;  %v6378_v47 = vor.u32 %v7184_v43, %v6375_v2  ;;  %v7194_v13 = vld [vmem:[#allocation3 + $0x3c4] sm:$0xf0]  ;;  %5298 = vmatpush.bf16.msrb.mxu1 %v7321_v62  ;;  %v7343_v20 = vld [vmem:[%s9072_s6 + $0x3f0] sm:$0xff] }
 0x156   : > { %v8543_v28 = vadd.f32 %v4930_v51, %v4882_v41  ;;  %v2037_v32 = vrot.slane %v2036_v22, 4  ;;  %v2136_v51 = vsel %vm8077_vm6, %v5899_v29, %v2135_v55  ;;  %v6383_v22 = vld [vmem:[#allocation3 + $0x3c8] sm:$0xf0] }
 0x157   : > { %v4786_v21 = vpop.f32.mrf.mxu2  ;;  %v4835_v46 = vpop.f32.mrf.mxu3  ;;  %2205 = vst [vmem:[#allocation3 + $0x28] sm:$0xff] %v2136_v51  ;;  %v2047_v36 = vrot.slane %v2046_v12, 4 }
 0x158   : > { %v4787_v26 = vadd.f32 %v4786_v21, %v8296_v0  ;;  %v2139_v0 = vsel %vm8077_vm6, %v2137_v3, %v2138_v44  ;;  %v2042_v23 = vsel %vm8051_vm2, %v2037_v32, %v2041_v49  ;;  %v2223_v49 = vld [vmem:[#allocation2 + $0x38] sm:$0xff]  ;;  %v2090_v3 = vld [vmem:[#allocation2 + $0x40] sm:$0x11] }
 0x159   : > { %2206 = vst [vmem:[#allocation3 + $0x70] sm:$0xff] %v2139_v0  ;;  %v2142_v57 = vrot.slane %v2223_v49, 5  ;;  %v2145_v54 = vrot.slane %v2090_v3, 5  ;;  %5487 = vmatpush.bf16.msra.mxu1 %v7360_v58 }
 0x15a   : > { %v4836_v53 = vadd.f32 %v4835_v46, %v4787_v26  ;;  %2083 = vst [vmem:[#allocation3 + $0x410] sm:$0xff] %v2042_v23  ;;  %v1860_v63 = vld [vmem:[#allocation2 + $0xd0] sm:$0x11]  ;;  %v6382_v26 = vor.u32 %v7194_v13, %v6381_v33 }
 0x15b   : > { %v4884_v31 = vpop.f32.mrf.mxu0  ;;  %v4933_v34 = vpop.f32.mrf.mxu1  ;;  %v2049_v41 = vshll.u32 %v1860_v63, 16  ;;  %v7185_v46 = vld [vmem:[#allocation3 + $0x384] sm:$0xf]  ;;  %2239 = vst [vmem:[#allocation3 + $0x78] sm:$0xff] %v2223_v49  ;;  %v2144_v52 = vrot.slane %v2142_v57, 4 }
 0x15c   : > { %v4885_v9 = vadd.f32 %v4884_v31, %v4836_v53  ;;  %v2222_v31 = vld [vmem:[#allocation2 + $0x30] sm:$0xff]  ;;  %v6386_v51 = vor.u32 %v7185_v46, %v6383_v22  ;;  %v6445_v63 = vld [vmem:[#allocation3 + $0x408] sm:$0xf] }
 0x15d   : > { %v2051_v55 = vrot.slane %v2049_v41, 5  ;;  %2238 = vst [vmem:[#allocation3 + $0x30] sm:$0xff] %v2222_v31  ;;  %v2146_v37 = vsel %vm8077_vm6, %v2144_v52, %v2145_v54  ;;  %v6447_v41 = vld [vmem:[#allocation3 + $0x450] sm:$0xf0]  ;;  %v2225_v46 = vld [vmem:[#allocation2 + $0x50] sm:$0xff] }
 0x15e   : > { %5079 = vmatmul.bf16.gmra.mxu0 %v6310_v16  ;;  %5128 = vmatmul.bf16.gmra.mxu1 %v6314_v11  ;;  %v8560_v19 = vadd.f32 %v4933_v34, %v4885_v9  ;;  %v2088_v34 = vld [vmem:[#allocation2 + $0x30] sm:$0xee]  ;;  %2208 = vst [vmem:[#allocation3 + $0x100] sm:$0xff] %v2146_v37  ;;  %v2149_v22 = vrot.slane %v2225_v46, 5  ;;  %v2091_v31 = vld [vmem:[#allocation2 + $0x48] sm:$0xee] }
 0x15f   : > { %v4788_v5 = vpop.f32.mrf.mxu2  ;;  %v4837_v18 = vpop.f32.mrf.mxu3  ;;  %v2052_v11 = vsel %vm8051_vm2, %v2047_v36, %v2051_v55  ;;  %v5900_v53 = vrot.slane %v2088_v34, 9  ;;  %v7202_v36 = vld [vmem:[#allocation3 + $0x40c] sm:$0xf]  ;;  %2241 = vst [vmem:[#allocation3 + $0x108] sm:$0xff] %v2225_v46 }
 0x160   : > { %v4789_v38 = vadd.f32 %v4788_v5, %v4740_v7  ;;  %2084 = vst [vmem:[#allocation3 + $0x458] sm:$0xff] %v2052_v11  ;;  %v7211_v7 = vld [vmem:[#allocation3 + $0x44c] sm:$0xf0]  ;;  %v7352_v11 = vld [vmem:[%s9072_s6 + $0x438] sm:$0xff] }
 0x161   : > { %v2143_v9 = vsel %vm8077_vm6, %v5900_v53, %v2142_v57  ;;  %v6453_v62 = vld [vmem:[#allocation3 + $0x410] sm:$0xf]  ;;  %5438 = vmatpush.bf16.msra.mxu0 %v7352_v11  ;;  %v2093_v34 = vld [vmem:[#allocation2 + $0x58] sm:$0x11]  ;;  %v2151_v53 = vrot.slane %v2149_v22, 4  ;;  %v7359_v11 = vld [vmem:[%s9072_s6 + $0x470] sm:$0xff] }
 0x162   : > { %v4838_v16 = vadd.f32 %v4837_v18, %v4789_v38  ;;  %2207 = vst [vmem:[#allocation3 + $0xb8] sm:$0xff] %v2143_v9  ;;  %v2152_v52 = vrot.slane %v2093_v34, 5  ;;  %5488 = vmatpush.bf16.msra.mxu1 %v7359_v11 }
 0x163   : > { %v4886_v60 = vpop.f32.mrf.mxu0  ;;  %v4935_v42 = vpop.f32.mrf.mxu1 }
 0x164   : > { %4986 = vmatmul.bf16.gmra.mxu2 %v6374_v61  ;;  %5035 = vmatmul.bf16.gmra.mxu3 %v6378_v47  ;;  %v4887_v21 = vadd.f32 %v4886_v60, %v4838_v16  ;;  %v6446_v47 = vor.u32 %v7211_v7, %v6445_v63  ;;  %v6450_v60 = vor.u32 %v7202_v36, %v6447_v41  ;;  %v7078_v63 = vld [vmem:[#allocation3 + $0x2c] sm:$0xf]  ;;  %v5959_v7 = vld [vmem:[#allocation3 + $0x70] sm:$0xf0]  ;;  %v5965_v58 = vld [vmem:[#allocation3 + $0x30] sm:$0xf] }
 0x165   : > { %v2153_v9 = vsel %vm8077_vm6, %v2151_v53, %v2152_v52 }
 0x166   : > { %v8570_v29 = vadd.f32 %v4935_v42, %v4887_v21  ;;  %v7203_v21 = vld [vmem:[#allocation3 + $0x414] sm:$0xf]  ;;  %2210 = vst [vmem:[#allocation3 + $0x190] sm:$0xff] %v2153_v9 }
 0x167   : > { %v4791_v44 = vpop.f32.mrf.mxu2  ;;  %v4840_v32 = vpop.f32.mrf.mxu3  ;;  %v7212_v33 = vld [vmem:[#allocation3 + $0x454] sm:$0xf0] }
 0x168   : > { %v4792_v12 = vadd.f32 %v4791_v44, %v8353_v24  ;;  %v7344_v24 = vld [vmem:[%s9072_s6 + $0x3f8] sm:$0xff]  ;;  %v6454_v57 = vor.u32 %v7212_v33, %v6453_v62  ;;  %v7088_v62 = vld [vmem:[#allocation3 + $0x74] sm:$0xf0] }
 0x169   : > { %5389 = vmatpush.bf16.msra.mxu3 %v7344_v24  ;;  %v5957_v24 = vld [vmem:[#allocation3 + $0x28] sm:$0xf] }
 0x16a   : > { %v4841_v43 = vadd.f32 %v4840_v32, %v4792_v12 }
 0x16b   : > { %v4889_v0 = vpop.f32.mrf.mxu0  ;;  %v4938_v23 = vpop.f32.mrf.mxu1 }
 0x16c   : > { %v4890_v2 = vadd.f32 %v4889_v0, %v4841_v43  ;;  %v7335_v43 = vld [vmem:[%s9072_s6 + $0x3b0] sm:$0xff] }
 0x16d   : > { %5341 = vmatpush.bf16.msra.mxu2 %v7335_v43  ;;  %5390 = vmatpush.bf16.msra.mxu3 %v7343_v20  ;;  %v7342_v43 = vld [vmem:[%s9072_s6 + $0x3e8] sm:$0xff] }
 0x16e   : > { %5084 = vmatmul.bf16.gmra.mxu0 %v6382_v26  ;;  %5133 = vmatmul.bf16.gmra.mxu1 %v6386_v51  ;;  %v8583_v5 = vadd.f32 %v4938_v23, %v4890_v2  ;;  %v2224_v26 = vld [vmem:[#allocation2 + $0x48] sm:$0xff]  ;;  %v5901_v51 = vrot.slane %v2091_v31, 9  ;;  %v7087_v2 = vld [vmem:[#allocation3 + $0x6c] sm:$0xf0]  ;;  %v2096_v31 = vld [vmem:[#allocation2 + $0x70] sm:$0x11] }
 0x16f   : > { %v4793_v18 = vpop.f32.mrf.mxu2  ;;  %v4842_v38 = vpop.f32.mrf.mxu3  ;;  %2240 = vst [vmem:[#allocation3 + $0xc0] sm:$0xff] %v2224_v26  ;;  %v2094_v26 = vld [vmem:[#allocation2 + $0x60] sm:$0xee]  ;;  %v2159_v53 = vrot.slane %v2096_v31, 5  ;;  %v6029_v20 = vld [vmem:[#allocation3 + $0xb8] sm:$0xf] }
 0x170   : > { %v4794_v61 = vadd.f32 %v4793_v18, %v8357_v59  ;;  %v6455_v59 = vld [vmem:[#allocation3 + $0x458] sm:$0xf0]  ;;  %v2150_v23 = vsel %vm8077_vm6, %v5901_v51, %v2149_v22  ;;  %v5966_v22 = vor.u32 %v7088_v62, %v5965_v58  ;;  %v7106_v58 = vld [vmem:[#allocation3 + $0x104] sm:$0xf0] }
 0x171   : > { %v6458_v32 = vor.u32 %v7203_v21, %v6455_v59  ;;  %2209 = vst [vmem:[#allocation3 + $0x148] sm:$0xff] %v2150_v23  ;;  %v2227_v21 = vld [vmem:[#allocation2 + $0x68] sm:$0xff]  ;;  %5391 = vmatpush.bf16.msra.mxu3 %v7342_v43 }
 0x172   : > { %v4843_v16 = vadd.f32 %v4842_v38, %v4794_v61  ;;  %v5958_v61 = vor.u32 %v7087_v2, %v5957_v24  ;;  %2243 = vst [vmem:[#allocation3 + $0x198] sm:$0xff] %v2227_v21  ;;  %v2156_v59 = vrot.slane %v2227_v21, 5  ;;  %v7096_v24 = vld [vmem:[#allocation3 + $0xbc] sm:$0xf]  ;;  %v6031_v2 = vld [vmem:[#allocation3 + $0x100] sm:$0xf0] }
 0x173   : > { %v4891_v42 = vpop.f32.mrf.mxu0  ;;  %v4940_v55 = vpop.f32.mrf.mxu1 }
 0x174   : > { %4991 = vmatmul.bf16.gmra.mxu2 %v6446_v47  ;;  %5040 = vmatmul.bf16.gmra.mxu3 %v6450_v60  ;;  %v4892_v13 = vadd.f32 %v4891_v42, %v4843_v16  ;;  %v5962_v47 = vor.u32 %v7078_v63, %v5959_v7  ;;  %v7351_v16 = vld [vmem:[%s9072_s6 + $0x430] sm:$0xff]  ;;  %v2158_v51 = vrot.slane %v2156_v59, 4 }
 0x175   : > { %5439 = vmatpush.bf16.msra.mxu0 %v7351_v16  ;;  %v7358_v16 = vld [vmem:[%s9072_s6 + $0x468] sm:$0xff] }
 0x176   : > { %v8592_v49 = vadd.f32 %v4940_v55, %v4892_v13  ;;  %v7079_v13 = vld [vmem:[#allocation3 + $0x34] sm:$0xf]  ;;  %v2160_v23 = vsel %vm8077_vm6, %v2158_v51, %v2159_v53  ;;  %v6037_v11 = vld [vmem:[#allocation3 + $0xc0] sm:$0xf]  ;;  %5489 = vmatpush.bf16.msra.mxu1 %v7358_v16 }
 0x177   : > { %v4796_v3 = vpop.f32.mrf.mxu2  ;;  %v4845_v44 = vpop.f32.mrf.mxu3  ;;  %2212 = vst [vmem:[#allocation3 + $0x220] sm:$0xff] %v2160_v23 }
 0x178   : > { %v4797_v54 = vadd.f32 %v4796_v3, %v8371_v25  ;;  %v6101_v43 = vld [vmem:[#allocation3 + $0x148] sm:$0xf] }
 0x17a   : > { %v4846_v37 = vadd.f32 %v4845_v44, %v4797_v54 }
 0x17b   : > { %v4894_v12 = vpop.f32.mrf.mxu0  ;;  %v4943_v0 = vpop.f32.mrf.mxu1 }
 0x17c   : > { %v4895_v25 = vadd.f32 %v4894_v12, %v4846_v37  ;;  %v7334_v37 = vld [vmem:[%s9072_s6 + $0x3a8] sm:$0xff] }
 0x17d   : > { %5342 = vmatpush.bf16.msra.mxu2 %v7334_v37  ;;  %v7341_v37 = vld [vmem:[%s9072_s6 + $0x3e0] sm:$0xff] }
 0x17e   : > { %5089 = vmatmul.bf16.gmra.mxu0 %v6454_v57  ;;  %5138 = vmatmul.bf16.gmra.mxu1 %v6458_v32  ;;  %v8605_v36 = vadd.f32 %v4943_v0, %v4895_v25  ;;  %v2226_v57 = vld [vmem:[#allocation2 + $0x60] sm:$0xff]  ;;  %v5902_v32 = vrot.slane %v2094_v26, 9  ;;  %v7105_v25 = vld [vmem:[#allocation3 + $0xfc] sm:$0xf0]  ;;  %v2099_v26 = vld [vmem:[#allocation2 + $0x88] sm:$0x11] }
 0x17f   : > { %v4798_v41 = vpop.f32.mrf.mxu2  ;;  %v4847_v18 = vpop.f32.mrf.mxu3  ;;  %2242 = vst [vmem:[#allocation3 + $0x150] sm:$0xff] %v2226_v57  ;;  %v2097_v57 = vld [vmem:[#allocation2 + $0x78] sm:$0xee]  ;;  %v2166_v51 = vrot.slane %v2099_v26, 5  ;;  %5392 = vmatpush.bf16.msra.mxu3 %v7341_v37 }
 0x180   : > { %v4799_v38 = vadd.f32 %v4798_v41, %v8381_v10  ;;  %v5967_v10 = vld [vmem:[#allocation3 + $0x78] sm:$0xf0]  ;;  %v2157_v0 = vsel %vm8077_vm6, %v5902_v32, %v2156_v59  ;;  %v6038_v59 = vor.u32 %v7106_v58, %v6037_v11  ;;  %v7124_v11 = vld [vmem:[#allocation3 + $0x194] sm:$0xf0] }
 0x181   : > { %v5970_v44 = vor.u32 %v7079_v13, %v5967_v10  ;;  %2211 = vst [vmem:[#allocation3 + $0x1d8] sm:$0xff] %v2157_v0  ;;  %v2229_v13 = vld [vmem:[#allocation2 + $0x80] sm:$0xff] }
 0x182   : > { %v4848_v55 = vadd.f32 %v4847_v18, %v4799_v38  ;;  %v6030_v38 = vor.u32 %v7105_v25, %v6029_v20  ;;  %2245 = vst [vmem:[#allocation3 + $0x228] sm:$0xff] %v2229_v13  ;;  %v2163_v10 = vrot.slane %v2229_v13, 5  ;;  %v7114_v20 = vld [vmem:[#allocation3 + $0x14c] sm:$0xf]  ;;  %v6103_v25 = vld [vmem:[#allocation3 + $0x190] sm:$0xf0] }
 0x183   : > { %v4896_v60 = vpop.f32.mrf.mxu0  ;;  %v4945_v42 = vpop.f32.mrf.mxu1 }
 0x184   : > { %5152 = vmatmul.bf16.vlgmr.msrb.gmra.mxu2 %v5958_v61  ;;  %5201 = vmatmul.bf16.vlgmr.msrb.gmra.mxu3 %v5962_v47  ;;  %v4897_v33 = vadd.f32 %v4896_v60, %v4848_v55  ;;  %v6034_v61 = vor.u32 %v7096_v24, %v6031_v2  ;;  %v7350_v55 = vld [vmem:[%s9072_s6 + $0x428] sm:$0xff]  ;;  %v2165_v32 = vrot.slane %v2163_v10, 4 }
 0x185   : > { %5440 = vmatpush.bf16.msra.mxu0 %v7350_v55  ;;  %v7357_v55 = vld [vmem:[%s9072_s6 + $0x460] sm:$0xff] }
 0x186   : > { %v8614_v46 = vadd.f32 %v4945_v42, %v4897_v33  ;;  %v7097_v33 = vld [vmem:[#allocation3 + $0xc4] sm:$0xf]  ;;  %v2167_v0 = vsel %vm8077_vm6, %v2165_v32, %v2166_v51  ;;  %v6109_v16 = vld [vmem:[#allocation3 + $0x150] sm:$0xf]  ;;  %v7115_v58 = vld [vmem:[#allocation3 + $0x154] sm:$0xf]  ;;  %5490 = vmatpush.bf16.msra.mxu1 %v7357_v55 }
 0x187   : > { %v4957_v34 = vpop.f32.mrf.mxu2  ;;  %v5006_v3 = vpop.f32.mrf.mxu3  ;;  %2214 = vst [vmem:[#allocation3 + $0x2b0] sm:$0xff] %v2167_v0 }
 0x188   : > { %v4958_v52 = vadd.f32 %v4957_v34, %v8414_v48  ;;  %v6173_v37 = vld [vmem:[#allocation3 + $0x1d8] sm:$0xf] }
 0x18a   : > { %v5007_v9 = vadd.f32 %v5006_v3, %v4958_v52 }
 0x18b   : > { %v5055_v54 = vpop.f32.mrf.mxu0  ;;  %v5104_v12 = vpop.f32.mrf.mxu1 }
 0x18c   : > { %v5056_v48 = vadd.f32 %v5055_v54, %v5007_v9  ;;  %v7333_v9 = vld [vmem:[%s9072_s6 + $0x3a0] sm:$0xff] }
 0x18d   : > { %5343 = vmatpush.bf16.msra.mxu2 %v7333_v9 }
 0x18e   : > { %5250 = vmatmul.bf16.vlgmr.msrb.gmra.mxu0 %v5966_v22  ;;  %5299 = vmatmul.bf16.vlgmr.msrb.gmra.mxu1 %v5970_v44  ;;  %v8627_v63 = vadd.f32 %v5104_v12, %v5056_v48  ;;  %v2228_v22 = vld [vmem:[#allocation2 + $0x78] sm:$0xff]  ;;  %v5903_v44 = vrot.slane %v2097_v57, 9  ;;  %v7123_v48 = vld [vmem:[#allocation3 + $0x18c] sm:$0xf0] }
 0x18f   : > { %v4959_v7 = vpop.f32.mrf.mxu2  ;;  %v5008_v41 = vpop.f32.mrf.mxu3  ;;  %2244 = vst [vmem:[#allocation3 + $0x1e0] sm:$0xff] %v2228_v22  ;;  %v2100_v22 = vld [vmem:[#allocation2 + $0x90] sm:$0xee]  ;;  %v2102_v57 = vld [vmem:[#allocation2 + $0xa0] sm:$0x11] }
 0x190   : > { %v4960_v18 = vadd.f32 %v4959_v7, %v8423_v40  ;;  %v6039_v40 = vld [vmem:[#allocation3 + $0x108] sm:$0xf0]  ;;  %v2164_v12 = vsel %vm8077_vm6, %v5903_v44, %v2163_v10  ;;  %v6110_v10 = vor.u32 %v7124_v11, %v6109_v16  ;;  %v2173_v32 = vrot.slane %v2102_v57, 5 }
 0x191   : > { %v6042_v3 = vor.u32 %v7097_v33, %v6039_v40  ;;  %2213 = vst [vmem:[#allocation3 + $0x268] sm:$0xff] %v2164_v12  ;;  %v2231_v33 = vld [vmem:[#allocation2 + $0x98] sm:$0xff] }
 0x192   : > { %v5009_v42 = vadd.f32 %v5008_v41, %v4960_v18  ;;  %v6102_v18 = vor.u32 %v7123_v48, %v6101_v43  ;;  %2247 = vst [vmem:[#allocation3 + $0x2b8] sm:$0xff] %v2231_v33  ;;  %v2170_v40 = vrot.slane %v2231_v33, 5  ;;  %v7132_v43 = vld [vmem:[#allocation3 + $0x1dc] sm:$0xf]  ;;  %v6175_v48 = vld [vmem:[#allocation3 + $0x220] sm:$0xf0] }
 0x193   : > { %v5057_v47 = vpop.f32.mrf.mxu0  ;;  %v5106_v60 = vpop.f32.mrf.mxu1 }
 0x194   : > { %5157 = vmatmul.bf16.gmra.mxu2 %v6030_v38  ;;  %5206 = vmatmul.bf16.gmra.mxu3 %v6034_v61  ;;  %v5058_v62 = vadd.f32 %v5057_v47, %v5009_v42  ;;  %v6106_v38 = vor.u32 %v7114_v20, %v6103_v25  ;;  %v7349_v42 = vld [vmem:[%s9072_s6 + $0x420] sm:$0xff]  ;;  %v2172_v44 = vrot.slane %v2170_v40, 4 }
 0x195   : > { %5441 = vmatpush.bf16.msra.mxu0 %v7349_v42  ;;  %v7356_v42 = vld [vmem:[%s9072_s6 + $0x458] sm:$0xff] }
 0x196   : > { %v8636_v21 = vadd.f32 %v5106_v60, %v5058_v62  ;;  %v6111_v62 = vld [vmem:[#allocation3 + $0x198] sm:$0xf0]  ;;  %v2174_v12 = vsel %vm8077_vm6, %v2172_v44, %v2173_v32  ;;  %v6181_v55 = vld [vmem:[#allocation3 + $0x1e0] sm:$0xf]  ;;  %v7133_v11 = vld [vmem:[#allocation3 + $0x1e4] sm:$0xf]  ;;  %5491 = vmatpush.bf16.msra.mxu1 %v7356_v42  ;;  %v1044_v42 = vstv %s1043_s20 }
 0x197   : > { %v4962_v31 = vpop.f32.mrf.mxu2  ;;  %v5011_v34 = vpop.f32.mrf.mxu3  ;;  %2216 = vst [vmem:[#allocation3 + $0x340] sm:$0xff] %v2174_v12 }
 0x198   : > { %v4963_v53 = vadd.f32 %v4962_v31, %v8436_v1 }
 0x19a   : > { %v5012_v23 = vadd.f32 %v5011_v34, %v4963_v53  ;;  %v6114_v34 = vor.u32 %v7115_v58, %v6111_v62  ;;  %v2233_v58 = vld [vmem:[#allocation2 + $0xb0] sm:$0xff] }
 0x19b   : > { %v5060_v52 = vpop.f32.mrf.mxu0  ;;  %v5109_v54 = vpop.f32.mrf.mxu1  ;;  %2249 = vst [vmem:[#allocation3 + $0x348] sm:$0xff] %v2233_v58  ;;  %v2177_v62 = vrot.slane %v2233_v58, 5 }
 0x19c   : > { %v5061_v1 = vadd.f32 %v5060_v52, %v5012_v23  ;;  %v7340_v23 = vld [vmem:[%s9072_s6 + $0x3d8] sm:$0xff] }
 0x19d   : > { %5393 = vmatpush.bf16.msra.mxu3 %v7340_v23  ;;  %v6245_v23 = vld [vmem:[#allocation3 + $0x268] sm:$0xf] }
 0x19e   : > { %5255 = vmatmul.bf16.gmra.mxu0 %v6038_v59  ;;  %5304 = vmatmul.bf16.gmra.mxu1 %v6042_v3  ;;  %v8652_v24 = vadd.f32 %v5109_v54, %v5061_v1  ;;  %v2230_v59 = vld [vmem:[#allocation2 + $0x90] sm:$0xff]  ;;  %v5904_v3 = vrot.slane %v2100_v22, 9  ;;  %v2105_v22 = vld [vmem:[#allocation2 + $0xb8] sm:$0x11] }
 0x19f   : > { %v4964_v2 = vpop.f32.mrf.mxu2  ;;  %v5013_v7 = vpop.f32.mrf.mxu3  ;;  %2246 = vst [vmem:[#allocation3 + $0x270] sm:$0xff] %v2230_v59  ;;  %v7141_v1 = vld [vmem:[#allocation3 + $0x21c] sm:$0xf0]  ;;  %v2103_v59 = vld [vmem:[#allocation2 + $0xa8] sm:$0xee]  ;;  %v2180_v44 = vrot.slane %v2105_v22, 5 }
 0x1a0   : > { %v4965_v41 = vadd.f32 %v4964_v2, %v8445_v45  ;;  %v2171_v54 = vsel %vm8077_vm6, %v5904_v3, %v2170_v40  ;;  %v2179_v3 = vrot.slane %v2177_v62, 4  ;;  %v2107_v22 = vld [vmem:[#allocation2 + $0xc8] sm:$0xff] }
 0x1a1   : > { %2215 = vst [vmem:[#allocation3 + $0x2f8] sm:$0xff] %v2171_v54 }
 0x1a2   : > { %v5014_v60 = vadd.f32 %v5013_v7, %v4965_v41  ;;  %v6174_v41 = vor.u32 %v7141_v1, %v6173_v37  ;;  %v2181_v54 = vsel %vm8077_vm6, %v2179_v3, %v2180_v44  ;;  %v7150_v37 = vld [vmem:[#allocation3 + $0x26c] sm:$0xf]  ;;  %v6247_v1 = vld [vmem:[#allocation3 + $0x2b0] sm:$0xf0] }
 0x1a3   : > { %v5062_v61 = vpop.f32.mrf.mxu0  ;;  %v5111_v47 = vpop.f32.mrf.mxu1  ;;  %2218 = vst [vmem:[#allocation3 + $0x3d0] sm:$0xff] %v2181_v54  ;;  %v2108_v54 = vld [vmem:[#allocation2 + $0xd0] sm:$0x11] }
 0x1a4   : > { %5162 = vmatmul.bf16.gmra.mxu2 %v6102_v18  ;;  %5211 = vmatmul.bf16.gmra.mxu3 %v6106_v38  ;;  %v5063_v45 = vadd.f32 %v5062_v61, %v5014_v60  ;;  %v6178_v18 = vor.u32 %v7132_v43, %v6175_v48  ;;  %v7348_v60 = vld [vmem:[%s9072_s6 + $0x418] sm:$0xff] }
 0x1a5   : > { %5442 = vmatpush.bf16.msra.mxu0 %v7348_v60  ;;  %v7366_v60 = vld [vmem:[%s603_s26] sm:$0xff]  }
 0x1a6   : > { %v8665_v13 = vadd.f32 %v5111_v47, %v5063_v45  ;;  %v6183_v45 = vld [vmem:[#allocation3 + $0x228] sm:$0xf0]  ;;  %v7151_v58 = vld [vmem:[#allocation3 + $0x274] sm:$0xf] }
 0x1a7   : > { %v4967_v26 = vpop.f32.mrf.mxu2  ;;  %v5016_v31 = vpop.f32.mrf.mxu3 }
 0x1a8   : > { %v4968_v51 = vadd.f32 %v4967_v26, %v8458_v4  ;;  %v7332_v4 = vld [vmem:[%s9072_s6 + $0x398] sm:$0xff] }
 0x1a9   : > { %5344 = vmatpush.bf16.msra.mxu2 %v7332_v4  ;;  %v7339_v4 = vld [vmem:[%s9072_s6 + $0x3d0] sm:$0xff] }
 0x1aa   : > { %v5017_v0 = vadd.f32 %v5016_v31, %v4968_v51  ;;  %v6186_v31 = vor.u32 %v7133_v11, %v6183_v45  ;;  %5394 = vmatpush.bf16.msra.mxu3 %v7339_v4  ;;  %v7368_v11 = vunpack.c.h.bf16 %v7366_v60  ;;  %v1048_v45 = vunpack.c.l.bf16 %v1044_v42 }
 0x1ab   : > { %v5065_v53 = vpop.f32.mrf.mxu0  ;;  %v5114_v52 = vpop.f32.mrf.mxu1 }
 0x1ac   : > { %v5066_v9 = vadd.f32 %v5065_v53, %v5017_v0  ;;  %v7331_v0 = vld [vmem:[%s9072_s6 + $0x390] sm:$0xff]  ;;  %v1050_v44 = vmul.f32 %v7368_v11, %v1048_v45 }
 0x1ad   : > { %5345 = vmatpush.bf16.msra.mxu2 %v7331_v0 }
 0x1ae   : > { %5260 = vmatmul.bf16.gmra.mxu0 %v6110_v10  ;;  %5309 = vmatmul.bf16.gmra.mxu1 %v6114_v34  ;;  %v8690_v20 = vadd.f32 %v5114_v52, %v5066_v9  ;;  %v2232_v10 = vld [vmem:[#allocation2 + $0xa8] sm:$0xff]  ;;  %v5905_v34 = vrot.slane %v2103_v59, 9  ;;  %v7159_v9 = vld [vmem:[#allocation3 + $0x2ac] sm:$0xf0] }
 0x1af   : > { %v4969_v25 = vpop.f32.mrf.mxu2  ;;  %v5018_v2 = vpop.f32.mrf.mxu3  ;;  %2248 = vst [vmem:[#allocation3 + $0x300] sm:$0xff] %v2232_v10 }
 0x1b0   : > { %v4970_v7 = vadd.f32 %v4969_v25, %v8467_v14  ;;  %v7142_v14 = vld [vmem:[#allocation3 + $0x224] sm:$0xf0]  ;;  %v2178_v52 = vsel %vm8077_vm6, %v5905_v34, %v2177_v62  ;;  %v6255_v62 = vld [vmem:[#allocation3 + $0x2b8] sm:$0xf0]  ;;  %v2184_v34 = vrot.slane %v2107_v22, 5 }
 0x1b1   : > { %v6182_v40 = vor.u32 %v7142_v14, %v6181_v55  ;;  %2217 = vst [vmem:[#allocation3 + $0x388] sm:$0xff] %v2178_v52  ;;  %v7347_v14 = vld [vmem:[%s9072_s6 + $0x410] sm:$0xff]  ;;  %v2106_v52 = vld [vmem:[#allocation2 + $0xc0] sm:$0xee] }
 0x1b2   : > { %v5019_v47 = vadd.f32 %v5018_v2, %v4970_v7  ;;  %v6246_v7 = vor.u32 %v7159_v9, %v6245_v23  ;;  %5443 = vmatpush.bf16.msra.mxu0 %v7347_v14  ;;  %v5906_v23 = vrot.slane %v2106_v52, 9  ;;  %v2186_v9 = vrot.slane %v2184_v34, 4 }
 0x1b3   : > { %v5067_v38 = vpop.f32.mrf.mxu0  ;;  %v5116_v61 = vpop.f32.mrf.mxu1 }
 0x1b4   : > { %5167 = vmatmul.bf16.gmra.mxu2 %v6174_v41  ;;  %5216 = vmatmul.bf16.gmra.mxu3 %v6178_v18  ;;  %v5068_v16 = vadd.f32 %v5067_v38, %v5019_v47  ;;  %v6250_v41 = vor.u32 %v7150_v37, %v6247_v1  ;;  %v7160_v47 = vld [vmem:[#allocation3 + $0x2b4] sm:$0xf0]  ;;  %v2187_v37 = vrot.slane %v2108_v54, 5  ;;  %v1052_v1 = vpack.c.bf16 %v1050_v44, %v1050_v44 }
 0x1b6   : > { %v8710_v33 = vadd.f32 %v5116_v61, %v5068_v16  ;;  %v6253_v61 = vld [vmem:[#allocation3 + $0x270] sm:$0xf]  ;;  %v7367_v16 = vunpack.c.l.bf16 %v7366_v60  ;;  %v7330_v60 = vld [vmem:[%s9072_s6 + $0x388] sm:$0xff]  ;;  %v1065_v14 = vshll.u32 %v1052_v1, 16 }
 0x1b7   : > { %v4972_v57 = vpop.f32.mrf.mxu2  ;;  %v5021_v26 = vpop.f32.mrf.mxu3  ;;  %v6254_v59 = vor.u32 %v7160_v47, %v6253_v61  ;;  %v1062_v61 = vshrl.u32 %v1052_v1, 16  ;;  %5346 = vmatpush.bf16.msra.mxu2 %v7330_v60 }
 0x1b8   : > { %v4973_v32 = vadd.f32 %v4972_v57, %v8486_v35  ;;  %v725_v57 = vld [vmem:[#allocation2 + $0xd8] sm:$0x11] }
 0x1b9   : > { %v726_v3 = vsel %vm7644_vm9, 0, %v725_v57 }
 0x1ba   : > { %v5022_v12 = vadd.f32 %v5021_v26, %v4973_v32  ;;  %v1049_v26 = vmul.f32 %v7367_v16, %v1048_v45  ;;  %727 = vst [vmem:[#allocation2 + $0xd8] sm:$0x11] %v726_v3  ;;  %v8759_v16 = vrot.slane %v1062_v61, 7  ;;  %v7178_v61 = vld [vmem:[#allocation3 + $0x344] sm:$0xf0] }
 0x1bb   : > { %v5070_v51 = vpop.f32.mrf.mxu0  ;;  %v5119_v53 = vpop.f32.mrf.mxu1 }
 0x1bc   : > { %v5071_v35 = vadd.f32 %v5070_v51, %v5022_v12  ;;  %v1051_v12 = vpack.c.bf16 %v1049_v26, %v1049_v26  ;;  %v6319_v26 = vld [vmem:[#allocation3 + $0x340] sm:$0xf0] }
 0x1be   : > { %5265 = vmatmul.bf16.gmra.mxu0 %v6182_v40  ;;  %5314 = vmatmul.bf16.gmra.mxu1 %v6186_v31  ;;  %v8727_v43 = vadd.f32 %v5119_v53, %v5071_v35  ;;  %v7374_v40 = vld [vmem:[%s648_s18] sm:$0xff]   ;;  %v6258_v53 = vor.u32 %v7151_v58, %v6255_v62 }
 0x1bf   : > { %v4974_v48 = vpop.f32.mrf.mxu2  ;;  %v5023_v25 = vpop.f32.mrf.mxu3  ;;  %v7375_v31 = vunpack.c.l.bf16 %v7374_v40  ;;  %v7376_v32 = vunpack.c.h.bf16 %v7374_v40  ;;  %v7177_v40 = vld [vmem:[#allocation3 + $0x33c] sm:$0xf0] }
 0x1c0   : > { %v4975_v2 = vadd.f32 %v4974_v48, %v8507_v50  ;;  %v7355_v50 = vld [vmem:[%s9072_s6 + $0x450] sm:$0xff] }
 0x1c1   : > { %5492 = vmatpush.bf16.msra.mxu1 %v7355_v50  ;;  %v1352_v0 = vmul.f32 %v7375_v31, %v1048_v45  ;;  %v6317_v50 = vld [vmem:[#allocation3 + $0x2f8] sm:$0xf]  ;;  %v1067_v31 = vor.u32 %v1065_v14, %v8759_v16 }
 0x1c2   : > { %v5024_v55 = vadd.f32 %v5023_v25, %v4975_v2  ;;  %v1054_v2 = vshrl.u32 %v1051_v12, 16 }
 0x1c3   : > { %v5072_v18 = vpop.f32.mrf.mxu0  ;;  %v5121_v38 = vpop.f32.mrf.mxu1 }
 0x1c4   : > { %5172 = vmatmul.bf16.gmra.mxu2 %v6246_v7  ;;  %5221 = vmatmul.bf16.gmra.mxu3 %v6250_v41  ;;  %v5073_v10 = vadd.f32 %v5072_v18, %v5024_v55  ;;  %v1353_v7 = vmul.f32 %v7376_v32, %v1048_v45  ;;  %v1354_v41 = vpack.c.bf16 %v1352_v0, %v1352_v0  ;;  %v1056_v42 = vrot.slane %v1054_v2, 7 }
 0x1c5   : > { %v2185_v18 = vsel %vm8077_vm6, %v5906_v23, %v2184_v34  ;;  %v1057_v55 = vshll.u32 %v1051_v12, 16  ;;  %v1074_v34 = vld [vmem:[#allocation2 + $0xd8] sm:$0xf]  ;;  %v6318_v23 = vor.u32 %v7177_v40, %v6317_v50  ;;  %v6327_v50 = vld [vmem:[#allocation3 + $0x348] sm:$0xf0] }
 0x1c6   : > { %v8746_v51 = vadd.f32 %v5121_v38, %v5073_v10  ;;  %v2188_v38 = vsel %vm8077_vm6, %v2186_v9, %v2187_v37  ;;  %2219 = vst [vmem:[#allocation3 + $0x418] sm:$0xff] %v2185_v18  ;;  %v1355_v11 = vpack.c.bf16 %v1353_v7, %v1353_v7  ;;  %v1357_v45 = vshrl.u32 %v1354_v41, 16  ;;  %v7168_v10 = vld [vmem:[#allocation3 + $0x2fc] sm:$0xf]  ;;  %v8773_v7 = vld [vmem:[#allocation2 + $0x38] sm:$0xff] }
 0x1c7   : > { %v4977_v4 = vpop.f32.mrf.mxu2  ;;  %v5026_v35 = vpop.f32.mrf.mxu3  ;;  %2220 = vst [vmem:[#allocation3 + $0x460] sm:$0xff] %v2188_v38  ;;  %v1360_v58 = vshll.u32 %v1354_v41, 16  ;;  %v1059_v22 = vor.u32 %v1057_v55, %v1056_v42  ;;  %v1060_v57 = vrot.slane %v1056_v42, 4  ;;  %v6322_v9 = vor.u32 %v7168_v10, %v6319_v26  ;;  %v6325_v38 = vld [vmem:[#allocation3 + $0x300] sm:$0xf] }
 0x1c8   : > { %v4978_v48 = vadd.f32 %v4977_v4, %v8530_v27  ;;  %v7338_v27 = vld [vmem:[%s9072_s6 + $0x3c8] sm:$0xff]  ;;  %v1365_v3 = vshrl.u32 %v1355_v11, 16  ;;  %v2288_v55 = vshll.u32 %v8773_v7, 16 }
 0x1c9   : > { %5395 = vmatpush.bf16.msra.mxu3 %v7338_v27  ;;  %v1075_v32 = vsel %vm7708_vm15, %v1059_v22, %v1074_v34  ;;  %v1068_v12 = vsel %vm7694_vm14, %v1060_v57, %v1067_v31  ;;  %v7169_v27 = vld [vmem:[#allocation3 + $0x304] sm:$0xf]  ;;  %v6326_v34 = vor.u32 %v7178_v61, %v6325_v38 }
 0x1ca   : > { %v5027_v47 = vadd.f32 %v5026_v35, %v4978_v48  ;;  %1076 = vst [vmem:[#allocation2 + $0xd8] sm:$0xf] %v1075_v32  ;;  %v8769_v48 = vrot.slane %v1365_v3, 7  ;;  %v2290_v40 = vrot.slane %v2288_v55, 5  ;;  %v2257_v55 = vld [vmem:[#allocation2 + $0x48] sm:$0xff] }
 0x1cb   : > { %v5075_v8 = vpop.f32.mrf.mxu0  ;;  %v5124_v25 = vpop.f32.mrf.mxu1  ;;  %1077 = vst [vmem:[#allocation2 + $0xe0] sm:$0xf] %v1068_v12 }
 0x1cc   : > { %v5076_v62 = vadd.f32 %v5075_v8, %v5027_v47  ;;  %v1376_v8 = vld [vmem:[#allocation2 + $0xdc] sm:$0xf]  ;;  %v7354_v47 = vld [vmem:[%s9072_s6 + $0x448] sm:$0xff] }
 0x1cd   : > { %5493 = vmatpush.bf16.msra.mxu1 %v7354_v47 }
 0x1ce   : > { %5270 = vmatmul.bf16.gmra.mxu0 %v6254_v59  ;;  %5319 = vmatmul.bf16.gmra.mxu1 %v6258_v53  ;;  %v1359_v59 = vrot.slane %v1357_v45, 7  ;;  %v8762_v44 = vadd.f32 %v5124_v25, %v5076_v62  ;;  %v1368_v53 = vshll.u32 %v1355_v11, 16  ;;  %v2254_v25 = vld [vmem:[#allocation2 + $0x30] sm:$0xff]  ;;  %v2256_v45 = vld [vmem:[#allocation2 + $0x40] sm:$0x11] }
 0x1cf   : > { %v4979_v52 = vpop.f32.mrf.mxu2  ;;  %v5028_v54 = vpop.f32.mrf.mxu3  ;;  %v2279_v41 = vshrl.u32 %v2254_v25, 16  ;;  %v2282_v42 = vshll.u32 %v2254_v25, 16  ;;  %v2298_v10 = vshll.u32 %v2256_v45, 16  ;;  %v7187_v45 = vld [vmem:[#allocation3 + $0x394] sm:$0xf] }
 0x1d0   : > { %v1362_v0 = vor.u32 %v1360_v58, %v1359_v59  ;;  %v1363_v4 = vrot.slane %v1359_v59, 4  ;;  %v4980_v35 = vadd.f32 %v4979_v52, %v8543_v28  ;;  %v7346_v28 = vld [vmem:[%s9072_s6 + $0x408] sm:$0xff]  ;;  %v1370_v60 = vor.u32 %v1368_v53, %v8769_v48 }
 0x1d1   : > { %v2281_v39 = vrot.slane %v2279_v41, 4  ;;  %v2292_v58 = vshrl.u32 %v8773_v7, 16  ;;  %5444 = vmatpush.bf16.msra.mxu0 %v7346_v28  ;;  %v2284_v62 = vrot.slane %v2282_v42, 5  ;;  %v6330_v59 = vor.u32 %v7169_v27, %v6327_v50  ;;  %v7195_v41 = vld [vmem:[#allocation3 + $0x3cc] sm:$0xf0] }
 0x1d2   : > { %v1377_v2 = vsel %vm7708_vm15, %v1362_v0, %v1376_v8  ;;  %v5029_v18 = vadd.f32 %v5028_v54, %v4980_v35  ;;  %v1371_v11 = vsel %vm7694_vm14, %v1363_v4, %v1370_v60  ;;  %v2300_v54 = vrot.slane %v2298_v10, 5  ;;  %v7329_v35 = vld [vmem:[%s9072_s6 + $0x380] sm:$0xff]  ;;  %v7186_v8 = vld [vmem:[#allocation3 + $0x38c] sm:$0xf]  ;;  %v7196_v50 = vld [vmem:[#allocation3 + $0x3d4] sm:$0xf0] }
 0x1d3   : > { %v5077_v37 = vpop.f32.mrf.mxu0  ;;  %v5126_v1 = vpop.f32.mrf.mxu1  ;;  %1378 = vst [vmem:[#allocation2 + $0xdc] sm:$0xf] %v1377_v2  ;;  %v2294_v57 = vrot.slane %v2292_v58, 4  ;;  %v2285_v3 = vor.u32 %v2284_v62, %v2281_v39  ;;  %5347 = vmatpush.bf16.msra.mxu2 %v7329_v35  ;;  %v7345_v58 = vld [vmem:[%s9072_s6 + $0x400] sm:$0xff]  ;;  %v2502_v10 = vld [vmem:[#allocation2 + $0x30] sm:$0xee] }
 0x1d4   : > { %5177 = vmatmul.bf16.gmra.mxu2 %v6318_v23  ;;  %5226 = vmatmul.bf16.gmra.mxu3 %v6322_v9  ;;  %v5078_v14 = vadd.f32 %v5077_v37, %v5029_v18  ;;  %1379 = vst [vmem:[#allocation2 + $0xe4] sm:$0xf] %v1371_v11  ;;  %v7337_v23 = vld [vmem:[%s9072_s6 + $0x3c0] sm:$0xff] }
 0x1d5   : > { %v2295_v52 = vor.u32 %v2294_v57, %v2290_v40  ;;  %v2286_v0 = vrot.slane %v2285_v3, 4  ;;  %5396 = vmatpush.bf16.msra.mxu3 %v7337_v23  ;;  %v6391_v18 = vld [vmem:[#allocation3 + $0x3d0] sm:$0xf0]  ;;  %v2303_v57 = vshrl.u32 %v2257_v55, 16  ;;  %5445 = vmatpush.bf16.msra.mxu0 %v7345_v58  ;;  %v5907_v3 = vrot.slane %v2502_v10, 9 }
 0x1d6   : > { %v8786_v22 = vadd.f32 %v5126_v1, %v5078_v14  ;;  %v6389_v1 = vld [vmem:[#allocation3 + $0x388] sm:$0xf]  ;;  %v6394_v27 = vor.u32 %v7186_v8, %v6391_v18  ;;  %v6397_v14 = vld [vmem:[#allocation3 + $0x390] sm:$0xf] }
 0x1d7   : > { %v4982_v26 = vpop.f32.mrf.mxu2  ;;  %v5031_v31 = vpop.f32.mrf.mxu3  ;;  %v2296_v9 = vrot.slane %v2295_v52, 4  ;;  %v6390_v60 = vor.u32 %v7195_v41, %v6389_v1  ;;  %v7353_v62 = vld [vmem:[%s9072_s6 + $0x440] sm:$0xff]  ;;  %v2305_v23 = vrot.slane %v2303_v57, 4 }
 0x1d8   : > { %v4983_v30 = vadd.f32 %v4982_v26, %v8560_v19  ;;  %v2291_v19 = vsel %vm8051_vm2, %v2286_v0, %v2290_v40  ;;  %v2552_v40 = vrot.slane %v8773_v7, 5  ;;  %v2306_v26 = vshll.u32 %v2257_v55, 16  ;;  %5494 = vmatpush.bf16.msra.mxu1 %v7353_v62  ;;  %v2259_v7 = vld [vmem:[#allocation2 + $0x58] sm:$0x11] }
 0x1d9   : > { %v2301_v2 = vsel %vm8051_vm2, %v2296_v9, %v2300_v54  ;;  %2486 = vst [vmem:[#allocation3 + $0x38] sm:$0xff] %v2291_v19  ;;  %v2322_v18 = vshll.u32 %v2259_v7, 16 }
 0x1da   : > { %v8789_v12 = vld [vmem:[#allocation2 + $0xd8] sm:$0xff]  ;;  %v5032_v4 = vadd.f32 %v5031_v31, %v4983_v30  ;;  %2487 = vst [vmem:[#allocation3 + $0x80] sm:$0xff] %v2301_v2  ;;  %v2554_v30 = vrot.slane %v2552_v40, 4  ;;  %v2553_v35 = vsel %vm8077_vm6, %v5907_v3, %v2552_v40  ;;  %v2308_v9 = vrot.slane %v2306_v26, 5 }
 0x1db   : > { %v5080_v32 = vpop.f32.mrf.mxu0  ;;  %v5129_v53 = vpop.f32.mrf.mxu1  ;;  %2252 = vst [vmem:[#allocation3 + $0x420] sm:$0xff] %v8789_v12  ;;  %v8800_v25 = vld [vmem:[#allocation2 + $0xe0] sm:$0xff]  ;;  %v2324_v55 = vrot.slane %v2322_v18, 5 }
 0x1dc   : > { %v5081_v37 = vadd.f32 %v5080_v32, %v5032_v4  ;;  %2253 = vst [vmem:[#allocation3 + $0x468] sm:$0xff] %v8800_v25 }
 0x1dd   : > { %2622 = vst [vmem:[#allocation3 + $0x40] sm:$0xff] %v2553_v35 }
 0x1de   : > { %5275 = vmatmul.bf16.gmra.mxu0 %v6326_v34  ;;  %5324 = vmatmul.bf16.gmra.mxu1 %v6330_v59  ;;  %v8805_v38 = vadd.f32 %v5129_v53, %v5081_v37  ;;  %v2504_v34 = vld [vmem:[#allocation2 + $0x40] sm:$0x11]  ;;  %v8815_v59 = vld [vmem:[#allocation2 + $0x50] sm:$0xff]  ;;  %v6398_v53 = vor.u32 %v7196_v50, %v6397_v14  ;;  %v7204_v50 = vld [vmem:[#allocation3 + $0x41c] sm:$0xf] }
 0x1df   : > { %v4984_v61 = vpop.f32.mrf.mxu2  ;;  %v5033_v28 = vpop.f32.mrf.mxu3  ;;  %v2555_v54 = vrot.slane %v2504_v34, 5  ;;  %v2312_v19 = vshll.u32 %v8815_v59, 16  ;;  %v2316_v41 = vshrl.u32 %v8815_v59, 16  ;;  %v7213_v14 = vld [vmem:[#allocation3 + $0x45c] sm:$0xf0] }
 0x1e0   : > { %v4985_v47 = vadd.f32 %v4984_v61, %v8570_v29  ;;  %v6399_v29 = vld [vmem:[#allocation3 + $0x3d8] sm:$0xf0]  ;;  %v2309_v61 = vor.u32 %v2308_v9, %v2305_v23 }
 0x1e1   : > { %v6402_v52 = vor.u32 %v7187_v45, %v6399_v29  ;;  %v2556_v2 = vsel %vm8077_vm6, %v2554_v30, %v2555_v54  ;;  %v2260_v30 = vld [vmem:[#allocation2 + $0x60] sm:$0xff] }
 0x1e2   : > { %v5034_v11 = vadd.f32 %v5033_v28, %v4985_v47  ;;  %2623 = vst [vmem:[#allocation3 + $0x88] sm:$0xff] %v2556_v2  ;;  %v2314_v28 = vrot.slane %v2312_v19, 5  ;;  %v2330_v54 = vshll.u32 %v2260_v30, 16  ;;  %v7205_v35 = vld [vmem:[#allocation3 + $0x424] sm:$0xf] }
 0x1e3   : > { %v5082_v39 = vpop.f32.mrf.mxu0  ;;  %v5131_v42 = vpop.f32.mrf.mxu1  ;;  %v6471_v23 = vld [vmem:[#allocation3 + $0x468] sm:$0xf0] }
 0x1e4   : > { %5182 = vmatmul.bf16.gmra.mxu2 %v6390_v60  ;;  %5231 = vmatmul.bf16.gmra.mxu3 %v6394_v27  ;;  %v5083_v31 = vadd.f32 %v5082_v39, %v5034_v11  ;;  %v2318_v60 = vrot.slane %v2316_v41, 4  ;;  %v2310_v27 = vrot.slane %v2309_v61, 4  ;;  %v6463_v11 = vld [vmem:[#allocation3 + $0x460] sm:$0xf0]  ;;  %v2332_v2 = vrot.slane %v2330_v54, 5 }
 0x1e5   : > { %v6466_v26 = vor.u32 %v7204_v50, %v6463_v11  ;;  %v5973_v54 = vld [vmem:[#allocation3 + $0x38] sm:$0xf] }
 0x1e6   : > { %v8817_v32 = vadd.f32 %v5131_v42, %v5083_v31  ;;  %v6461_v42 = vld [vmem:[#allocation3 + $0x418] sm:$0xf]  ;;  %v2315_v45 = vsel %vm8051_vm2, %v2310_v27, %v2314_v28 }
 0x1e7   : > { %v4987_v0 = vpop.f32.mrf.mxu2  ;;  %v5036_v4 = vpop.f32.mrf.mxu3  ;;  %2488 = vst [vmem:[#allocation3 + $0xc8] sm:$0xff] %v2315_v45  ;;  %v6462_v57 = vor.u32 %v7213_v14, %v6461_v42  ;;  %v6474_v45 = vor.u32 %v7205_v35, %v6471_v23 }
 0x1e8   : > { %v4988_v37 = vadd.f32 %v4987_v0, %v8583_v5  ;;  %v2319_v5 = vor.u32 %v2318_v60, %v2314_v28  ;;  %v6469_v0 = vld [vmem:[#allocation3 + $0x420] sm:$0xf] }
 0x1ea   : > { %v5037_v47 = vadd.f32 %v5036_v4, %v4988_v37  ;;  %v2320_v62 = vrot.slane %v2319_v5, 4  ;;  %v7214_v4 = vld [vmem:[#allocation3 + $0x464] sm:$0xf0]  ;;  %v2505_v37 = vld [vmem:[#allocation2 + $0x48] sm:$0xee] }
 0x1eb   : > { %v5085_v1 = vpop.f32.mrf.mxu0  ;;  %v5134_v8 = vpop.f32.mrf.mxu1  ;;  %v5908_v18 = vrot.slane %v2505_v37, 9  ;;  %v6470_v11 = vor.u32 %v7214_v4, %v6469_v0  ;;  %v5975_v0 = vld [vmem:[#allocation3 + $0x80] sm:$0xf0] }
 0x1ec   : > { %v5086_v39 = vadd.f32 %v5085_v1, %v5037_v47  ;;  %v2325_v3 = vsel %vm8051_vm2, %v2320_v62, %v2324_v55  ;;  %v2507_v1 = vld [vmem:[#allocation2 + $0x58] sm:$0x11]  ;;  %v2262_v47 = vld [vmem:[#allocation2 + $0x70] sm:$0x11] }
 0x1ed   : > { %2489 = vst [vmem:[#allocation3 + $0x110] sm:$0xff] %v2325_v3  ;;  %v2562_v28 = vrot.slane %v2507_v1, 5  ;;  %v2346_v55 = vshll.u32 %v2262_v47, 16 }
 0x1ee   : > { %5280 = vmatmul.bf16.gmra.mxu0 %v6398_v53  ;;  %5329 = vmatmul.bf16.gmra.mxu1 %v6402_v52  ;;  %v8828_v58 = vadd.f32 %v5134_v8, %v5086_v39  ;;  %v8833_v53 = vld [vmem:[#allocation2 + $0x68] sm:$0xff]  ;;  %v2327_v52 = vshrl.u32 %v2260_v30, 16 }
 0x1ef   : > { %v4989_v40 = vpop.f32.mrf.mxu2  ;;  %v5038_v29 = vpop.f32.mrf.mxu3  ;;  %v2336_v9 = vshll.u32 %v8833_v53, 16  ;;  %v2340_v19 = vshrl.u32 %v8833_v53, 16 }
 0x1f0   : > { %v4990_v10 = vadd.f32 %v4989_v40, %v8592_v49  ;;  %v2559_v49 = vrot.slane %v8815_v59, 5  ;;  %v2329_v8 = vrot.slane %v2327_v52, 4 }
 0x1f1   : > { %v2338_v27 = vrot.slane %v2336_v9, 5  ;;  %v2342_v39 = vrot.slane %v2340_v19, 4 }
 0x1f2   : > { %v5039_v7 = vadd.f32 %v5038_v29, %v4990_v10  ;;  %v2561_v61 = vrot.slane %v2559_v49, 4  ;;  %v2333_v60 = vor.u32 %v2332_v2, %v2329_v8  ;;  %v2560_v59 = vsel %vm8077_vm6, %v5908_v18, %v2559_v49  ;;  %v2263_v8 = vld [vmem:[#allocation2 + $0x78] sm:$0xff]  ;;  %v8852_v2 = vld [vmem:[#allocation2 + $0x80] sm:$0xff] }
 0x1f3   : > { %v5087_v31 = vpop.f32.mrf.mxu0  ;;  %v5136_v34 = vpop.f32.mrf.mxu1  ;;  %2624 = vst [vmem:[#allocation3 + $0xd0] sm:$0xff] %v2560_v59  ;;  %v2343_v40 = vor.u32 %v2342_v39, %v2338_v27  ;;  %v7090_v18 = vld [vmem:[#allocation3 + $0x84] sm:$0xf0]  ;;  %v2364_v39 = vshrl.u32 %v8852_v2, 16  ;;  %v7081_v59 = vld [vmem:[#allocation3 + $0x44] sm:$0xf] }
 0x1f4   : > { %5187 = vmatmul.bf16.gmra.mxu2 %v6462_v57  ;;  %5236 = vmatmul.bf16.gmra.mxu3 %v6466_v26  ;;  %v5088_v41 = vadd.f32 %v5087_v31, %v5039_v7  ;;  %v2563_v5 = vsel %vm8077_vm6, %v2561_v61, %v2562_v28  ;;  %v2334_v62 = vrot.slane %v2333_v60, 4  ;;  %v2348_v26 = vrot.slane %v2346_v55, 5  ;;  %v7089_v7 = vld [vmem:[#allocation3 + $0x7c] sm:$0xf0] }
 0x1f5   : > { %2625 = vst [vmem:[#allocation3 + $0x118] sm:$0xff] %v2563_v5  ;;  %v5974_v9 = vor.u32 %v7089_v7, %v5973_v54  ;;  %v2351_v61 = vshrl.u32 %v2263_v8, 16  ;;  %v2354_v28 = vshll.u32 %v2263_v8, 16  ;;  %v2566_v60 = vrot.slane %v8833_v53, 5  ;;  %v2508_v5 = vld [vmem:[#allocation2 + $0x60] sm:$0xee] }
 0x1f6   : > { %v8838_v42 = vadd.f32 %v5136_v34, %v5088_v41  ;;  %v2339_v31 = vsel %vm8051_vm2, %v2334_v62, %v2338_v27  ;;  %v2344_v34 = vrot.slane %v2343_v40, 4  ;;  %v5981_v41 = vld [vmem:[#allocation3 + $0x40] sm:$0xf]  ;;  %v2360_v27 = vshll.u32 %v8852_v2, 16 }
 0x1f7   : > { %v4992_v14 = vpop.f32.mrf.mxu2  ;;  %v5041_v50 = vpop.f32.mrf.mxu3  ;;  %2490 = vst [vmem:[#allocation3 + $0x158] sm:$0xff] %v2339_v31  ;;  %v2568_v62 = vrot.slane %v2566_v60, 4  ;;  %v2366_v31 = vrot.slane %v2364_v39, 4 }
 0x1f8   : > { %v4993_v29 = vadd.f32 %v4992_v14, %v8605_v36  ;;  %v2349_v30 = vsel %vm8051_vm2, %v2344_v34, %v2348_v26  ;;  %v7080_v36 = vld [vmem:[#allocation3 + $0x3c] sm:$0xf]  ;;  %v5982_v14 = vor.u32 %v7090_v18, %v5981_v41  ;;  %v2362_v26 = vrot.slane %v2360_v27, 5  ;;  %v6045_v41 = vld [vmem:[#allocation3 + $0xc8] sm:$0xf] }
 0x1f9   : > { %2491 = vst [vmem:[#allocation3 + $0x1a0] sm:$0xff] %v2349_v30  ;;  %v5978_v19 = vor.u32 %v7080_v36, %v5975_v0  ;;  %v7098_v18 = vld [vmem:[#allocation3 + $0xcc] sm:$0xf] }
 0x1fa   : > { %v5042_v3 = vadd.f32 %v5041_v50, %v4993_v29  ;;  %v2510_v50 = vld [vmem:[#allocation2 + $0x70] sm:$0x11]  ;;  %v2353_v29 = vrot.slane %v2351_v61, 4 }
 0x1fb   : > { %v5090_v10 = vpop.f32.mrf.mxu0  ;;  %v5139_v57 = vpop.f32.mrf.mxu1  ;;  %v2569_v40 = vrot.slane %v2510_v50, 5  ;;  %v8871_v50 = vld [vmem:[#allocation2 + $0x98] sm:$0xff] }
 0x1fc   : > { %v5091_v52 = vadd.f32 %v5090_v10, %v5042_v3  ;;  %v2356_v10 = vrot.slane %v2354_v28, 5  ;;  %v6047_v28 = vld [vmem:[#allocation3 + $0x110] sm:$0xf0] }
 0x1fe   : > { %5285 = vmatmul.bf16.gmra.mxu0 %v6470_v11  ;;  %5334 = vmatmul.bf16.gmra.mxu1 %v6474_v45  ;;  %v8849_v4 = vadd.f32 %v5139_v57, %v5091_v52  ;;  %v5909_v11 = vrot.slane %v2508_v5, 9  ;;  %v2265_v45 = vld [vmem:[#allocation2 + $0x88] sm:$0x11]  ;;  %v2570_v52 = vsel %vm8077_vm6, %v2568_v62, %v2569_v40  ;;  %v2357_v54 = vor.u32 %v2356_v10, %v2353_v29  ;;  %v7099_v62 = vld [vmem:[#allocation3 + $0xd4] sm:$0xf] }
 0x1ff   : > { %v4994_v35 = vpop.f32.mrf.mxu2  ;;  %v5043_v23 = vpop.f32.mrf.mxu3  ;;  %v2370_v7 = vshll.u32 %v2265_v45, 16  ;;  %2627 = vst [vmem:[#allocation3 + $0x1a8] sm:$0xff] %v2570_v52  ;;  %v7108_v45 = vld [vmem:[#allocation3 + $0x114] sm:$0xf0]  ;;  %v6055_v29 = vld [vmem:[#allocation3 + $0x118] sm:$0xf0] }
 0x200   : > { %v4995_v49 = vadd.f32 %v4994_v35, %v8614_v46  ;;  %v5983_v46 = vld [vmem:[#allocation3 + $0x88] sm:$0xf0]  ;;  %v2567_v53 = vsel %vm8077_vm6, %v5909_v11, %v2566_v60  ;;  %v6053_v11 = vld [vmem:[#allocation3 + $0xd0] sm:$0xf]  ;;  %v2573_v10 = vrot.slane %v8852_v2, 5 }
 0x201   : > { %v5986_v30 = vor.u32 %v7081_v59, %v5983_v46  ;;  %2626 = vst [vmem:[#allocation3 + $0x160] sm:$0xff] %v2567_v53  ;;  %v6050_v46 = vor.u32 %v7098_v18, %v6047_v28  ;;  %v6054_v52 = vor.u32 %v7108_v45, %v6053_v11  ;;  %v7116_v11 = vld [vmem:[#allocation3 + $0x15c] sm:$0xf]  ;;  %v7125_v45 = vld [vmem:[#allocation3 + $0x19c] sm:$0xf0] }
 0x202   : > { %v5044_v47 = vadd.f32 %v5043_v23, %v4995_v49  ;;  %v2367_v23 = vor.u32 %v2366_v31, %v2362_v26  ;;  %v2358_v49 = vrot.slane %v2357_v54, 4  ;;  %v2511_v31 = vld [vmem:[#allocation2 + $0x78] sm:$0xee]  ;;  %v6058_v54 = vor.u32 %v7099_v62, %v6055_v29  ;;  %v6119_v62 = vld [vmem:[#allocation3 + $0x1a0] sm:$0xf0] }
 0x203   : > { %v5092_v37 = vpop.f32.mrf.mxu0  ;;  %v5141_v1 = vpop.f32.mrf.mxu1 }
 0x204   : > { %5348 = vmatmul.bf16.vlgmr.msra.gmra.mxu2 %v5974_v9  ;;  %5397 = vmatmul.bf16.vlgmr.msra.gmra.mxu3 %v5978_v19  ;;  %v5093_v55 = vadd.f32 %v5092_v37, %v5044_v47  ;;  %v2372_v9 = vrot.slane %v2370_v7, 5  ;;  %v2368_v37 = vrot.slane %v2367_v23, 4  ;;  %v5910_v7 = vrot.slane %v2511_v31, 9 }
 0x206   : > { %v8857_v57 = vadd.f32 %v5141_v1, %v5093_v55  ;;  %v2363_v1 = vsel %vm8051_vm2, %v2358_v49, %v2362_v26  ;;  %v2373_v61 = vsel %vm8051_vm2, %v2368_v37, %v2372_v9  ;;  %v2574_v37 = vsel %vm8077_vm6, %v5910_v7, %v2573_v10 }
 0x207   : > { %v5153_v34 = vpop.f32.mrf.mxu2  ;;  %v5202_v3 = vpop.f32.mrf.mxu3  ;;  %2492 = vst [vmem:[#allocation3 + $0x1e8] sm:$0xff] %v2363_v1 }
 0x208   : > { %v5154_v36 = vadd.f32 %v5153_v34, %v8627_v63  ;;  %v7107_v63 = vld [vmem:[#allocation3 + $0x10c] sm:$0xf0]  ;;  %2493 = vst [vmem:[#allocation3 + $0x230] sm:$0xff] %v2373_v61  ;;  %v2384_v34 = vshll.u32 %v8871_v50, 16  ;;  %v7117_v7 = vld [vmem:[#allocation3 + $0x164] sm:$0xf] }
 0x209   : > { %v6046_v59 = vor.u32 %v7107_v63, %v6045_v41  ;;  %2628 = vst [vmem:[#allocation3 + $0x1f0] sm:$0xff] %v2574_v37  ;;  %v2514_v37 = vld [vmem:[#allocation2 + $0x90] sm:$0xee] }
 0x20a   : > { %v5203_v19 = vadd.f32 %v5202_v3, %v5154_v36  ;;  %v2575_v36 = vrot.slane %v2573_v10, 4  ;;  %v2386_v1 = vrot.slane %v2384_v34, 5  ;;  %v6122_v34 = vor.u32 %v7116_v11, %v6119_v62 }
 0x20b   : > { %v5251_v0 = vpop.f32.mrf.mxu0  ;;  %v5300_v35 = vpop.f32.mrf.mxu1 }
 0x20c   : > { %v5252_v8 = vadd.f32 %v5251_v0, %v5203_v19  ;;  %v2268_v0 = vld [vmem:[#allocation2 + $0xa0] sm:$0x11] }
 0x20d   : > { %v2394_v41 = vshll.u32 %v2268_v0, 16 }
 0x20e   : > { %5446 = vmatmul.bf16.vlgmr.msra.gmra.mxu0 %v5982_v14  ;;  %5495 = vmatmul.bf16.vlgmr.msra.gmra.mxu1 %v5986_v30  ;;  %v8868_v47 = vadd.f32 %v5300_v35, %v5252_v8  ;;  %v2266_v14 = vld [vmem:[#allocation2 + $0x90] sm:$0xff]  ;;  %v2513_v30 = vld [vmem:[#allocation2 + $0x88] sm:$0x11] }
 0x20f   : > { %v5155_v60 = vpop.f32.mrf.mxu2  ;;  %v5204_v27 = vpop.f32.mrf.mxu3  ;;  %v2375_v53 = vshrl.u32 %v2266_v14, 16  ;;  %v2378_v26 = vshll.u32 %v2266_v14, 16  ;;  %v2576_v23 = vrot.slane %v2513_v30, 5  ;;  %v6117_v14 = vld [vmem:[#allocation3 + $0x158] sm:$0xf] }
 0x210   : > { %v5156_v39 = vadd.f32 %v5155_v60, %v8636_v21  ;;  %v2388_v21 = vshrl.u32 %v8871_v50, 16  ;;  %v6118_v31 = vor.u32 %v7125_v45, %v6117_v14  ;;  %v2269_v30 = vld [vmem:[#allocation2 + $0xa8] sm:$0xff] }
 0x211   : > { %v2377_v2 = vrot.slane %v2375_v53, 4  ;;  %v2380_v49 = vrot.slane %v2378_v26, 5  ;;  %v2577_v28 = vsel %vm8077_vm6, %v2575_v36, %v2576_v23  ;;  %v8890_v36 = vld [vmem:[#allocation2 + $0xb0] sm:$0xff]  ;;  %v2399_v0 = vshrl.u32 %v2269_v30, 16 }
 0x212   : > { %v5205_v40 = vadd.f32 %v5204_v27, %v5156_v39  ;;  %v2390_v8 = vrot.slane %v2388_v21, 4  ;;  %2629 = vst [vmem:[#allocation3 + $0x238] sm:$0xff] %v2577_v28  ;;  %v2396_v39 = vrot.slane %v2394_v41, 5  ;;  %v2402_v23 = vshll.u32 %v2269_v30, 16 }
 0x213   : > { %v5253_v5 = vpop.f32.mrf.mxu0  ;;  %v5302_v55 = vpop.f32.mrf.mxu1  ;;  %v2381_v60 = vor.u32 %v2380_v49, %v2377_v2  ;;  %v6127_v49 = vld [vmem:[#allocation3 + $0x1a8] sm:$0xf0] }
 0x214   : > { %5353 = vmatmul.bf16.gmra.mxu2 %v6046_v59  ;;  %5402 = vmatmul.bf16.gmra.mxu3 %v6050_v46  ;;  %v5254_v3 = vadd.f32 %v5253_v5, %v5205_v40  ;;  %v2391_v27 = vor.u32 %v2390_v8, %v2386_v1  ;;  %v2401_v8 = vrot.slane %v2399_v0, 4  ;;  %v2404_v41 = vrot.slane %v2402_v23, 5  ;;  %v6191_v0 = vld [vmem:[#allocation3 + $0x230] sm:$0xf0] }
 0x215   : > { %v2382_v46 = vrot.slane %v2381_v60, 4 }
 0x216   : > { %v8876_v35 = vadd.f32 %v5302_v55, %v5254_v3  ;;  %v2392_v5 = vrot.slane %v2391_v27, 4  ;;  %v2405_v60 = vor.u32 %v2404_v41, %v2401_v8  ;;  %v2272_v8 = vld [vmem:[#allocation2 + $0xc0] sm:$0xff]  ;;  %v8909_v41 = vld [vmem:[#allocation2 + $0xc8] sm:$0xff] }
 0x217   : > { %v5158_v9 = vpop.f32.mrf.mxu2  ;;  %v5207_v19 = vpop.f32.mrf.mxu3 }
 0x218   : > { %v5159_v18 = vadd.f32 %v5158_v9, %v8652_v24  ;;  %v2387_v24 = vsel %vm8051_vm2, %v2382_v46, %v2386_v1  ;;  %v2397_v40 = vsel %vm8051_vm2, %v2392_v5, %v2396_v39  ;;  %v2580_v9 = vrot.slane %v8871_v50, 5  ;;  %v2516_v1 = vld [vmem:[#allocation2 + $0xa0] sm:$0x11]  ;;  %v2271_v5 = vld [vmem:[#allocation2 + $0xb8] sm:$0x11] }
 0x219   : > { %2494 = vst [vmem:[#allocation3 + $0x278] sm:$0xff] %v2387_v24  ;;  %v2583_v28 = vrot.slane %v2516_v1, 5  ;;  %v6130_v50 = vor.u32 %v7117_v7, %v6127_v49  ;;  %v2406_v24 = vrot.slane %v2405_v60, 4  ;;  %v2418_v62 = vshll.u32 %v2271_v5, 16  ;;  %v7134_v7 = vld [vmem:[#allocation3 + $0x1ec] sm:$0xf] }
 0x21a   : > { %v5208_v59 = vadd.f32 %v5207_v19, %v5159_v18  ;;  %2495 = vst [vmem:[#allocation3 + $0x2c0] sm:$0xff] %v2397_v40  ;;  %v2408_v19 = vshll.u32 %v8890_v36, 16  ;;  %v2426_v60 = vshll.u32 %v2272_v8, 16  ;;  %v2517_v5 = vld [vmem:[#allocation2 + $0xa8] sm:$0xee] }
 0x21b   : > { %v5256_v61 = vpop.f32.mrf.mxu0  ;;  %v5305_v63 = vpop.f32.mrf.mxu1 }
 0x21c   : > { %v5257_v55 = vadd.f32 %v5256_v61, %v5208_v59  ;;  %v5911_v61 = vrot.slane %v2514_v37, 9  ;;  %v2410_v27 = vrot.slane %v2408_v19, 5 }
 0x21e   : > { %5451 = vmatmul.bf16.gmra.mxu0 %v6054_v52  ;;  %5500 = vmatmul.bf16.gmra.mxu1 %v6058_v54  ;;  %v8887_v29 = vadd.f32 %v5305_v63, %v5257_v55  ;;  %v6125_v52 = vld [vmem:[#allocation3 + $0x160] sm:$0xf]  ;;  %v7126_v54 = vld [vmem:[#allocation3 + $0x1a4] sm:$0xf0]  ;;  %v2582_v63 = vrot.slane %v2580_v9, 4  ;;  %v2581_v46 = vsel %vm8077_vm6, %v5911_v61, %v2580_v9 }
 0x21f   : > { %v5160_v10 = vpop.f32.mrf.mxu2  ;;  %v5209_v53 = vpop.f32.mrf.mxu3  ;;  %v6126_v59 = vor.u32 %v7126_v54, %v6125_v52  ;;  %2630 = vst [vmem:[#allocation3 + $0x280] sm:$0xff] %v2581_v46  ;;  %v6189_v52 = vld [vmem:[#allocation3 + $0x1e8] sm:$0xf]  ;;  %v7143_v54 = vld [vmem:[#allocation3 + $0x22c] sm:$0xf0]  ;;  %v2432_v46 = vshll.u32 %v8909_v41, 16 }
 0x220   : > { %v5161_v26 = vadd.f32 %v5160_v10, %v8665_v13  ;;  %v2412_v13 = vshrl.u32 %v8890_v36, 16  ;;  %v2584_v11 = vsel %vm8077_vm6, %v2582_v63, %v2583_v28  ;;  %v6190_v19 = vor.u32 %v7143_v54, %v6189_v52  ;;  %v7144_v61 = vld [vmem:[#allocation3 + $0x234] sm:$0xf0]  ;;  %v7135_v63 = vld [vmem:[#allocation3 + $0x1f4] sm:$0xf] }
 0x221   : > { %2631 = vst [vmem:[#allocation3 + $0x2c8] sm:$0xff] %v2584_v11  ;;  %v2423_v28 = vshrl.u32 %v2272_v8, 16  ;;  %v2428_v11 = vrot.slane %v2426_v60, 5  ;;  %v6261_v17 = vld [vmem:[#allocation3 + $0x278] sm:$0xf] }
 0x222   : > { %v5210_v2 = vadd.f32 %v5209_v53, %v5161_v26  ;;  %v2414_v45 = vrot.slane %v2412_v13, 4  ;;  %v2411_v26 = vsel %vm8051_vm2, %v2406_v24, %v2410_v27  ;;  %v6194_v13 = vor.u32 %v7134_v7, %v6191_v0  ;;  %v7161_v60 = vld [vmem:[#allocation3 + $0x2bc] sm:$0xf0] }
 0x223   : > { %v5258_v21 = vpop.f32.mrf.mxu0  ;;  %v5307_v3 = vpop.f32.mrf.mxu1  ;;  %2496 = vst [vmem:[#allocation3 + $0x308] sm:$0xff] %v2411_v26  ;;  %v2434_v26 = vrot.slane %v2432_v46, 5 }
 0x224   : > { %5358 = vmatmul.bf16.gmra.mxu2 %v6118_v31  ;;  %5407 = vmatmul.bf16.gmra.mxu3 %v6122_v34  ;;  %v5259_v18 = vadd.f32 %v5258_v21, %v5210_v2  ;;  %v2415_v31 = vor.u32 %v2414_v45, %v2410_v27  ;;  %v2420_v34 = vrot.slane %v2418_v62, 5  ;;  %v5912_v45 = vrot.slane %v2517_v5, 9 }
 0x226   : > { %v8895_v39 = vadd.f32 %v5307_v3, %v5259_v18  ;;  %v2416_v3 = vrot.slane %v2415_v31, 4  ;;  %v6197_v18 = vld [vmem:[#allocation3 + $0x1f0] sm:$0xf] }
 0x227   : > { %v5163_v55 = vpop.f32.mrf.mxu2  ;;  %v5212_v14 = vpop.f32.mrf.mxu3 }
 0x228   : > { %v5164_v40 = vadd.f32 %v5163_v55, %v8690_v20  ;;  %v2421_v20 = vsel %vm8051_vm2, %v2416_v3, %v2420_v34  ;;  %v2519_v55 = vld [vmem:[#allocation2 + $0xb8] sm:$0x11]  ;;  %v760_v34 = vld [vmem:[#allocation2 + $0xe8] sm:$0x11] }
 0x229   : > { %2497 = vst [vmem:[#allocation3 + $0x350] sm:$0xff] %v2421_v20 }
 0x22a   : > { %v5213_v21 = vadd.f32 %v5212_v14, %v5164_v40  ;;  %v2425_v14 = vrot.slane %v2423_v28, 4  ;;  %v2590_v40 = vrot.slane %v2519_v55, 5  ;;  %v6262_v55 = vor.u32 %v7161_v60, %v6261_v17 }
 0x22b   : > { %v5261_v10 = vpop.f32.mrf.mxu0  ;;  %v5310_v53 = vpop.f32.mrf.mxu1 }
 0x22c   : > { %v5262_v30 = vadd.f32 %v5261_v10, %v5213_v21  ;;  %v2274_v10 = vld [vmem:[#allocation2 + $0xd0] sm:$0x11]  ;;  %v6198_v21 = vor.u32 %v7144_v61, %v6197_v18 }
 0x22e   : > { %5456 = vmatmul.bf16.gmra.mxu0 %v6126_v59  ;;  %5505 = vmatmul.bf16.gmra.mxu1 %v6130_v50  ;;  %v8906_v23 = vadd.f32 %v5310_v53, %v5262_v30  ;;  %v6199_v59 = vld [vmem:[#allocation3 + $0x238] sm:$0xf0]  ;;  %v2587_v50 = vrot.slane %v8890_v36, 5  ;;  %v2429_v53 = vor.u32 %v2428_v11, %v2425_v14 }
 0x22f   : > { %v5165_v2 = vpop.f32.mrf.mxu2  ;;  %v5214_v49 = vpop.f32.mrf.mxu3  ;;  %v6202_v3 = vor.u32 %v7135_v63, %v6199_v59  ;;  %v1372_v63 = vrot.slane %v8769_v48, 4  ;;  %v6263_v59 = vld [vmem:[#allocation3 + $0x2c0] sm:$0xf0] }
 0x230   : > { %v5166_v9 = vadd.f32 %v5165_v2, %v8710_v33  ;;  %v2436_v33 = vshrl.u32 %v8909_v41, 16  ;;  %v2589_v62 = vrot.slane %v2587_v50, 4  ;;  %v2588_v30 = vsel %vm8077_vm6, %v5912_v45, %v2587_v50 }
 0x231   : > { %2632 = vst [vmem:[#allocation3 + $0x310] sm:$0xff] %v2588_v30  ;;  %v2430_v0 = vrot.slane %v2429_v53, 4  ;;  %v2442_v2 = vshll.u32 %v2274_v10, 16  ;;  %v2450_v10 = vshll.u32 %v8789_v12, 16  ;;  %v2520_v30 = vld [vmem:[#allocation2 + $0xc0] sm:$0xee] }
 0x232   : > { %v5215_v27 = vadd.f32 %v5214_v49, %v5166_v9  ;;  %v2438_v31 = vrot.slane %v2436_v33, 4  ;;  %v2591_v7 = vsel %vm8077_vm6, %v2589_v62, %v2590_v40  ;;  %v2447_v40 = vshrl.u32 %v8789_v12, 16 }
 0x233   : > { %v5263_v37 = vpop.f32.mrf.mxu0  ;;  %v5312_v1 = vpop.f32.mrf.mxu1  ;;  %2633 = vst [vmem:[#allocation3 + $0x358] sm:$0xff] %v2591_v7  ;;  %v2444_v8 = vrot.slane %v2442_v2, 5  ;;  %v5913_v7 = vrot.slane %v2520_v30, 9  ;;  %v2452_v2 = vrot.slane %v2450_v10, 5 }
 0x234   : > { %5363 = vmatmul.bf16.gmra.mxu2 %v6190_v19  ;;  %5412 = vmatmul.bf16.gmra.mxu3 %v6194_v13  ;;  %v5264_v24 = vadd.f32 %v5263_v37, %v5215_v27  ;;  %v2439_v20 = vor.u32 %v2438_v31, %v2434_v26  ;;  %v761_v13 = vsel %vm7677_vm13, 0, %v760_v34  ;;  %v2435_v37 = vsel %vm8051_vm2, %v2430_v0, %v2434_v26  ;;  %v7152_v27 = vld [vmem:[#allocation3 + $0x27c] sm:$0xf]  ;;  %v6269_v26 = vld [vmem:[#allocation3 + $0x280] sm:$0xf] }
 0x235   : > { %762 = vst [vmem:[#allocation2 + $0xe8] sm:$0x11] %v761_v13  ;;  %v6266_v14 = vor.u32 %v7152_v27, %v6263_v59  ;;  %v2456_v31 = vshll.u32 %v8800_v25, 16  ;;  %v2460_v34 = vshrl.u32 %v8800_v25, 16  ;;  %v6333_v27 = vld [vmem:[#allocation3 + $0x308] sm:$0xf] }
 0x236   : > { %v8914_v36 = vadd.f32 %v5312_v1, %v5264_v24  ;;  %v2440_v1 = vrot.slane %v2439_v20, 4  ;;  %2498 = vst [vmem:[#allocation3 + $0x398] sm:$0xff] %v2435_v37  ;;  %v2449_v20 = vrot.slane %v2447_v40, 4 }
 0x237   : > { %v5168_v52 = vpop.f32.mrf.mxu2  ;;  %v5217_v54 = vpop.f32.mrf.mxu3  ;;  %v2458_v25 = vrot.slane %v2456_v31, 5  ;;  %v2524_v31 = vld [vmem:[#allocation2 + $0xe0] sm:$0xff] }
 0x238   : > { %v5169_v49 = vadd.f32 %v5168_v52, %v8727_v43  ;;  %v2445_v61 = vsel %vm8051_vm2, %v2440_v1, %v2444_v8  ;;  %v1069_v43 = vrot.slane %v8759_v16, 4  ;;  %v6271_v52 = vld [vmem:[#allocation3 + $0x2c8] sm:$0xf0] }
 0x239   : > { %2499 = vst [vmem:[#allocation3 + $0x3e0] sm:$0xff] %v2445_v61 }
 0x23a   : > { %v5218_v18 = vadd.f32 %v5217_v54, %v5169_v49  ;;  %v2522_v54 = vld [vmem:[#allocation2 + $0xd0] sm:$0x11]  ;;  %v7180_v30 = vld [vmem:[#allocation3 + $0x354] sm:$0xf0] }
 0x23b   : > { %v5266_v9 = vpop.f32.mrf.mxu0  ;;  %v5315_v19 = vpop.f32.mrf.mxu1  ;;  %v2597_v12 = vrot.slane %v2522_v54, 5 }
 0x23c   : > { %v5267_v28 = vadd.f32 %v5266_v9, %v5218_v18  ;;  %v1078_v45 = vld [vmem:[#allocation2 + $0xe8] sm:$0x1]  ;;  %v1380_v16 = vld [vmem:[#allocation2 + $0xec] sm:$0x1]  ;;  %v2462_v9 = vrot.slane %v2460_v34, 4  ;;  %v2453_v18 = vor.u32 %v2452_v2, %v2449_v20 }
 0x23d   : > { %v1079_v48 = vsel %vm7631_vm4, %v1069_v43, %v1078_v45  ;;  %v1381_v62 = vsel %vm7631_vm4, %v1372_v63, %v1380_v16 }
 0x23e   : > { %5461 = vmatmul.bf16.gmra.mxu0 %v6198_v21  ;;  %5510 = vmatmul.bf16.gmra.mxu1 %v6202_v3  ;;  %v8929_v50 = vadd.f32 %v5315_v19, %v5267_v28  ;;  %1080 = vst [vmem:[#allocation2 + $0xe8] sm:$0x1] %v1079_v48  ;;  %v7162_v21 = vld [vmem:[#allocation3 + $0x2c4] sm:$0xf0]  ;;  %v7153_v3 = vld [vmem:[#allocation3 + $0x284] sm:$0xf]  ;;  %v2463_v17 = vor.u32 %v2462_v9, %v2458_v25 }
 0x23f   : > { %v5170_v46 = vpop.f32.mrf.mxu2  ;;  %v5219_v33 = vpop.f32.mrf.mxu3  ;;  %1382 = vst [vmem:[#allocation2 + $0xec] sm:$0x1] %v1381_v62  ;;  %v6270_v37 = vor.u32 %v7162_v21, %v6269_v26  ;;  %v6274_v1 = vor.u32 %v7153_v3, %v6271_v52  ;;  %v2454_v28 = vrot.slane %v2453_v18, 4  ;;  %v6341_v21 = vld [vmem:[#allocation3 + $0x310] sm:$0xf]  ;;  %v2601_v3 = vrot.slane %v2524_v31, 5 }
 0x240   : > { %v5171_v5 = vadd.f32 %v5170_v46, %v8746_v51  ;;  %v2594_v51 = vrot.slane %v8909_v41, 5  ;;  %v2523_v52 = vld [vmem:[#allocation2 + $0xd8] sm:$0xee]  ;;  %v6342_v9 = vor.u32 %v7180_v30, %v6341_v21 }
 0x241   : > { %v2459_v59 = vsel %vm8051_vm2, %v2454_v28, %v2458_v25  ;;  %v7188_v28 = vld [vmem:[#allocation3 + $0x39c] sm:$0xf] }
 0x242   : > { %v5220_v53 = vadd.f32 %v5219_v33, %v5171_v5  ;;  %v2596_v0 = vrot.slane %v2594_v51, 4  ;;  %v2595_v49 = vsel %vm8077_vm6, %v5913_v7, %v2594_v51  ;;  %v7170_v33 = vld [vmem:[#allocation3 + $0x30c] sm:$0xf]  ;;  %2500 = vst [vmem:[#allocation3 + $0x428] sm:$0xff] %v2459_v59  ;;  %v6343_v7 = vld [vmem:[#allocation3 + $0x358] sm:$0xf0] }
 0x243   : > { %v5268_v11 = vpop.f32.mrf.mxu0  ;;  %v5317_v24 = vpop.f32.mrf.mxu1  ;;  %2634 = vst [vmem:[#allocation3 + $0x3a0] sm:$0xff] %v2595_v49 }
 0x244   : > { %5368 = vmatmul.bf16.gmra.mxu2 %v6262_v55  ;;  %5417 = vmatmul.bf16.gmra.mxu3 %v6266_v14  ;;  %v5269_v6 = vadd.f32 %v5268_v11, %v5220_v53  ;;  %v2598_v8 = vsel %vm8077_vm6, %v2596_v0, %v2597_v12  ;;  %v7179_v55 = vld [vmem:[#allocation3 + $0x34c] sm:$0xf0]  ;;  %v6335_v14 = vld [vmem:[#allocation3 + $0x350] sm:$0xf0]  ;;  %v2464_v11 = vrot.slane %v2463_v17, 4  ;;  %v5914_v0 = vrot.slane %v2523_v52, 9 }
 0x245   : > { %2635 = vst [vmem:[#allocation3 + $0x3e8] sm:$0xff] %v2598_v8  ;;  %v6334_v40 = vor.u32 %v7179_v55, %v6333_v27  ;;  %v6338_v10 = vor.u32 %v7170_v33, %v6335_v14  ;;  %v2603_v12 = vrot.slane %v2601_v3, 4  ;;  %v6407_v17 = vld [vmem:[#allocation3 + $0x3e0] sm:$0xf0] }
 0x246   : > { %v8941_v41 = vadd.f32 %v5317_v24, %v5269_v6  ;;  %v2277_v5 = vld [vmem:[#allocation2 + $0xe8] sm:$0x11]  ;;  %v7171_v6 = vld [vmem:[#allocation3 + $0x314] sm:$0xf]  ;;  %v2602_v15 = vsel %vm8077_vm6, %v5914_v0, %v2601_v3  ;;  %v6410_v33 = vor.u32 %v7188_v28, %v6407_v17 }
 0x247   : > { %v5173_v19 = vpop.f32.mrf.mxu2  ;;  %v5222_v13 = vpop.f32.mrf.mxu3  ;;  %2636 = vst [vmem:[#allocation3 + $0x430] sm:$0xff] %v2602_v15 }
 0x248   : > { %v5174_v61 = vadd.f32 %v5173_v19, %v8762_v44  ;;  %v2466_v44 = vshll.u32 %v2277_v5, 16  ;;  %v6346_v19 = vor.u32 %v7171_v6, %v6343_v7 }
 0x249   : > { %v6477_v21 = vld [vmem:[#allocation3 + $0x428] sm:$0xf]  ;;  %v7206_v30 = vld [vmem:[#allocation3 + $0x42c] sm:$0xf] }
 0x24a   : > { %v5223_v60 = vadd.f32 %v5222_v13, %v5174_v61  ;;  %v2468_v48 = vrot.slane %v2466_v44, 5  ;;  %v6413_v14 = vld [vmem:[#allocation3 + $0x3a0] sm:$0xf] }
 0x24b   : > { %v5271_v43 = vpop.f32.mrf.mxu0  ;;  %v5320_v63 = vpop.f32.mrf.mxu1 }
 0x24c   : > { %v5272_v46 = vadd.f32 %v5271_v43, %v5223_v60  ;;  %v2469_v51 = vsel %vm8051_vm2, %v2464_v11, %v2468_v48  ;;  %v6405_v43 = vld [vmem:[#allocation3 + $0x398] sm:$0xf]  ;;  %v7198_v44 = vld [vmem:[#allocation3 + $0x3e4] sm:$0xf0] }
 0x24d   : > { %2501 = vst [vmem:[#allocation3 + $0x470] sm:$0xff] %v2469_v51 }
 0x24e   : > { %5466 = vmatmul.bf16.gmra.mxu0 %v6270_v37  ;;  %5515 = vmatmul.bf16.gmra.mxu1 %v6274_v1  ;;  %v8950_v24 = vadd.f32 %v5320_v63, %v5272_v46  ;;  %v7197_v63 = vld [vmem:[#allocation3 + $0x3dc] sm:$0xf0] }
 0x24f   : > { %v5175_v45 = vpop.f32.mrf.mxu2  ;;  %v5224_v16 = vpop.f32.mrf.mxu3  ;;  %v6406_v46 = vor.u32 %v7197_v63, %v6405_v43 }
 0x250   : > { %v5176_v62 = vadd.f32 %v5175_v45, %v8786_v22  ;;  %v2525_v22 = vld [vmem:[#allocation2 + $0xe8] sm:$0x11]  ;;  %v7189_v45 = vld [vmem:[#allocation3 + $0x3a4] sm:$0xf] }
 0x251   : > { %v2604_v20 = vrot.slane %v2525_v22, 5 }
 0x252   : > { %v5225_v34 = vadd.f32 %v5224_v16, %v5176_v62  ;;  %v6415_v16 = vld [vmem:[#allocation3 + $0x3e8] sm:$0xf0] }
 0x253   : > { %v5273_v53 = vpop.f32.mrf.mxu0  ;;  %v5322_v26 = vpop.f32.mrf.mxu1  ;;  %v2605_v13 = vsel %vm8077_vm6, %v2603_v12, %v2604_v20 }
 0x254   : > { %5373 = vmatmul.bf16.gmra.mxu2 %v6334_v40  ;;  %5422 = vmatmul.bf16.gmra.mxu3 %v6338_v10  ;;  %v5274_v54 = vadd.f32 %v5273_v53, %v5225_v34  ;;  %2637 = vst [vmem:[#allocation3 + $0x478] sm:$0xff] %v2605_v13  ;;  %v6414_v10 = vor.u32 %v7198_v44, %v6413_v14  ;;  %v7215_v3 = vld [vmem:[#allocation3 + $0x46c] sm:$0xf0]  ;;  %v6479_v6 = vld [vmem:[#allocation3 + $0x470] sm:$0xf0] }
 0x255   : > { %v6418_v53 = vor.u32 %v7189_v45, %v6415_v16  ;;  %v6478_v0 = vor.u32 %v7215_v3, %v6477_v21  ;;  %v6482_v12 = vor.u32 %v7206_v30, %v6479_v6 }
 0x256   : > { %v8955_v2 = vadd.f32 %v5322_v26, %v5274_v54 }
 0x257   : > { %v5178_v49 = vpop.f32.mrf.mxu2  ;;  %v5227_v25 = vpop.f32.mrf.mxu3 }
 0x258   : > { %v5179_v37 = vadd.f32 %v5178_v49, %v8805_v38  ;;  %v6485_v49 = vld [vmem:[#allocation3 + $0x430] sm:$0xf] }
 0x25a   : > { %v5228_v18 = vadd.f32 %v5227_v25, %v5179_v37 }
 0x25b   : > { %v5276_v1 = vpop.f32.mrf.mxu0  ;;  %v5325_v8 = vpop.f32.mrf.mxu1  ;;  %v6487_v13 = vld [vmem:[#allocation3 + $0x478] sm:$0xf0] }
 0x25c   : > { %v5277_v61 = vadd.f32 %v5276_v1, %v5228_v18 }
 0x25e   : > { %5471 = vmatmul.bf16.gmra.mxu0 %v6342_v9  ;;  %5520 = vmatmul.bf16.gmra.mxu1 %v6346_v19  ;;  %v8962_v60 = vadd.f32 %v5325_v8, %v5277_v61  ;;  %v7216_v9 = vld [vmem:[#allocation3 + $0x474] sm:$0xf0]  ;;  %v7207_v19 = vld [vmem:[#allocation3 + $0x434] sm:$0xf] }
 0x25f   : > { %v5180_v27 = vpop.f32.mrf.mxu2  ;;  %v5229_v59 = vpop.f32.mrf.mxu3  ;;  %v6486_v18 = vor.u32 %v7216_v9, %v6485_v49  ;;  %v6490_v61 = vor.u32 %v7207_v19, %v6487_v13 }
 0x260   : > { %v5181_v56 = vadd.f32 %v5180_v27, %v8817_v32 }
 0x262   : > { %v5230_v55 = vadd.f32 %v5229_v59, %v5181_v56 }
 0x263   : > { %v5278_v38 = vpop.f32.mrf.mxu0  ;;  %v5327_v5 = vpop.f32.mrf.mxu1 }
 0x264   : > { %5378 = vmatmul.bf16.gmra.mxu2 %v6406_v46  ;;  %5427 = vmatmul.bf16.gmra.mxu3 %v6410_v33  ;;  %v5279_v11 = vadd.f32 %v5278_v38, %v5230_v55 }
 0x266   : > { %v8965_v48 = vadd.f32 %v5327_v5, %v5279_v11 }
 0x267   : > { %v5183_v62 = vpop.f32.mrf.mxu2  ;;  %v5232_v40 = vpop.f32.mrf.mxu3 }
 0x268   : > { %v5184_v32 = vadd.f32 %v5183_v62, %v8828_v58 }
 0x26a   : > { %v5233_v31 = vadd.f32 %v5232_v40, %v5184_v32 }
 0x26b   : > { %v5281_v26 = vpop.f32.mrf.mxu0  ;;  %v5330_v51 = vpop.f32.mrf.mxu1 }
 0x26c   : > { %v5282_v34 = vadd.f32 %v5281_v26, %v5233_v31 }
 0x26e   : > { %5476 = vmatmul.bf16.gmra.mxu0 %v6414_v10  ;;  %5525 = vmatmul.bf16.gmra.mxu1 %v6418_v53  ;;  %v8968_v52 = vadd.f32 %v5330_v51, %v5282_v34 }
 0x26f   : > { %v5185_v54 = vpop.f32.mrf.mxu2  ;;  %v5234_v7 = vpop.f32.mrf.mxu3 }
 0x270   : > { %v5186_v22 = vadd.f32 %v5185_v54, %v8838_v42 }
 0x272   : > { %v5235_v15 = vadd.f32 %v5234_v7, %v5186_v22 }
 0x273   : > { %v5283_v20 = vpop.f32.mrf.mxu0  ;;  %v5332_v58 = vpop.f32.mrf.mxu1 }
 0x274   : > { %5383 = vmatmul.bf16.gmra.mxu2 %v6478_v0  ;;  %5432 = vmatmul.bf16.gmra.mxu3 %v6482_v12  ;;  %v5284_v25 = vadd.f32 %v5283_v20, %v5235_v15 }
 0x276   : > { %v8971_v37 = vadd.f32 %v5332_v58, %v5284_v25 }
 0x277   : > { %v5188_v1 = vpop.f32.mrf.mxu2  ;;  %v5237_v8 = vpop.f32.mrf.mxu3 }
 0x278   : > { %v5189_v42 = vadd.f32 %v5188_v1, %v8849_v4 }
 0x27a   : > { %v5238_v28 = vadd.f32 %v5237_v8, %v5189_v42 }
 0x27b   : > { %v5286_v43 = vpop.f32.mrf.mxu0  ;;  %v5335_v63 = vpop.f32.mrf.mxu1 }
 0x27c   : > { %v5287_v17 = vadd.f32 %v5286_v43, %v5238_v28 }
 0x27e   : > { %5481 = vmatmul.bf16.gmra.mxu0 %v6486_v18  ;;  %5530 = vmatmul.bf16.gmra.mxu1 %v6490_v61  ;;  %v8974_v27 = vadd.f32 %v5335_v63, %v5287_v17 }
 0x27f   : > { %v5190_v59 = vpop.f32.mrf.mxu2  ;;  %v5239_v56 = vpop.f32.mrf.mxu3 }
 0x280   : > { %v5191_v46 = vadd.f32 %v5190_v59, %v8857_v57  ;;  %v8983_v57 = vld [vmem:[%s9073_s7] ss:$0 sm:$0xff] }
 0x282   : > { %v5240_v5 = vadd.f32 %v5239_v56, %v5191_v46 }
 0x283   : > { %v5288_v33 = vpop.f32.mrf.mxu0  ;;  %v5337_v38 = vpop.f32.mrf.mxu1 }
 0x284   : > { %v5289_v55 = vadd.f32 %v5288_v33, %v5240_v5 }
 0x286   : > { %v8977_v14 = vadd.f32 %v5337_v38, %v5289_v55 }
 0x287   : > { %v5349_v11 = vpop.f32.mrf.mxu2  ;;  %v5398_v4 = vpop.f32.mrf.mxu3 }
 0x288   : > { %v5350_v44 = vadd.f32 %v5349_v11, %v8868_v47  ;;  %v8990_v47 = vld [vmem:[%s9074_s8] ss:$0 sm:$0xff] }
 0x28a   : > { %v5399_v62 = vadd.f32 %v5398_v4, %v5350_v44 }
 0x28b   : > { %v5447_v45 = vpop.f32.mrf.mxu0  ;;  %v5496_v16 = vpop.f32.mrf.mxu1 }
 0x28c   : > { %v5448_v40 = vadd.f32 %v5447_v45, %v5399_v62 }
 0x28e   : > { %v5497_v32 = vadd.f32 %v5496_v16, %v5448_v40 }
 0x28f   : > { %v5351_v10 = vpop.f32.mrf.mxu2  ;;  %v5400_v53 = vpop.f32.mrf.mxu3 }
 0x290   : > { %v5352_v26 = vadd.f32 %v5351_v10, %v8876_v35  ;;  %v5540_v21 = vmul.f32 %v8983_v57, %v5497_v32 }
 0x292   : > { %v5401_v34 = vadd.f32 %v5400_v53, %v5352_v26  ;;  %v5560_v7 = vadd.f32 %v8990_v47, %v5540_v21 }
 0x293   : > { %v5449_v51 = vpop.f32.mrf.mxu0  ;;  %v5498_v31 = vpop.f32.mrf.mxu1 }
 0x294   : > { %v5450_v3 = vadd.f32 %v5449_v51, %v5401_v34  ;;  %v5576_v15 = vmax.f32 %v5560_v7, 0.0 }
 0x296   : > { %v5499_v30 = vadd.f32 %v5498_v31, %v5450_v3 }
 0x297   : > { %v5354_v6 = vpop.f32.mrf.mxu2  ;;  %v5403_v54 = vpop.f32.mrf.mxu3 }
 0x298   : > { %v5541_v22 = vmul.f32 %v8983_v57, %v5499_v30  ;;  %v5355_v35 = vadd.f32 %v5354_v6, %v8887_v29 }
 0x29a   : > { %v5561_v20 = vadd.f32 %v8990_v47, %v5541_v22  ;;  %v5404_v58 = vadd.f32 %v5403_v54, %v5355_v35 }
 0x29b   : > { %v5452_v0 = vpop.f32.mrf.mxu0  ;;  %v5501_v12 = vpop.f32.mrf.mxu1 }
 0x29c   : > { %v5577_v49 = vmax.f32 %v5561_v20, 0.0  ;;  %v5453_v25 = vadd.f32 %v5452_v0, %v5404_v58 }
 0x29e   : > { %v7380_v9 = vpack.c.bf16 %v5577_v49, %v5576_v15  ;;  %v5502_v1 = vadd.f32 %v5501_v12, %v5453_v25 }
 0x29f   : > { %v5356_v19 = vpop.f32.mrf.mxu2  ;;  %v5405_v13 = vpop.f32.mrf.mxu3 }
 0x2a0   : > { %7381 = vst [vmem:[%s9000_s29] sm:$0xff] %v7380_v9   ;;  %v5357_v29 = vadd.f32 %v5356_v19, %v8895_v39  ;;  %v5542_v42 = vmul.f32 %v8983_v57, %v5502_v1 }
 0x2a2   : > { %v5406_v61 = vadd.f32 %v5405_v13, %v5357_v29  ;;  %v5562_v59 = vadd.f32 %v8990_v47, %v5542_v42 }
 0x2a3   : > { %v5454_v8 = vpop.f32.mrf.mxu0  ;;  %v5503_v18 = vpop.f32.mrf.mxu1 }
 0x2a4   : > { %v5455_v43 = vadd.f32 %v5454_v8, %v5406_v61  ;;  %v5578_v55 = vmax.f32 %v5562_v59, 0.0 }
 0x2a6   : > { %v5504_v63 = vadd.f32 %v5503_v18, %v5455_v43 }
 0x2a7   : > { %v5359_v28 = vpop.f32.mrf.mxu2  ;;  %v5408_v17 = vpop.f32.mrf.mxu3 }
 0x2a8   : > { %v5543_v56 = vmul.f32 %v8983_v57, %v5504_v63  ;;  %v5360_v46 = vadd.f32 %v5359_v28, %v8906_v23 }
 0x2aa   : > { %v5563_v39 = vadd.f32 %v8990_v47, %v5543_v56  ;;  %v5409_v5 = vadd.f32 %v5408_v17, %v5360_v46 }
 0x2ab   : > { %v5457_v33 = vpop.f32.mrf.mxu0  ;;  %v5506_v38 = vpop.f32.mrf.mxu1 }
 0x2ac   : > { %v5579_v11 = vmax.f32 %v5563_v39, 0.0  ;;  %v5458_v4 = vadd.f32 %v5457_v33, %v5409_v5 }
 0x2ae   : > { %v7385_v44 = vpack.c.bf16 %v5579_v11, %v5578_v55  ;;  %v5507_v62 = vadd.f32 %v5506_v38, %v5458_v4 }
 0x2af   : > { %v5361_v45 = vpop.f32.mrf.mxu2  ;;  %v5410_v16 = vpop.f32.mrf.mxu3 }
 0x2b0   : > { %7417 = vst [vmem:[%s9000_s29 + $0x8] sm:$0xff] %v7385_v44   ;;  %v5362_v40 = vadd.f32 %v5361_v45, %v8914_v36  ;;  %v5544_v23 = vmul.f32 %v8983_v57, %v5507_v62 }
 0x2b2   : > { %v5411_v32 = vadd.f32 %v5410_v16, %v5362_v40  ;;  %v5564_v21 = vadd.f32 %v8990_v47, %v5544_v23 }
 0x2b3   : > { %v5459_v10 = vpop.f32.mrf.mxu0  ;;  %v5508_v53 = vpop.f32.mrf.mxu1 }
 0x2b4   : > { %v5460_v26 = vadd.f32 %v5459_v10, %v5411_v32  ;;  %v5580_v22 = vmax.f32 %v5564_v21, 0.0 }
 0x2b6   : > { %v5509_v51 = vadd.f32 %v5508_v53, %v5460_v26 }
 0x2b7   : > { %v5364_v31 = vpop.f32.mrf.mxu2  ;;  %v5413_v34 = vpop.f32.mrf.mxu3 }
 0x2b8   : > { %v5545_v3 = vmul.f32 %v8983_v57, %v5509_v51  ;;  %v5365_v30 = vadd.f32 %v5364_v31, %v8929_v50 }
 0x2ba   : > { %v5565_v36 = vadd.f32 %v8990_v47, %v5545_v3  ;;  %v5414_v7 = vadd.f32 %v5413_v34, %v5365_v30 }
 0x2bb   : > { %v5462_v6 = vpop.f32.mrf.mxu0  ;;  %v5511_v54 = vpop.f32.mrf.mxu1 }
 0x2bc   : > { %v5581_v35 = vmax.f32 %v5565_v36, 0.0  ;;  %v5463_v0 = vadd.f32 %v5462_v6, %v5414_v7 }
 0x2be   : > { %v7390_v12 = vpack.c.bf16 %v5581_v35, %v5580_v22  ;;  %v5512_v15 = vadd.f32 %v5511_v54, %v5463_v0 }
 0x2bf   : > { %v5366_v20 = vpop.f32.mrf.mxu2  ;;  %v5415_v58 = vpop.f32.mrf.mxu3 }
 0x2c0   : > { %7418 = vst [vmem:[%s9000_s29 + $0x10] sm:$0xff] %v7390_v12   ;;  %v5367_v49 = vadd.f32 %v5366_v20, %v8941_v41  ;;  %v5546_v50 = vmul.f32 %v8983_v57, %v5512_v15 }
 0x2c2   : > { %v5416_v19 = vadd.f32 %v5415_v58, %v5367_v49  ;;  %v5566_v18 = vadd.f32 %v8990_v47, %v5546_v50 }
 0x2c3   : > { %v5464_v25 = vpop.f32.mrf.mxu0  ;;  %v5513_v9 = vpop.f32.mrf.mxu1 }
 0x2c4   : > { %v5465_v13 = vadd.f32 %v5464_v25, %v5416_v19  ;;  %v5582_v17 = vmax.f32 %v5566_v18, 0.0 }
 0x2c6   : > { %v5514_v1 = vadd.f32 %v5513_v9, %v5465_v13 }
 0x2c7   : > { %v5369_v29 = vpop.f32.mrf.mxu2  ;;  %v5418_v8 = vpop.f32.mrf.mxu3 }
 0x2c8   : > { %v5547_v61 = vmul.f32 %v8983_v57, %v5514_v1  ;;  %v5370_v42 = vadd.f32 %v5369_v29, %v8950_v24 }
 0x2ca   : > { %v5567_v41 = vadd.f32 %v8990_v47, %v5547_v61  ;;  %v5419_v28 = vadd.f32 %v5418_v8, %v5370_v42 }
 0x2cb   : > { %v5467_v43 = vpop.f32.mrf.mxu0  ;;  %v5516_v63 = vpop.f32.mrf.mxu1 }
 0x2cc   : > { %v5583_v59 = vmax.f32 %v5567_v41, 0.0  ;;  %v5468_v56 = vadd.f32 %v5467_v43, %v5419_v28 }
 0x2ce   : > { %v7395_v46 = vpack.c.bf16 %v5583_v59, %v5582_v17  ;;  %v5517_v39 = vadd.f32 %v5516_v63, %v5468_v56 }
 0x2cf   : > { %v5371_v33 = vpop.f32.mrf.mxu2  ;;  %v5420_v38 = vpop.f32.mrf.mxu3 }
 0x2d0   : > { %7419 = vst [vmem:[%s9000_s29 + $0x18] sm:$0xff] %v7395_v46   ;;  %v5372_v5 = vadd.f32 %v5371_v33, %v8955_v2  ;;  %v5548_v24 = vmul.f32 %v8983_v57, %v5517_v39 }
 0x2d2   : > { %v5421_v4 = vadd.f32 %v5420_v38, %v5372_v5  ;;  %v5568_v40 = vadd.f32 %v8990_v47, %v5548_v24 }
 0x2d3   : > { %v5469_v55 = vpop.f32.mrf.mxu0  ;;  %v5518_v11 = vpop.f32.mrf.mxu1 }
 0x2d4   : > { %v5470_v44 = vadd.f32 %v5469_v55, %v5421_v4  ;;  %v5584_v51 = vmax.f32 %v5568_v40, 0.0 }
 0x2d6   : > { %v5519_v45 = vadd.f32 %v5518_v11, %v5470_v44 }
 0x2d7   : > { %v5374_v16 = vpop.f32.mrf.mxu2  ;;  %v5423_v62 = vpop.f32.mrf.mxu3 }
 0x2d8   : > { %v5549_v10 = vmul.f32 %v8983_v57, %v5519_v45  ;;  %v5375_v53 = vadd.f32 %v5374_v16, %v8962_v60 }
 0x2da   : > { %v5569_v2 = vadd.f32 %v8990_v47, %v5549_v10  ;;  %v5424_v26 = vadd.f32 %v5423_v62, %v5375_v53 }
 0x2db   : > { %v5472_v32 = vpop.f32.mrf.mxu0  ;;  %v5521_v23 = vpop.f32.mrf.mxu1 }
 0x2dc   : > { %v5585_v31 = vmax.f32 %v5569_v2, 0.0  ;;  %v5473_v34 = vadd.f32 %v5472_v32, %v5424_v26 }
 0x2de   : > { %v7400_v21 = vpack.c.bf16 %v5585_v31, %v5584_v51  ;;  %v5522_v6 = vadd.f32 %v5521_v23, %v5473_v34 }
 0x2df   : > { %v5376_v3 = vpop.f32.mrf.mxu2  ;;  %v5425_v30 = vpop.f32.mrf.mxu3 }
 0x2e0   : > { %7420 = vst [vmem:[%s9000_s29 + $0x20] sm:$0xff] %v7400_v21   ;;  %v5377_v54 = vadd.f32 %v5376_v3, %v8965_v48  ;;  %v5550_v60 = vmul.f32 %v8983_v57, %v5522_v6 }
 0x2e2   : > { %v5426_v22 = vadd.f32 %v5425_v30, %v5377_v54  ;;  %v5570_v58 = vadd.f32 %v8990_v47, %v5550_v60 }
 0x2e3   : > { %v5474_v36 = vpop.f32.mrf.mxu0  ;;  %v5523_v7 = vpop.f32.mrf.mxu1 }
 0x2e4   : > { %v5475_v35 = vadd.f32 %v5474_v36, %v5426_v22  ;;  %v5586_v50 = vmax.f32 %v5570_v58, 0.0 }
 0x2e6   : > { %v5524_v0 = vadd.f32 %v5523_v7, %v5475_v35 }
 0x2e7   : > { %v5379_v12 = vpop.f32.mrf.mxu2  ;;  %v5428_v20 = vpop.f32.mrf.mxu3 }
 0x2e8   : > { %v5551_v15 = vmul.f32 %v8983_v57, %v5524_v0  ;;  %v5380_v49 = vadd.f32 %v5379_v12, %v8968_v52 }
 0x2ea   : > { %v5571_v48 = vadd.f32 %v8990_v47, %v5551_v15  ;;  %v5429_v19 = vadd.f32 %v5428_v20, %v5380_v49 }
 0x2eb   : > { %v5477_v25 = vpop.f32.mrf.mxu0  ;;  %v5526_v9 = vpop.f32.mrf.mxu1 }
 0x2ec   : > { %v5587_v13 = vmax.f32 %v5571_v48, 0.0  ;;  %v5478_v1 = vadd.f32 %v5477_v25, %v5429_v19 }
 0x2ee   : > { %v7405_v29 = vpack.c.bf16 %v5587_v13, %v5586_v50  ;;  %v5527_v61 = vadd.f32 %v5526_v9, %v5478_v1 }
 0x2ef   : > { %v5381_v8 = vpop.f32.mrf.mxu2  ;;  %v5430_v18 = vpop.f32.mrf.mxu3 }
 0x2f0   : > { %7421 = vst [vmem:[%s9000_s29 + $0x28] sm:$0xff] %v7405_v29   ;;  %v5382_v42 = vadd.f32 %v5381_v8, %v8971_v37  ;;  %v5552_v52 = vmul.f32 %v8983_v57, %v5527_v61 }
 0x2f2   : > { %v5431_v41 = vadd.f32 %v5430_v18, %v5382_v42  ;;  %v5572_v46 = vadd.f32 %v8990_v47, %v5552_v52 }
 0x2f3   : > { %v5479_v43 = vpop.f32.mrf.mxu0  ;;  %v5528_v63 = vpop.f32.mrf.mxu1 }
 0x2f4   : > { %v5480_v28 = vadd.f32 %v5479_v43, %v5431_v41  ;;  %v5588_v11 = vmax.f32 %v5572_v46, 0.0 }
 0x2f6   : > { %v5529_v17 = vadd.f32 %v5528_v63, %v5480_v28 }
 0x2f7   : > { %v5384_v59 = vpop.f32.mrf.mxu2  ;;  %v5433_v56 = vpop.f32.mrf.mxu3 }
 0x2f8   : > { %v5553_v33 = vmul.f32 %v8983_v57, %v5529_v17  ;;  %v5385_v38 = vadd.f32 %v5384_v59, %v8974_v27 }
 0x2fa   : > { %v5573_v5 = vadd.f32 %v8990_v47, %v5553_v33  ;;  %v5434_v37 = vadd.f32 %v5433_v56, %v5385_v38 }
 0x2fb   : > { %v5482_v39 = vpop.f32.mrf.mxu0  ;;  %v5531_v55 = vpop.f32.mrf.mxu1 }
 0x2fc   : > { %v5589_v4 = vmax.f32 %v5573_v5, 0.0  ;;  %v5483_v24 = vadd.f32 %v5482_v39, %v5434_v37 }
 0x2fe   : > { %v7410_v44 = vpack.c.bf16 %v5589_v4, %v5588_v11  ;;  %v5532_v16 = vadd.f32 %v5531_v55, %v5483_v24 }
 0x2ff   : > { %v5386_v45 = vpop.f32.mrf.mxu2  ;;  %v5435_v40 = vpop.f32.mrf.mxu3 }
 0x300   : > { %7422 = vst [vmem:[%s9000_s29 + $0x30] sm:$0xff] %v7410_v44   ;;  %v5387_v62 = vadd.f32 %v5386_v45, %v8977_v14  ;;  %v5554_v27 = vmul.f32 %v8983_v57, %v5532_v16 }
 0x302   : > { %v5436_v53 = vadd.f32 %v5435_v40, %v5387_v62  ;;  %v5574_v26 = vadd.f32 %v8990_v47, %v5554_v27 }
 0x303   : > { %v5484_v10 = vpop.f32.mrf.mxu0  ;;  %v5533_v23 = vpop.f32.mrf.mxu1 }
 0x304   : > { %v5485_v32 = vadd.f32 %v5484_v10, %v5436_v53  ;;  %v5590_v34 = vmax.f32 %v5574_v26, 0.0 }
 0x306   : > { %v5534_v2 = vadd.f32 %v5533_v23, %v5485_v32 }
 0x308   : > { %v5555_v51 = vmul.f32 %v8983_v57, %v5534_v2 }
 0x30a   : > { %v5575_v31 = vadd.f32 %v8990_v47, %v5555_v51 }
 0x30c   : > { %v5591_v21 = vmax.f32 %v5575_v31, 0.0 }
 0x30e   : > { %v7415_v3 = vpack.c.bf16 %v5591_v21, %v5590_v34 }
 0x310   : > { %7423 = vst [vmem:[%s9000_s29 + $0x38] sm:$0xff] %v7415_v3  }
 0x311 PF: > { %s19_s13 = sadd.s32 1, %s7520_s13   ;;  %s9095_s30 = smov %s7512_s11 }
 0x312   : > { %p16_p0 = scmp.ge.s32.totalorder %s19_s13, 6   ;;  %s9096_s10 = smov %s7516_s12 }
 0x313   : > { %s9097_s11 = smov %s9100_s14  ;;  %s9098_s12 = smov %s9104_s15 }
 0x314   :  { %18 = sbr.rel (!%p16_p0) target bundleno = 4 (0x4), region = 104 }

</bundles_post_ra>
